<compile_context>
chip_gen: v7x
topology: tpu7x:2x2x1
jax: 0.10.0
libtpu: 0.0.40
codegen_flags: <defaults>
</compile_context>

<pallas_src>
import functools

import jax
import jax.numpy as jnp
from jax.experimental import pallas as pl
from jax.experimental.pallas import tpu as pltpu

FEATURES = 16          # latent features (mu / log_var each of size 16)
IN_DIM = 3072          # 3*32*32 flattened input
HID = 128
TB = 128               # batch rows per grid step (MXU height)


def vae_kernel(x_ref, eps_ref,
               w1_ref, b1_ref, w2_ref, b2_ref,
               w3_ref, b3_ref, w4_ref, b4_ref,
               recon_ref, mulv_ref):
    # ---- encoder ----
    # (TB, 3072) @ (3072, 128): bf16 operands, f32 accumulation on the MXU.
    x16 = x_ref[...].astype(jnp.bfloat16)
    h1 = jnp.dot(x16, w1_ref[...], preferred_element_type=jnp.float32) + b1_ref[...]
    h1 = jnp.maximum(h1, 0.0)                                        # relu, (TB, 128)

    # (TB, 128) @ (128, 32): tiny, keep f32.
    h2 = jnp.dot(h1, w2_ref[...], preferred_element_type=jnp.float32) + b2_ref[...]
    mu = h2[:, :FEATURES]                                            # (TB, 16)
    log_var = h2[:, FEATURES:]                                       # (TB, 16)

    # ---- reparameterize: z = mu + eps * exp(0.5 * log_var) ----
    z = mu + eps_ref[...] * jnp.exp(0.5 * log_var)                   # (TB, 16)

    # ---- decoder ----
    # (TB, 16) @ (16, 128): padded-K matmul, tiny; leave as-is.
    h3 = jnp.dot(z, w3_ref[...], preferred_element_type=jnp.float32) + b3_ref[...]
    h3 = jnp.maximum(h3, 0.0)                                        # (TB, 128)

    # (TB, 128) @ (128, 3072): bf16 operands, f32 accumulation.
    logits = jnp.dot(h3.astype(jnp.bfloat16), w4_ref[...],
                     preferred_element_type=jnp.float32) + b4_ref[...]

    recon_ref[...] = jax.nn.sigmoid(logits)                          # (TB, 3072)
    # single lane-dense (TB, 32) store; wrapper slices mu / log_var.
    mulv_ref[...] = h2


@functools.partial(jax.jit, static_argnames=("tb",))
def vae_forward(x, eps, params, *, tb=TB):
    w1, b1, w2, b2, w3, b3, w4, b4 = params
    B = x.shape[0]
    # pad the batch up to a multiple of the tile so the grid is uniform
    Bp = pl.cdiv(B, tb) * tb
    if Bp != B:
        x = jnp.pad(x, ((0, Bp - B), (0, 0)))
        eps = jnp.pad(eps, ((0, Bp - B), (0, 0)))

    batch_spec = lambda f: pl.BlockSpec((tb, f), lambda i: (i, 0))   # streamed per step
    resident = lambda shape: pl.BlockSpec(shape, lambda i: (0, 0))   # stays in VMEM

    recon, mulv = pl.pallas_call(
        vae_kernel,
        grid=(Bp // tb,),
        out_shape=(
            jax.ShapeDtypeStruct((Bp, IN_DIM), jnp.float32),         # reconstruction
            jax.ShapeDtypeStruct((Bp, 2 * FEATURES), jnp.float32),   # [mu | log_var]
        ),
        in_specs=[
            batch_spec(IN_DIM),                # x
            batch_spec(FEATURES),              # eps
            resident((IN_DIM, HID)),           # w1 (bf16)
            resident((1, HID)),                # b1
            resident((HID, 2 * FEATURES)),     # w2
            resident((1, 2 * FEATURES)),       # b2
            resident((FEATURES, HID)),         # w3
            resident((1, HID)),                # b3
            resident((HID, IN_DIM)),           # w4 (bf16)
            resident((1, IN_DIM)),             # b4
        ],
        out_specs=(
            batch_spec(IN_DIM),                # recon
            batch_spec(2 * FEATURES),          # mu|log_var
        ),
        compiler_params=pltpu.CompilerParams(
            dimension_semantics=("parallel",),
            vmem_limit_bytes=48 << 20,
        ),
    )(x, eps, w1, b1, w2, b2, w3, b3, w4, b4)

    return recon[:B], mulv[:B, :FEATURES], mulv[:B, FEATURES:]


def init_params(key):
    """Deterministic init mimicking PyTorch Linear default (uniform ±1/sqrt(fan_in)).
    Weights are stored as [in, out] (already transposed for x @ W).
    The two HBM-heavy weights (enc1, dec2) are stored in bfloat16."""
    def linear(key, fan_in, fan_out, wdtype=jnp.float32):
        kw, kb = jax.random.split(key)
        bound = 1.0 / jnp.sqrt(fan_in)
        w = jax.random.uniform(kw, (fan_in, fan_out), jnp.float32, -bound, bound)
        b = jax.random.uniform(kb, (1, fan_out), jnp.float32, -bound, bound)
        return w.astype(wdtype), b

    k1, k2, k3, k4 = jax.random.split(key, 4)
    w1, b1 = linear(k1, IN_DIM, HID, jnp.bfloat16)        # enc1: 3072 -> 128
    w2, b2 = linear(k2, HID, FEATURES * 2)                # enc2: 128  -> 32
    w3, b3 = linear(k3, FEATURES, HID)                    # dec1: 16   -> 128
    w4, b4 = linear(k4, HID, IN_DIM, jnp.bfloat16)        # dec2: 128  -> 3072
    return (w1, b1, w2, b2, w3, b3, w4, b4)


def reference_forward(x, eps, params):
    """Pure-JAX reference using the same bf16 weights / f32 accumulation."""
    w1, b1, w2, b2, w3, b3, w4, b4 = params
    h1 = jnp.dot(x.astype(jnp.bfloat16), w1, preferred_element_type=jnp.float32) + b1
    h1 = jnp.maximum(h1, 0.0)
    h2 = jnp.dot(h1, w2, preferred_element_type=jnp.float32) + b2
    mu = h2[:, :FEATURES]
    log_var = h2[:, FEATURES:]
    z = mu + eps * jnp.exp(0.5 * log_var)
    h3 = jnp.maximum(jnp.dot(z, w3, preferred_element_type=jnp.float32) + b3, 0.0)
    recon = jax.nn.sigmoid(
        jnp.dot(h3.astype(jnp.bfloat16), w4, preferred_element_type=jnp.float32) + b4)
    return recon, mu, log_var


if __name__ == "__main__":
    key = jax.random.PRNGKey(0)
    k_params, k_x, k_eps = jax.random.split(key, 3)

    params = init_params(k_params)

    # --- small deterministic check (B=8, one grid step after padding) ---
    B = 8
    x = jax.random.normal(k_x, (B, IN_DIM), jnp.float32)
    # eps ~ N(0,1) supplied as an input so the kernel is deterministic/reproducible
    eps = jax.random.normal(k_eps, (B, FEATURES), jnp.float32)

    recon, mu, log_var = jax.block_until_ready(vae_forward(x, eps, params))
    r_recon, r_mu, r_logvar = reference_forward(x, eps, params)

    assert recon.shape == (B, IN_DIM)
    assert mu.shape == (B, FEATURES) and log_var.shape == (B, FEATURES)
    assert jnp.allclose(recon, r_recon, atol=1e-3, rtol=1e-3)
    assert jnp.allclose(mu, r_mu, atol=1e-3, rtol=1e-3)
    assert jnp.allclose(log_var, r_logvar, atol=1e-3, rtol=1e-3)

    # --- multi-step grid check (B=256 -> 2 grid steps, resident weights) ---
    B2 = 256
    x2 = jax.random.normal(jax.random.PRNGKey(1), (B2, IN_DIM), jnp.float32)
    eps2 = jax.random.normal(jax.random.PRNGKey(2), (B2, FEATURES), jnp.float32)
    recon2, mu2, logvar2 = jax.block_until_ready(vae_forward(x2, eps2, params))
    r_recon2, r_mu2, r_logvar2 = reference_forward(x2, eps2, params)
    assert jnp.allclose(recon2, r_recon2, atol=1e-3, rtol=1e-3)
    assert jnp.allclose(mu2, r_mu2, atol=1e-3, rtol=1e-3)
    assert jnp.allclose(logvar2, r_logvar2, atol=1e-3, rtol=1e-3)

    print("KERNEL_OK")
</pallas_src>

<mosaic_0001>
module attributes {stable_mosaic.version = 11 : i64} {
  func.func @vae_kernel(%arg0: i32, %arg1: memref<128x3072xf32, #tpu.memory_space<vmem>>, %arg2: memref<128x16xf32, #tpu.memory_space<vmem>>, %arg3: memref<3072x128xbf16, #tpu.memory_space<vmem>>, %arg4: memref<1x128xf32, #tpu.memory_space<vmem>>, %arg5: memref<128x32xf32, #tpu.memory_space<vmem>>, %arg6: memref<1x32xf32, #tpu.memory_space<vmem>>, %arg7: memref<16x128xf32, #tpu.memory_space<vmem>>, %arg8: memref<1x128xf32, #tpu.memory_space<vmem>>, %arg9: memref<128x3072xbf16, #tpu.memory_space<vmem>>, %arg10: memref<1x3072xf32, #tpu.memory_space<vmem>>, %arg11: memref<128x3072xf32, #tpu.memory_space<vmem>>, %arg12: memref<128x32xf32, #tpu.memory_space<vmem>>) attributes {dimension_semantics = [#tpu.dimension_semantics<parallel>], iteration_bounds = array<i64: 1>, scalar_prefetch = 0 : i64, scratch_operands = 0 : i64, tpu.core_type = #tpu.core_type<tc>, window_params = [{transform_indices = @transform_0, window_bounds = array<i64: 128, 3072>}, {transform_indices = @transform_1, window_bounds = array<i64: 128, 16>}, {pipeline_mode = #tpu.pipeline_mode<synchronous>, transform_indices = @transform_2, window_bounds = array<i64: 3072, 128>}, {pipeline_mode = #tpu.pipeline_mode<synchronous>, transform_indices = @transform_3, window_bounds = array<i64: 1, 128>}, {pipeline_mode = #tpu.pipeline_mode<synchronous>, transform_indices = @transform_4, window_bounds = array<i64: 128, 32>}, {pipeline_mode = #tpu.pipeline_mode<synchronous>, transform_indices = @transform_5, window_bounds = array<i64: 1, 32>}, {pipeline_mode = #tpu.pipeline_mode<synchronous>, transform_indices = @transform_6, window_bounds = array<i64: 16, 128>}, {pipeline_mode = #tpu.pipeline_mode<synchronous>, transform_indices = @transform_7, window_bounds = array<i64: 1, 128>}, {pipeline_mode = #tpu.pipeline_mode<synchronous>, transform_indices = @transform_8, window_bounds = array<i64: 128, 3072>}, {pipeline_mode = #tpu.pipeline_mode<synchronous>, transform_indices = @transform_9, window_bounds = array<i64: 1, 3072>}, {transform_indices = @transform_10, window_bounds = array<i64: 128, 3072>}, {transform_indices = @transform_11, window_bounds = array<i64: 128, 32>}]} {
    %c0 = arith.constant 0 : index
    %c0_0 = arith.constant 0 : index
    %0 = vector.load %arg1[%c0, %c0_0] : memref<128x3072xf32, #tpu.memory_space<vmem>>, vector<128x3072xf32>
    %1 = arith.truncf %0 : vector<128x3072xf32> to vector<128x3072xbf16>
    %c0_1 = arith.constant 0 : index
    %c0_2 = arith.constant 0 : index
    %2 = vector.load %arg3[%c0_1, %c0_2] : memref<3072x128xbf16, #tpu.memory_space<vmem>>, vector<3072x128xbf16>
    %cst = arith.constant dense<0.000000e+00> : vector<128x128xf32>
    %3 = tpu.matmul %1, %2, %cst {dimension_numbers = #tpu.dot_dimension_numbers<[1], [0], [0], [1], [0, 0, 1, 1], [], []>} : vector<128x3072xbf16>, vector<3072x128xbf16>, vector<128x128xf32> -> vector<128x128xf32>
    %c0_3 = arith.constant 0 : index
    %c0_4 = arith.constant 0 : index
    %4 = vector.load %arg4[%c0_3, %c0_4] : memref<1x128xf32, #tpu.memory_space<vmem>>, vector<1x128xf32>
    %5 = vector.broadcast %4 : vector<1x128xf32> to vector<128x128xf32>
    %6 = arith.addf %3, %5 : vector<128x128xf32>
    %cst_5 = arith.constant 0.000000e+00 : f32
    %7 = vector.broadcast %cst_5 : f32 to vector<128x128xf32>
    %8 = arith.maximumf %6, %7 : vector<128x128xf32>
    %c0_6 = arith.constant 0 : index
    %c0_7 = arith.constant 0 : index
    %9 = vector.load %arg5[%c0_6, %c0_7] : memref<128x32xf32, #tpu.memory_space<vmem>>, vector<128x32xf32>
    %cst_8 = arith.constant dense<0.000000e+00> : vector<128x32xf32>
    %10 = tpu.matmul %8, %9, %cst_8 {dimension_numbers = #tpu.dot_dimension_numbers<[1], [0], [0], [1], [0, 0, 1, 1], [], []>} : vector<128x128xf32>, vector<128x32xf32>, vector<128x32xf32> -> vector<128x32xf32>
    %c0_9 = arith.constant 0 : index
    %c0_10 = arith.constant 0 : index
    %11 = vector.load %arg6[%c0_9, %c0_10] : memref<1x32xf32, #tpu.memory_space<vmem>>, vector<1x32xf32>
    %12 = vector.broadcast %11 : vector<1x32xf32> to vector<128x32xf32>
    %13 = arith.addf %10, %12 : vector<128x32xf32>
    %14 = vector.extract_strided_slice %13 {offsets = [0, 0], sizes = [128, 16], strides = [1, 1]} : vector<128x32xf32> to vector<128x16xf32>
    %15 = vector.extract_strided_slice %13 {offsets = [0, 16], sizes = [128, 16], strides = [1, 1]} : vector<128x32xf32> to vector<128x16xf32>
    %c0_11 = arith.constant 0 : index
    %c0_12 = arith.constant 0 : index
    %16 = vector.load %arg2[%c0_11, %c0_12] : memref<128x16xf32, #tpu.memory_space<vmem>>, vector<128x16xf32>
    %cst_13 = arith.constant 5.000000e-01 : f32
    %17 = vector.broadcast %cst_13 : f32 to vector<128x16xf32>
    %18 = arith.mulf %17, %15 : vector<128x16xf32>
    %19 = math.exp %18 : vector<128x16xf32>
    %20 = arith.mulf %16, %19 : vector<128x16xf32>
    %21 = arith.addf %14, %20 : vector<128x16xf32>
    %c0_14 = arith.constant 0 : index
    %c0_15 = arith.constant 0 : index
    %22 = vector.load %arg7[%c0_14, %c0_15] : memref<16x128xf32, #tpu.memory_space<vmem>>, vector<16x128xf32>
    %cst_16 = arith.constant dense<0.000000e+00> : vector<128x128xf32>
    %23 = tpu.matmul %21, %22, %cst_16 {dimension_numbers = #tpu.dot_dimension_numbers<[1], [0], [0], [1], [0, 0, 1, 1], [], []>} : vector<128x16xf32>, vector<16x128xf32>, vector<128x128xf32> -> vector<128x128xf32>
    %c0_17 = arith.constant 0 : index
    %c0_18 = arith.constant 0 : index
    %24 = vector.load %arg8[%c0_17, %c0_18] : memref<1x128xf32, #tpu.memory_space<vmem>>, vector<1x128xf32>
    %25 = vector.broadcast %24 : vector<1x128xf32> to vector<128x128xf32>
    %26 = arith.addf %23, %25 : vector<128x128xf32>
    %cst_19 = arith.constant 0.000000e+00 : f32
    %27 = vector.broadcast %cst_19 : f32 to vector<128x128xf32>
    %28 = arith.maximumf %26, %27 : vector<128x128xf32>
    %29 = arith.truncf %28 : vector<128x128xf32> to vector<128x128xbf16>
    %c0_20 = arith.constant 0 : index
    %c0_21 = arith.constant 0 : index
    %30 = vector.load %arg9[%c0_20, %c0_21] : memref<128x3072xbf16, #tpu.memory_space<vmem>>, vector<128x3072xbf16>
    %cst_22 = arith.constant dense<0.000000e+00> : vector<128x3072xf32>
    %31 = tpu.matmul %29, %30, %cst_22 {dimension_numbers = #tpu.dot_dimension_numbers<[1], [0], [0], [1], [0, 0, 1, 1], [], []>} : vector<128x128xbf16>, vector<128x3072xbf16>, vector<128x3072xf32> -> vector<128x3072xf32>
    %c0_23 = arith.constant 0 : index
    %c0_24 = arith.constant 0 : index
    %32 = vector.load %arg10[%c0_23, %c0_24] : memref<1x3072xf32, #tpu.memory_space<vmem>>, vector<1x3072xf32>
    %33 = vector.broadcast %32 : vector<1x3072xf32> to vector<128x3072xf32>
    %34 = arith.addf %31, %33 : vector<128x3072xf32>
    %35 = arith.negf %34 : vector<128x3072xf32>
    %36 = math.exp %35 : vector<128x3072xf32>
    %cst_25 = arith.constant 1.000000e+00 : f32
    %37 = vector.broadcast %cst_25 : f32 to vector<128x3072xf32>
    %38 = arith.addf %37, %36 : vector<128x3072xf32>
    %39 = arith.divf %37, %38 : vector<128x3072xf32>
    %c0_26 = arith.constant 0 : index
    %c0_27 = arith.constant 0 : index
    %40 = vector.load %arg11[%c0_26, %c0_27] : memref<128x3072xf32, #tpu.memory_space<vmem>>, vector<128x3072xf32>
    tpu.vector_store %arg11[%c0_26, %c0_27], %39 {strides = array<i32>} : memref<128x3072xf32, #tpu.memory_space<vmem>>, vector<128x3072xf32>,
    %c0_28 = arith.constant 0 : index
    %c0_29 = arith.constant 0 : index
    %41 = vector.load %arg12[%c0_28, %c0_29] : memref<128x32xf32, #tpu.memory_space<vmem>>, vector<128x32xf32>
    tpu.vector_store %arg12[%c0_28, %c0_29], %13 {strides = array<i32>} : memref<128x32xf32, #tpu.memory_space<vmem>>, vector<128x32xf32>,
    return
  }
  func.func @transform_0(%arg0: i32) -> (i32, i32) {
    %c0_i32 = arith.constant 0 : i32
    %c0_i32_0 = arith.constant 0 : i32
    return %arg0, %c0_i32 : i32, i32
  }
  func.func @transform_1(%arg0: i32) -> (i32, i32) {
    %c0_i32 = arith.constant 0 : i32
    %c0_i32_0 = arith.constant 0 : i32
    return %arg0, %c0_i32 : i32, i32
  }
  func.func @transform_2(%arg0: i32) -> (i32, i32) {
    %c0_i32 = arith.constant 0 : i32
    %c0_i32_0 = arith.constant 0 : i32
    %c0_i32_1 = arith.constant 0 : i32
    return %c0_i32, %c0_i32_0 : i32, i32
  }
  func.func @transform_3(%arg0: i32) -> (i32, i32) {
    %c0_i32 = arith.constant 0 : i32
    %c0_i32_0 = arith.constant 0 : i32
    %c0_i32_1 = arith.constant 0 : i32
    return %c0_i32, %c0_i32_0 : i32, i32
  }
  func.func @transform_4(%arg0: i32) -> (i32, i32) {
    %c0_i32 = arith.constant 0 : i32
    %c0_i32_0 = arith.constant 0 : i32
    %c0_i32_1 = arith.constant 0 : i32
    return %c0_i32, %c0_i32_0 : i32, i32
  }
  func.func @transform_5(%arg0: i32) -> (i32, i32) {
    %c0_i32 = arith.constant 0 : i32
    %c0_i32_0 = arith.constant 0 : i32
    %c0_i32_1 = arith.constant 0 : i32
    return %c0_i32, %c0_i32_0 : i32, i32
  }
  func.func @transform_6(%arg0: i32) -> (i32, i32) {
    %c0_i32 = arith.constant 0 : i32
    %c0_i32_0 = arith.constant 0 : i32
    %c0_i32_1 = arith.constant 0 : i32
    return %c0_i32, %c0_i32_0 : i32, i32
  }
  func.func @transform_7(%arg0: i32) -> (i32, i32) {
    %c0_i32 = arith.constant 0 : i32
    %c0_i32_0 = arith.constant 0 : i32
    %c0_i32_1 = arith.constant 0 : i32
    return %c0_i32, %c0_i32_0 : i32, i32
  }
  func.func @transform_8(%arg0: i32) -> (i32, i32) {
    %c0_i32 = arith.constant 0 : i32
    %c0_i32_0 = arith.constant 0 : i32
    %c0_i32_1 = arith.constant 0 : i32
    return %c0_i32, %c0_i32_0 : i32, i32
  }
  func.func @transform_9(%arg0: i32) -> (i32, i32) {
    %c0_i32 = arith.constant 0 : i32
    %c0_i32_0 = arith.constant 0 : i32
    %c0_i32_1 = arith.constant 0 : i32
    return %c0_i32, %c0_i32_0 : i32, i32
  }
  func.func @transform_10(%arg0: i32) -> (i32, i32) {
    %c0_i32 = arith.constant 0 : i32
    %c0_i32_0 = arith.constant 0 : i32
    return %arg0, %c0_i32 : i32, i32
  }
  func.func @transform_11(%arg0: i32) -> (i32, i32) {
    %c0_i32 = arith.constant 0 : i32
    %c0_i32_0 = arith.constant 0 : i32
    return %arg0, %c0_i32 : i32, i32
  }
}

</mosaic_0001>

<bundles_post_ra>
// kernel: vae_forward.1
= control target key start
LH: loop header
LB: loop body
LE: loop exit
PB: predicated region body
PF: predicated region fallthrough
CT: control target
= control target key end

     0   :  { %vm9214_vm0 = vcmask 261120   ;;  %s12729_s22 = smov 112   ;;  %vm3674_vm1 = vcmask 130048   ;;  %s18833_s2 = inlined_call_operand.vmem [shape: bf16[3072,128], index: 2, kind: input, shape index: {}]   ;;  %s18834_s0 = inlined_call_operand.vmem [shape: f32[128,3072], index: 0, kind: input, shape index: {}]   ;;  %s18835_s3 = inlined_call_operand.vmem [shape: f32[1,128], index: 3, kind: input, shape index: {}]   ;;  %s18836_s4 = inlined_call_operand.vmem [shape: f32[128,32], index: 4, kind: input, shape index: {}]   ;;  %s18837_s6 = inlined_call_operand.vmem [shape: f32[16,128], index: 6, kind: input, shape index: {}]   ;;  %s18838_s5 = inlined_call_operand.vmem [shape: f32[1,32], index: 5, kind: input, shape index: {}]   ;;  %s18839_s11 = inlined_call_operand.vmem [shape: f32[128,32], index: 11, kind: output, shape index: {1}]   ;;  %s18840_s8 = inlined_call_operand.vmem [shape: bf16[128,3072], index: 8, kind: input, shape index: {}]   ;;  %s18841_s1 = inlined_call_operand.vmem [shape: f32[128,16], index: 1, kind: input, shape index: {}]   ;;  %s18842_s7 = inlined_call_operand.vmem [shape: f32[1,128], index: 7, kind: input, shape index: {}]   ;;  %s18843_s9 = inlined_call_operand.vmem [shape: f32[1,3072], index: 9, kind: input, shape index: {}]   ;;  %s18844_s10 = inlined_call_operand.vmem [shape: f32[128,3072], index: 10, kind: output, shape index: {0}]  }
   0x1   :  { %v10966_v0 = vld [vmem:[%s18833_s2 + $0x40] sm:$0xff]   ;;  %v10970_v4 = vld [vmem:[%s18833_s2 + $0x48] sm:$0xff]   ;;  %v10974_v8 = vld [vmem:[%s18833_s2 + $0x50] sm:$0xff]  }
   0x2   :  { %v10967_v1 = vld [vmem:[%s18833_s2 + $0xc0] sm:$0xff]   ;;  %10026 = vmatprep.subr.bf16.mxu0 %v10966_v0  ;;  %v10971_v5 = vld [vmem:[%s18833_s2 + $0xc8] sm:$0xff]   ;;  %v10975_v9 = vld [vmem:[%s18833_s2 + $0xd0] sm:$0xff]  }
   0x3   :  { %v10968_v2 = vld [vmem:[%s18833_s2] sm:$0xff]   ;;  %10090 = vmatprep.subr.bf16.mxu1 %v10967_v1  ;;  %v10972_v6 = vld [vmem:[%s18833_s2 + $0x8] sm:$0xff]   ;;  %v10976_v10 = vld [vmem:[%s18833_s2 + $0x10] sm:$0xff]  }
   0x4   :  { %v10969_v3 = vld [vmem:[%s18833_s2 + $0x80] sm:$0xff]   ;;  %10027 = vmatpush3.bf16.msra.mxu0 %v10968_v2  ;;  %v10973_v7 = vld [vmem:[%s18833_s2 + $0x88] sm:$0xff]   ;;  %v10977_v11 = vld [vmem:[%s18833_s2 + $0x90] sm:$0xff]  }
   0x5   :  { %10091 = vmatpush3.bf16.msra.mxu1 %v10969_v3  ;;  %10028 = vmatprep.subr.bf16.mxu0 %v10970_v4  ;;  %v10978_v12 = vld [vmem:[%s18833_s2 + $0x58] sm:$0xff]   ;;  %v10982_v16 = vld [vmem:[%s18833_s2 + $0x60] sm:$0xff]   ;;  %v10986_v20 = vld [vmem:[%s18833_s2 + $0x68] sm:$0xff]  }
   0x6   :  { %10092 = vmatprep.subr.bf16.mxu1 %v10971_v5  ;;  %v10979_v13 = vld [vmem:[%s18833_s2 + $0xd8] sm:$0xff]   ;;  %v10983_v17 = vld [vmem:[%s18833_s2 + $0xe0] sm:$0xff]   ;;  %v10987_v21 = vld [vmem:[%s18833_s2 + $0xe8] sm:$0xff]  }
   0x7   :  { %v10980_v14 = vld [vmem:[%s18833_s2 + $0x18] sm:$0xff]   ;;  %v10984_v18 = vld [vmem:[%s18833_s2 + $0x20] sm:$0xff]   ;;  %v10988_v22 = vld [vmem:[%s18833_s2 + $0x28] sm:$0xff]  }
   0x8   :  { %10029 = vmatpush3.bf16.msra.mxu0 %v10972_v6  ;;  %v10981_v15 = vld [vmem:[%s18833_s2 + $0x98] sm:$0xff]   ;;  %v10985_v19 = vld [vmem:[%s18833_s2 + $0xa0] sm:$0xff]   ;;  %v10989_v23 = vld [vmem:[%s18833_s2 + $0xa8] sm:$0xff]  }
   0x9   :  { %10093 = vmatpush3.bf16.msra.mxu1 %v10973_v7  ;;  %10030 = vmatprep.subr.bf16.mxu0 %v10974_v8  ;;  %v10990_v24 = vld [vmem:[%s18833_s2 + $0x70] sm:$0xff]   ;;  %v10994_v28 = vld [vmem:[%s18833_s2 + $0x78] sm:$0xff]   ;;  %v39_v32 = vld [vmem:[%s18834_s0 + $0x8] sm:$0xff] }
   0xa   :  { %10094 = vmatprep.subr.bf16.mxu1 %v10975_v9  ;;  %v10991_v25 = vld [vmem:[%s18833_s2 + $0xf0] sm:$0xff]   ;;  %v10995_v29 = vld [vmem:[%s18833_s2 + $0xf8] sm:$0xff]   ;;  %v63_v33 = vld [vmem:[%s18834_s0 + $0xc8] sm:$0xff] }
   0xb   :  { %v10992_v26 = vld [vmem:[%s18833_s2 + $0x30] sm:$0xff]   ;;  %v10996_v30 = vld [vmem:[%s18833_s2 + $0x38] sm:$0xff]   ;;  %v423_v35 = vpack.c.bf16 %v63_v33, %v39_v32  ;;  %v38_v37 = vld [vmem:[%s18834_s0] sm:$0xff] }
   0xc   :  { %10031 = vmatpush3.bf16.msra.mxu0 %v10976_v10  ;;  %v10993_v27 = vld [vmem:[%s18833_s2 + $0xb0] sm:$0xff]   ;;  %v10997_v31 = vld [vmem:[%s18833_s2 + $0xb8] sm:$0xff]   ;;  %v62_v38 = vld [vmem:[%s18834_s0 + $0xc0] sm:$0xff] }
   0xd   :  { %10095 = vmatpush3.bf16.msra.mxu1 %v10977_v11  ;;  %10032 = vmatprep.subr.bf16.mxu0 %v10978_v12  ;;  %v41_v34 = vld [vmem:[%s18834_s0 + $0x18] sm:$0xff]  ;;  %v422_v40 = vpack.c.bf16 %v62_v38, %v38_v37  ;;  %v40_v41 = vld [vmem:[%s18834_s0 + $0x10] sm:$0xff]  ;;  %v10998_v44 = vld [vmem:[%s18833_s2 + $0x140] sm:$0xff]  }
   0xe   :  { %10096 = vmatprep.subr.bf16.mxu1 %v10979_v13  ;;  %v65_v36 = vld [vmem:[%s18834_s0 + $0xd8] sm:$0xff]  ;;  %v64_v42 = vld [vmem:[%s18834_s0 + $0xd0] sm:$0xff]  ;;  %2189 = vmatprep.mubr.bf16.mxu0 %v423_v35  ;;  %v10999_v45 = vld [vmem:[%s18833_s2 + $0x100] sm:$0xff]  }
   0xf   :  { %v425_v39 = vpack.c.bf16 %v65_v36, %v41_v34  ;;  %v424_v43 = vpack.c.bf16 %v64_v42, %v40_v41  ;;  %v11000_v46 = vld [vmem:[%s18833_s2 + $0x1c0] sm:$0xff]   ;;  %v87_v48 = vld [vmem:[%s18834_s0 + $0x188] sm:$0xff]  ;;  %v89_v50 = vld [vmem:[%s18834_s0 + $0x198] sm:$0xff] }
  0x10   :  { %10033 = vmatpush3.bf16.msra.mxu0 %v10980_v14  ;;  %v11001_v47 = vld [vmem:[%s18833_s2 + $0x180] sm:$0xff]   ;;  %v111_v49 = vld [vmem:[%s18834_s0 + $0x248] sm:$0xff]  ;;  %v113_v51 = vld [vmem:[%s18834_s0 + $0x258] sm:$0xff] }
  0x11   :  { %10097 = vmatpush3.bf16.msra.mxu1 %v10981_v15  ;;  %10034 = vmatprep.subr.bf16.mxu0 %v10982_v16  ;;  %v447_v52 = vpack.c.bf16 %v111_v49, %v87_v48  ;;  %v449_v53 = vpack.c.bf16 %v113_v51, %v89_v50  ;;  %v86_v54 = vld [vmem:[%s18834_s0 + $0x180] sm:$0xff]  ;;  %v88_v56 = vld [vmem:[%s18834_s0 + $0x190] sm:$0xff]  ;;  %v11002_v60 = vld [vmem:[%s18833_s2 + $0x148] sm:$0xff]  }
  0x12   :  { %10098 = vmatprep.subr.bf16.mxu1 %v10983_v17  ;;  %2286 = vmatprep.mubr.bf16.mxu1 %v425_v39  ;;  %v110_v55 = vld [vmem:[%s18834_s0 + $0x240] sm:$0xff]  ;;  %v112_v58 = vld [vmem:[%s18834_s0 + $0x250] sm:$0xff]  ;;  %v11003_v61 = vld [vmem:[%s18833_s2 + $0x108] sm:$0xff]  }
  0x13   :  { %v446_v57 = vpack.c.bf16 %v110_v55, %v86_v54  ;;  %v448_v59 = vpack.c.bf16 %v112_v58, %v88_v56  ;;  %v11004_v62 = vld [vmem:[%s18833_s2 + $0x1c8] sm:$0xff]   ;;  %v137_v3 = vld [vmem:[%s18834_s0 + $0x318] sm:$0xff]  ;;  %v134_v5 = vld [vmem:[%s18834_s0 + $0x300] sm:$0xff] }
  0x14   :  { %10035 = vmatpush3.bf16.msra.mxu0 %v10984_v18  ;;  %v11005_v63 = vld [vmem:[%s18833_s2 + $0x188] sm:$0xff]   ;;  %v161_v4 = vld [vmem:[%s18834_s0 + $0x3d8] sm:$0xff]  ;;  %v158_v7 = vld [vmem:[%s18834_s0 + $0x3c0] sm:$0xff] }
  0x15   :  { %10099 = vmatpush3.bf16.msra.mxu1 %v10985_v19  ;;  %10036 = vmatprep.subr.bf16.mxu0 %v10986_v20  ;;  %v135_v0 = vld [vmem:[%s18834_s0 + $0x308] sm:$0xff]  ;;  %v473_v6 = vpack.c.bf16 %v161_v4, %v137_v3  ;;  %v136_v8 = vld [vmem:[%s18834_s0 + $0x310] sm:$0xff]  ;;  %v470_v10 = vpack.c.bf16 %v158_v7, %v134_v5  ;;  %v185_v18 = vld [vmem:[%s18834_s0 + $0x498] sm:$0xff] }
  0x16   :  { %10100 = vmatprep.subr.bf16.mxu1 %v10987_v21  ;;  %v159_v1 = vld [vmem:[%s18834_s0 + $0x3c8] sm:$0xff]  ;;  %v160_v9 = vld [vmem:[%s18834_s0 + $0x3d0] sm:$0xff]  ;;  %v209_v20 = vld [vmem:[%s18834_s0 + $0x558] sm:$0xff] }
  0x17   :  { %v471_v2 = vpack.c.bf16 %v159_v1, %v135_v0  ;;  %v11006_v11 = vld [vmem:[%s18833_s2 + $0x150] sm:$0xff]   ;;  %v472_v12 = vpack.c.bf16 %v160_v9, %v136_v8  ;;  %v183_v16 = vld [vmem:[%s18834_s0 + $0x488] sm:$0xff]  ;;  %v182_v21 = vld [vmem:[%s18834_s0 + $0x480] sm:$0xff] }
  0x18   :  { %10037 = vmatpush3.bf16.msra.mxu0 %v10988_v22  ;;  %v11007_v13 = vld [vmem:[%s18833_s2 + $0x110] sm:$0xff]   ;;  %v207_v17 = vld [vmem:[%s18834_s0 + $0x548] sm:$0xff]  ;;  %v206_v22 = vld [vmem:[%s18834_s0 + $0x540] sm:$0xff] }
  0x19   :  { %10101 = vmatpush3.bf16.msra.mxu1 %v10989_v23  ;;  %10038 = vmatprep.subr.bf16.mxu0 %v10990_v24  ;;  %v11008_v14 = vld [vmem:[%s18833_s2 + $0x1d0] sm:$0xff]   ;;  %v495_v19 = vpack.c.bf16 %v207_v17, %v183_v16  ;;  %v497_v23 = vpack.c.bf16 %v209_v20, %v185_v18  ;;  %v231_v32 = vld [vmem:[%s18834_s0 + $0x608] sm:$0xff]  ;;  %v233_v34 = vld [vmem:[%s18834_s0 + $0x618] sm:$0xff] }
  0x1a   :  { %10102 = vmatprep.subr.bf16.mxu1 %v10991_v25  ;;  %v11009_v15 = vld [vmem:[%s18833_s2 + $0x190] sm:$0xff]   ;;  %v255_v33 = vld [vmem:[%s18834_s0 + $0x6c8] sm:$0xff]  ;;  %v257_v35 = vld [vmem:[%s18834_s0 + $0x6d8] sm:$0xff] }
  0x1b   :  { %v184_v24 = vld [vmem:[%s18834_s0 + $0x490] sm:$0xff]  ;;  %v519_v36 = vpack.c.bf16 %v255_v33, %v231_v32  ;;  %v521_v37 = vpack.c.bf16 %v257_v35, %v233_v34  ;;  %v230_v38 = vld [vmem:[%s18834_s0 + $0x600] sm:$0xff]  ;;  %v279_v48 = vld [vmem:[%s18834_s0 + $0x788] sm:$0xff] }
  0x1c   :  { %10039 = vmatpush3.bf16.msra.mxu0 %v10992_v26  ;;  %v208_v25 = vld [vmem:[%s18834_s0 + $0x550] sm:$0xff]  ;;  %v11010_v26 = vld [vmem:[%s18833_s2 + $0x158] sm:$0xff]   ;;  %v254_v39 = vld [vmem:[%s18834_s0 + $0x6c0] sm:$0xff] }
  0x1d   :  { %10103 = vmatpush3.bf16.msra.mxu1 %v10993_v27  ;;  %10040 = vmatprep.subr.bf16.mxu0 %v10994_v28  ;;  %v494_v27 = vpack.c.bf16 %v206_v22, %v182_v21  ;;  %v11011_v28 = vld [vmem:[%s18833_s2 + $0x118] sm:$0xff]   ;;  %v256_v41 = vld [vmem:[%s18834_s0 + $0x6d0] sm:$0xff]  ;;  %v11014_v42 = vld [vmem:[%s18833_s2 + $0x160] sm:$0xff]  }
  0x1e   :  { %10104 = vmatprep.subr.bf16.mxu1 %v10995_v29  ;;  %v496_v29 = vpack.c.bf16 %v208_v25, %v184_v24  ;;  %v303_v49 = vld [vmem:[%s18834_s0 + $0x848] sm:$0xff]  ;;  %v281_v51 = vld [vmem:[%s18834_s0 + $0x798] sm:$0xff]  ;;  %v278_v54 = vld [vmem:[%s18834_s0 + $0x780] sm:$0xff] }
  0x1f   :  { %v543_v50 = vpack.c.bf16 %v303_v49, %v279_v48  ;;  %v302_v55 = vld [vmem:[%s18834_s0 + $0x840] sm:$0xff]  ;;  %v280_v56 = vld [vmem:[%s18834_s0 + $0x790] sm:$0xff]  ;;  %v11018_v58 = vld [vmem:[%s18833_s2 + $0x168] sm:$0xff]  }
  0x20   :  { %10041 = vmatpush3.bf16.msra.mxu0 %v10996_v30  ;;  %v11012_v30 = vld [vmem:[%s18833_s2 + $0x1d8] sm:$0xff]   ;;  %v351_v0 = vld [vmem:[%s18834_s0 + $0x9c8] sm:$0xff]  ;;  %v350_v7 = vld [vmem:[%s18834_s0 + $0x9c0] sm:$0xff] }
  0x21   :  { %10105 = vmatpush3.bf16.msra.mxu1 %v10997_v31  ;;  %10154 = vmatprep.subr.bf16.mxu0 %v10998_v44  ;;  %v11013_v31 = vld [vmem:[%s18833_s2 + $0x198] sm:$0xff]   ;;  %v518_v44 = vpack.c.bf16 %v254_v39, %v230_v38  ;;  %v11022_v8 = vld [vmem:[%s18833_s2 + $0x170] sm:$0xff]   ;;  %v11030_v35 = vld [vmem:[%s18833_s2 + $0x240] sm:$0xff]  }
  0x22   :  { %10218 = vmatprep.subr.bf16.mxu1 %v11000_v46  ;;  %v329_v1 = vld [vmem:[%s18834_s0 + $0x918] sm:$0xff]  ;;  %v328_v9 = vld [vmem:[%s18834_s0 + $0x910] sm:$0xff]  ;;  %v11032_v39 = vld [vmem:[%s18833_s2 + $0x2c0] sm:$0xff]  }
  0x23   :  { %2190 = vmatmul.mubr.bf16.vlgmr.msra.gmra.mrb[0].mxu0 %v422_v40  ;;  %v232_v40 = vld [vmem:[%s18834_s0 + $0x610] sm:$0xff]  ;;  %v353_v4 = vld [vmem:[%s18834_s0 + $0x9d8] sm:$0xff] }
  0x24   :  { %2287 = vmatmul.mubr.bf16.vlgmr.msra.gmra.mrb[0].mxu1 %v424_v43  ;;  %10155 = vmatpush3.bf16.msra.mxu0 %v10999_v45  ;;  %v11015_v43 = vld [vmem:[%s18833_s2 + $0x120] sm:$0xff]   ;;  %v520_v46 = vpack.c.bf16 %v256_v41, %v232_v40  ;;  %v569_v5 = vpack.c.bf16 %v353_v4, %v329_v1  ;;  %v377_v16 = vld [vmem:[%s18834_s0 + $0xa98] sm:$0xff]  ;;  %v11038_v1 = vld [vmem:[%s18833_s2 + $0x250] sm:$0xff]  }
  0x25   :  { %10219 = vmatpush3.bf16.msra.mxu1 %v11001_v47  ;;  %2197 = vmatprep.mubr.bf16.mxu0 %v447_v52  ;;  %v11016_v45 = vld [vmem:[%s18833_s2 + $0x1e0] sm:$0xff]   ;;  %v305_v52 = vld [vmem:[%s18834_s0 + $0x858] sm:$0xff]  ;;  %v11040_v4 = vld [vmem:[%s18833_s2 + $0x2d0] sm:$0xff]  }
  0x26   :  { %2294 = vmatprep.mubr.bf16.mxu1 %v449_v53  ;;  %10156 = vmatprep.subr.bf16.mxu0 %v11002_v60  ;;  %v11017_v47 = vld [vmem:[%s18833_s2 + $0x1a0] sm:$0xff]   ;;  %v545_v53 = vpack.c.bf16 %v305_v52, %v281_v51  ;;  %v11020_v60 = vld [vmem:[%s18833_s2 + $0x1e8] sm:$0xff]   ;;  %v401_v17 = vld [vmem:[%s18834_s0 + $0xb58] sm:$0xff] }
  0x27   :  { %10220 = vmatprep.subr.bf16.mxu1 %v11004_v62  ;;  %v542_v62 = vpack.c.bf16 %v302_v55, %v278_v54  ;;  %v593_v21 = vpack.c.bf16 %v401_v17, %v377_v16  ;;  %v11026_v22 = vld [vmem:[%s18833_s2 + $0x178] sm:$0xff]   ;;  %v42_v40 = vld [vmem:[%s18834_s0 + $0x20] sm:$0xff] }
  0x28   :  { %10157 = vmatpush3.bf16.msra.mxu0 %v11003_v61  ;;  %v11021_v61 = vld [vmem:[%s18833_s2 + $0x1a8] sm:$0xff]   ;;  %v11027_v24 = vld [vmem:[%s18833_s2 + $0x138] sm:$0xff]   ;;  %v66_v41 = vld [vmem:[%s18834_s0 + $0xe0] sm:$0xff] }
  0x29   :  { %10221 = vmatpush3.bf16.msra.mxu1 %v11005_v63  ;;  %10158 = vmatprep.subr.bf16.mxu0 %v11006_v11  ;;  %v327_v63 = vld [vmem:[%s18834_s0 + $0x908] sm:$0xff]  ;;  %v11023_v11 = vld [vmem:[%s18833_s2 + $0x130] sm:$0xff]   ;;  %v11028_v25 = vld [vmem:[%s18833_s2 + $0x1f8] sm:$0xff]  }
  0x2a   :  { %10222 = vmatprep.subr.bf16.mxu1 %v11008_v14  ;;  %v567_v3 = vpack.c.bf16 %v351_v0, %v327_v63  ;;  %v375_v14 = vld [vmem:[%s18834_s0 + $0xa88] sm:$0xff]  ;;  %v45_v32 = vld [vmem:[%s18834_s0 + $0x38] sm:$0xff]  ;;  %v11033_v51 = vld [vmem:[%s18833_s2 + $0x280] sm:$0xff]  }
  0x2b   :  { %2198 = vmatmul.mubr.bf16.gmra.mrb[4].mxu0 %v446_v57  ;;  %v304_v57 = vld [vmem:[%s18834_s0 + $0x850] sm:$0xff]  ;;  %v69_v33 = vld [vmem:[%s18834_s0 + $0xf8] sm:$0xff]  ;;  %v90_v54 = vld [vmem:[%s18834_s0 + $0x1a0] sm:$0xff] }
  0x2c   :  { %2295 = vmatmul.mubr.bf16.gmra.mrb[4].mxu1 %v448_v59  ;;  %2205 = vmatprep.mubr.bf16.mxu0 %v471_v2  ;;  %v11019_v59 = vld [vmem:[%s18833_s2 + $0x128] sm:$0xff]   ;;  %v544_v2 = vpack.c.bf16 %v304_v57, %v280_v56  ;;  %v429_v38 = vpack.c.bf16 %v69_v33, %v45_v32  ;;  %v117_v48 = vld [vmem:[%s18834_s0 + $0x278] sm:$0xff]  ;;  %v114_v55 = vld [vmem:[%s18834_s0 + $0x260] sm:$0xff] }
  0x2d   :  { %2302 = vmatprep.mubr.bf16.mxu1 %v473_v6  ;;  %10159 = vmatpush3.bf16.msra.mxu0 %v11007_v13  ;;  %v326_v6 = vld [vmem:[%s18834_s0 + $0x900] sm:$0xff]  ;;  %v11025_v13 = vld [vmem:[%s18833_s2 + $0x1b0] sm:$0xff]   ;;  %v11034_v56 = vld [vmem:[%s18833_s2 + $0x248] sm:$0xff]  }
  0x2e   :  { %10223 = vmatpush3.bf16.msra.mxu1 %v11009_v15  ;;  %10160 = vmatprep.subr.bf16.mxu0 %v11010_v26  ;;  %v399_v15 = vld [vmem:[%s18834_s0 + $0xb48] sm:$0xff]  ;;  %v566_v18 = vpack.c.bf16 %v350_v7, %v326_v6  ;;  %v398_v26 = vld [vmem:[%s18834_s0 + $0xb40] sm:$0xff]  ;;  %v141_v0 = vld [vmem:[%s18834_s0 + $0x338] sm:$0xff] }
  0x2f   :  { %10224 = vmatprep.subr.bf16.mxu1 %v11012_v30  ;;  %v591_v20 = vpack.c.bf16 %v399_v15, %v375_v14  ;;  %v43_v30 = vld [vmem:[%s18834_s0 + $0x28] sm:$0xff]  ;;  %v11042_v16 = vld [vmem:[%s18833_s2 + $0x258] sm:$0xff]   ;;  %v11047_v32 = vld [vmem:[%s18833_s2 + $0x220] sm:$0xff]  }
  0x30   :  { %v11035_v57 = vld [vmem:[%s18833_s2 + $0x208] sm:$0xff]   ;;  %v189_v17 = vld [vmem:[%s18834_s0 + $0x4b8] sm:$0xff]  ;;  %v11048_v33 = vld [vmem:[%s18833_s2 + $0x2e0] sm:$0xff]  }
  0x31   :  { %10161 = vmatpush3.bf16.msra.mxu0 %v11011_v28  ;;  %v11029_v28 = vld [vmem:[%s18833_s2 + $0x1b8] sm:$0xff]   ;;  %v163_v63 = vld [vmem:[%s18834_s0 + $0x3e8] sm:$0xff] }
  0x32   :  { %10225 = vmatpush3.bf16.msra.mxu1 %v11013_v31  ;;  %10162 = vmatprep.subr.bf16.mxu0 %v11014_v42  ;;  %v67_v31 = vld [vmem:[%s18834_s0 + $0xe8] sm:$0xff]  ;;  %v44_v42 = vld [vmem:[%s18834_s0 + $0x30] sm:$0xff] }
  0x33   :  { %2206 = vmatmul.mubr.bf16.gmra.mrb[8].mxu0 %v470_v10  ;;  %10226 = vmatprep.subr.bf16.mxu1 %v11016_v45  ;;  %v352_v10 = vld [vmem:[%s18834_s0 + $0x9d0] sm:$0xff]  ;;  %v115_v45 = vld [vmem:[%s18834_s0 + $0x268] sm:$0xff] }
  0x34   :  { %2303 = vmatmul.mubr.bf16.gmra.mrb[8].mxu1 %v472_v12  ;;  %2213 = vmatprep.mubr.bf16.mxu0 %v495_v19  ;;  %v11024_v12 = vld [vmem:[%s18833_s2 + $0x1f0] sm:$0xff]   ;;  %v568_v19 = vpack.c.bf16 %v352_v10, %v328_v9  ;;  %v138_v9 = vld [vmem:[%s18834_s0 + $0x320] sm:$0xff]  ;;  %v187_v14 = vld [vmem:[%s18834_s0 + $0x4a8] sm:$0xff] }
  0x35   :  { %2310 = vmatprep.mubr.bf16.mxu1 %v497_v23  ;;  %10163 = vmatpush3.bf16.msra.mxu0 %v11015_v43  ;;  %v374_v23 = vld [vmem:[%s18834_s0 + $0xa80] sm:$0xff]  ;;  %v68_v43 = vld [vmem:[%s18834_s0 + $0xf0] sm:$0xff]  ;;  %v211_v15 = vld [vmem:[%s18834_s0 + $0x568] sm:$0xff] }
  0x36   :  { %10227 = vmatpush3.bf16.msra.mxu1 %v11017_v47  ;;  %10164 = vmatprep.subr.bf16.mxu0 %v11018_v58  ;;  %v590_v34 = vpack.c.bf16 %v398_v26, %v374_v23  ;;  %v426_v47 = vpack.c.bf16 %v66_v41, %v42_v40  ;;  %v428_v49 = vpack.c.bf16 %v68_v43, %v44_v42  ;;  %v11036_v58 = vld [vmem:[%s18833_s2 + $0x2c8] sm:$0xff]   ;;  %v162_v10 = vld [vmem:[%s18834_s0 + $0x3e0] sm:$0xff] }
  0x37   :  { %10228 = vmatprep.subr.bf16.mxu1 %v11020_v60  ;;  %v116_v60 = vld [vmem:[%s18834_s0 + $0x270] sm:$0xff]  ;;  %v186_v26 = vld [vmem:[%s18834_s0 + $0x4a0] sm:$0xff]  ;;  %v11050_v42 = vld [vmem:[%s18833_s2 + $0x268] sm:$0xff]  }
  0x38   :  { %v234_v43 = vld [vmem:[%s18834_s0 + $0x620] sm:$0xff] }
  0x39   :  { %10165 = vmatpush3.bf16.msra.mxu0 %v11019_v59  ;;  %v92_v59 = vld [vmem:[%s18834_s0 + $0x1b0] sm:$0xff] }
  0x3a   :  { %10229 = vmatpush3.bf16.msra.mxu1 %v11021_v61  ;;  %10166 = vmatprep.subr.bf16.mxu0 %v11022_v8  ;;  %v11037_v61 = vld [vmem:[%s18833_s2 + $0x288] sm:$0xff]   ;;  %v11039_v8 = vld [vmem:[%s18833_s2 + $0x210] sm:$0xff]  }
  0x3b   :  { %2214 = vmatmul.mubr.bf16.gmra.mrb[12].mxu0 %v494_v27  ;;  %10230 = vmatprep.subr.bf16.mxu1 %v11024_v12  ;;  %v376_v27 = vld [vmem:[%s18834_s0 + $0xa90] sm:$0xff] }
  0x3c   :  { %2311 = vmatmul.mubr.bf16.gmra.mrb[12].mxu1 %v496_v29  ;;  %2221 = vmatprep.mubr.bf16.mxu0 %v519_v36  ;;  %v400_v29 = vld [vmem:[%s18834_s0 + $0xb50] sm:$0xff] }
  0x3d   :  { %2318 = vmatprep.mubr.bf16.mxu1 %v521_v37  ;;  %10167 = vmatpush3.bf16.msra.mxu0 %v11023_v11  ;;  %v592_v36 = vpack.c.bf16 %v400_v29, %v376_v27  ;;  %v427_v37 = vpack.c.bf16 %v67_v31, %v43_v30  ;;  %v11041_v11 = vld [vmem:[%s18833_s2 + $0x290] sm:$0xff]   ;;  %v210_v27 = vld [vmem:[%s18834_s0 + $0x560] sm:$0xff]  ;;  %v235_v31 = vld [vmem:[%s18834_s0 + $0x628] sm:$0xff] }
  0x3e   :  { %10231 = vmatpush3.bf16.msra.mxu1 %v11025_v13  ;;  %10168 = vmatprep.subr.bf16.mxu0 %v11026_v22  ;;  %v140_v12 = vld [vmem:[%s18834_s0 + $0x330] sm:$0xff]  ;;  %v474_v22 = vpack.c.bf16 %v162_v10, %v138_v9 }
  0x3f   :  { %10232 = vmatprep.subr.bf16.mxu1 %v11028_v25  ;;  %v164_v13 = vld [vmem:[%s18834_s0 + $0x3f0] sm:$0xff] }
  0x40   :  { %v476_v23 = vpack.c.bf16 %v164_v13, %v140_v12  ;;  %v188_v29 = vld [vmem:[%s18834_s0 + $0x4b0] sm:$0xff]  ;;  %v11061_v13 = vld [vmem:[%s18833_s2 + $0x2b8] sm:$0xff]  }
  0x41   :  { %10169 = vmatpush3.bf16.msra.mxu0 %v11027_v24  ;;  %v499_v24 = vpack.c.bf16 %v211_v15, %v187_v14  ;;  %v212_v30 = vld [vmem:[%s18834_s0 + $0x570] sm:$0xff]  ;;  %v330_v14 = vld [vmem:[%s18834_s0 + $0x920] sm:$0xff] }
  0x42   :  { %10233 = vmatpush3.bf16.msra.mxu1 %v11029_v28  ;;  %10282 = vmatprep.subr.bf16.mxu0 %v11030_v35  ;;  %v11046_v28 = vld [vmem:[%s18833_s2 + $0x260] sm:$0xff]  }
  0x43   :  { %2222 = vmatmul.mubr.bf16.gmra.mrb[16].mxu0 %v518_v44  ;;  %10346 = vmatprep.subr.bf16.mxu1 %v11032_v39  ;;  %v91_v44 = vld [vmem:[%s18834_s0 + $0x1a8] sm:$0xff]  ;;  %v11049_v35 = vld [vmem:[%s18833_s2 + $0x2a0] sm:$0xff]   ;;  %v500_v39 = vpack.c.bf16 %v212_v30, %v188_v29  ;;  %v380_v30 = vld [vmem:[%s18834_s0 + $0xab0] sm:$0xff] }
  0x44   :  { %2319 = vmatmul.mubr.bf16.gmra.mrb[16].mxu1 %v520_v46  ;;  %2229 = vmatprep.mubr.bf16.mxu0 %v543_v50  ;;  %v93_v46 = vld [vmem:[%s18834_s0 + $0x1b8] sm:$0xff]  ;;  %v11031_v50 = vld [vmem:[%s18833_s2 + $0x200] sm:$0xff]   ;;  %v451_v52 = vpack.c.bf16 %v115_v45, %v91_v44  ;;  %v11051_v44 = vld [vmem:[%s18833_s2 + $0x228] sm:$0xff]  }
  0x45   :  { %2326 = vmatprep.mubr.bf16.mxu1 %v545_v53  ;;  %v453_v53 = vpack.c.bf16 %v117_v48, %v93_v46  ;;  %v11052_v45 = vld [vmem:[%s18833_s2 + $0x2e8] sm:$0xff]   ;;  %v258_v46 = vld [vmem:[%s18834_s0 + $0x6e0] sm:$0xff] }
  0x46   :  { %v11053_v48 = vld [vmem:[%s18833_s2 + $0x2a8] sm:$0xff]   ;;  %v354_v15 = vld [vmem:[%s18834_s0 + $0x9e0] sm:$0xff] }
  0x47   :  { %v402_v29 = vld [vmem:[%s18834_s0 + $0xb60] sm:$0xff] }
  0x4b   :  { %2230 = vmatmul.mubr.bf16.gmra.mrb[20].mxu0 %v542_v62  ;;  %v139_v62 = vld [vmem:[%s18834_s0 + $0x328] sm:$0xff] }
  0x4c   :  { %2327 = vmatmul.mubr.bf16.gmra.mrb[20].mxu1 %v544_v2  ;;  %2237 = vmatprep.mubr.bf16.mxu0 %v567_v3  ;;  %v165_v2 = vld [vmem:[%s18834_s0 + $0x3f8] sm:$0xff]  ;;  %v450_v3 = vpack.c.bf16 %v114_v55, %v90_v54  ;;  %v475_v6 = vpack.c.bf16 %v163_v63, %v139_v62  ;;  %v522_v54 = vpack.c.bf16 %v258_v46, %v234_v43  ;;  %v11054_v55 = vld [vmem:[%s18833_s2 + $0x270] sm:$0xff]   ;;  %v282_v62 = vld [vmem:[%s18834_s0 + $0x7a0] sm:$0xff] }
  0x4d   :  { %2334 = vmatprep.mubr.bf16.mxu1 %v569_v5  ;;  %v452_v5 = vpack.c.bf16 %v116_v60, %v92_v59  ;;  %v477_v7 = vpack.c.bf16 %v165_v2, %v141_v0  ;;  %v11056_v60 = vld [vmem:[%s18833_s2 + $0x2f0] sm:$0xff]   ;;  %v306_v63 = vld [vmem:[%s18834_s0 + $0x860] sm:$0xff]  ;;  %v331_v2 = vld [vmem:[%s18834_s0 + $0x928] sm:$0xff] }
  0x4e   :  { %v284_v0 = vld [vmem:[%s18834_s0 + $0x7b0] sm:$0xff] }
  0x4f   :  { %v72_v43 = vld [vmem:[%s18834_s0 + $0x110] sm:$0xff] }
  0x53   :  { %2238 = vmatmul.mubr.bf16.gmra.mrb[24].mxu0 %v566_v18  ;;  %v213_v18 = vld [vmem:[%s18834_s0 + $0x578] sm:$0xff] }
  0x54   :  { %2335 = vmatmul.mubr.bf16.gmra.mrb[24].mxu1 %v568_v19  ;;  %2245 = vmatprep.mubr.bf16.mxu0 %v591_v20  ;;  %v11043_v19 = vld [vmem:[%s18833_s2 + $0x218] sm:$0xff]   ;;  %v501_v25 = vpack.c.bf16 %v213_v18, %v189_v17  ;;  %v356_v17 = vld [vmem:[%s18834_s0 + $0x9f0] sm:$0xff]  ;;  %v379_v18 = vld [vmem:[%s18834_s0 + $0xaa8] sm:$0xff] }
  0x55   :  { %2342 = vmatprep.mubr.bf16.mxu1 %v593_v21  ;;  %v11044_v20 = vld [vmem:[%s18833_s2 + $0x2d8] sm:$0xff]  }
  0x56   :  { %v11045_v21 = vld [vmem:[%s18833_s2 + $0x298] sm:$0xff]  }
  0x5b   :  { %2246 = vmatmul.mubr.bf16.gmra.mrb[28].mxu0 %v590_v34  ;;  %v259_v34 = vld [vmem:[%s18834_s0 + $0x6e8] sm:$0xff] }
  0x5c   :  { %2343 = vmatmul.mubr.bf16.gmra.mrb[28].mxu1 %v592_v36  ;;  %2383 = vmatprep.mubr.bf16.mxu0 %v427_v37  ;;  %v237_v36 = vld [vmem:[%s18834_s0 + $0x638] sm:$0xff]  ;;  %v523_v40 = vpack.c.bf16 %v259_v34, %v235_v31  ;;  %v404_v31 = vld [vmem:[%s18834_s0 + $0xb70] sm:$0xff] }
  0x5d   :  { %2480 = vmatprep.mubr.bf16.mxu1 %v429_v38  ;;  %v261_v37 = vld [vmem:[%s18834_s0 + $0x6f8] sm:$0xff]  ;;  %v498_v38 = vpack.c.bf16 %v210_v27, %v186_v26 }
  0x5e   :  { %v525_v41 = vpack.c.bf16 %v261_v37, %v237_v36  ;;  %v49_v34 = vld [vmem:[%s18834_s0 + $0x58] sm:$0xff]  ;;  %v596_v37 = vpack.c.bf16 %v404_v31, %v380_v30  ;;  %v214_v30 = vld [vmem:[%s18834_s0 + $0x580] sm:$0xff] }
  0x5f   :  { %v11081_v31 = vld [vmem:[%s18833_s2 + $0x3a0] sm:$0xff]  }
  0x63   :  { %2384 = vmatmul.mubr.bf16.vlgmr.msra.gmra.mrb[32].mxu0 %v426_v47  ;;  %v236_v47 = vld [vmem:[%s18834_s0 + $0x630] sm:$0xff] }
  0x64   :  { %2481 = vmatmul.mubr.bf16.vlgmr.msra.gmra.mrb[32].mxu1 %v428_v49  ;;  %10283 = vmatpush3.bf16.msra.mxu0 %v11031_v50  ;;  %v260_v49 = vld [vmem:[%s18834_s0 + $0x6f0] sm:$0xff]  ;;  %v283_v50 = vld [vmem:[%s18834_s0 + $0x7a8] sm:$0xff] }
  0x65   :  { %10347 = vmatpush3.bf16.msra.mxu1 %v11033_v51  ;;  %2391 = vmatprep.mubr.bf16.mxu0 %v451_v52  ;;  %v307_v51 = vld [vmem:[%s18834_s0 + $0x868] sm:$0xff]  ;;  %v285_v52 = vld [vmem:[%s18834_s0 + $0x7b8] sm:$0xff] }
  0x66   :  { %2488 = vmatprep.mubr.bf16.mxu1 %v453_v53  ;;  %10284 = vmatprep.subr.bf16.mxu0 %v11034_v56  ;;  %v309_v53 = vld [vmem:[%s18834_s0 + $0x878] sm:$0xff]  ;;  %v524_v56 = vpack.c.bf16 %v260_v49, %v236_v47 }
  0x67   :  { %10348 = vmatprep.subr.bf16.mxu1 %v11036_v58  ;;  %v11055_v58 = vld [vmem:[%s18833_s2 + $0x230] sm:$0xff]   ;;  %v549_v59 = vpack.c.bf16 %v309_v53, %v285_v52  ;;  %v97_v47 = vld [vmem:[%s18834_s0 + $0x1d8] sm:$0xff] }
  0x68   :  { %10285 = vmatpush3.bf16.msra.mxu0 %v11035_v57  ;;  %v547_v57 = vpack.c.bf16 %v307_v51, %v283_v50  ;;  %v11063_v50 = vld [vmem:[%s18833_s2 + $0x300] sm:$0xff]  }
  0x69   :  { %10349 = vmatpush3.bf16.msra.mxu1 %v11037_v61  ;;  %10286 = vmatprep.subr.bf16.mxu0 %v11038_v1  ;;  %v11057_v61 = vld [vmem:[%s18833_s2 + $0x2b0] sm:$0xff]   ;;  %v11065_v51 = vld [vmem:[%s18833_s2 + $0x380] sm:$0xff]  }
  0x6a   :  { %10350 = vmatprep.subr.bf16.mxu1 %v11040_v4  ;;  %v308_v1 = vld [vmem:[%s18834_s0 + $0x870] sm:$0xff]  ;;  %v333_v4 = vld [vmem:[%s18834_s0 + $0x938] sm:$0xff] }
  0x6b   :  { %2392 = vmatmul.mubr.bf16.gmra.mrb[36].mxu0 %v450_v3  ;;  %v355_v3 = vld [vmem:[%s18834_s0 + $0x9e8] sm:$0xff]  ;;  %v548_v9 = vpack.c.bf16 %v308_v1, %v284_v0  ;;  %v11070_v0 = vld [vmem:[%s18833_s2 + $0x350] sm:$0xff]   ;;  %v145_v1 = vld [vmem:[%s18834_s0 + $0x358] sm:$0xff] }
  0x6c   :  { %2489 = vmatmul.mubr.bf16.gmra.mrb[36].mxu1 %v452_v5  ;;  %2399 = vmatprep.mubr.bf16.mxu0 %v475_v6  ;;  %v357_v5 = vld [vmem:[%s18834_s0 + $0x9f8] sm:$0xff]  ;;  %v571_v10 = vpack.c.bf16 %v355_v3, %v331_v2  ;;  %v11072_v3 = vld [vmem:[%s18833_s2 + $0x3d0] sm:$0xff]  }
  0x6d   :  { %2496 = vmatprep.mubr.bf16.mxu1 %v477_v7  ;;  %10287 = vmatpush3.bf16.msra.mxu0 %v11039_v8  ;;  %v11058_v6 = vld [vmem:[%s18833_s2 + $0x278] sm:$0xff]   ;;  %v546_v7 = vpack.c.bf16 %v306_v63, %v282_v62  ;;  %v573_v12 = vpack.c.bf16 %v357_v5, %v333_v4  ;;  %v143_v62 = vld [vmem:[%s18834_s0 + $0x348] sm:$0xff] }
  0x6e   :  { %10351 = vmatpush3.bf16.msra.mxu1 %v11041_v11  ;;  %10288 = vmatprep.subr.bf16.mxu0 %v11042_v16  ;;  %v11059_v8 = vld [vmem:[%s18833_s2 + $0x238] sm:$0xff]   ;;  %v332_v16 = vld [vmem:[%s18834_s0 + $0x930] sm:$0xff]  ;;  %v167_v63 = vld [vmem:[%s18834_s0 + $0x408] sm:$0xff] }
  0x6f   :  { %10352 = vmatprep.subr.bf16.mxu1 %v11044_v20  ;;  %v11060_v11 = vld [vmem:[%s18833_s2 + $0x2f8] sm:$0xff]  }
  0x70   :  { %v381_v20 = vld [vmem:[%s18834_s0 + $0xab8] sm:$0xff] }
  0x71   :  { %10289 = vmatpush3.bf16.msra.mxu0 %v11043_v19  ;;  %v403_v19 = vld [vmem:[%s18834_s0 + $0xb68] sm:$0xff]  ;;  %v169_v2 = vld [vmem:[%s18834_s0 + $0x418] sm:$0xff] }
  0x72   :  { %10353 = vmatpush3.bf16.msra.mxu1 %v11045_v21  ;;  %10290 = vmatprep.subr.bf16.mxu0 %v11046_v28  ;;  %v11062_v21 = vld [vmem:[%s18833_s2 + $0x340] sm:$0xff]   ;;  %v595_v26 = vpack.c.bf16 %v403_v19, %v379_v18  ;;  %v193_v18 = vld [vmem:[%s18834_s0 + $0x4d8] sm:$0xff] }
  0x73   :  { %2400 = vmatmul.mubr.bf16.gmra.mrb[40].mxu0 %v474_v22  ;;  %10354 = vmatprep.subr.bf16.mxu1 %v11048_v33  ;;  %v405_v22 = vld [vmem:[%s18834_s0 + $0xb78] sm:$0xff]  ;;  %v378_v28 = vld [vmem:[%s18834_s0 + $0xaa0] sm:$0xff]  ;;  %v71_v33 = vld [vmem:[%s18834_s0 + $0x108] sm:$0xff] }
  0x74   :  { %2497 = vmatmul.mubr.bf16.gmra.mrb[40].mxu1 %v476_v23  ;;  %2407 = vmatprep.mubr.bf16.mxu0 %v499_v24  ;;  %v570_v23 = vpack.c.bf16 %v354_v15, %v330_v14  ;;  %v11064_v24 = vld [vmem:[%s18833_s2 + $0x3c0] sm:$0xff]   ;;  %v597_v27 = vpack.c.bf16 %v405_v22, %v381_v20  ;;  %v594_v36 = vpack.c.bf16 %v402_v29, %v378_v28  ;;  %v168_v14 = vld [vmem:[%s18834_s0 + $0x410] sm:$0xff]  ;;  %v191_v15 = vld [vmem:[%s18834_s0 + $0x4c8] sm:$0xff] }
  0x75   :  { %2504 = vmatprep.mubr.bf16.mxu1 %v501_v25  ;;  %10291 = vmatpush3.bf16.msra.mxu0 %v11047_v32  ;;  %v572_v25 = vpack.c.bf16 %v356_v17, %v332_v16  ;;  %v47_v32 = vld [vmem:[%s18834_s0 + $0x48] sm:$0xff]  ;;  %v11076_v16 = vld [vmem:[%s18833_s2 + $0x3d8] sm:$0xff]   ;;  %v11078_v22 = vld [vmem:[%s18833_s2 + $0x360] sm:$0xff]  }
  0x76   :  { %10355 = vmatpush3.bf16.msra.mxu1 %v11049_v35  ;;  %10292 = vmatprep.subr.bf16.mxu0 %v11050_v42  ;;  %v73_v35 = vld [vmem:[%s18834_s0 + $0x118] sm:$0xff]  ;;  %v48_v42 = vld [vmem:[%s18834_s0 + $0x50] sm:$0xff]  ;;  %v215_v17 = vld [vmem:[%s18834_s0 + $0x588] sm:$0xff] }
  0x77   :  { %10356 = vmatprep.subr.bf16.mxu1 %v11052_v45  ;;  %v119_v45 = vld [vmem:[%s18834_s0 + $0x288] sm:$0xff]  ;;  %v432_v49 = vpack.c.bf16 %v72_v43, %v48_v42  ;;  %v217_v19 = vld [vmem:[%s18834_s0 + $0x598] sm:$0xff]  ;;  %v11079_v28 = vld [vmem:[%s18833_s2 + $0x320] sm:$0xff]  }
  0x78   :  { %v11075_v20 = vld [vmem:[%s18833_s2 + $0x318] sm:$0xff]   ;;  %v190_v29 = vld [vmem:[%s18834_s0 + $0x4c0] sm:$0xff]  ;;  %v11086_v42 = vld [vmem:[%s18833_s2 + $0x370] sm:$0xff]  }
  0x79   :  { %10293 = vmatpush3.bf16.msra.mxu0 %v11051_v44  ;;  %v95_v44 = vld [vmem:[%s18834_s0 + $0x1c8] sm:$0xff]  ;;  %v502_v43 = vpack.c.bf16 %v214_v30, %v190_v29  ;;  %v406_v29 = vld [vmem:[%s18834_s0 + $0xb80] sm:$0xff]  ;;  %v384_v30 = vld [vmem:[%s18834_s0 + $0xad0] sm:$0xff] }
  0x7a   :  { %10357 = vmatpush3.bf16.msra.mxu1 %v11053_v48  ;;  %10294 = vmatprep.subr.bf16.mxu0 %v11054_v55  ;;  %v121_v48 = vld [vmem:[%s18834_s0 + $0x298] sm:$0xff]  ;;  %v455_v52 = vpack.c.bf16 %v119_v45, %v95_v44  ;;  %v118_v55 = vld [vmem:[%s18834_s0 + $0x280] sm:$0xff]  ;;  %v11088_v44 = vld [vmem:[%s18833_s2 + $0x3f0] sm:$0xff]  }
  0x7b   :  { %2408 = vmatmul.mubr.bf16.gmra.mrb[44].mxu0 %v498_v38  ;;  %10358 = vmatprep.subr.bf16.mxu1 %v11056_v60  ;;  %v431_v38 = vpack.c.bf16 %v71_v33, %v47_v32  ;;  %v457_v53 = vpack.c.bf16 %v121_v48, %v97_v47  ;;  %v11067_v60 = vld [vmem:[%s18833_s2 + $0x308] sm:$0xff]   ;;  %v192_v33 = vld [vmem:[%s18834_s0 + $0x4d0] sm:$0xff] }
  0x7c   :  { %2505 = vmatmul.mubr.bf16.gmra.mrb[44].mxu1 %v500_v39  ;;  %2415 = vmatprep.mubr.bf16.mxu0 %v523_v40  ;;  %v433_v39 = vpack.c.bf16 %v73_v35, %v49_v34  ;;  %v46_v40 = vld [vmem:[%s18834_s0 + $0x40] sm:$0xff]  ;;  %v11082_v32 = vld [vmem:[%s18833_s2 + $0x368] sm:$0xff]   ;;  %v216_v34 = vld [vmem:[%s18834_s0 + $0x590] sm:$0xff] }
  0x7d   :  { %2512 = vmatprep.mubr.bf16.mxu1 %v525_v41  ;;  %10295 = vmatpush3.bf16.msra.mxu0 %v11055_v58  ;;  %v70_v41 = vld [vmem:[%s18834_s0 + $0x100] sm:$0xff]  ;;  %v11068_v58 = vld [vmem:[%s18833_s2 + $0x3c8] sm:$0xff]   ;;  %v504_v45 = vpack.c.bf16 %v216_v34, %v192_v33  ;;  %v11087_v48 = vld [vmem:[%s18833_s2 + $0x330] sm:$0xff]  }
  0x7e   :  { %10359 = vmatpush3.bf16.msra.mxu1 %v11057_v61  ;;  %10296 = vmatprep.subr.bf16.mxu0 %v11058_v6  ;;  %v430_v46 = vpack.c.bf16 %v70_v41, %v46_v40  ;;  %v11069_v61 = vld [vmem:[%s18833_s2 + $0x388] sm:$0xff]   ;;  %v479_v6 = vpack.c.bf16 %v167_v63, %v143_v62  ;;  %v53_v34 = vld [vmem:[%s18834_s0 + $0x78] sm:$0xff] }
  0x7f   :  { %10360 = vmatprep.subr.bf16.mxu1 %v11060_v11  ;;  %v166_v11 = vld [vmem:[%s18834_s0 + $0x400] sm:$0xff]  ;;  %v239_v35 = vld [vmem:[%s18834_s0 + $0x648] sm:$0xff] }
  0x80   :  { %v11083_v40 = vld [vmem:[%s18833_s2 + $0x328] sm:$0xff]  }
  0x81   :  { %10297 = vmatpush3.bf16.msra.mxu0 %v11059_v8  ;;  %v481_v8 = vpack.c.bf16 %v169_v2, %v145_v1  ;;  %v11085_v41 = vld [vmem:[%s18833_s2 + $0x3a8] sm:$0xff]   ;;  %v286_v2 = vld [vmem:[%s18834_s0 + $0x7c0] sm:$0xff] }
  0x82   :  { %10361 = vmatpush3.bf16.msra.mxu1 %v11061_v13  ;;  %10410 = vmatprep.subr.bf16.mxu0 %v11062_v21  ;;  %v144_v13 = vld [vmem:[%s18834_s0 + $0x350] sm:$0xff]  ;;  %v11077_v21 = vld [vmem:[%s18833_s2 + $0x398] sm:$0xff]   ;;  %v75_v33 = vld [vmem:[%s18834_s0 + $0x128] sm:$0xff] }
  0x83   :  { %2416 = vmatmul.mubr.bf16.gmra.mrb[48].mxu0 %v522_v54  ;;  %10474 = vmatprep.subr.bf16.mxu1 %v11064_v24  ;;  %v94_v54 = vld [vmem:[%s18834_s0 + $0x1c0] sm:$0xff] }
  0x84   :  { %2513 = vmatmul.mubr.bf16.gmra.mrb[48].mxu1 %v524_v56  ;;  %2423 = vmatprep.mubr.bf16.mxu0 %v547_v57  ;;  %v11066_v56 = vld [vmem:[%s18833_s2 + $0x348] sm:$0xff]   ;;  %v96_v57 = vld [vmem:[%s18834_s0 + $0x1d0] sm:$0xff]  ;;  %v454_v4 = vpack.c.bf16 %v118_v55, %v94_v54  ;;  %v11080_v24 = vld [vmem:[%s18833_s2 + $0x3e0] sm:$0xff]  }
  0x85   :  { %2520 = vmatprep.mubr.bf16.mxu1 %v549_v59  ;;  %v120_v59 = vld [vmem:[%s18834_s0 + $0x290] sm:$0xff]  ;;  %v287_v54 = vld [vmem:[%s18834_s0 + $0x7c8] sm:$0xff] }
  0x86   :  { %v456_v5 = vpack.c.bf16 %v120_v59, %v96_v57  ;;  %v311_v55 = vld [vmem:[%s18834_s0 + $0x888] sm:$0xff]  ;;  %v289_v57 = vld [vmem:[%s18834_s0 + $0x7d8] sm:$0xff] }
  0x87   :  { %v11091_v59 = vld [vmem:[%s18833_s2 + $0x338] sm:$0xff]  }
  0x8b   :  { %2424 = vmatmul.mubr.bf16.gmra.mrb[52].mxu0 %v546_v7  ;;  %v11071_v7 = vld [vmem:[%s18833_s2 + $0x310] sm:$0xff]  }
  0x8c   :  { %2521 = vmatmul.mubr.bf16.gmra.mrb[52].mxu1 %v548_v9  ;;  %2431 = vmatprep.mubr.bf16.mxu0 %v571_v10  ;;  %v11073_v9 = vld [vmem:[%s18833_s2 + $0x390] sm:$0xff]   ;;  %v142_v10 = vld [vmem:[%s18834_s0 + $0x340] sm:$0xff] }
  0x8d   :  { %2528 = vmatprep.mubr.bf16.mxu1 %v573_v12  ;;  %v11074_v12 = vld [vmem:[%s18833_s2 + $0x358] sm:$0xff]  }
  0x93   :  { %2432 = vmatmul.mubr.bf16.gmra.mrb[56].mxu0 %v570_v23  ;;  %v478_v23 = vpack.c.bf16 %v166_v11, %v142_v10  ;;  %v337_v10 = vld [vmem:[%s18834_s0 + $0x958] sm:$0xff] }
  0x94   :  { %2529 = vmatmul.mubr.bf16.gmra.mrb[56].mxu1 %v572_v25  ;;  %2439 = vmatprep.mubr.bf16.mxu0 %v595_v26  ;;  %v480_v25 = vpack.c.bf16 %v168_v14, %v144_v13  ;;  %v503_v26 = vpack.c.bf16 %v215_v17, %v191_v15  ;;  %v361_v11 = vld [vmem:[%s18834_s0 + $0xa18] sm:$0xff]  ;;  %v358_v17 = vld [vmem:[%s18834_s0 + $0xa00] sm:$0xff] }
  0x95   :  { %2536 = vmatprep.mubr.bf16.mxu1 %v597_v27  ;;  %v505_v27 = vpack.c.bf16 %v217_v19, %v193_v18  ;;  %v577_v15 = vpack.c.bf16 %v361_v11, %v337_v10  ;;  %v336_v18 = vld [vmem:[%s18834_s0 + $0x950] sm:$0xff]  ;;  %v146_v10 = vld [vmem:[%s18834_s0 + $0x360] sm:$0xff] }
  0x96   :  { %v360_v19 = vld [vmem:[%s18834_s0 + $0xa10] sm:$0xff]  ;;  %v170_v11 = vld [vmem:[%s18834_s0 + $0x420] sm:$0xff] }
  0x9b   :  { %2440 = vmatmul.mubr.bf16.gmra.mrb[60].mxu0 %v594_v36  ;;  %v263_v36 = vld [vmem:[%s18834_s0 + $0x708] sm:$0xff] }
  0x9c   :  { %2537 = vmatmul.mubr.bf16.gmra.mrb[60].mxu1 %v596_v37  ;;  %2577 = vmatprep.mubr.bf16.mxu0 %v431_v38  ;;  %v11084_v37 = vld [vmem:[%s18833_s2 + $0x3e8] sm:$0xff]   ;;  %v241_v38 = vld [vmem:[%s18834_s0 + $0x658] sm:$0xff] }
  0x9d   :  { %2674 = vmatprep.mubr.bf16.mxu1 %v433_v39  ;;  %v265_v39 = vld [vmem:[%s18834_s0 + $0x718] sm:$0xff] }
  0x9e   :  { %v529_v47 = vpack.c.bf16 %v265_v39, %v241_v38 }
  0xa3   :  { %2578 = vmatmul.mubr.bf16.vlgmr.msra.gmra.mrb[64].mxu0 %v430_v46  ;;  %v527_v46 = vpack.c.bf16 %v263_v36, %v239_v35  ;;  %v77_v35 = vld [vmem:[%s18834_s0 + $0x138] sm:$0xff] }
  0xa4   :  { %2675 = vmatmul.mubr.bf16.vlgmr.msra.gmra.mrb[64].mxu1 %v432_v49  ;;  %10411 = vmatpush3.bf16.msra.mxu0 %v11063_v50  ;;  %v238_v49 = vld [vmem:[%s18834_s0 + $0x640] sm:$0xff]  ;;  %v437_v39 = vpack.c.bf16 %v77_v35, %v53_v34  ;;  %v11116_v34 = vld [vmem:[%s18833_s2 + $0x4e8] sm:$0xff]   ;;  %v220_v35 = vld [vmem:[%s18834_s0 + $0x5b0] sm:$0xff] }
  0xa5   :  { %10475 = vmatpush3.bf16.msra.mxu1 %v11065_v51  ;;  %2585 = vmatprep.mubr.bf16.mxu0 %v455_v52  ;;  %v262_v50 = vld [vmem:[%s18834_s0 + $0x700] sm:$0xff]  ;;  %v11089_v51 = vld [vmem:[%s18833_s2 + $0x3b0] sm:$0xff]  }
  0xa6   :  { %2682 = vmatprep.mubr.bf16.mxu1 %v457_v53  ;;  %10412 = vmatprep.subr.bf16.mxu0 %v11066_v56  ;;  %v240_v52 = vld [vmem:[%s18834_s0 + $0x650] sm:$0xff]  ;;  %v11090_v56 = vld [vmem:[%s18833_s2 + $0x378] sm:$0xff]   ;;  %v526_v62 = vpack.c.bf16 %v262_v50, %v238_v49  ;;  %v11095_v50 = vld [vmem:[%s18833_s2 + $0x400] sm:$0xff]  }
  0xa7   :  { %10476 = vmatprep.subr.bf16.mxu1 %v11068_v58  ;;  %v264_v53 = vld [vmem:[%s18834_s0 + $0x710] sm:$0xff]  ;;  %v313_v58 = vld [vmem:[%s18834_s0 + $0x898] sm:$0xff] }
  0xa8   :  { %10413 = vmatpush3.bf16.msra.mxu0 %v11067_v60  ;;  %v11092_v60 = vld [vmem:[%s18833_s2 + $0x3f8] sm:$0xff]   ;;  %v528_v63 = vpack.c.bf16 %v264_v53, %v240_v52  ;;  %v553_v1 = vpack.c.bf16 %v313_v58, %v289_v57  ;;  %v11099_v57 = vld [vmem:[%s18833_s2 + $0x408] sm:$0xff]  }
  0xa9   :  { %10477 = vmatpush3.bf16.msra.mxu1 %v11069_v61  ;;  %10414 = vmatprep.subr.bf16.mxu0 %v11070_v0  ;;  %v11093_v61 = vld [vmem:[%s18833_s2 + $0x3b8] sm:$0xff]   ;;  %v551_v0 = vpack.c.bf16 %v311_v55, %v287_v54  ;;  %v98_v54 = vld [vmem:[%s18834_s0 + $0x1e0] sm:$0xff]  ;;  %v11100_v58 = vld [vmem:[%s18833_s2 + $0x4c8] sm:$0xff]  }
  0xaa   :  { %10478 = vmatprep.subr.bf16.mxu1 %v11072_v3  ;;  %v310_v3 = vld [vmem:[%s18834_s0 + $0x880] sm:$0xff] }
  0xab   :  { %2586 = vmatmul.mubr.bf16.gmra.mrb[68].mxu0 %v454_v4  ;;  %v11094_v4 = vld [vmem:[%s18833_s2 + $0x440] sm:$0xff]  }
  0xac   :  { %2683 = vmatmul.mubr.bf16.gmra.mrb[68].mxu1 %v456_v5  ;;  %2593 = vmatprep.mubr.bf16.mxu0 %v479_v6  ;;  %v288_v5 = vld [vmem:[%s18834_s0 + $0x7d0] sm:$0xff]  ;;  %v122_v55 = vld [vmem:[%s18834_s0 + $0x2a0] sm:$0xff] }
  0xad   :  { %2690 = vmatprep.mubr.bf16.mxu1 %v481_v8  ;;  %10415 = vmatpush3.bf16.msra.mxu0 %v11071_v7  ;;  %v312_v6 = vld [vmem:[%s18834_s0 + $0x890] sm:$0xff]  ;;  %v11096_v7 = vld [vmem:[%s18833_s2 + $0x4c0] sm:$0xff]   ;;  %v335_v8 = vld [vmem:[%s18834_s0 + $0x948] sm:$0xff] }
  0xae   :  { %10479 = vmatpush3.bf16.msra.mxu1 %v11073_v9  ;;  %10416 = vmatprep.subr.bf16.mxu0 %v11074_v12  ;;  %v359_v9 = vld [vmem:[%s18834_s0 + $0xa08] sm:$0xff]  ;;  %v550_v12 = vpack.c.bf16 %v310_v3, %v286_v2  ;;  %v552_v13 = vpack.c.bf16 %v312_v6, %v288_v5  ;;  %v11102_v2 = vld [vmem:[%s18833_s2 + $0x450] sm:$0xff]  }
  0xaf   :  { %10480 = vmatprep.subr.bf16.mxu1 %v11076_v16  ;;  %v575_v14 = vpack.c.bf16 %v359_v9, %v335_v8  ;;  %v334_v16 = vld [vmem:[%s18834_s0 + $0x940] sm:$0xff]  ;;  %v11104_v3 = vld [vmem:[%s18833_s2 + $0x4d0] sm:$0xff]  }
  0xb0   :  { %v11103_v8 = vld [vmem:[%s18833_s2 + $0x410] sm:$0xff]  }
  0xb1   :  { %10417 = vmatpush3.bf16.msra.mxu0 %v11075_v20  ;;  %v383_v20 = vld [vmem:[%s18834_s0 + $0xac8] sm:$0xff]  ;;  %v11105_v9 = vld [vmem:[%s18833_s2 + $0x490] sm:$0xff]  }
  0xb2   :  { %10481 = vmatpush3.bf16.msra.mxu1 %v11077_v21  ;;  %10418 = vmatprep.subr.bf16.mxu0 %v11078_v22  ;;  %v407_v21 = vld [vmem:[%s18834_s0 + $0xb88] sm:$0xff]  ;;  %v385_v22 = vld [vmem:[%s18834_s0 + $0xad8] sm:$0xff] }
  0xb3   :  { %2594 = vmatmul.mubr.bf16.gmra.mrb[72].mxu0 %v478_v23  ;;  %10482 = vmatprep.subr.bf16.mxu1 %v11080_v24  ;;  %v409_v23 = vld [vmem:[%s18834_s0 + $0xb98] sm:$0xff]  ;;  %v574_v24 = vpack.c.bf16 %v358_v17, %v334_v16  ;;  %v219_v16 = vld [vmem:[%s18834_s0 + $0x5a8] sm:$0xff] }
  0xb4   :  { %2691 = vmatmul.mubr.bf16.gmra.mrb[72].mxu1 %v480_v25  ;;  %2601 = vmatprep.mubr.bf16.mxu0 %v503_v26  ;;  %v576_v25 = vpack.c.bf16 %v360_v19, %v336_v18  ;;  %v599_v26 = vpack.c.bf16 %v407_v21, %v383_v20  ;;  %v11108_v17 = vld [vmem:[%s18833_s2 + $0x4d8] sm:$0xff]  }
  0xb5   :  { %2698 = vmatprep.mubr.bf16.mxu1 %v505_v27  ;;  %10419 = vmatpush3.bf16.msra.mxu0 %v11079_v28  ;;  %v601_v27 = vpack.c.bf16 %v409_v23, %v385_v22  ;;  %v382_v28 = vld [vmem:[%s18834_s0 + $0xac0] sm:$0xff]  ;;  %v197_v18 = vld [vmem:[%s18834_s0 + $0x4f8] sm:$0xff]  ;;  %v482_v23 = vpack.c.bf16 %v170_v11, %v146_v10 }
  0xb6   :  { %10483 = vmatpush3.bf16.msra.mxu1 %v11081_v31  ;;  %10420 = vmatprep.subr.bf16.mxu0 %v11082_v32  ;;  %v408_v31 = vld [vmem:[%s18834_s0 + $0xb90] sm:$0xff]  ;;  %v51_v32 = vld [vmem:[%s18834_s0 + $0x68] sm:$0xff]  ;;  %v598_v36 = vpack.c.bf16 %v406_v29, %v382_v28  ;;  %v11107_v19 = vld [vmem:[%s18833_s2 + $0x418] sm:$0xff]  }
  0xb7   :  { %10484 = vmatprep.subr.bf16.mxu1 %v11084_v37  ;;  %v600_v37 = vpack.c.bf16 %v408_v31, %v384_v30  ;;  %v435_v38 = vpack.c.bf16 %v75_v33, %v51_v32  ;;  %v221_v20 = vld [vmem:[%s18834_s0 + $0x5b8] sm:$0xff]  ;;  %v11110_v22 = vld [vmem:[%s18833_s2 + $0x460] sm:$0xff]   ;;  %v11114_v32 = vld [vmem:[%s18833_s2 + $0x468] sm:$0xff]  }
  0xb8   :  { %v11109_v21 = vld [vmem:[%s18833_s2 + $0x498] sm:$0xff]   ;;  %v509_v28 = vpack.c.bf16 %v221_v20, %v197_v18  ;;  %v11113_v29 = vld [vmem:[%s18833_s2 + $0x4a0] sm:$0xff]   ;;  %v196_v33 = vld [vmem:[%s18834_s0 + $0x4f0] sm:$0xff] }
  0xb9   :  { %10421 = vmatpush3.bf16.msra.mxu0 %v11083_v40  ;;  %v50_v40 = vld [vmem:[%s18834_s0 + $0x60] sm:$0xff]  ;;  %v293_v10 = vld [vmem:[%s18834_s0 + $0x7f8] sm:$0xff] }
  0xba   :  { %10485 = vmatpush3.bf16.msra.mxu1 %v11085_v41  ;;  %10422 = vmatprep.subr.bf16.mxu0 %v11086_v42  ;;  %v74_v41 = vld [vmem:[%s18834_s0 + $0x120] sm:$0xff]  ;;  %v52_v42 = vld [vmem:[%s18834_s0 + $0x70] sm:$0xff]  ;;  %v317_v11 = vld [vmem:[%s18834_s0 + $0x8b8] sm:$0xff] }
  0xbb   :  { %2602 = vmatmul.mubr.bf16.gmra.mrb[76].mxu0 %v502_v43  ;;  %10486 = vmatprep.subr.bf16.mxu1 %v11088_v44  ;;  %v76_v43 = vld [vmem:[%s18834_s0 + $0x130] sm:$0xff]  ;;  %v99_v44 = vld [vmem:[%s18834_s0 + $0x1e8] sm:$0xff]  ;;  %v194_v30 = vld [vmem:[%s18834_s0 + $0x4e0] sm:$0xff] }
  0xbc   :  { %2699 = vmatmul.mubr.bf16.gmra.mrb[76].mxu1 %v504_v45  ;;  %2609 = vmatprep.mubr.bf16.mxu0 %v527_v46  ;;  %v123_v45 = vld [vmem:[%s18834_s0 + $0x2a8] sm:$0xff]  ;;  %v101_v46 = vld [vmem:[%s18834_s0 + $0x1f8] sm:$0xff]  ;;  %v436_v49 = vpack.c.bf16 %v76_v43, %v52_v42  ;;  %v218_v31 = vld [vmem:[%s18834_s0 + $0x5a0] sm:$0xff] }
  0xbd   :  { %2706 = vmatprep.mubr.bf16.mxu1 %v529_v47  ;;  %10423 = vmatpush3.bf16.msra.mxu0 %v11087_v48  ;;  %v434_v47 = vpack.c.bf16 %v74_v41, %v50_v40  ;;  %v125_v48 = vld [vmem:[%s18834_s0 + $0x2b8] sm:$0xff]  ;;  %v459_v52 = vpack.c.bf16 %v123_v45, %v99_v44  ;;  %v11115_v40 = vld [vmem:[%s18833_s2 + $0x428] sm:$0xff]   ;;  %v11118_v44 = vld [vmem:[%s18833_s2 + $0x470] sm:$0xff]  }
  0xbe   :  { %10487 = vmatpush3.bf16.msra.mxu1 %v11089_v51  ;;  %10424 = vmatprep.subr.bf16.mxu0 %v11090_v56  ;;  %v11097_v51 = vld [vmem:[%s18833_s2 + $0x480] sm:$0xff]   ;;  %v461_v53 = vpack.c.bf16 %v125_v48, %v101_v46  ;;  %v11098_v56 = vld [vmem:[%s18833_s2 + $0x448] sm:$0xff]   ;;  %v269_v42 = vld [vmem:[%s18834_s0 + $0x738] sm:$0xff] }
  0xbf   :  { %10488 = vmatprep.subr.bf16.mxu1 %v11092_v60  ;;  %v124_v60 = vld [vmem:[%s18834_s0 + $0x2b0] sm:$0xff]  ;;  %v11117_v43 = vld [vmem:[%s18833_s2 + $0x4a8] sm:$0xff]   ;;  %v11128_v20 = vld [vmem:[%s18833_s2 + $0x5c0] sm:$0xff]  }
  0xc0   :  { %v11120_v48 = vld [vmem:[%s18833_s2 + $0x4f0] sm:$0xff]  }
  0xc1   :  { %10425 = vmatpush3.bf16.msra.mxu0 %v11091_v59  ;;  %v100_v59 = vld [vmem:[%s18834_s0 + $0x1f0] sm:$0xff] }
  0xc2   :  { %10489 = vmatpush3.bf16.msra.mxu1 %v11093_v61  ;;  %10538 = vmatprep.subr.bf16.mxu0 %v11094_v4  ;;  %v11101_v61 = vld [vmem:[%s18833_s2 + $0x488] sm:$0xff]   ;;  %v458_v4 = vpack.c.bf16 %v122_v55, %v98_v54  ;;  %v460_v5 = vpack.c.bf16 %v124_v60, %v100_v59  ;;  %v11121_v59 = vld [vmem:[%s18833_s2 + $0x4b0] sm:$0xff]  }
  0xc3   :  { %2610 = vmatmul.mubr.bf16.gmra.mrb[80].mxu0 %v526_v62  ;;  %10602 = vmatprep.subr.bf16.mxu1 %v11096_v7  ;;  %v147_v62 = vld [vmem:[%s18834_s0 + $0x368] sm:$0xff] }
  0xc4   :  { %2707 = vmatmul.mubr.bf16.gmra.mrb[80].mxu1 %v528_v63  ;;  %2617 = vmatprep.mubr.bf16.mxu0 %v551_v0  ;;  %v171_v63 = vld [vmem:[%s18834_s0 + $0x428] sm:$0xff]  ;;  %v149_v0 = vld [vmem:[%s18834_s0 + $0x378] sm:$0xff] }
  0xc5   :  { %2714 = vmatprep.mubr.bf16.mxu1 %v553_v1  ;;  %v173_v1 = vld [vmem:[%s18834_s0 + $0x438] sm:$0xff]  ;;  %v483_v6 = vpack.c.bf16 %v171_v63, %v147_v62  ;;  %v242_v63 = vld [vmem:[%s18834_s0 + $0x660] sm:$0xff] }
  0xc6   :  { %v485_v7 = vpack.c.bf16 %v173_v1, %v149_v0  ;;  %v266_v0 = vld [vmem:[%s18834_s0 + $0x720] sm:$0xff]  ;;  %v11122_v1 = vld [vmem:[%s18833_s2 + $0x478] sm:$0xff]  }
  0xcb   :  { %2618 = vmatmul.mubr.bf16.gmra.mrb[84].mxu0 %v550_v12  ;;  %v11106_v12 = vld [vmem:[%s18833_s2 + $0x458] sm:$0xff]  }
  0xcc   :  { %2715 = vmatmul.mubr.bf16.gmra.mrb[84].mxu1 %v552_v13  ;;  %2625 = vmatprep.mubr.bf16.mxu0 %v575_v14  ;;  %v148_v13 = vld [vmem:[%s18834_s0 + $0x370] sm:$0xff] }
  0xcd   :  { %2722 = vmatprep.mubr.bf16.mxu1 %v577_v15  ;;  %v172_v14 = vld [vmem:[%s18834_s0 + $0x430] sm:$0xff]  ;;  %v195_v15 = vld [vmem:[%s18834_s0 + $0x4e8] sm:$0xff] }
  0xd3   :  { %2626 = vmatmul.mubr.bf16.gmra.mrb[88].mxu0 %v574_v24  ;;  %v11112_v24 = vld [vmem:[%s18833_s2 + $0x4e0] sm:$0xff]  }
  0xd4   :  { %2723 = vmatmul.mubr.bf16.gmra.mrb[88].mxu1 %v576_v25  ;;  %2633 = vmatprep.mubr.bf16.mxu0 %v599_v26  ;;  %v484_v25 = vpack.c.bf16 %v172_v14, %v148_v13  ;;  %v507_v26 = vpack.c.bf16 %v219_v16, %v195_v15  ;;  %v11125_v13 = vld [vmem:[%s18833_s2 + $0x4b8] sm:$0xff]   ;;  %v11126_v16 = vld [vmem:[%s18833_s2 + $0x540] sm:$0xff]  }
  0xd5   :  { %2730 = vmatprep.mubr.bf16.mxu1 %v601_v27  ;;  %v11111_v27 = vld [vmem:[%s18833_s2 + $0x420] sm:$0xff]  }
  0xdb   :  { %2634 = vmatmul.mubr.bf16.gmra.mrb[92].mxu0 %v598_v36  ;;  %v243_v36 = vld [vmem:[%s18834_s0 + $0x668] sm:$0xff] }
  0xdc   :  { %2731 = vmatmul.mubr.bf16.gmra.mrb[92].mxu1 %v600_v37  ;;  %2771 = vmatprep.mubr.bf16.mxu0 %v435_v38  ;;  %v13919_v37 = vld [vmem:[%s18835_s3] ss:$0 sm:$0xff]  ;;  %v267_v38 = vld [vmem:[%s18834_s0 + $0x728] sm:$0xff] }
  0xdd   :  { %2868 = vmatprep.mubr.bf16.mxu1 %v437_v39  ;;  %v245_v39 = vld [vmem:[%s18834_s0 + $0x678] sm:$0xff] }
  0xe3   :  { %2772 = vmatmul.mubr.bf16.vlgmr.msra.gmra.mrb[96].mxu0 %v434_v47  ;;  %v506_v47 = vpack.c.bf16 %v218_v31, %v194_v30 }
  0xe4   :  { %2869 = vmatmul.mubr.bf16.vlgmr.msra.gmra.mrb[96].mxu1 %v436_v49  ;;  %10539 = vmatpush3.bf16.msra.mxu0 %v11095_v50 }
  0xe5   :  { %10603 = vmatpush3.bf16.msra.mxu1 %v11097_v51  ;;  %2779 = vmatprep.mubr.bf16.mxu0 %v459_v52  ;;  %v508_v52 = vpack.c.bf16 %v220_v35, %v196_v33  ;;  %v314_v35 = vld [vmem:[%s18834_s0 + $0x8a0] sm:$0xff] }
  0xe6   :  { %2876 = vmatprep.mubr.bf16.mxu1 %v461_v53  ;;  %10540 = vmatprep.subr.bf16.mxu0 %v11098_v56  ;;  %v531_v53 = vpack.c.bf16 %v267_v38, %v243_v36  ;;  %v292_v36 = vld [vmem:[%s18834_s0 + $0x7f0] sm:$0xff] }
  0xe7   :  { %10604 = vmatprep.subr.bf16.mxu1 %v11100_v58  ;;  %v11119_v58 = vld [vmem:[%s18833_s2 + $0x430] sm:$0xff]  }
  0xe8   :  { %10541 = vmatpush3.bf16.msra.mxu0 %v11099_v57  ;;  %v533_v57 = vpack.c.bf16 %v269_v42, %v245_v39  ;;  %v363_v42 = vld [vmem:[%s18834_s0 + $0xa28] sm:$0xff] }
  0xe9   :  { %10605 = vmatpush3.bf16.msra.mxu1 %v11101_v61  ;;  %10542 = vmatprep.subr.bf16.mxu0 %v11102_v2 }
  0xea   :  { %10606 = vmatprep.subr.bf16.mxu1 %v11104_v3  ;;  %v244_v3 = vld [vmem:[%s18834_s0 + $0x670] sm:$0xff] }
  0xeb   :  { %2780 = vmatmul.mubr.bf16.gmra.mrb[100].mxu0 %v458_v4  ;;  %v268_v4 = vld [vmem:[%s18834_s0 + $0x730] sm:$0xff] }
  0xec   :  { %2877 = vmatmul.mubr.bf16.gmra.mrb[100].mxu1 %v460_v5  ;;  %2787 = vmatprep.mubr.bf16.mxu0 %v483_v6  ;;  %v11124_v5 = vld [vmem:[%s18833_s2 + $0x4f8] sm:$0xff]  }
  0xed   :  { %2884 = vmatprep.mubr.bf16.mxu1 %v485_v7  ;;  %10543 = vmatpush3.bf16.msra.mxu0 %v11103_v8  ;;  %v291_v8 = vld [vmem:[%s18834_s0 + $0x7e8] sm:$0xff] }
  0xee   :  { %10607 = vmatpush3.bf16.msra.mxu1 %v11105_v9  ;;  %10544 = vmatprep.subr.bf16.mxu0 %v11106_v12  ;;  %v315_v9 = vld [vmem:[%s18834_s0 + $0x8a8] sm:$0xff]  ;;  %v11123_v12 = vld [vmem:[%s18833_s2 + $0x438] sm:$0xff]  }
  0xef   :  { %10608 = vmatprep.subr.bf16.mxu1 %v11108_v17 }
  0xf1   :  { %10545 = vmatpush3.bf16.msra.mxu0 %v11107_v19  ;;  %v530_v19 = vpack.c.bf16 %v266_v0, %v242_v63  ;;  %v362_v63 = vld [vmem:[%s18834_s0 + $0xa20] sm:$0xff] }
  0xf2   :  { %10609 = vmatpush3.bf16.msra.mxu1 %v11109_v21  ;;  %10546 = vmatprep.subr.bf16.mxu0 %v11110_v22 }
  0xf3   :  { %2788 = vmatmul.mubr.bf16.gmra.mrb[104].mxu0 %v482_v23  ;;  %10610 = vmatprep.subr.bf16.mxu1 %v11112_v24  ;;  %v532_v24 = vpack.c.bf16 %v268_v4, %v244_v3  ;;  %v387_v3 = vld [vmem:[%s18834_s0 + $0xae8] sm:$0xff] }
  0xf4   :  { %2885 = vmatmul.mubr.bf16.gmra.mrb[104].mxu1 %v484_v25  ;;  %2795 = vmatprep.mubr.bf16.mxu0 %v507_v26  ;;  %v555_v25 = vpack.c.bf16 %v315_v9, %v291_v8  ;;  %v389_v8 = vld [vmem:[%s18834_s0 + $0xaf8] sm:$0xff] }
  0xf5   :  { %2892 = vmatprep.mubr.bf16.mxu1 %v509_v28  ;;  %10547 = vmatpush3.bf16.msra.mxu0 %v11111_v27 }
  0xf6   :  { %v10042_v41 = vpop.f32.mrb[0].mxu0  ;;  %10611 = vmatpush3.bf16.msra.mxu1 %v11113_v29  ;;  %10548 = vmatprep.subr.bf16.mxu0 %v11114_v32  ;;  %v557_v29 = vpack.c.bf16 %v317_v11, %v293_v10  ;;  %v413_v11 = vld [vmem:[%s18834_s0 + $0xbb8] sm:$0xff] }
  0xf7   :  { %v10106_v45 = vpop.f32.mrb[0].mxu1  ;;  %v10043_v46 = vpop.f32.mrb[1].mxu0  ;;  %10612 = vmatprep.subr.bf16.mxu1 %v11116_v34  ;;  %v290_v34 = vld [vmem:[%s18834_s0 + $0x7e0] sm:$0xff] }
  0xf8   :  { %v10044_v49 = vadd.f32 %v10043_v46, %v10042_v41  ;;  %v10107_v50 = vpop.f32.mrb[1].mxu1  ;;  %v10045_v51 = vpop.f32.mrb[2].mxu0  ;;  %v339_v41 = vld [vmem:[%s18834_s0 + $0x968] sm:$0xff]  ;;  %v365_v46 = vld [vmem:[%s18834_s0 + $0xa38] sm:$0xff] }
  0xf9   :  { %v10108_v54 = vadd.f32 %v10107_v50, %v10106_v45  ;;  %v10109_v55 = vpop.f32.mrb[2].mxu1  ;;  %v10046_v56 = vpop.f32.mrb[3].mxu0  ;;  %10549 = vmatpush3.bf16.msra.mxu0 %v11115_v40  ;;  %v316_v40 = vld [vmem:[%s18834_s0 + $0x8b0] sm:$0xff] }
  0xfa   :  { %v2192_v60 = vadd.f32 %v10044_v49, %v13919_v37  ;;  %v10047_v61 = vadd.f32 %v10046_v56, %v10045_v51  ;;  %v10110_v62 = vpop.f32.mrb[3].mxu1  ;;  %10613 = vmatpush3.bf16.msra.mxu1 %v11117_v43  ;;  %10550 = vmatprep.subr.bf16.mxu0 %v11118_v44  ;;  %v341_v43 = vld [vmem:[%s18834_s0 + $0x978] sm:$0xff]  ;;  %v554_v49 = vpack.c.bf16 %v314_v35, %v290_v34 }
  0xfb   :  { %v10111_v2 = vadd.f32 %v10110_v62, %v10109_v55  ;;  %2796 = vmatmul.mubr.bf16.gmra.mrb[108].mxu0 %v506_v47  ;;  %10614 = vmatprep.subr.bf16.mxu1 %v11120_v48  ;;  %v338_v62 = vld [vmem:[%s18834_s0 + $0x960] sm:$0xff] }
  0xfc   :  { %v13967_v6 = vadd.f32 %v10108_v54, %v2192_v60  ;;  %v2195_v7 = vadd.f32 %v10047_v61, %v13919_v37  ;;  %2893 = vmatmul.mubr.bf16.gmra.mrb[108].mxu1 %v508_v52  ;;  %2803 = vmatprep.mubr.bf16.mxu0 %v531_v53  ;;  %v556_v53 = vpack.c.bf16 %v316_v40, %v292_v36  ;;  %v79_v36 = vld [vmem:[%s18834_s0 + $0x148] sm:$0xff] }
  0xfd   :  { %2900 = vmatprep.mubr.bf16.mxu1 %v533_v57  ;;  %10551 = vmatpush3.bf16.msra.mxu0 %v11119_v58  ;;  %v579_v54 = vpack.c.bf16 %v363_v42, %v339_v41  ;;  %v581_v58 = vpack.c.bf16 %v365_v46, %v341_v43  ;;  %v81_v42 = vld [vmem:[%s18834_s0 + $0x158] sm:$0xff] }
  0xfe   :  { %v13988_v14 = vadd.f32 %v10111_v2, %v2195_v7  ;;  %v10048_v15 = vpop.f32.mrb[4].mxu0  ;;  %10615 = vmatpush3.bf16.msra.mxu1 %v11121_v59  ;;  %10552 = vmatprep.subr.bf16.mxu0 %v11122_v1  ;;  %v340_v1 = vld [vmem:[%s18834_s0 + $0x970] sm:$0xff]  ;;  %v411_v7 = vld [vmem:[%s18834_s0 + $0xba8] sm:$0xff] }
  0xff   :  { %v10112_v17 = vpop.f32.mrb[4].mxu1  ;;  %v10049_v18 = vpop.f32.mrb[5].mxu0  ;;  %10616 = vmatprep.subr.bf16.mxu1 %v11124_v5  ;;  %v364_v2 = vld [vmem:[%s18834_s0 + $0xa30] sm:$0xff] }
 0x100   :  { %v10050_v21 = vadd.f32 %v10049_v18, %v10048_v15  ;;  %v10113_v22 = vpop.f32.mrb[5].mxu1  ;;  %v10051_v23 = vpop.f32.mrb[6].mxu0  ;;  %v578_v15 = vpack.c.bf16 %v362_v63, %v338_v62  ;;  %v78_v63 = vld [vmem:[%s18834_s0 + $0x140] sm:$0xff] }
 0x101   :  { %v10114_v26 = vadd.f32 %v10113_v22, %v10112_v17  ;;  %v10115_v27 = vpop.f32.mrb[6].mxu1  ;;  %v10052_v28 = vpop.f32.mrb[7].mxu0  ;;  %10553 = vmatpush3.bf16.msra.mxu0 %v11123_v12 }
 0x102   :  { %v2200_v30 = vadd.f32 %v10050_v21, %v13919_v37  ;;  %v10053_v31 = vadd.f32 %v10052_v28, %v10051_v23  ;;  %v10116_v32 = vpop.f32.mrb[7].mxu1  ;;  %10617 = vmatpush3.bf16.msra.mxu1 %v11125_v13  ;;  %10666 = vmatprep.subr.bf16.mxu0 %v11126_v16  ;;  %v386_v28 = vld [vmem:[%s18834_s0 + $0xae0] sm:$0xff] }
 0x103   :  { %v10117_v33 = vadd.f32 %v10116_v32, %v10115_v27  ;;  %2804 = vmatmul.mubr.bf16.gmra.mrb[112].mxu0 %v530_v19  ;;  %10730 = vmatprep.subr.bf16.mxu1 %v11128_v20  ;;  %v580_v19 = vpack.c.bf16 %v364_v2, %v340_v1  ;;  %v603_v20 = vpack.c.bf16 %v411_v7, %v387_v3  ;;  %v412_v32 = vld [vmem:[%s18834_s0 + $0xbb0] sm:$0xff]  ;;  %v127_v7 = vld [vmem:[%s18834_s0 + $0x2c8] sm:$0xff] }
 0x104   :  { %v14006_v38 = vadd.f32 %v10114_v26, %v2200_v30  ;;  %v2203_v39 = vadd.f32 %v10053_v31, %v13919_v37  ;;  %2901 = vmatmul.mubr.bf16.gmra.mrb[112].mxu1 %v532_v24  ;;  %2811 = vmatprep.mubr.bf16.mxu0 %v555_v25  ;;  %v605_v24 = vpack.c.bf16 %v413_v11, %v389_v8  ;;  %v388_v31 = vld [vmem:[%s18834_s0 + $0xaf0] sm:$0xff] }
 0x105   :  { %2908 = vmatprep.mubr.bf16.mxu1 %v557_v29  ;;  %v410_v29 = vld [vmem:[%s18834_s0 + $0xba0] sm:$0xff]  ;;  %v80_v1 = vld [vmem:[%s18834_s0 + $0x150] sm:$0xff] }
 0x106   :  { %v14021_v44 = vadd.f32 %v10117_v33, %v2203_v39  ;;  %v10054_v45 = vpop.f32.mrb[8].mxu0  ;;  %v55_v33 = vld [vmem:[%s18834_s0 + $0x88] sm:$0xff]  ;;  %v57_v39 = vld [vmem:[%s18834_s0 + $0x98] sm:$0xff]  ;;  %v602_v46 = vpack.c.bf16 %v410_v29, %v386_v28  ;;  %v102_v29 = vld [vmem:[%s18834_s0 + $0x200] sm:$0xff] }
 0x107   :  { %v10118_v47 = vpop.f32.mrb[8].mxu1  ;;  %v10055_v48 = vpop.f32.mrb[9].mxu0 }
 0x108   :  { %v10056_v50 = vadd.f32 %v10055_v48, %v10054_v45  ;;  %v10119_v51 = vpop.f32.mrb[9].mxu1  ;;  %v10057_v52 = vpop.f32.mrb[10].mxu0 }
 0x109   :  { %v10120_v55 = vadd.f32 %v10119_v51, %v10118_v47  ;;  %v10121_v56 = vpop.f32.mrb[10].mxu1  ;;  %v10058_v57 = vpop.f32.mrb[11].mxu0  ;;  %v439_v51 = vpack.c.bf16 %v79_v36, %v55_v33  ;;  %v104_v33 = vld [vmem:[%s18834_s0 + $0x210] sm:$0xff]  ;;  %v11132_v36 = vld [vmem:[%s18833_s2 + $0x5c8] sm:$0xff]  }
 0x10a   :  { %v2208_v59 = vadd.f32 %v10056_v50, %v13919_v37  ;;  %v10059_v60 = vadd.f32 %v10058_v57, %v10057_v52  ;;  %v10122_v61 = vpop.f32.mrb[11].mxu1  ;;  %v604_v50 = vpack.c.bf16 %v412_v32, %v388_v31  ;;  %v11130_v31 = vld [vmem:[%s18833_s2 + $0x548] sm:$0xff]  }
 0x10b   :  { %v10123_v0 = vadd.f32 %v10122_v61, %v10121_v56  ;;  %2812 = vmatmul.mubr.bf16.gmra.mrb[116].mxu0 %v554_v49 }
 0x10c   :  { %v14042_v4 = vadd.f32 %v10120_v55, %v2208_v59  ;;  %v2211_v5 = vadd.f32 %v10059_v60, %v13919_v37  ;;  %2909 = vmatmul.mubr.bf16.gmra.mrb[116].mxu1 %v556_v53  ;;  %2819 = vmatprep.mubr.bf16.mxu0 %v579_v54  ;;  %v441_v55 = vpack.c.bf16 %v81_v42, %v57_v39  ;;  %v54_v60 = vld [vmem:[%s18834_s0 + $0x80] sm:$0xff]  ;;  %v11131_v42 = vld [vmem:[%s18833_s2 + $0x508] sm:$0xff]  }
 0x10d   :  { %2916 = vmatprep.mubr.bf16.mxu1 %v581_v58  ;;  %v438_v11 = vpack.c.bf16 %v78_v63, %v54_v60 }
 0x10e   :  { %v14051_v9 = vadd.f32 %v10123_v0, %v2211_v5  ;;  %v10060_v10 = vpop.f32.mrb[12].mxu0  ;;  %v56_v0 = vld [vmem:[%s18834_s0 + $0x90] sm:$0xff]  ;;  %v103_v5 = vld [vmem:[%s18834_s0 + $0x208] sm:$0xff] }
 0x10f   :  { %v10124_v12 = vpop.f32.mrb[12].mxu1  ;;  %v10061_v13 = vpop.f32.mrb[13].mxu0 }
 0x110   :  { %v10062_v16 = vadd.f32 %v10061_v13, %v10060_v10  ;;  %v10125_v17 = vpop.f32.mrb[13].mxu1  ;;  %v10063_v18 = vpop.f32.mrb[14].mxu0  ;;  %v129_v13 = vld [vmem:[%s18834_s0 + $0x2d8] sm:$0xff] }
 0x111   :  { %v10126_v21 = vadd.f32 %v10125_v17, %v10124_v12  ;;  %v10127_v22 = vpop.f32.mrb[14].mxu1  ;;  %v10064_v23 = vpop.f32.mrb[15].mxu0  ;;  %v105_v12 = vld [vmem:[%s18834_s0 + $0x218] sm:$0xff] }
 0x112   :  { %v2216_v25 = vadd.f32 %v10062_v16, %v13919_v37  ;;  %v10065_v26 = vadd.f32 %v10064_v23, %v10063_v18  ;;  %v10128_v27 = vpop.f32.mrb[15].mxu1  ;;  %v440_v18 = vpack.c.bf16 %v80_v1, %v56_v0  ;;  %v465_v28 = vpack.c.bf16 %v129_v13, %v105_v12  ;;  %v174_v12 = vld [vmem:[%s18834_s0 + $0x440] sm:$0xff]  ;;  %v11138_v13 = vld [vmem:[%s18833_s2 + $0x558] sm:$0xff]  }
 0x113   :  { %v10129_v30 = vadd.f32 %v10128_v27, %v10127_v22  ;;  %2820 = vmatmul.mubr.bf16.gmra.mrb[120].mxu0 %v578_v15 }
 0x114   :  { %v14072_v34 = vadd.f32 %v10126_v21, %v2216_v25  ;;  %v2219_v35 = vadd.f32 %v10065_v26, %v13919_v37  ;;  %2917 = vmatmul.mubr.bf16.gmra.mrb[120].mxu1 %v580_v19  ;;  %2827 = vmatprep.mubr.bf16.mxu0 %v603_v20  ;;  %v11127_v19 = vld [vmem:[%s18833_s2 + $0x500] sm:$0xff]  }
 0x115   :  { %2924 = vmatprep.mubr.bf16.mxu1 %v605_v24  ;;  %v11129_v20 = vld [vmem:[%s18833_s2 + $0x580] sm:$0xff]   ;;  %v463_v24 = vpack.c.bf16 %v127_v7, %v103_v5  ;;  %v11137_v5 = vld [vmem:[%s18833_s2 + $0x590] sm:$0xff]  }
 0x116   :  { %v14081_v40 = vadd.f32 %v10129_v30, %v2219_v35  ;;  %v10066_v41 = vpop.f32.mrb[16].mxu0  ;;  %v126_v30 = vld [vmem:[%s18834_s0 + $0x2c0] sm:$0xff]  ;;  %v128_v35 = vld [vmem:[%s18834_s0 + $0x2d0] sm:$0xff] }
 0x117   :  { %v10130_v43 = vpop.f32.mrb[16].mxu1  ;;  %v10067_v45 = vpop.f32.mrb[17].mxu0 }
 0x118   :  { %v10068_v47 = vadd.f32 %v10067_v45, %v10066_v41  ;;  %v10131_v48 = vpop.f32.mrb[17].mxu1  ;;  %v10069_v49 = vpop.f32.mrb[18].mxu0  ;;  %v151_v45 = vld [vmem:[%s18834_s0 + $0x388] sm:$0xff] }
 0x119   :  { %v10132_v52 = vadd.f32 %v10131_v48, %v10130_v43  ;;  %v10133_v53 = vpop.f32.mrb[18].mxu1  ;;  %v10070_v54 = vpop.f32.mrb[19].mxu0  ;;  %v11133_v43 = vld [vmem:[%s18833_s2 + $0x588] sm:$0xff]  }
 0x11a   :  { %v2224_v56 = vadd.f32 %v10068_v47, %v13919_v37  ;;  %v10071_v57 = vadd.f32 %v10070_v54, %v10069_v49  ;;  %v10134_v58 = vpop.f32.mrb[19].mxu1  ;;  %v11134_v47 = vld [vmem:[%s18833_s2 + $0x550] sm:$0xff]  }
 0x11b   :  { %v10135_v59 = vadd.f32 %v10134_v58, %v10133_v53  ;;  %2828 = vmatmul.mubr.bf16.gmra.mrb[124].mxu0 %v602_v46  ;;  %v175_v46 = vld [vmem:[%s18834_s0 + $0x448] sm:$0xff] }
 0x11c   :  { %v14090_v61 = vadd.f32 %v10132_v52, %v2224_v56  ;;  %v2227_v62 = vadd.f32 %v10071_v57, %v13919_v37  ;;  %2925 = vmatmul.mubr.bf16.gmra.mrb[124].mxu1 %v604_v50  ;;  %2965 = vmatprep.mubr.bf16.mxu0 %v439_v51  ;;  %v153_v50 = vld [vmem:[%s18834_s0 + $0x398] sm:$0xff]  ;;  %v11136_v52 = vld [vmem:[%s18833_s2 + $0x5d0] sm:$0xff]   ;;  %v487_v60 = vpack.c.bf16 %v175_v46, %v151_v45 }
 0x11d   :  { %3062 = vmatprep.mubr.bf16.mxu1 %v441_v55  ;;  %v177_v51 = vld [vmem:[%s18834_s0 + $0x458] sm:$0xff]  ;;  %v462_v55 = vpack.c.bf16 %v126_v30, %v102_v29  ;;  %v11142_v29 = vld [vmem:[%s18833_s2 + $0x560] sm:$0xff]  }
 0x11e   :  { %v14102_v2 = vadd.f32 %v10135_v59, %v2227_v62  ;;  %v10072_v3 = vpop.f32.mrb[20].mxu0  ;;  %v464_v59 = vpack.c.bf16 %v128_v35, %v104_v33  ;;  %v489_v1 = vpack.c.bf16 %v177_v51, %v153_v50  ;;  %v11144_v33 = vld [vmem:[%s18833_s2 + $0x5e0] sm:$0xff]  }
 0x11f   :  { %v10136_v8 = vpop.f32.mrb[20].mxu1  ;;  %v10073_v10 = vpop.f32.mrb[21].mxu0  ;;  %v11143_v50 = vld [vmem:[%s18833_s2 + $0x520] sm:$0xff]  }
 0x120   :  { %v10074_v15 = vadd.f32 %v10073_v10, %v10072_v3  ;;  %v10137_v16 = vpop.f32.mrb[21].mxu1  ;;  %v10075_v17 = vpop.f32.mrb[22].mxu0  ;;  %v11135_v3 = vld [vmem:[%s18833_s2 + $0x510] sm:$0xff]  }
 0x121   :  { %v10138_v21 = vadd.f32 %v10137_v16, %v10136_v8  ;;  %v10139_v22 = vpop.f32.mrb[22].mxu1  ;;  %v10076_v23 = vpop.f32.mrb[23].mxu0  ;;  %v11140_v16 = vld [vmem:[%s18833_s2 + $0x5d8] sm:$0xff]  }
 0x122   :  { %v2232_v25 = vadd.f32 %v10074_v15, %v13919_v37  ;;  %v10077_v26 = vadd.f32 %v10076_v23, %v10075_v17  ;;  %v10140_v27 = vpop.f32.mrb[23].mxu1  ;;  %v201_v23 = vld [vmem:[%s18834_s0 + $0x518] sm:$0xff] }
 0x123   :  { %v10141_v32 = vadd.f32 %v10140_v27, %v10139_v22  ;;  %2966 = vmatmul.mubr.bf16.vlgmr.msra.gmra.mrb[128].mxu0 %v438_v11  ;;  %v150_v11 = vld [vmem:[%s18834_s0 + $0x380] sm:$0xff]  ;;  %v223_v22 = vld [vmem:[%s18834_s0 + $0x5c8] sm:$0xff]  ;;  %v225_v27 = vld [vmem:[%s18834_s0 + $0x5d8] sm:$0xff] }
 0x124   :  { %v14141_v39 = vadd.f32 %v10138_v21, %v2232_v25  ;;  %v2235_v41 = vadd.f32 %v10077_v26, %v13919_v37  ;;  %3063 = vmatmul.mubr.bf16.vlgmr.msra.gmra.mrb[128].mxu1 %v440_v18  ;;  %10667 = vmatpush3.bf16.msra.mxu0 %v11127_v19  ;;  %v152_v19 = vld [vmem:[%s18834_s0 + $0x390] sm:$0xff]  ;;  %v199_v21 = vld [vmem:[%s18834_s0 + $0x508] sm:$0xff] }
 0x125   :  { %10731 = vmatpush3.bf16.msra.mxu1 %v11129_v20  ;;  %2973 = vmatprep.mubr.bf16.mxu0 %v463_v24  ;;  %v176_v20 = vld [vmem:[%s18834_s0 + $0x450] sm:$0xff]  ;;  %v11139_v24 = vld [vmem:[%s18833_s2 + $0x518] sm:$0xff]  }
 0x126   :  { %v14159_v48 = vadd.f32 %v10141_v32, %v2235_v41  ;;  %v10078_v49 = vpop.f32.mrb[24].mxu0  ;;  %3070 = vmatprep.mubr.bf16.mxu1 %v465_v28  ;;  %10668 = vmatprep.subr.bf16.mxu0 %v11130_v31  ;;  %v11141_v28 = vld [vmem:[%s18833_s2 + $0x598] sm:$0xff]   ;;  %v486_v32 = vpack.c.bf16 %v174_v12, %v150_v11  ;;  %v11149_v11 = vld [vmem:[%s18833_s2 + $0x5a8] sm:$0xff]   ;;  %v11150_v12 = vld [vmem:[%s18833_s2 + $0x570] sm:$0xff]  }
 0x127   :  { %v10142_v53 = vpop.f32.mrb[24].mxu1  ;;  %v10079_v54 = vpop.f32.mrb[25].mxu0  ;;  %10732 = vmatprep.subr.bf16.mxu1 %v11132_v36 }
 0x128   :  { %v10080_v56 = vadd.f32 %v10079_v54, %v10078_v49  ;;  %v10143_v57 = vpop.f32.mrb[25].mxu1  ;;  %v10081_v58 = vpop.f32.mrb[26].mxu0  ;;  %10669 = vmatpush3.bf16.msra.mxu0 %v11131_v42  ;;  %v488_v42 = vpack.c.bf16 %v176_v20, %v152_v19  ;;  %v513_v49 = vpack.c.bf16 %v225_v27, %v201_v23  ;;  %v11145_v54 = vld [vmem:[%s18833_s2 + $0x5a0] sm:$0xff]  }
 0x129   :  { %v10144_v62 = vadd.f32 %v10143_v57, %v10142_v53  ;;  %v10145_v63 = vpop.f32.mrb[26].mxu1  ;;  %v10082_v0 = vpop.f32.mrb[27].mxu0  ;;  %10733 = vmatpush3.bf16.msra.mxu1 %v11133_v43  ;;  %10670 = vmatprep.subr.bf16.mxu0 %v11134_v47  ;;  %v511_v43 = vpack.c.bf16 %v223_v22, %v199_v21  ;;  %v198_v57 = vld [vmem:[%s18834_s0 + $0x500] sm:$0xff] }
 0x12a   :  { %v2240_v7 = vadd.f32 %v10080_v56, %v13919_v37  ;;  %v10083_v8 = vadd.f32 %v10082_v0, %v10081_v58  ;;  %v10146_v10 = vpop.f32.mrb[27].mxu1  ;;  %10734 = vmatprep.subr.bf16.mxu1 %v11136_v52  ;;  %v222_v58 = vld [vmem:[%s18834_s0 + $0x5c0] sm:$0xff]  ;;  %v224_v0 = vld [vmem:[%s18834_s0 + $0x5d0] sm:$0xff] }
 0x12b   :  { %v10147_v15 = vadd.f32 %v10146_v10, %v10145_v63  ;;  %2974 = vmatmul.mubr.bf16.gmra.mrb[132].mxu0 %v462_v55  ;;  %v11146_v55 = vld [vmem:[%s18833_s2 + $0x568] sm:$0xff]   ;;  %v200_v63 = vld [vmem:[%s18834_s0 + $0x510] sm:$0xff]  ;;  %v273_v10 = vld [vmem:[%s18834_s0 + $0x758] sm:$0xff] }
 0x12c   :  { %v14189_v17 = vadd.f32 %v10144_v62, %v2240_v7  ;;  %v2243_v18 = vadd.f32 %v10083_v8, %v13919_v37  ;;  %3071 = vmatmul.mubr.bf16.gmra.mrb[132].mxu1 %v464_v59  ;;  %2981 = vmatprep.mubr.bf16.mxu0 %v487_v60  ;;  %v11148_v59 = vld [vmem:[%s18833_s2 + $0x5e8] sm:$0xff]   ;;  %v512_v22 = vpack.c.bf16 %v224_v0, %v200_v63 }
 0x12d   :  { %3078 = vmatprep.mubr.bf16.mxu1 %v489_v1  ;;  %10671 = vmatpush3.bf16.msra.mxu0 %v11135_v3  ;;  %v247_v1 = vld [vmem:[%s18834_s0 + $0x688] sm:$0xff] }
 0x12e   :  { %v14210_v25 = vadd.f32 %v10147_v15, %v2243_v18  ;;  %v10084_v26 = vpop.f32.mrb[28].mxu0  ;;  %10735 = vmatpush3.bf16.msra.mxu1 %v11137_v5  ;;  %10672 = vmatprep.subr.bf16.mxu0 %v11138_v13  ;;  %v271_v3 = vld [vmem:[%s18834_s0 + $0x748] sm:$0xff]  ;;  %v11152_v18 = vld [vmem:[%s18833_s2 + $0x5f0] sm:$0xff]  }
 0x12f   :  { %v10148_v30 = vpop.f32.mrb[28].mxu1  ;;  %v10085_v31 = vpop.f32.mrb[29].mxu0  ;;  %10736 = vmatprep.subr.bf16.mxu1 %v11140_v16  ;;  %v11147_v5 = vld [vmem:[%s18833_s2 + $0x528] sm:$0xff]   ;;  %v510_v16 = vpack.c.bf16 %v222_v58, %v198_v57  ;;  %v535_v23 = vpack.c.bf16 %v271_v3, %v247_v1 }
 0x130   :  { %v10086_v35 = vadd.f32 %v10085_v31, %v10084_v26  ;;  %v10149_v36 = vpop.f32.mrb[29].mxu1  ;;  %v10087_v41 = vpop.f32.mrb[30].mxu0 }
 0x131   :  { %v10150_v45 = vadd.f32 %v10149_v36, %v10148_v30  ;;  %v10151_v46 = vpop.f32.mrb[30].mxu1  ;;  %v10088_v47 = vpop.f32.mrb[31].mxu0  ;;  %10673 = vmatpush3.bf16.msra.mxu0 %v11139_v24 }
 0x132   :  { %v2248_v51 = vadd.f32 %v10086_v35, %v13919_v37  ;;  %v10089_v52 = vadd.f32 %v10088_v47, %v10087_v41  ;;  %v10152_v53 = vpop.f32.mrb[31].mxu1  ;;  %10737 = vmatpush3.bf16.msra.mxu1 %v11141_v28  ;;  %10674 = vmatprep.subr.bf16.mxu0 %v11142_v29  ;;  %v11151_v29 = vld [vmem:[%s18833_s2 + $0x530] sm:$0xff]   ;;  %v11154_v35 = vld [vmem:[%s18833_s2 + $0x578] sm:$0xff]   ;;  %v246_v41 = vld [vmem:[%s18834_s0 + $0x680] sm:$0xff] }
 0x133   :  { %v10153_v56 = vadd.f32 %v10152_v53, %v10151_v46  ;;  %2982 = vmatmul.mubr.bf16.gmra.mrb[136].mxu0 %v486_v32  ;;  %10738 = vmatprep.subr.bf16.mxu1 %v11144_v33  ;;  %v11153_v33 = vld [vmem:[%s18833_s2 + $0x5b0] sm:$0xff]   ;;  %v297_v53 = vld [vmem:[%s18834_s0 + $0x818] sm:$0xff] }
 0x134   :  { %v14243_v60 = vadd.f32 %v10150_v45, %v2248_v51  ;;  %v2251_v62 = vadd.f32 %v10089_v52, %v13919_v37  ;;  %3079 = vmatmul.mubr.bf16.gmra.mrb[136].mxu1 %v488_v42  ;;  %2989 = vmatprep.mubr.bf16.mxu0 %v511_v43  ;;  %v249_v37 = vld [vmem:[%s18834_s0 + $0x698] sm:$0xff]  ;;  %v270_v45 = vld [vmem:[%s18834_s0 + $0x740] sm:$0xff]  ;;  %v248_v46 = vld [vmem:[%s18834_s0 + $0x690] sm:$0xff] }
 0x135   :  { %3086 = vmatprep.mubr.bf16.mxu1 %v513_v49  ;;  %10675 = vmatpush3.bf16.msra.mxu0 %v11143_v50  ;;  %v537_v28 = vpack.c.bf16 %v273_v10, %v249_v37  ;;  %v272_v47 = vld [vmem:[%s18834_s0 + $0x750] sm:$0xff]  ;;  %v295_v49 = vld [vmem:[%s18834_s0 + $0x808] sm:$0xff]  ;;  %v11155_v50 = vld [vmem:[%s18833_s2 + $0x538] sm:$0xff]   ;;  %v534_v58 = vpack.c.bf16 %v270_v45, %v246_v41 }
 0x136   :  { %v14264_v7 = vadd.f32 %v10153_v56, %v2251_v62  ;;  %v10170_v8 = vpop.f32.mrb[32].mxu0  ;;  %10739 = vmatpush3.bf16.msra.mxu1 %v11145_v54  ;;  %10676 = vmatprep.subr.bf16.mxu0 %v11146_v55  ;;  %v321_v54 = vld [vmem:[%s18834_s0 + $0x8d8] sm:$0xff]  ;;  %v536_v0 = vpack.c.bf16 %v272_v47, %v248_v46 }
 0x137   :  { %v10234_v13 = vpop.f32.mrb[32].mxu1  ;;  %v10171_v15 = vpop.f32.mrb[33].mxu0  ;;  %10740 = vmatprep.subr.bf16.mxu1 %v11148_v59  ;;  %v11157_v55 = vld [vmem:[%s18833_s2 + $0x5b8] sm:$0xff]  }
 0x138   :  { %v10172_v19 = vadd.f32 %v10171_v15, %v10170_v8  ;;  %v10235_v20 = vpop.f32.mrb[33].mxu1  ;;  %v10173_v21 = vpop.f32.mrb[34].mxu0  ;;  %v561_v8 = vpack.c.bf16 %v321_v54, %v297_v53  ;;  %v366_v53 = vld [vmem:[%s18834_s0 + $0xa40] sm:$0xff]  ;;  %v368_v54 = vld [vmem:[%s18834_s0 + $0xa50] sm:$0xff] }
 0x139   :  { %v10236_v24 = vadd.f32 %v10235_v20, %v10234_v13  ;;  %v10237_v26 = vpop.f32.mrb[34].mxu1  ;;  %v10174_v27 = vpop.f32.mrb[35].mxu0  ;;  %10677 = vmatpush3.bf16.msra.mxu0 %v11147_v5  ;;  %v320_v20 = vld [vmem:[%s18834_s0 + $0x8d0] sm:$0xff] }
 0x13a   :  { %v2386_v30 = vadd.f32 %v10172_v19, %v13967_v6  ;;  %v10175_v31 = vadd.f32 %v10174_v27, %v10173_v21  ;;  %v10238_v32 = vpop.f32.mrb[35].mxu1  ;;  %10741 = vmatpush3.bf16.msra.mxu1 %v11149_v11  ;;  %10678 = vmatprep.subr.bf16.mxu0 %v11150_v12  ;;  %v11156_v6 = vld [vmem:[%s18833_s2 + $0x5f8] sm:$0xff]   ;;  %v318_v19 = vld [vmem:[%s18834_s0 + $0x8c0] sm:$0xff]  ;;  %v367_v21 = vld [vmem:[%s18834_s0 + $0xa48] sm:$0xff] }
 0x13b   :  { %v10239_v36 = vadd.f32 %v10238_v32, %v10237_v26  ;;  %2990 = vmatmul.mubr.bf16.gmra.mrb[140].mxu0 %v510_v16  ;;  %10742 = vmatprep.subr.bf16.mxu1 %v11152_v18  ;;  %v294_v18 = vld [vmem:[%s18834_s0 + $0x800] sm:$0xff]  ;;  %v369_v26 = vld [vmem:[%s18834_s0 + $0xa58] sm:$0xff] }
 0x13c   :  { %v14294_v42 = vadd.f32 %v10236_v24, %v2386_v30  ;;  %v2389_v43 = vadd.f32 %v10175_v31, %v13988_v14  ;;  %3087 = vmatmul.mubr.bf16.gmra.mrb[140].mxu1 %v512_v22  ;;  %2997 = vmatprep.mubr.bf16.mxu0 %v535_v23  ;;  %v319_v14 = vld [vmem:[%s18834_s0 + $0x8c8] sm:$0xff]  ;;  %v345_v24 = vld [vmem:[%s18834_s0 + $0x998] sm:$0xff] }
 0x13d   :  { %3094 = vmatprep.mubr.bf16.mxu1 %v537_v28  ;;  %10679 = vmatpush3.bf16.msra.mxu0 %v11151_v29  ;;  %v559_v1 = vpack.c.bf16 %v319_v14, %v295_v49  ;;  %v558_v29 = vpack.c.bf16 %v318_v19, %v294_v18 }
 0x13e   :  { %v14315_v51 = vadd.f32 %v10239_v36, %v2389_v43  ;;  %v10176_v52 = vpop.f32.mrb[36].mxu0  ;;  %10743 = vmatpush3.bf16.msra.mxu1 %v11153_v33  ;;  %10680 = vmatprep.subr.bf16.mxu0 %v11154_v35  ;;  %v585_v43 = vpack.c.bf16 %v369_v26, %v345_v24  ;;  %v416_v24 = vld [vmem:[%s18834_s0 + $0xbd0] sm:$0xff]  ;;  %v83_v26 = vld [vmem:[%s18834_s0 + $0x168] sm:$0xff] }
 0x13f   :  { %v10240_v56 = vpop.f32.mrb[36].mxu1  ;;  %v10177_v57 = vpop.f32.mrb[37].mxu0  ;;  %10744 = vmatprep.subr.bf16.mxu1 %v11156_v6 }
 0x140   :  { %v10178_v59 = vadd.f32 %v10177_v57, %v10176_v52  ;;  %v10241_v62 = vpop.f32.mrb[37].mxu1  ;;  %v10179_v63 = vpop.f32.mrb[38].mxu0  ;;  %v342_v52 = vld [vmem:[%s18834_s0 + $0x980] sm:$0xff] }
 0x141   :  { %v10242_v3 = vadd.f32 %v10241_v62, %v10240_v56  ;;  %v10243_v37 = vpop.f32.mrb[38].mxu1  ;;  %v10180_v5 = vpop.f32.mrb[39].mxu0  ;;  %10681 = vmatpush3.bf16.msra.mxu0 %v11155_v50 }
 0x142   :  { %v2394_v10 = vadd.f32 %v10178_v59, %v14006_v38  ;;  %v10181_v11 = vadd.f32 %v10180_v5, %v10179_v63  ;;  %v10244_v12 = vpop.f32.mrb[39].mxu1  ;;  %10745 = vmatpush3.bf16.msra.mxu1 %v11157_v55  ;;  %v296_v38 = vld [vmem:[%s18834_s0 + $0x810] sm:$0xff]  ;;  %v415_v55 = vld [vmem:[%s18834_s0 + $0xbc8] sm:$0xff]  ;;  %v417_v59 = vld [vmem:[%s18834_s0 + $0xbd8] sm:$0xff] }
 0x143   :  { %v10245_v13 = vadd.f32 %v10244_v12, %v10243_v37  ;;  %2998 = vmatmul.mubr.bf16.gmra.mrb[144].mxu0 %v534_v58  ;;  %v560_v33 = vpack.c.bf16 %v320_v20, %v296_v38  ;;  %v393_v58 = vld [vmem:[%s18834_s0 + $0xb18] sm:$0xff] }
 0x144   :  { %v14327_v15 = vadd.f32 %v10242_v3, %v2394_v10  ;;  %v2397_v16 = vadd.f32 %v10181_v11, %v14021_v44  ;;  %3095 = vmatmul.mubr.bf16.gmra.mrb[144].mxu1 %v536_v0  ;;  %3005 = vmatprep.mubr.bf16.mxu0 %v559_v1  ;;  %v343_v44 = vld [vmem:[%s18834_s0 + $0x988] sm:$0xff]  ;;  %v582_v0 = vpack.c.bf16 %v366_v53, %v342_v52 }
 0x145   :  { %3102 = vmatprep.mubr.bf16.mxu1 %v561_v8  ;;  %v583_v35 = vpack.c.bf16 %v367_v21, %v343_v44  ;;  %v390_v21 = vld [vmem:[%s18834_s0 + $0xb00] sm:$0xff] }
 0x146   :  { %v14348_v22 = vadd.f32 %v10245_v13, %v2397_v16  ;;  %v10182_v23 = vpop.f32.mrb[40].mxu0  ;;  %v609_v13 = vpack.c.bf16 %v417_v59, %v393_v58  ;;  %v84_v58 = vld [vmem:[%s18834_s0 + $0x170] sm:$0xff]  ;;  %v131_v59 = vld [vmem:[%s18834_s0 + $0x2e8] sm:$0xff] }
 0x147   :  { %v10246_v27 = vpop.f32.mrb[40].mxu1  ;;  %v10183_v28 = vpop.f32.mrb[41].mxu0 }
 0x148   :  { %v10184_v30 = vadd.f32 %v10183_v28, %v10182_v23  ;;  %v10247_v31 = vpop.f32.mrb[41].mxu1  ;;  %v10185_v32 = vpop.f32.mrb[42].mxu0  ;;  %v414_v23 = vld [vmem:[%s18834_s0 + $0xbc0] sm:$0xff] }
 0x149   :  { %v10248_v36 = vadd.f32 %v10247_v31, %v10246_v27  ;;  %v10249_v41 = vpop.f32.mrb[42].mxu1  ;;  %v10186_v6 = vpop.f32.mrb[43].mxu0 }
 0x14a   :  { %v2402_v45 = vadd.f32 %v10184_v30, %v14042_v4  ;;  %v10187_v46 = vadd.f32 %v10186_v6, %v10185_v32  ;;  %v10250_v47 = vpop.f32.mrb[43].mxu1  ;;  %v344_v4 = vld [vmem:[%s18834_s0 + $0x990] sm:$0xff]  ;;  %v85_v30 = vld [vmem:[%s18834_s0 + $0x178] sm:$0xff] }
 0x14b   :  { %v10251_v49 = vadd.f32 %v10250_v47, %v10249_v41  ;;  %3006 = vmatmul.mubr.bf16.gmra.mrb[148].mxu0 %v558_v29  ;;  %v584_v5 = vpack.c.bf16 %v368_v54, %v344_v4  ;;  %v61_v29 = vld [vmem:[%s18834_s0 + $0xb8] sm:$0xff] }
 0x14c   :  { %v14357_v14 = vadd.f32 %v10248_v36, %v2402_v45  ;;  %v2405_v50 = vadd.f32 %v10187_v46, %v14051_v9  ;;  %3103 = vmatmul.mubr.bf16.gmra.mrb[148].mxu1 %v560_v33  ;;  %3013 = vmatprep.mubr.bf16.mxu0 %v583_v35  ;;  %v391_v9 = vld [vmem:[%s18834_s0 + $0xb08] sm:$0xff]  ;;  %v606_v33 = vpack.c.bf16 %v414_v23, %v390_v21 }
 0x14d   :  { %3110 = vmatprep.mubr.bf16.mxu1 %v585_v43  ;;  %v607_v8 = vpack.c.bf16 %v415_v55, %v391_v9  ;;  %v58_v55 = vld [vmem:[%s18834_s0 + $0xa0] sm:$0xff] }
 0x14e   :  { %v14378_v56 = vadd.f32 %v10251_v49, %v2405_v50  ;;  %v10188_v57 = vpop.f32.mrb[44].mxu0  ;;  %v445_v49 = vpack.c.bf16 %v85_v30, %v61_v29  ;;  %v132_v29 = vld [vmem:[%s18834_s0 + $0x2f0] sm:$0xff]  ;;  %v179_v30 = vld [vmem:[%s18834_s0 + $0x468] sm:$0xff] }
 0x14f   :  { %v10252_v62 = vpop.f32.mrb[44].mxu1  ;;  %v10189_v63 = vpop.f32.mrb[45].mxu0 }
 0x150   :  { %v10190_v1 = vadd.f32 %v10189_v63, %v10188_v57  ;;  %v10253_v3 = vpop.f32.mrb[45].mxu1  ;;  %v10191_v37 = vpop.f32.mrb[46].mxu0  ;;  %v82_v57 = vld [vmem:[%s18834_s0 + $0x160] sm:$0xff] }
 0x151   :  { %v10254_v10 = vadd.f32 %v10253_v3, %v10252_v62  ;;  %v10255_v11 = vpop.f32.mrb[46].mxu1  ;;  %v10192_v12 = vpop.f32.mrb[47].mxu0 }
 0x152   :  { %v2410_v16 = vadd.f32 %v10190_v1, %v14072_v34  ;;  %v10193_v18 = vadd.f32 %v10192_v12, %v10191_v37  ;;  %v10256_v19 = vpop.f32.mrb[47].mxu1  ;;  %v392_v34 = vld [vmem:[%s18834_s0 + $0xb10] sm:$0xff]  ;;  %v133_v1 = vld [vmem:[%s18834_s0 + $0x2f8] sm:$0xff] }
 0x153   :  { %v10257_v38 = vadd.f32 %v10256_v19, %v10255_v11  ;;  %3014 = vmatmul.mubr.bf16.gmra.mrb[152].mxu0 %v582_v0  ;;  %v608_v6 = vpack.c.bf16 %v416_v24, %v392_v34  ;;  %v109_v0 = vld [vmem:[%s18834_s0 + $0x238] sm:$0xff] }
 0x154   :  { %v14387_v20 = vadd.f32 %v10254_v10, %v2410_v16  ;;  %v2413_v44 = vadd.f32 %v10193_v18, %v14081_v40  ;;  %3111 = vmatmul.mubr.bf16.gmra.mrb[152].mxu1 %v584_v5  ;;  %3021 = vmatprep.mubr.bf16.mxu0 %v607_v8  ;;  %v59_v40 = vld [vmem:[%s18834_s0 + $0xa8] sm:$0xff]  ;;  %v442_v5 = vpack.c.bf16 %v82_v57, %v58_v55 }
 0x155   :  { %3118 = vmatprep.mubr.bf16.mxu1 %v609_v13  ;;  %v443_v43 = vpack.c.bf16 %v83_v26, %v59_v40  ;;  %v106_v26 = vld [vmem:[%s18834_s0 + $0x220] sm:$0xff] }
 0x156   :  { %v14408_v27 = vadd.f32 %v10257_v38, %v2413_v44  ;;  %v10194_v28 = vpop.f32.mrb[48].mxu0  ;;  %v469_v38 = vpack.c.bf16 %v133_v1, %v109_v0  ;;  %v180_v0 = vld [vmem:[%s18834_s0 + $0x470] sm:$0xff]  ;;  %v227_v1 = vld [vmem:[%s18834_s0 + $0x5e8] sm:$0xff] }
 0x157   :  { %v10258_v31 = vpop.f32.mrb[48].mxu1  ;;  %v10195_v32 = vpop.f32.mrb[49].mxu0 }
 0x158   :  { %v10196_v35 = vadd.f32 %v10195_v32, %v10194_v28  ;;  %v10259_v36 = vpop.f32.mrb[49].mxu1  ;;  %v10197_v41 = vpop.f32.mrb[50].mxu0  ;;  %v130_v28 = vld [vmem:[%s18834_s0 + $0x2e0] sm:$0xff] }
 0x159   :  { %v10260_v45 = vadd.f32 %v10259_v36, %v10258_v31  ;;  %v10261_v46 = vpop.f32.mrb[50].mxu1  ;;  %v10198_v47 = vpop.f32.mrb[51].mxu0 }
 0x15a   :  { %v2418_v50 = vadd.f32 %v10196_v35, %v14090_v61  ;;  %v10199_v52 = vadd.f32 %v10198_v47, %v10197_v41  ;;  %v10262_v53 = vpop.f32.mrb[51].mxu1  ;;  %v60_v61 = vld [vmem:[%s18834_s0 + $0xb0] sm:$0xff]  ;;  %v181_v35 = vld [vmem:[%s18834_s0 + $0x478] sm:$0xff] }
 0x15b   :  { %v10263_v4 = vadd.f32 %v10262_v53, %v10261_v46  ;;  %3022 = vmatmul.mubr.bf16.gmra.mrb[156].mxu0 %v606_v33  ;;  %v444_v12 = vpack.c.bf16 %v84_v58, %v60_v61  ;;  %v157_v33 = vld [vmem:[%s18834_s0 + $0x3b8] sm:$0xff] }
 0x15c   :  { %v14417_v54 = vadd.f32 %v10260_v45, %v2418_v50  ;;  %v2421_v9 = vadd.f32 %v10199_v52, %v14102_v2  ;;  %3119 = vmatmul.mubr.bf16.gmra.mrb[156].mxu1 %v608_v6  ;;  %3159 = vmatprep.mubr.bf16.mxu0 %v443_v43  ;;  %v107_v2 = vld [vmem:[%s18834_s0 + $0x228] sm:$0xff]  ;;  %v466_v6 = vpack.c.bf16 %v130_v28, %v106_v26 }
 0x15d   :  { %3256 = vmatprep.mubr.bf16.mxu1 %v445_v49  ;;  %v467_v13 = vpack.c.bf16 %v131_v59, %v107_v2  ;;  %v154_v59 = vld [vmem:[%s18834_s0 + $0x3a0] sm:$0xff] }
 0x15e   :  { %v14438_v62 = vadd.f32 %v10263_v4, %v2421_v9  ;;  %v10200_v63 = vpop.f32.mrb[52].mxu0  ;;  %v493_v4 = vpack.c.bf16 %v181_v35, %v157_v33  ;;  %v228_v33 = vld [vmem:[%s18834_s0 + $0x5f0] sm:$0xff]  ;;  %v275_v35 = vld [vmem:[%s18834_s0 + $0x768] sm:$0xff] }
 0x15f   :  { %v10264_v3 = vpop.f32.mrb[52].mxu1  ;;  %v10201_v37 = vpop.f32.mrb[53].mxu0 }
 0x160   :  { %v10202_v8 = vadd.f32 %v10201_v37, %v10200_v63  ;;  %v10265_v10 = vpop.f32.mrb[53].mxu1  ;;  %v10203_v11 = vpop.f32.mrb[54].mxu0  ;;  %v178_v63 = vld [vmem:[%s18834_s0 + $0x460] sm:$0xff] }
 0x161   :  { %v10266_v16 = vadd.f32 %v10265_v10, %v10264_v3  ;;  %v10267_v18 = vpop.f32.mrb[54].mxu1  ;;  %v10204_v19 = vpop.f32.mrb[55].mxu0 }
 0x162   :  { %v2426_v44 = vadd.f32 %v10202_v8, %v14141_v39  ;;  %v10205_v21 = vadd.f32 %v10204_v19, %v10203_v11  ;;  %v10268_v23 = vpop.f32.mrb[55].mxu1  ;;  %v108_v39 = vld [vmem:[%s18834_s0 + $0x230] sm:$0xff]  ;;  %v229_v8 = vld [vmem:[%s18834_s0 + $0x5f8] sm:$0xff] }
 0x163   :  { %v10269_v34 = vadd.f32 %v10268_v23, %v10267_v18  ;;  %3160 = vmatmul.mubr.bf16.vlgmr.msra.gmra.mrb[160].mxu0 %v442_v5  ;;  %v468_v47 = vpack.c.bf16 %v132_v29, %v108_v39  ;;  %v205_v5 = vld [vmem:[%s18834_s0 + $0x538] sm:$0xff] }
 0x164   :  { %v14447_v24 = vadd.f32 %v10266_v16, %v2426_v44  ;;  %v2429_v40 = vadd.f32 %v10205_v21, %v14159_v48  ;;  %3257 = vmatmul.mubr.bf16.vlgmr.msra.gmra.mrb[160].mxu1 %v444_v12  ;;  %3167 = vmatprep.mubr.bf16.mxu0 %v467_v13  ;;  %v155_v48 = vld [vmem:[%s18834_s0 + $0x3a8] sm:$0xff]  ;;  %v490_v12 = vpack.c.bf16 %v178_v63, %v154_v59 }
 0x165   :  { %3264 = vmatprep.mubr.bf16.mxu1 %v469_v38  ;;  %v491_v49 = vpack.c.bf16 %v179_v30, %v155_v48  ;;  %v202_v30 = vld [vmem:[%s18834_s0 + $0x520] sm:$0xff] }
 0x166   :  { %v14468_v31 = vadd.f32 %v10269_v34, %v2429_v40  ;;  %v10206_v32 = vpop.f32.mrb[56].mxu0  ;;  %v517_v34 = vpack.c.bf16 %v229_v8, %v205_v5  ;;  %v276_v5 = vld [vmem:[%s18834_s0 + $0x770] sm:$0xff]  ;;  %v323_v8 = vld [vmem:[%s18834_s0 + $0x8e8] sm:$0xff] }
 0x167   :  { %v10270_v36 = vpop.f32.mrb[56].mxu1  ;;  %v10207_v41 = vpop.f32.mrb[57].mxu0 }
 0x168   :  { %v10208_v43 = vadd.f32 %v10207_v41, %v10206_v32  ;;  %v10271_v45 = vpop.f32.mrb[57].mxu1  ;;  %v10209_v46 = vpop.f32.mrb[58].mxu0  ;;  %v226_v32 = vld [vmem:[%s18834_s0 + $0x5e0] sm:$0xff] }
 0x169   :  { %v10272_v50 = vadd.f32 %v10271_v45, %v10270_v36  ;;  %v10273_v52 = vpop.f32.mrb[58].mxu1  ;;  %v10210_v53 = vpop.f32.mrb[59].mxu0 }
 0x16a   :  { %v2434_v9 = vadd.f32 %v10208_v43, %v14189_v17  ;;  %v10211_v55 = vadd.f32 %v10210_v53, %v10209_v46  ;;  %v10274_v57 = vpop.f32.mrb[59].mxu1  ;;  %v156_v17 = vld [vmem:[%s18834_s0 + $0x3b0] sm:$0xff]  ;;  %v277_v43 = vld [vmem:[%s18834_s0 + $0x778] sm:$0xff] }
 0x16b   :  { %v10275_v61 = vadd.f32 %v10274_v57, %v10273_v52  ;;  %3168 = vmatmul.mubr.bf16.gmra.mrb[164].mxu0 %v466_v6  ;;  %v492_v19 = vpack.c.bf16 %v180_v0, %v156_v17  ;;  %v253_v6 = vld [vmem:[%s18834_s0 + $0x6b8] sm:$0xff] }
 0x16c   :  { %v14477_v58 = vadd.f32 %v10272_v50, %v2434_v9  ;;  %v2437_v2 = vadd.f32 %v10211_v55, %v14210_v25  ;;  %3265 = vmatmul.mubr.bf16.gmra.mrb[164].mxu1 %v468_v47  ;;  %3175 = vmatprep.mubr.bf16.mxu0 %v491_v49  ;;  %v203_v25 = vld [vmem:[%s18834_s0 + $0x528] sm:$0xff]  ;;  %v514_v47 = vpack.c.bf16 %v226_v32, %v202_v30 }
 0x16d   :  { %3272 = vmatprep.mubr.bf16.mxu1 %v493_v4  ;;  %v515_v38 = vpack.c.bf16 %v227_v1, %v203_v25  ;;  %v250_v1 = vld [vmem:[%s18834_s0 + $0x6a0] sm:$0xff] }
 0x16e   :  { %v14498_v3 = vadd.f32 %v10275_v61, %v2437_v2  ;;  %v10212_v37 = vpop.f32.mrb[60].mxu0  ;;  %v541_v61 = vpack.c.bf16 %v277_v43, %v253_v6  ;;  %v324_v6 = vld [vmem:[%s18834_s0 + $0x8f0] sm:$0xff]  ;;  %v347_v43 = vld [vmem:[%s18834_s0 + $0x9a8] sm:$0xff] }
 0x16f   :  { %v10276_v10 = vpop.f32.mrb[60].mxu1  ;;  %v10213_v11 = vpop.f32.mrb[61].mxu0 }
 0x170   :  { %v10214_v13 = vadd.f32 %v10213_v11, %v10212_v37  ;;  %v10277_v16 = vpop.f32.mrb[61].mxu1  ;;  %v10215_v18 = vpop.f32.mrb[62].mxu0  ;;  %v274_v37 = vld [vmem:[%s18834_s0 + $0x760] sm:$0xff] }
 0x171   :  { %v10278_v44 = vadd.f32 %v10277_v16, %v10276_v10  ;;  %v10279_v21 = vpop.f32.mrb[62].mxu1  ;;  %v10216_v23 = vpop.f32.mrb[63].mxu0 }
 0x172   :  { %v2442_v40 = vadd.f32 %v10214_v13, %v14243_v60  ;;  %v10217_v26 = vadd.f32 %v10216_v23, %v10215_v18  ;;  %v10280_v28 = vpop.f32.mrb[63].mxu1  ;;  %v204_v60 = vld [vmem:[%s18834_s0 + $0x530] sm:$0xff]  ;;  %v325_v13 = vld [vmem:[%s18834_s0 + $0x8f8] sm:$0xff] }
 0x173   :  { %v10281_v39 = vadd.f32 %v10280_v28, %v10279_v21  ;;  %3176 = vmatmul.mubr.bf16.gmra.mrb[168].mxu0 %v490_v12  ;;  %v516_v53 = vpack.c.bf16 %v228_v33, %v204_v60  ;;  %v301_v12 = vld [vmem:[%s18834_s0 + $0x838] sm:$0xff]  ;;  %v298_v33 = vld [vmem:[%s18834_s0 + $0x820] sm:$0xff] }
 0x174   :  { %v14507_v29 = vadd.f32 %v10278_v44, %v2442_v40  ;;  %v2445_v48 = vadd.f32 %v10217_v26, %v14264_v7  ;;  %3273 = vmatmul.mubr.bf16.gmra.mrb[168].mxu1 %v492_v19  ;;  %3183 = vmatprep.mubr.bf16.mxu0 %v515_v38  ;;  %v251_v7 = vld [vmem:[%s18834_s0 + $0x6a8] sm:$0xff]  ;;  %v538_v19 = vpack.c.bf16 %v274_v37, %v250_v1 }
 0x175   :  { %3280 = vmatprep.mubr.bf16.mxu1 %v517_v34  ;;  %v539_v4 = vpack.c.bf16 %v275_v35, %v251_v7  ;;  %v322_v7 = vld [vmem:[%s18834_s0 + $0x8e0] sm:$0xff] }
 0x176   :  { %v14528_v36 = vadd.f32 %v10281_v39, %v2445_v48  ;;  %v10298_v41 = vpop.f32.mrb[64].mxu0  ;;  %v565_v39 = vpack.c.bf16 %v325_v13, %v301_v12  ;;  %v370_v12 = vld [vmem:[%s18834_s0 + $0xa60] sm:$0xff] }
 0x177   :  { %v10362_v45 = vpop.f32.mrb[64].mxu1  ;;  %v10299_v46 = vpop.f32.mrb[65].mxu0 }
 0x178   :  { %v10300_v49 = vadd.f32 %v10299_v46, %v10298_v41  ;;  %v10363_v50 = vpop.f32.mrb[65].mxu1  ;;  %v10301_v52 = vpop.f32.mrb[66].mxu0  ;;  %v3338_v46 = vld [vmem:[%s18836_s4 + $0x8] sm:$0xff] }
 0x179   :  { %v10364_v9 = vadd.f32 %v10363_v50, %v10362_v45  ;;  %v10365_v55 = vpop.f32.mrb[66].mxu1  ;;  %v10302_v57 = vpop.f32.mrb[67].mxu0  ;;  %v371_v45 = vld [vmem:[%s18834_s0 + $0xa68] sm:$0xff]  ;;  %v349_v50 = vld [vmem:[%s18834_s0 + $0x9b8] sm:$0xff] }
 0x17a   :  { %v2580_v2 = vadd.f32 %v10300_v49, %v14294_v42  ;;  %v10303_v59 = vadd.f32 %v10302_v57, %v10301_v52  ;;  %v10366_v63 = vpop.f32.mrb[67].mxu1  ;;  %v252_v42 = vld [vmem:[%s18834_s0 + $0x6b0] sm:$0xff]  ;;  %v373_v52 = vld [vmem:[%s18834_s0 + $0xa78] sm:$0xff] }
 0x17b   :  { %v10367_v17 = vadd.f32 %v10366_v63, %v10365_v55  ;;  %3184 = vmatmul.mubr.bf16.gmra.mrb[172].mxu0 %v514_v47  ;;  %v540_v23 = vpack.c.bf16 %v276_v5, %v252_v42  ;;  %v562_v55 = vpack.c.bf16 %v322_v7, %v298_v33  ;;  %v587_v63 = vpack.c.bf16 %v371_v45, %v347_v43 }
 0x17c   :  { %v14537_v0 = vadd.f32 %v10364_v9, %v2580_v2  ;;  %v2583_v25 = vadd.f32 %v10303_v59, %v14315_v51  ;;  %3281 = vmatmul.mubr.bf16.gmra.mrb[172].mxu1 %v516_v53  ;;  %3191 = vmatprep.mubr.bf16.mxu0 %v539_v4  ;;  %v299_v51 = vld [vmem:[%s18834_s0 + $0x828] sm:$0xff]  ;;  %v589_v37 = vpack.c.bf16 %v373_v52, %v349_v50  ;;  %v394_v50 = vld [vmem:[%s18834_s0 + $0xb20] sm:$0xff] }
 0x17d   :  { %3288 = vmatprep.mubr.bf16.mxu1 %v541_v61  ;;  %v563_v34 = vpack.c.bf16 %v323_v8, %v299_v51 }
 0x17e   :  { %v14558_v10 = vadd.f32 %v10367_v17, %v2583_v25  ;;  %v10304_v11 = vpop.f32.mrb[68].mxu0 }
 0x17f   :  { %v10368_v16 = vpop.f32.mrb[68].mxu1  ;;  %v10305_v18 = vpop.f32.mrb[69].mxu0 }
 0x180   :  { %v10306_v38 = vadd.f32 %v10305_v18, %v10304_v11  ;;  %v10369_v44 = vpop.f32.mrb[69].mxu1  ;;  %v10307_v21 = vpop.f32.mrb[70].mxu0  ;;  %v346_v11 = vld [vmem:[%s18834_s0 + $0x9a0] sm:$0xff]  ;;  %v3339_v18 = vld [vmem:[%s18836_s4 + $0x10] sm:$0xff] }
 0x181   :  { %v10370_v40 = vadd.f32 %v10369_v44, %v10368_v16  ;;  %v10371_v26 = vpop.f32.mrb[70].mxu1  ;;  %v10308_v28 = vpop.f32.mrb[71].mxu0  ;;  %v419_v44 = vld [vmem:[%s18834_s0 + $0xbe8] sm:$0xff] }
 0x182   :  { %v2588_v48 = vadd.f32 %v10306_v38, %v14327_v15  ;;  %v10309_v30 = vadd.f32 %v10308_v28, %v10307_v21  ;;  %v10372_v32 = vpop.f32.mrb[71].mxu1  ;;  %v300_v15 = vld [vmem:[%s18834_s0 + $0x830] sm:$0xff] }
 0x183   :  { %v10373_v60 = vadd.f32 %v10372_v32, %v10371_v26  ;;  %3192 = vmatmul.mubr.bf16.gmra.mrb[176].mxu0 %v538_v19  ;;  %v564_v59 = vpack.c.bf16 %v324_v6, %v300_v15  ;;  %v3340_v19 = vld [vmem:[%s18836_s4 + $0x18] sm:$0xff]  ;;  %v372_v38 = vld [vmem:[%s18834_s0 + $0xa70] sm:$0xff] }
 0x184   :  { %v14573_v35 = vadd.f32 %v10370_v40, %v2588_v48  ;;  %v2591_v41 = vadd.f32 %v10309_v30, %v14348_v22  ;;  %3289 = vmatmul.mubr.bf16.gmra.mrb[176].mxu1 %v540_v23  ;;  %3199 = vmatprep.mubr.bf16.mxu0 %v563_v34  ;;  %v3337_v22 = vld [vmem:[%s18836_s4] sm:$0xff]  ;;  %v10932_v21 = vpack.c.bf16 %v3340_v19, %v3339_v18  ;;  %v397_v40 = vld [vmem:[%s18834_s0 + $0xb38] sm:$0xff] }
 0x185   :  { %3296 = vmatprep.mubr.bf16.mxu1 %v565_v39  ;;  %v10928_v53 = vpack.c.bf16 %v3338_v46, %v3337_v22  ;;  %v421_v26 = vld [vmem:[%s18834_s0 + $0xbf8] sm:$0xff]  ;;  %v586_v48 = vpack.c.bf16 %v370_v12, %v346_v11 }
 0x186   :  { %v14594_v47 = vadd.f32 %v10373_v60, %v2591_v41  ;;  %v10310_v49 = vpop.f32.mrb[72].mxu0  ;;  %v613_v43 = vpack.c.bf16 %v421_v26, %v397_v40 }
 0x187   :  { %v10374_v4 = vpop.f32.mrb[72].mxu1  ;;  %v10311_v9 = vpop.f32.mrb[73].mxu0  ;;  %10929 = vmatprep.subr.bf16.mxu0 %v10928_v53 }
 0x188   :  { %v10312_v57 = vadd.f32 %v10311_v9, %v10310_v49  ;;  %v10375_v61 = vpop.f32.mrb[73].mxu1  ;;  %v10313_v2 = vpop.f32.mrb[74].mxu0  ;;  %10931 = vmatpush3.bf16.msra.mxu0 %v10928_v53  ;;  %v3342_v9 = vld [vmem:[%s18836_s4 + $0x28] sm:$0xff] }
 0x189   :  { %v10376_v17 = vadd.f32 %v10375_v61, %v10374_v4  ;;  %v10377_v25 = vpop.f32.mrb[74].mxu1  ;;  %v10314_v1 = vpop.f32.mrb[75].mxu0  ;;  %10933 = vmatprep.subr.bf16.mxu0 %v10932_v21  ;;  %v418_v4 = vld [vmem:[%s18834_s0 + $0xbe0] sm:$0xff] }
 0x18a   :  { %v2596_v42 = vadd.f32 %v10312_v57, %v14357_v14  ;;  %v10315_v5 = vadd.f32 %v10314_v1, %v10313_v2  ;;  %v10378_v51 = vpop.f32.mrb[75].mxu1  ;;  %v348_v14 = vld [vmem:[%s18834_s0 + $0x9b0] sm:$0xff] }
 0x18b   :  { %v10379_v8 = vadd.f32 %v10378_v51, %v10377_v25  ;;  %3200 = vmatmul.mubr.bf16.gmra.mrb[180].mxu0 %v562_v55  ;;  %v588_v33 = vpack.c.bf16 %v372_v38, %v348_v14  ;;  %v396_v55 = vld [vmem:[%s18834_s0 + $0xb30] sm:$0xff] }
 0x18c   :  { %v14609_v13 = vadd.f32 %v10376_v17, %v2596_v42  ;;  %v2599_v16 = vadd.f32 %v10315_v5, %v14378_v56  ;;  %3297 = vmatmul.mubr.bf16.gmra.mrb[180].mxu1 %v564_v59  ;;  %3207 = vmatprep.mubr.bf16.mxu0 %v587_v63  ;;  %v395_v56 = vld [vmem:[%s18834_s0 + $0xb28] sm:$0xff]  ;;  %v610_v17 = vpack.c.bf16 %v418_v4, %v394_v50 }
 0x18d   :  { %3304 = vmatprep.mubr.bf16.mxu1 %v589_v37  ;;  %v611_v7 = vpack.c.bf16 %v419_v44, %v395_v56  ;;  %10935 = vmatpush3.bf16.msra.mxu0 %v10932_v21  ;;  %v3343_v44 = vld [vmem:[%s18836_s4 + $0x30] sm:$0xff] }
 0x18e   :  { %v14630_v23 = vadd.f32 %v10379_v8, %v2599_v16  ;;  %v10316_v34 = vpop.f32.mrb[76].mxu0 }
 0x18f   :  { %v10380_v28 = vpop.f32.mrb[76].mxu1  ;;  %v10317_v39 = vpop.f32.mrb[77].mxu0 }
 0x190   :  { %v10318_v30 = vadd.f32 %v10317_v39, %v10316_v34  ;;  %v10381_v32 = vpop.f32.mrb[77].mxu1  ;;  %v10319_v60 = vpop.f32.mrb[78].mxu0 }
 0x191   :  { %v10382_v41 = vadd.f32 %v10381_v32, %v10380_v28  ;;  %v10383_v15 = vpop.f32.mrb[78].mxu1  ;;  %v10320_v6 = vpop.f32.mrb[79].mxu0 }
 0x192   :  { %v2604_v45 = vadd.f32 %v10318_v30, %v14387_v20  ;;  %v10321_v22 = vadd.f32 %v10320_v6, %v10319_v60  ;;  %v10384_v46 = vpop.f32.mrb[79].mxu1  ;;  %v3341_v20 = vld [vmem:[%s18836_s4 + $0x20] sm:$0xff] }
 0x193   :  { %v10385_v49 = vadd.f32 %v10384_v46, %v10383_v15  ;;  %3208 = vmatmul.mubr.bf16.gmra.mrb[184].mxu0 %v586_v48  ;;  %v10936_v57 = vpack.c.bf16 %v3342_v9, %v3341_v20 }
 0x194   :  { %v14642_v52 = vadd.f32 %v10382_v41, %v2604_v45  ;;  %v2607_v53 = vadd.f32 %v10321_v22, %v14408_v27  ;;  %3305 = vmatmul.mubr.bf16.gmra.mrb[184].mxu1 %v588_v33  ;;  %3215 = vmatprep.mubr.bf16.mxu0 %v611_v7  ;;  %v420_v27 = vld [vmem:[%s18834_s0 + $0xbf0] sm:$0xff]  ;;  %v3345_v45 = vld [vmem:[%s18836_s4 + $0x40] sm:$0xff]  ;;  %v3346_v22 = vld [vmem:[%s18836_s4 + $0x48] sm:$0xff] }
 0x195   :  { %3312 = vmatprep.mubr.bf16.mxu1 %v613_v43  ;;  %10937 = vmatprep.subr.bf16.mxu0 %v10936_v57  ;;  %v612_v42 = vpack.c.bf16 %v420_v27, %v396_v55 }
 0x196   :  { %v14660_v61 = vadd.f32 %v10385_v49, %v2607_v53  ;;  %v10322_v2 = vpop.f32.mrb[80].mxu0  ;;  %10939 = vmatpush3.bf16.msra.mxu0 %v10936_v57  ;;  %v10944_v49 = vpack.c.bf16 %v3346_v22, %v3345_v45 }
 0x197   :  { %v10386_v59 = vpop.f32.mrb[80].mxu1  ;;  %v10323_v63 = vpop.f32.mrb[81].mxu0 }
 0x198   :  { %v10324_v25 = vadd.f32 %v10323_v63, %v10322_v2  ;;  %v10387_v1 = vpop.f32.mrb[81].mxu1  ;;  %v10325_v37 = vpop.f32.mrb[82].mxu0 }
 0x199   :  { %v10388_v5 = vadd.f32 %v10387_v1, %v10386_v59  ;;  %v10389_v51 = vpop.f32.mrb[82].mxu1  ;;  %v10326_v8 = vpop.f32.mrb[83].mxu0  ;;  %v3347_v1 = vld [vmem:[%s18836_s4 + $0x50] sm:$0xff] }
 0x19a   :  { %v2612_v11 = vadd.f32 %v10324_v25, %v14417_v54  ;;  %v10327_v12 = vadd.f32 %v10326_v8, %v10325_v37  ;;  %v10390_v16 = vpop.f32.mrb[83].mxu1  ;;  %v3344_v54 = vld [vmem:[%s18836_s4 + $0x38] sm:$0xff] }
 0x19b   :  { %v10391_v14 = vadd.f32 %v10390_v16, %v10389_v51  ;;  %3216 = vmatmul.mubr.bf16.gmra.mrb[188].mxu0 %v610_v17  ;;  %v10940_v40 = vpack.c.bf16 %v3344_v54, %v3343_v44  ;;  %v3348_v37 = vld [vmem:[%s18836_s4 + $0x58] sm:$0xff] }
 0x19c   :  { %v14663_v18 = vadd.f32 %v10388_v5, %v2612_v11  ;;  %v2615_v19 = vadd.f32 %v10327_v12, %v14438_v62  ;;  %3313 = vmatmul.mubr.bf16.gmra.mrb[188].mxu1 %v612_v42  ;;  %v10948_v5 = vpack.c.bf16 %v3348_v37, %v3347_v1 }
 0x19d   :  { %10941 = vmatprep.subr.bf16.mxu0 %v10940_v40 }
 0x19e   :  { %v14666_v38 = vadd.f32 %v10391_v14, %v2615_v19  ;;  %v10328_v56 = vpop.f32.mrb[84].mxu0  ;;  %10943 = vmatpush3.bf16.msra.mxu0 %v10940_v40 }
 0x19f   :  { %v10392_v21 = vpop.f32.mrb[84].mxu1  ;;  %v10329_v34 = vpop.f32.mrb[85].mxu0  ;;  %10945 = vmatprep.subr.bf16.mxu0 %v10944_v49 }
 0x1a0   :  { %v10330_v26 = vadd.f32 %v10329_v34, %v10328_v56  ;;  %v10393_v28 = vpop.f32.mrb[85].mxu1  ;;  %v10331_v39 = vpop.f32.mrb[86].mxu0 }
 0x1a1   :  { %v10394_v48 = vadd.f32 %v10393_v28, %v10392_v21  ;;  %v10395_v62 = vpop.f32.mrb[86].mxu1  ;;  %v10332_v30 = vpop.f32.mrb[87].mxu0  ;;  %v3350_v28 = vld [vmem:[%s18836_s4 + $0x68] sm:$0xff] }
 0x1a2   :  { %v2620_v32 = vadd.f32 %v10330_v26, %v14447_v24  ;;  %v10333_v60 = vadd.f32 %v10332_v30, %v10331_v39  ;;  %v10396_v33 = vpop.f32.mrb[87].mxu1  ;;  %10947 = vmatpush3.bf16.msra.mxu0 %v10944_v49  ;;  %v3349_v26 = vld [vmem:[%s18836_s4 + $0x60] sm:$0xff]  ;;  %v3352_v49 = vld [vmem:[%s18836_s4 + $0x78] sm:$0xff] }
 0x1a3   :  { %v10397_v7 = vadd.f32 %v10396_v33, %v10395_v62  ;;  %10949 = vmatprep.subr.bf16.mxu0 %v10948_v5 }
 0x1a4   :  { %v14675_v41 = vadd.f32 %v10394_v48, %v2620_v32  ;;  %v2623_v15 = vadd.f32 %v10333_v60, %v14468_v31  ;;  %v10952_v48 = vpack.c.bf16 %v3350_v28, %v3349_v26 }
 0x1a6   :  { %v14678_v6 = vadd.f32 %v10397_v7, %v2623_v15  ;;  %v10334_v43 = vpop.f32.mrb[88].mxu0  ;;  %10951 = vmatpush3.bf16.msra.mxu0 %v10948_v5 }
 0x1a7   :  { %v10398_v24 = vpop.f32.mrb[88].mxu1  ;;  %v10335_v46 = vpop.f32.mrb[89].mxu0  ;;  %10953 = vmatprep.subr.bf16.mxu0 %v10952_v48 }
 0x1a8   :  { %v10336_v50 = vadd.f32 %v10335_v46, %v10334_v43  ;;  %v10399_v53 = vpop.f32.mrb[89].mxu1  ;;  %v10337_v4 = vpop.f32.mrb[90].mxu0  ;;  %v3351_v46 = vld [vmem:[%s18836_s4 + $0x70] sm:$0xff] }
 0x1a9   :  { %v10400_v20 = vadd.f32 %v10399_v53, %v10398_v24  ;;  %v10401_v9 = vpop.f32.mrb[90].mxu1  ;;  %v10338_v31 = vpop.f32.mrb[91].mxu0 }
 0x1aa   :  { %v2628_v55 = vadd.f32 %v10336_v50, %v14477_v58  ;;  %v10339_v27 = vadd.f32 %v10338_v31, %v10337_v4  ;;  %v10402_v57 = vpop.f32.mrb[91].mxu1  ;;  %10955 = vmatpush3.bf16.msra.mxu0 %v10952_v48  ;;  %v10956_v50 = vpack.c.bf16 %v3352_v49, %v3351_v46 }
 0x1ab   :  { %v10403_v2 = vadd.f32 %v10402_v57, %v10401_v9 }
 0x1ac   :  { %v14687_v59 = vadd.f32 %v10400_v20, %v2628_v55  ;;  %v2631_v63 = vadd.f32 %v10339_v27, %v14498_v3  ;;  %10957 = vmatprep.subr.bf16.mxu0 %v10956_v50 }
 0x1ae   :  { %v14690_v17 = vadd.f32 %v10403_v2, %v2631_v63  ;;  %v10340_v25 = vpop.f32.mrb[92].mxu0  ;;  %10959 = vmatpush3.bf16.msra.mxu0 %v10956_v50 }
 0x1af   :  { %v10404_v58 = vpop.f32.mrb[92].mxu1  ;;  %v10341_v42 = vpop.f32.mrb[93].mxu0 }
 0x1b0   :  { %v10342_v51 = vadd.f32 %v10341_v42, %v10340_v25  ;;  %v10405_v8 = vpop.f32.mrb[93].mxu1  ;;  %v10343_v11 = vpop.f32.mrb[94].mxu0 }
 0x1b1   :  { %v10406_v12 = vadd.f32 %v10405_v8, %v10404_v58  ;;  %v10407_v16 = vpop.f32.mrb[94].mxu1  ;;  %v10344_v3 = vpop.f32.mrb[95].mxu0 }
 0x1b2   :  { %v2636_v14 = vadd.f32 %v10342_v51, %v14507_v29  ;;  %v10345_v19 = vadd.f32 %v10344_v3, %v10343_v11  ;;  %v10408_v56 = vpop.f32.mrb[95].mxu1 }
 0x1b3   :  { %v10409_v44 = vadd.f32 %v10408_v56, %v10407_v16 }
 0x1b4   :  { %v14699_v54 = vadd.f32 %v10406_v12, %v2636_v14  ;;  %v2639_v21 = vadd.f32 %v10345_v19, %v14528_v36 }
 0x1b6   :  { %v14702_v34 = vadd.f32 %v10409_v44, %v2639_v21  ;;  %v10426_v40 = vpop.f32.mrb[96].mxu0 }
 0x1b7   :  { %v10490_v29 = vpop.f32.mrb[96].mxu1  ;;  %v10427_v39 = vpop.f32.mrb[97].mxu0 }
 0x1b8   :  { %v10428_v62 = vadd.f32 %v10427_v39, %v10426_v40  ;;  %v10491_v30 = vpop.f32.mrb[97].mxu1  ;;  %v10429_v32 = vpop.f32.mrb[98].mxu0 }
 0x1b9   :  { %v10492_v60 = vadd.f32 %v10491_v30, %v10490_v29  ;;  %v10493_v33 = vpop.f32.mrb[98].mxu1  ;;  %v10430_v36 = vpop.f32.mrb[99].mxu0 }
 0x1ba   :  { %v2774_v7 = vadd.f32 %v10428_v62, %v14537_v0  ;;  %v10431_v15 = vadd.f32 %v10430_v36, %v10429_v32  ;;  %v10494_v43 = vpop.f32.mrb[99].mxu1 }
 0x1bb   :  { %v10495_v45 = vadd.f32 %v10494_v43, %v10493_v33 }
 0x1bc   :  { %v14711_v22 = vadd.f32 %v10492_v60, %v2774_v7  ;;  %v2777_v24 = vadd.f32 %v10431_v15, %v14558_v10 }
 0x1be   :  { %v14720_v53 = vadd.f32 %v10495_v45, %v2777_v24  ;;  %v10432_v0 = vpop.f32.mrb[100].mxu0 }
 0x1bf   :  { %v10496_v4 = vpop.f32.mrb[100].mxu1  ;;  %v10433_v20 = vpop.f32.mrb[101].mxu0 }
 0x1c0   :  { %v10434_v9 = vadd.f32 %v10433_v20, %v10432_v0  ;;  %v10497_v31 = vpop.f32.mrb[101].mxu1  ;;  %v10435_v55 = vpop.f32.mrb[102].mxu0 }
 0x1c1   :  { %v10498_v10 = vadd.f32 %v10497_v31, %v10496_v4  ;;  %v10499_v27 = vpop.f32.mrb[102].mxu1  ;;  %v10436_v57 = vpop.f32.mrb[103].mxu0 }
 0x1c2   :  { %v2782_v2 = vadd.f32 %v10434_v9, %v14573_v35  ;;  %v10437_v63 = vadd.f32 %v10436_v57, %v10435_v55  ;;  %v10500_v25 = vpop.f32.mrb[103].mxu1 }
 0x1c3   :  { %v10501_v1 = vadd.f32 %v10500_v25, %v10499_v27 }
 0x1c4   :  { %v14723_v37 = vadd.f32 %v10498_v10, %v2782_v2  ;;  %v2785_v58 = vadd.f32 %v10437_v63, %v14594_v47 }
 0x1c6   :  { %v14726_v42 = vadd.f32 %v10501_v1, %v2785_v58  ;;  %v10438_v5 = vpop.f32.mrb[104].mxu0 }
 0x1c7   :  { %v10502_v51 = vpop.f32.mrb[104].mxu1  ;;  %v10439_v8 = vpop.f32.mrb[105].mxu0 }
 0x1c8   :  { %v10440_v11 = vadd.f32 %v10439_v8, %v10438_v5  ;;  %v10503_v12 = vpop.f32.mrb[105].mxu1  ;;  %v10441_v16 = vpop.f32.mrb[106].mxu0 }
 0x1c9   :  { %v10504_v3 = vadd.f32 %v10503_v12, %v10502_v51  ;;  %v10505_v14 = vpop.f32.mrb[106].mxu1  ;;  %v10442_v19 = vpop.f32.mrb[107].mxu0 }
 0x1ca   :  { %v2790_v35 = vadd.f32 %v10440_v11, %v14609_v13  ;;  %v10443_v56 = vadd.f32 %v10442_v19, %v10441_v16  ;;  %v10506_v44 = vpop.f32.mrb[107].mxu1 }
 0x1cb   :  { %v10507_v21 = vadd.f32 %v10506_v44, %v10505_v14 }
 0x1cc   :  { %v14729_v40 = vadd.f32 %v10504_v3, %v2790_v35  ;;  %v2793_v47 = vadd.f32 %v10443_v56, %v14630_v23 }
 0x1ce   :  { %v14732_v26 = vadd.f32 %v10507_v21, %v2793_v47  ;;  %v10444_v28 = vpop.f32.mrb[108].mxu0 }
 0x1cf   :  { %v10508_v29 = vpop.f32.mrb[108].mxu1  ;;  %v10445_v39 = vpop.f32.mrb[109].mxu0 }
 0x1d0   :  { %v10446_v48 = vadd.f32 %v10445_v39, %v10444_v28  ;;  %v10509_v62 = vpop.f32.mrb[109].mxu1  ;;  %v10447_v30 = vpop.f32.mrb[110].mxu0 }
 0x1d1   :  { %v10510_v32 = vadd.f32 %v10509_v62, %v10508_v29  ;;  %v10511_v60 = vpop.f32.mrb[110].mxu1  ;;  %v10448_v33 = vpop.f32.mrb[111].mxu0 }
 0x1d2   :  { %v2798_v13 = vadd.f32 %v10446_v48, %v14642_v52  ;;  %v10449_v36 = vadd.f32 %v10448_v33, %v10447_v30  ;;  %v10512_v7 = vpop.f32.mrb[111].mxu1 }
 0x1d3   :  { %v10513_v15 = vadd.f32 %v10512_v7, %v10511_v60 }
 0x1d4   :  { %v14735_v43 = vadd.f32 %v10510_v32, %v2798_v13  ;;  %v2801_v23 = vadd.f32 %v10449_v36, %v14660_v61 }
 0x1d6   :  { %v14738_v45 = vadd.f32 %v10513_v15, %v2801_v23  ;;  %v10450_v24 = vpop.f32.mrb[112].mxu0 }
 0x1d7   :  { %v10514_v46 = vpop.f32.mrb[112].mxu1  ;;  %v10451_v49 = vpop.f32.mrb[113].mxu0 }
 0x1d8   :  { %v10452_v50 = vadd.f32 %v10451_v49, %v10450_v24  ;;  %v10515_v0 = vpop.f32.mrb[113].mxu1  ;;  %v10453_v4 = vpop.f32.mrb[114].mxu0 }
 0x1d9   :  { %v10516_v20 = vadd.f32 %v10515_v0, %v10514_v46  ;;  %v10517_v9 = vpop.f32.mrb[114].mxu1  ;;  %v10454_v31 = vpop.f32.mrb[115].mxu0 }
 0x1da   :  { %v2806_v52 = vadd.f32 %v10452_v50, %v14663_v18  ;;  %v10455_v55 = vadd.f32 %v10454_v31, %v10453_v4  ;;  %v10518_v10 = vpop.f32.mrb[115].mxu1 }
 0x1db   :  { %v10519_v27 = vadd.f32 %v10518_v10, %v10517_v9 }
 0x1dc   :  { %v2809_v57 = vadd.f32 %v10455_v55, %v14666_v38  ;;  %v14742_v2 = vadd.f32 %v10516_v20, %v2806_v52 }
 0x1de   :  { %v10456_v61 = vpop.f32.mrb[116].mxu0  ;;  %v14744_v63 = vadd.f32 %v10519_v27, %v2809_v57 }
 0x1df   :  { %v10520_v25 = vpop.f32.mrb[116].mxu1  ;;  %v10457_v1 = vpop.f32.mrb[117].mxu0 }
 0x1e0   :  { %v10458_v58 = vadd.f32 %v10457_v1, %v10456_v61  ;;  %v10521_v5 = vpop.f32.mrb[117].mxu1  ;;  %v10459_v51 = vpop.f32.mrb[118].mxu0 }
 0x1e1   :  { %v10522_v8 = vadd.f32 %v10521_v5, %v10520_v25  ;;  %v10523_v11 = vpop.f32.mrb[118].mxu1  ;;  %v10460_v12 = vpop.f32.mrb[119].mxu0 }
 0x1e2   :  { %v2814_v18 = vadd.f32 %v10458_v58, %v14675_v41  ;;  %v10461_v16 = vadd.f32 %v10460_v12, %v10459_v51  ;;  %v10524_v3 = vpop.f32.mrb[119].mxu1 }
 0x1e3   :  { %v10525_v14 = vadd.f32 %v10524_v3, %v10523_v11 }
 0x1e4   :  { %v2817_v38 = vadd.f32 %v10461_v16, %v14678_v6  ;;  %v14748_v19 = vadd.f32 %v10522_v8, %v2814_v18 }
 0x1e6   :  { %v10462_v35 = vpop.f32.mrb[120].mxu0  ;;  %v14750_v56 = vadd.f32 %v10525_v14, %v2817_v38 }
 0x1e7   :  { %v10526_v44 = vpop.f32.mrb[120].mxu1  ;;  %v10463_v21 = vpop.f32.mrb[121].mxu0 }
 0x1e8   :  { %v10464_v47 = vadd.f32 %v10463_v21, %v10462_v35  ;;  %v10527_v28 = vpop.f32.mrb[121].mxu1  ;;  %v10465_v29 = vpop.f32.mrb[122].mxu0 }
 0x1e9   :  { %v10528_v39 = vadd.f32 %v10527_v28, %v10526_v44  ;;  %v10529_v48 = vpop.f32.mrb[122].mxu1  ;;  %v10466_v62 = vpop.f32.mrb[123].mxu0 }
 0x1ea   :  { %v2822_v41 = vadd.f32 %v10464_v47, %v14687_v59  ;;  %v10467_v30 = vadd.f32 %v10466_v62, %v10465_v29  ;;  %v10530_v32 = vpop.f32.mrb[123].mxu1 }
 0x1eb   :  { %v10531_v60 = vadd.f32 %v10530_v32, %v10529_v48 }
 0x1ec   :  { %v2825_v6 = vadd.f32 %v10467_v30, %v14690_v17  ;;  %v14754_v33 = vadd.f32 %v10528_v39, %v2822_v41 }
 0x1ee   :  { %v10468_v13 = vpop.f32.mrb[124].mxu0  ;;  %v14756_v36 = vadd.f32 %v10531_v60, %v2825_v6 }
 0x1ef   :  { %v10532_v7 = vpop.f32.mrb[124].mxu1  ;;  %v10469_v15 = vpop.f32.mrb[125].mxu0 }
 0x1f0   :  { %v10470_v23 = vadd.f32 %v10469_v15, %v10468_v13  ;;  %v10533_v24 = vpop.f32.mrb[125].mxu1  ;;  %v10471_v46 = vpop.f32.mrb[126].mxu0 }
 0x1f1   :  { %v10534_v49 = vadd.f32 %v10533_v24, %v10532_v7  ;;  %v10535_v50 = vpop.f32.mrb[126].mxu1  ;;  %v10472_v0 = vpop.f32.mrb[127].mxu0 }
 0x1f2   :  { %v2830_v59 = vadd.f32 %v10470_v23, %v14699_v54  ;;  %v10473_v4 = vadd.f32 %v10472_v0, %v10471_v46  ;;  %v10536_v20 = vpop.f32.mrb[127].mxu1 }
 0x1f3   :  { %v10537_v9 = vadd.f32 %v10536_v20, %v10535_v50 }
 0x1f4   :  { %v2833_v17 = vadd.f32 %v10473_v4, %v14702_v34  ;;  %v14760_v31 = vadd.f32 %v10534_v49, %v2830_v59 }
 0x1f6   :  { %v10554_v52 = vpop.f32.mrb[128].mxu0  ;;  %v14762_v55 = vadd.f32 %v10537_v9, %v2833_v17 }
 0x1f7   :  { %v10618_v10 = vpop.f32.mrb[128].mxu1  ;;  %v10555_v27 = vpop.f32.mrb[129].mxu0 }
 0x1f8   :  { %v10556_v57 = vadd.f32 %v10555_v27, %v10554_v52  ;;  %v10619_v61 = vpop.f32.mrb[129].mxu1  ;;  %v10557_v25 = vpop.f32.mrb[130].mxu0 }
 0x1f9   :  { %v10620_v1 = vadd.f32 %v10619_v61, %v10618_v10  ;;  %v10621_v58 = vpop.f32.mrb[130].mxu1  ;;  %v10558_v5 = vpop.f32.mrb[131].mxu0 }
 0x1fa   :  { %v2968_v54 = vadd.f32 %v10556_v57, %v14711_v22  ;;  %v10559_v51 = vadd.f32 %v10558_v5, %v10557_v25  ;;  %v10622_v8 = vpop.f32.mrb[131].mxu1 }
 0x1fb   :  { %v10623_v11 = vadd.f32 %v10622_v8, %v10621_v58 }
 0x1fc   :  { %v2971_v34 = vadd.f32 %v10559_v51, %v14720_v53  ;;  %v14766_v12 = vadd.f32 %v10620_v1, %v2968_v54 }
 0x1fe   :  { %v10560_v18 = vpop.f32.mrb[132].mxu0  ;;  %v14768_v16 = vadd.f32 %v10623_v11, %v2971_v34 }
 0x1ff   :  { %v10624_v3 = vpop.f32.mrb[132].mxu1  ;;  %v10561_v14 = vpop.f32.mrb[133].mxu0 }
 0x200   :  { %v10562_v38 = vadd.f32 %v10561_v14, %v10560_v18  ;;  %v10625_v35 = vpop.f32.mrb[133].mxu1  ;;  %v10563_v44 = vpop.f32.mrb[134].mxu0 }
 0x201   :  { %v10626_v21 = vadd.f32 %v10625_v35, %v10624_v3  ;;  %v10627_v47 = vpop.f32.mrb[134].mxu1  ;;  %v10564_v28 = vpop.f32.mrb[135].mxu0 }
 0x202   :  { %v2976_v22 = vadd.f32 %v10562_v38, %v14723_v37  ;;  %v10565_v29 = vadd.f32 %v10564_v28, %v10563_v44  ;;  %v10628_v39 = vpop.f32.mrb[135].mxu1 }
 0x203   :  { %v10629_v48 = vadd.f32 %v10628_v39, %v10627_v47 }
 0x204   :  { %v2979_v53 = vadd.f32 %v10565_v29, %v14726_v42  ;;  %v14772_v62 = vadd.f32 %v10626_v21, %v2976_v22 }
 0x206   :  { %v10566_v41 = vpop.f32.mrb[136].mxu0  ;;  %v14774_v30 = vadd.f32 %v10629_v48, %v2979_v53 }
 0x207   :  { %v10630_v32 = vpop.f32.mrb[136].mxu1  ;;  %v10567_v60 = vpop.f32.mrb[137].mxu0 }
 0x208   :  { %v10568_v6 = vadd.f32 %v10567_v60, %v10566_v41  ;;  %v10631_v13 = vpop.f32.mrb[137].mxu1  ;;  %v10569_v7 = vpop.f32.mrb[138].mxu0 }
 0x209   :  { %v10632_v15 = vadd.f32 %v10631_v13, %v10630_v32  ;;  %v10633_v23 = vpop.f32.mrb[138].mxu1  ;;  %v10570_v24 = vpop.f32.mrb[139].mxu0 }
 0x20a   :  { %v2984_v37 = vadd.f32 %v10568_v6, %v14729_v40  ;;  %v10571_v46 = vadd.f32 %v10570_v24, %v10569_v7  ;;  %v10634_v49 = vpop.f32.mrb[139].mxu1 }
 0x20b   :  { %v10635_v50 = vadd.f32 %v10634_v49, %v10633_v23 }
 0x20c   :  { %v2987_v42 = vadd.f32 %v10571_v46, %v14732_v26  ;;  %v14778_v0 = vadd.f32 %v10632_v15, %v2984_v37 }
 0x20e   :  { %v10572_v59 = vpop.f32.mrb[140].mxu0  ;;  %v14780_v4 = vadd.f32 %v10635_v50, %v2987_v42 }
 0x20f   :  { %v10636_v20 = vpop.f32.mrb[140].mxu1  ;;  %v10573_v9 = vpop.f32.mrb[141].mxu0 }
 0x210   :  { %v10574_v17 = vadd.f32 %v10573_v9, %v10572_v59  ;;  %v10637_v52 = vpop.f32.mrb[141].mxu1  ;;  %v10575_v10 = vpop.f32.mrb[142].mxu0 }
 0x211   :  { %v10638_v27 = vadd.f32 %v10637_v52, %v10636_v20  ;;  %v10639_v57 = vpop.f32.mrb[142].mxu1  ;;  %v10576_v61 = vpop.f32.mrb[143].mxu0 }
 0x212   :  { %v2992_v40 = vadd.f32 %v10574_v17, %v14735_v43  ;;  %v10577_v25 = vadd.f32 %v10576_v61, %v10575_v10  ;;  %v10640_v1 = vpop.f32.mrb[143].mxu1 }
 0x213   :  { %v10641_v58 = vadd.f32 %v10640_v1, %v10639_v57 }
 0x214   :  { %v2995_v26 = vadd.f32 %v10577_v25, %v14738_v45  ;;  %v14784_v5 = vadd.f32 %v10638_v27, %v2992_v40 }
 0x216   :  { %v10578_v54 = vpop.f32.mrb[144].mxu0  ;;  %v14786_v51 = vadd.f32 %v10641_v58, %v2995_v26 }
 0x217   :  { %v10642_v8 = vpop.f32.mrb[144].mxu1  ;;  %v10579_v11 = vpop.f32.mrb[145].mxu0 }
 0x218   :  { %v10580_v34 = vadd.f32 %v10579_v11, %v10578_v54  ;;  %v10643_v18 = vpop.f32.mrb[145].mxu1  ;;  %v10581_v3 = vpop.f32.mrb[146].mxu0 }
 0x219   :  { %v10644_v14 = vadd.f32 %v10643_v18, %v10642_v8  ;;  %v10645_v38 = vpop.f32.mrb[146].mxu1  ;;  %v10582_v35 = vpop.f32.mrb[147].mxu0 }
 0x21a   :  { %v3000_v43 = vadd.f32 %v10580_v34, %v14742_v2  ;;  %v10583_v44 = vadd.f32 %v10582_v35, %v10581_v3  ;;  %v10646_v21 = vpop.f32.mrb[147].mxu1 }
 0x21b   :  { %v10647_v47 = vadd.f32 %v10646_v21, %v10645_v38 }
 0x21c   :  { %v14789_v28 = vadd.f32 %v10644_v14, %v3000_v43  ;;  %v3003_v45 = vadd.f32 %v10583_v44, %v14744_v63 }
 0x21e   :  { %v14792_v22 = vadd.f32 %v10647_v47, %v3003_v45  ;;  %v10584_v29 = vpop.f32.mrb[148].mxu0 }
 0x21f   :  { %v10648_v39 = vpop.f32.mrb[148].mxu1  ;;  %v10585_v48 = vpop.f32.mrb[149].mxu0 }
 0x220   :  { %v10586_v53 = vadd.f32 %v10585_v48, %v10584_v29  ;;  %v10649_v41 = vpop.f32.mrb[149].mxu1  ;;  %v10587_v32 = vpop.f32.mrb[150].mxu0 }
 0x221   :  { %v10650_v60 = vadd.f32 %v10649_v41, %v10648_v39  ;;  %v10651_v6 = vpop.f32.mrb[150].mxu1  ;;  %v10588_v13 = vpop.f32.mrb[151].mxu0 }
 0x222   :  { %v3008_v2 = vadd.f32 %v10586_v53, %v14748_v19  ;;  %v10589_v7 = vadd.f32 %v10588_v13, %v10587_v32  ;;  %v10652_v15 = vpop.f32.mrb[151].mxu1 }
 0x223   :  { %v10653_v23 = vadd.f32 %v10652_v15, %v10651_v6 }
 0x224   :  { %v14795_v24 = vadd.f32 %v10650_v60, %v3008_v2  ;;  %v3011_v63 = vadd.f32 %v10589_v7, %v14750_v56 }
 0x226   :  { %v14798_v37 = vadd.f32 %v10653_v23, %v3011_v63  ;;  %v10590_v46 = vpop.f32.mrb[152].mxu0 }
 0x227   :  { %v10654_v49 = vpop.f32.mrb[152].mxu1  ;;  %v10591_v50 = vpop.f32.mrb[153].mxu0 }
 0x228   :  { %v10592_v42 = vadd.f32 %v10591_v50, %v10590_v46  ;;  %v10655_v59 = vpop.f32.mrb[153].mxu1  ;;  %v10593_v20 = vpop.f32.mrb[154].mxu0 }
 0x229   :  { %v10656_v9 = vadd.f32 %v10655_v59, %v10654_v49  ;;  %v10657_v17 = vpop.f32.mrb[154].mxu1  ;;  %v10594_v52 = vpop.f32.mrb[155].mxu0 }
 0x22a   :  { %v3016_v19 = vadd.f32 %v10592_v42, %v14754_v33  ;;  %v10595_v10 = vadd.f32 %v10594_v52, %v10593_v20  ;;  %v10658_v27 = vpop.f32.mrb[155].mxu1 }
 0x22b   :  { %v10659_v57 = vadd.f32 %v10658_v27, %v10657_v17 }
 0x22c   :  { %v14801_v61 = vadd.f32 %v10656_v9, %v3016_v19  ;;  %v3019_v56 = vadd.f32 %v10595_v10, %v14756_v36 }
 0x22e   :  { %v14804_v40 = vadd.f32 %v10659_v57, %v3019_v56  ;;  %v10596_v25 = vpop.f32.mrb[156].mxu0 }
 0x22f   :  { %v10660_v1 = vpop.f32.mrb[156].mxu1  ;;  %v10597_v58 = vpop.f32.mrb[157].mxu0 }
 0x230   :  { %v10598_v26 = vadd.f32 %v10597_v58, %v10596_v25  ;;  %v10661_v54 = vpop.f32.mrb[157].mxu1  ;;  %v10599_v8 = vpop.f32.mrb[158].mxu0 }
 0x231   :  { %v10662_v11 = vadd.f32 %v10661_v54, %v10660_v1  ;;  %v10663_v34 = vpop.f32.mrb[158].mxu1  ;;  %v10600_v18 = vpop.f32.mrb[159].mxu0 }
 0x232   :  { %v3024_v33 = vadd.f32 %v10598_v26, %v14760_v31  ;;  %v10601_v3 = vadd.f32 %v10600_v18, %v10599_v8  ;;  %v10664_v14 = vpop.f32.mrb[159].mxu1 }
 0x233   :  { %v10665_v38 = vadd.f32 %v10664_v14, %v10663_v34 }
 0x234   :  { %v14807_v35 = vadd.f32 %v10662_v11, %v3024_v33  ;;  %v3027_v36 = vadd.f32 %v10601_v3, %v14762_v55 }
 0x236   :  { %v14810_v43 = vadd.f32 %v10665_v38, %v3027_v36  ;;  %v10682_v44 = vpop.f32.mrb[160].mxu0 }
 0x237   :  { %v10746_v21 = vpop.f32.mrb[160].mxu1  ;;  %v10683_v47 = vpop.f32.mrb[161].mxu0 }
 0x238   :  { %v10684_v45 = vadd.f32 %v10683_v47, %v10682_v44  ;;  %v10747_v29 = vpop.f32.mrb[161].mxu1  ;;  %v10685_v39 = vpop.f32.mrb[162].mxu0 }
 0x239   :  { %v10748_v48 = vadd.f32 %v10747_v29, %v10746_v21  ;;  %v10749_v53 = vpop.f32.mrb[162].mxu1  ;;  %v10686_v41 = vpop.f32.mrb[163].mxu0 }
 0x23a   :  { %v3162_v31 = vadd.f32 %v10684_v45, %v14766_v12  ;;  %v10687_v32 = vadd.f32 %v10686_v41, %v10685_v39  ;;  %v10750_v60 = vpop.f32.mrb[163].mxu1 }
 0x23b   :  { %v10751_v6 = vadd.f32 %v10750_v60, %v10749_v53 }
 0x23c   :  { %v3259_v13 = vadd.f32 %v10748_v48, %v3162_v31  ;;  %v3165_v2 = vadd.f32 %v10687_v32, %v14768_v16 }
 0x23e   :  { %v3321_v55 = vmax.f32 %v3259_v13, 0.0  ;;  %v3262_v7 = vadd.f32 %v10751_v6, %v3165_v2  ;;  %v10688_v15 = vpop.f32.mrb[164].mxu0 }
 0x23f   :  { %v10752_v23 = vpop.f32.mrb[164].mxu1  ;;  %v10689_v63 = vpop.f32.mrb[165].mxu0 }
 0x240   :  { %v3322_v46 = vmax.f32 %v3262_v7, 0.0  ;;  %v10690_v49 = vadd.f32 %v10689_v63, %v10688_v15  ;;  %v10753_v50 = vpop.f32.mrb[165].mxu1  ;;  %v10691_v42 = vpop.f32.mrb[166].mxu0  ;;  %10876 = vmatprep.mubr.f32.mxu0 %v3321_v55 }
 0x241   :  { %v10754_v59 = vadd.f32 %v10753_v50, %v10752_v23  ;;  %v10755_v20 = vpop.f32.mrb[166].mxu1  ;;  %v10692_v9 = vpop.f32.mrb[167].mxu0 }
 0x242   :  { %v3170_v12 = vadd.f32 %v10690_v49, %v14772_v62  ;;  %v10693_v17 = vadd.f32 %v10692_v9, %v10691_v42  ;;  %v10756_v52 = vpop.f32.mrb[167].mxu1  ;;  %10877 = vmatmul.mubr.f32.vlgmr.msra.gmra.mrb[192].mxu0 %v3322_v46 }
 0x243   :  { %v10757_v19 = vadd.f32 %v10756_v52, %v10755_v20 }
 0x244   :  { %v3267_v16 = vadd.f32 %v10754_v59, %v3170_v12  ;;  %v3173_v10 = vadd.f32 %v10693_v17, %v14774_v30 }
 0x246   :  { %v3323_v27 = vmax.f32 %v3267_v16, 0.0  ;;  %v3270_v57 = vadd.f32 %v10757_v19, %v3173_v10  ;;  %v10694_v56 = vpop.f32.mrb[168].mxu0 }
 0x247   :  { %v10695_v25 = vpop.f32.mrb[169].mxu0  ;;  %v10758_v1 = vpop.f32.mrb[168].mxu1 }
 0x248   :  { %v3324_v58 = vmax.f32 %v3270_v57, 0.0  ;;  %v10696_v26 = vadd.f32 %v10695_v25, %v10694_v56  ;;  %v10697_v54 = vpop.f32.mrb[170].mxu0  ;;  %10879 = vmatprep.mubr.f32.mxu0 %v3323_v27  ;;  %v10759_v8 = vpop.f32.mrb[169].mxu1 }
 0x249   :  { %v10698_v11 = vpop.f32.mrb[171].mxu0  ;;  %v10760_v34 = vadd.f32 %v10759_v8, %v10758_v1  ;;  %v10761_v62 = vpop.f32.mrb[170].mxu1 }
 0x24a   :  { %v3178_v18 = vadd.f32 %v10696_v26, %v14778_v0  ;;  %v10699_v33 = vadd.f32 %v10698_v11, %v10697_v54  ;;  %10880 = vmatmul.mubr.f32.gmra.mrb[194].mxu0 %v3324_v58  ;;  %v10762_v3 = vpop.f32.mrb[171].mxu1 }
 0x24b   :  { %v10763_v14 = vadd.f32 %v10762_v3, %v10761_v62 }
 0x24c   :  { %v3181_v30 = vadd.f32 %v10699_v33, %v14780_v4  ;;  %v3275_v38 = vadd.f32 %v10760_v34, %v3178_v18 }
 0x24e   :  { %v3325_v36 = vmax.f32 %v3275_v38, 0.0  ;;  %v3278_v44 = vadd.f32 %v10763_v14, %v3181_v30  ;;  %v10700_v21 = vpop.f32.mrb[172].mxu0 }
 0x24f   :  { %v10701_v47 = vpop.f32.mrb[173].mxu0  ;;  %v10764_v45 = vpop.f32.mrb[172].mxu1 }
 0x250   :  { %v3326_v29 = vmax.f32 %v3278_v44, 0.0  ;;  %v10702_v39 = vadd.f32 %v10701_v47, %v10700_v21  ;;  %v10703_v48 = vpop.f32.mrb[174].mxu0  ;;  %10882 = vmatprep.mubr.f32.mxu0 %v3325_v36  ;;  %v10765_v53 = vpop.f32.mrb[173].mxu1 }
 0x251   :  { %v10704_v41 = vpop.f32.mrb[175].mxu0  ;;  %v10766_v31 = vadd.f32 %v10765_v53, %v10764_v45  ;;  %v10767_v0 = vpop.f32.mrb[174].mxu1 }
 0x252   :  { %v3186_v32 = vadd.f32 %v10702_v39, %v14784_v5  ;;  %v10705_v60 = vadd.f32 %v10704_v41, %v10703_v48  ;;  %10883 = vmatmul.mubr.f32.gmra.mrb[196].mxu0 %v3326_v29  ;;  %v10768_v6 = vpop.f32.mrb[175].mxu1 }
 0x253   :  { %v10769_v4 = vadd.f32 %v10768_v6, %v10767_v0 }
 0x254   :  { %v3189_v13 = vadd.f32 %v10705_v60, %v14786_v51  ;;  %v3283_v2 = vadd.f32 %v10766_v31, %v3186_v32 }
 0x256   :  { %v3327_v55 = vmax.f32 %v3283_v2, 0.0  ;;  %v3286_v7 = vadd.f32 %v10769_v4, %v3189_v13  ;;  %v10706_v15 = vpop.f32.mrb[176].mxu0 }
 0x257   :  { %v10707_v23 = vpop.f32.mrb[177].mxu0  ;;  %v10770_v63 = vpop.f32.mrb[176].mxu1 }
 0x258   :  { %v3328_v46 = vmax.f32 %v3286_v7, 0.0  ;;  %v10708_v49 = vadd.f32 %v10707_v23, %v10706_v15  ;;  %v10709_v50 = vpop.f32.mrb[178].mxu0  ;;  %10885 = vmatprep.mubr.f32.mxu0 %v3327_v55  ;;  %v10771_v42 = vpop.f32.mrb[177].mxu1 }
 0x259   :  { %v10710_v59 = vpop.f32.mrb[179].mxu0  ;;  %v10772_v20 = vadd.f32 %v10771_v42, %v10770_v63  ;;  %v10773_v5 = vpop.f32.mrb[178].mxu1 }
 0x25a   :  { %v3194_v9 = vadd.f32 %v10708_v49, %v14789_v28  ;;  %v10711_v12 = vadd.f32 %v10710_v59, %v10709_v50  ;;  %10886 = vmatmul.mubr.f32.gmra.mrb[198].mxu0 %v3328_v46  ;;  %v10774_v17 = vpop.f32.mrb[179].mxu1 }
 0x25b   :  { %v10775_v51 = vadd.f32 %v10774_v17, %v10773_v5 }
 0x25c   :  { %v3197_v52 = vadd.f32 %v10711_v12, %v14792_v22  ;;  %v3291_v19 = vadd.f32 %v10772_v20, %v3194_v9  ;;  %v3665_v12 = vld [vmem:[%s18837_s6] sm:$0xff] }
 0x25e   :  { %v3329_v16 = vmax.f32 %v3291_v19, 0.0  ;;  %v3294_v10 = vadd.f32 %v10775_v51, %v3197_v52  ;;  %v10712_v27 = vpop.f32.mrb[180].mxu0 }
 0x25f   :  { %v10713_v57 = vpop.f32.mrb[181].mxu0  ;;  %v10776_v56 = vpop.f32.mrb[180].mxu1 }
 0x260   :  { %v3330_v25 = vmax.f32 %v3294_v10, 0.0  ;;  %v10714_v1 = vadd.f32 %v10713_v57, %v10712_v27  ;;  %v10715_v58 = vpop.f32.mrb[182].mxu0  ;;  %10888 = vmatprep.mubr.f32.mxu0 %v3329_v16  ;;  %v10777_v26 = vpop.f32.mrb[181].mxu1 }
 0x261   :  { %v10716_v54 = vpop.f32.mrb[183].mxu0  ;;  %v10778_v8 = vadd.f32 %v10777_v26, %v10776_v56  ;;  %v10779_v28 = vpop.f32.mrb[182].mxu1 }
 0x262   :  { %v3202_v11 = vadd.f32 %v10714_v1, %v14795_v24  ;;  %v10717_v34 = vadd.f32 %v10716_v54, %v10715_v58  ;;  %10889 = vmatmul.mubr.f32.gmra.mrb[200].mxu0 %v3330_v25  ;;  %v10780_v62 = vpop.f32.mrb[183].mxu1 }
 0x263   :  { %v10781_v22 = vadd.f32 %v10780_v62, %v10779_v28 }
 0x264   :  { %v3205_v18 = vadd.f32 %v10717_v34, %v14798_v37  ;;  %v3299_v33 = vadd.f32 %v10778_v8, %v3202_v11 }
 0x266   :  { %v3331_v3 = vmax.f32 %v3299_v33, 0.0  ;;  %v3302_v14 = vadd.f32 %v10781_v22, %v3205_v18  ;;  %v10718_v30 = vpop.f32.mrb[184].mxu0 }
 0x267   :  { %v10719_v38 = vpop.f32.mrb[185].mxu0  ;;  %v10782_v36 = vpop.f32.mrb[184].mxu1 }
 0x268   :  { %v3332_v44 = vmax.f32 %v3302_v14, 0.0  ;;  %v10720_v21 = vadd.f32 %v10719_v38, %v10718_v30  ;;  %v10721_v47 = vpop.f32.mrb[186].mxu0  ;;  %10891 = vmatprep.mubr.f32.mxu0 %v3331_v3  ;;  %v10783_v45 = vpop.f32.mrb[185].mxu1 }
 0x269   :  { %v10722_v29 = vpop.f32.mrb[187].mxu0  ;;  %v10784_v39 = vadd.f32 %v10783_v45, %v10782_v36  ;;  %v10785_v24 = vpop.f32.mrb[186].mxu1 }
 0x26a   :  { %v3210_v48 = vadd.f32 %v10720_v21, %v14801_v61  ;;  %v10723_v53 = vadd.f32 %v10722_v29, %v10721_v47  ;;  %10892 = vmatmul.mubr.f32.gmra.mrb[202].mxu0 %v3332_v44  ;;  %v10786_v41 = vpop.f32.mrb[187].mxu1 }
 0x26b   :  { %v10787_v37 = vadd.f32 %v10786_v41, %v10785_v24 }
 0x26c   :  { %v3213_v31 = vadd.f32 %v10723_v53, %v14804_v40  ;;  %v3307_v0 = vadd.f32 %v10784_v39, %v3210_v48 }
 0x26e   :  { %v3333_v32 = vmax.f32 %v3307_v0, 0.0  ;;  %v3310_v60 = vadd.f32 %v10787_v37, %v3213_v31  ;;  %v10724_v6 = vpop.f32.mrb[188].mxu0 }
 0x26f   :  { %v10725_v4 = vpop.f32.mrb[189].mxu0  ;;  %v10788_v13 = vpop.f32.mrb[188].mxu1 }
 0x270   :  { %v3334_v2 = vmax.f32 %v3310_v60, 0.0  ;;  %v10726_v55 = vadd.f32 %v10725_v4, %v10724_v6  ;;  %v10727_v7 = vpop.f32.mrb[190].mxu0  ;;  %10894 = vmatprep.mubr.f32.mxu0 %v3333_v32  ;;  %v10789_v15 = vpop.f32.mrb[189].mxu1 }
 0x271   :  { %v10728_v23 = vpop.f32.mrb[191].mxu0  ;;  %v10790_v63 = vadd.f32 %v10789_v15, %v10788_v13  ;;  %v10791_v61 = vpop.f32.mrb[190].mxu1 }
 0x272   :  { %v3218_v46 = vadd.f32 %v10726_v55, %v14807_v35  ;;  %v10729_v49 = vadd.f32 %v10728_v23, %v10727_v7  ;;  %10895 = vmatmul.mubr.f32.gmra.mrb[204].mxu0 %v3334_v2  ;;  %v10792_v50 = vpop.f32.mrb[191].mxu1  ;;  %v3666_v35 = vld [vmem:[%s18837_s6 + $0x8] sm:$0xff] }
 0x273   :  { %v10793_v40 = vadd.f32 %v10792_v50, %v10791_v61  ;;  %v10960_v17 = vpack.c.bf16 %v3666_v35, %v3665_v12 }
 0x274   :  { %v3221_v42 = vadd.f32 %v10729_v49, %v14810_v43  ;;  %v3315_v59 = vadd.f32 %v10790_v63, %v3218_v46  ;;  %v14837_v43 = vld [vmem:[%s18838_s5] ss:$0 sm:$0xff] }
 0x275   :  { %10961 = vmatprep.subr.bf16.mxu1 %v10960_v17 }
 0x276   :  { %v3335_v20 = vmax.f32 %v3315_v59, 0.0  ;;  %v3318_v5 = vadd.f32 %v10793_v40, %v3221_v42  ;;  %10963 = vmatpush3.bf16.msra.mxu1 %v10960_v17 }
 0x278   :  { %v3336_v9 = vmax.f32 %v3318_v5, 0.0  ;;  %10897 = vmatprep.mubr.f32.mxu0 %v3335_v20 }
 0x27a   :  { %10898 = vmatmul.mubr.f32.gmra.mrb[206].mxu0 %v3336_v9 }
 0x315   :  { %v10878_v51 = vpop.f32.mrb[192].mxu0 }
 0x316   :  { %v14840_v52 = vadd.f32 %v10878_v51, %v14837_v43  ;;  %v3426_v19 = vpop.f32.mrb[193].mxu0 }
 0x317   :  { %v14843_v16 = vadd.f32 %v14837_v43, %v3426_v19 }
 0x318   :  { %9216 = vst.msk [vmem:[%s18839_s11 + $0x8] sm:$0xff] %vm9214_vm0, %v14840_v52  ;;  %v3522_v10 = vmul.f32 0.5, %v14840_v52 }
 0x319   :  { %v3521_v27 = vmul.f32 0.5, %v14843_v16  ;;  %9215 = vst.msk [vmem:[%s18839_s11] sm:$0xff] %vm9214_vm0, %v14843_v16 }
 0x31a   :  { %v3539_v56 = vmul.f32 1.442695, %v3522_v10 }
 0x31b   :  { %v3537_v57 = vmul.f32 1.442695, %v3521_v27 }
 0x31d   :  { %11158 = vpow2.f32 %v3537_v57  ;;  %v10881_v25 = vpop.f32.mrb[194].mxu0 }
 0x31e   :  { %v14858_v1 = vadd.f32 %v10881_v25, %v14837_v43  ;;  %v3436_v58 = vpop.f32.mrb[195].mxu0  ;;  %11160 = vpow2.f32 %v3539_v56 }
 0x31f   :  { %v14861_v26 = vadd.f32 %v14837_v43, %v3436_v58 }
 0x320   :  { %9218 = vst.msk [vmem:[%s18839_s11 + $0x18] sm:$0xff] %vm9214_vm0, %v14858_v1  ;;  %v3524_v54 = vmul.f32 0.5, %v14858_v1 }
 0x321   :  { %v3523_v8 = vmul.f32 0.5, %v14861_v26  ;;  %9217 = vst.msk [vmem:[%s18839_s11 + $0x10] sm:$0xff] %vm9214_vm0, %v14861_v26 }
 0x322   :  { %v3543_v11 = vmul.f32 1.442695, %v3524_v54 }
 0x323   :  { %v3541_v28 = vmul.f32 1.442695, %v3523_v8 }
 0x325   :  { %11162 = vpow2.f32 %v3541_v28  ;;  %v10884_v34 = vpop.f32.mrb[196].mxu0 }
 0x326   :  { %v14876_v62 = vadd.f32 %v10884_v34, %v14837_v43  ;;  %v3446_v22 = vpop.f32.mrb[197].mxu0  ;;  %11164 = vpow2.f32 %v3543_v11 }
 0x327   :  { %v11159_v18 = vpop.eup %11158  ;;  %v14879_v33 = vadd.f32 %v14837_v43, %v3446_v22 }
 0x328   :  { %v3526_v3 = vmul.f32 0.5, %v14876_v62  ;;  %9220 = vst.msk [vmem:[%s18839_s11 + $0x28] sm:$0xff] %vm9214_vm0, %v14876_v62  ;;  %3585 = vrot.lane.b32.xlu0 %v11159_v18, %s12729_s22  ;;  %v11161_v38 = vpop.eup %11160  ;;  %v3892_v18 = vld [vmem:[%s18840_s8] sm:$0xff] }
 0x329   :  { %v3525_v14 = vmul.f32 0.5, %v14879_v33  ;;  %9219 = vst.msk [vmem:[%s18839_s11 + $0x20] sm:$0xff] %vm9214_vm0, %v14879_v33 }
 0x32a   :  { %v3547_v30 = vmul.f32 1.442695, %v3526_v3  ;;  %v3904_v3 = vld [vmem:[%s18840_s8 + $0x60] sm:$0xff] }
 0x32b   :  { %v3545_v36 = vmul.f32 1.442695, %v3525_v14  ;;  %v15006_v14 = vld [vmem:[%s18840_s8 + $0x8] sm:$0xff] }
 0x32c   :  { %11166 = vpow2.f32 %v3547_v30  ;;  %3587 = vrot.lane.b32.xlu0 %v11161_v38, %s12729_s22  ;;  %v9450_v30 = vcombine.low %v3892_v18, %v3904_v3  ;;  %v9451_v38 = vcombine.high %v3892_v18, %v3904_v3  ;;  %v3965_v3 = vld [vmem:[%s18840_s8 + $0x248] sm:$0xff] }
 0x32d   :  { %11168 = vpow2.f32 %v3545_v36  ;;  %v10887_v44 = vpop.f32.mrb[198].mxu0  ;;  %v3905_v36 = vld [vmem:[%s18840_s8 + $0x68] sm:$0xff] }
 0x32e   :  { %v14896_v21 = vadd.f32 %v10887_v44, %v14837_v43  ;;  %v3456_v47 = vpop.f32.mrb[199].mxu0  ;;  %v3916_v44 = vld [vmem:[%s18840_s8 + $0xc0] sm:$0xff]  ;;  %5170 = vmatprep.subr.bf16.mxu0 %v9451_v38  ;;  %v3510_v38 = vld [vmem:[%s18841_s1 + $0x28] sm:$0xff] }
 0x32f   :  { %v11163_v45 = vpop.eup %11162  ;;  %v14899_v29 = vadd.f32 %v14837_v43, %v3456_v47  ;;  %v3928_v47 = vld [vmem:[%s18840_s8 + $0x120] sm:$0xff]  ;;  %5171 = vmatpush1.bf16.msra.mxu0 %v9450_v30 }
 0x330   :  { %v3528_v39 = vmul.f32 0.5, %v14896_v21  ;;  %9222 = vst.msk [vmem:[%s18839_s11 + $0x38] sm:$0xff] %vm9214_vm0, %v14896_v21  ;;  %3589 = vrot.lane.b32.xlu1 %v11163_v45, %s12729_s22  ;;  %v11165_v53 = vpop.eup %11164  ;;  %v9452_v45 = vcombine.low %v15006_v14, %v3905_v36 }
 0x331   :  { %v3527_v24 = vmul.f32 0.5, %v14899_v29  ;;  %9221 = vst.msk [vmem:[%s18839_s11 + $0x30] sm:$0xff] %vm9214_vm0, %v14899_v29 }
 0x332   :  { %v3551_v48 = vmul.f32 1.442695, %v3528_v39  ;;  %v9453_v39 = vcombine.high %v15006_v14, %v3905_v36  ;;  %v3977_v14 = vld [vmem:[%s18840_s8 + $0x2a8] sm:$0xff] }
 0x333   :  { %v3549_v41 = vmul.f32 1.442695, %v3527_v24  ;;  %v9475_v24 = vcombine.high %v3916_v44, %v3928_v47 }
 0x334   :  { %11170 = vpow2.f32 %v3551_v48  ;;  %3591 = vrot.lane.b32.xlu1 %v11165_v53, %s12729_s22  ;;  %v3940_v48 = vld [vmem:[%s18840_s8 + $0x180] sm:$0xff]  ;;  %5283 = vmatprep.subr.bf16.mxu1 %v9453_v39 }
 0x335   :  { %11172 = vpow2.f32 %v3549_v41  ;;  %v10890_v37 = vpop.f32.mrb[200].mxu0  ;;  %v3952_v53 = vld [vmem:[%s18840_s8 + $0x1e0] sm:$0xff]  ;;  %v9474_v41 = vcombine.low %v3916_v44, %v3928_v47  ;;  %5172 = vmatprep.subr.bf16.mxu0 %v9475_v24  ;;  %v9525_v47 = vcombine.high %v3965_v3, %v3977_v14 }
 0x336   :  { %v11167_v31 = vpop.eup %11166  ;;  %v14916_v0 = vadd.f32 %v10890_v37, %v14837_v43  ;;  %v3466_v32 = vpop.f32.mrb[201].mxu0 }
 0x337   :  { %v11169_v60 = vpop.eup %11168  ;;  %v14919_v6 = vadd.f32 %v14837_v43, %v3466_v32  ;;  %5173 = vmatpush1.bf16.msra.mxu0 %v9474_v41  ;;  %v4001_v41 = vld [vmem:[%s18840_s8 + $0x368] sm:$0xff] }
 0x338   :  { %v3530_v4 = vmul.f32 0.5, %v14916_v0  ;;  %9224 = vst.msk [vmem:[%s18839_s11 + $0x48] sm:$0xff] %vm9214_vm0, %v14916_v0  ;;  %3595 = vrot.lane.b32.xlu1 %v11167_v31, %s12729_s22  ;;  %3593 = vrot.lane.b32.xlu0 %v11169_v60, %s12729_s22  ;;  %v9499_v31 = vcombine.high %v3940_v48, %v3952_v53  ;;  %v3964_v60 = vld [vmem:[%s18840_s8 + $0x240] sm:$0xff] }
 0x339   :  { %v3529_v13 = vmul.f32 0.5, %v14919_v6  ;;  %9223 = vst.msk [vmem:[%s18839_s11 + $0x40] sm:$0xff] %vm9214_vm0, %v14919_v6 }
 0x33a   :  { %v3555_v2 = vmul.f32 1.442695, %v3530_v4  ;;  %v3976_v4 = vld [vmem:[%s18840_s8 + $0x2a0] sm:$0xff]  ;;  %5174 = vmatprep.subr.bf16.mxu0 %v9499_v31  ;;  %v9524_v31 = vcombine.low %v3965_v3, %v3977_v14 }
 0x33b   :  { %v3553_v55 = vmul.f32 1.442695, %v3529_v13  ;;  %v9498_v13 = vcombine.low %v3940_v48, %v3952_v53  ;;  %v3989_v53 = vld [vmem:[%s18840_s8 + $0x308] sm:$0xff]  ;;  %v4036_v14 = vld [vmem:[%s18840_s8 + $0x480] sm:$0xff] }
 0x33c   :  { %11174 = vpow2.f32 %v3555_v2  ;;  %v9523_v2 = vcombine.high %v3964_v60, %v3976_v4 }
 0x33d   :  { %11176 = vpow2.f32 %v3553_v55  ;;  %v10893_v7 = vpop.f32.mrb[202].mxu0  ;;  %v3988_v55 = vld [vmem:[%s18840_s8 + $0x300] sm:$0xff]  ;;  %5175 = vmatpush1.bf16.msra.mxu0 %v9498_v13  ;;  %v4025_v13 = vld [vmem:[%s18840_s8 + $0x428] sm:$0xff] }
 0x33e   :  { %v11171_v15 = vpop.eup %11170  ;;  %v14936_v23 = vadd.f32 %v10893_v7, %v14837_v43  ;;  %v3476_v63 = vpop.f32.mrb[203].mxu0  ;;  %v4000_v7 = vld [vmem:[%s18840_s8 + $0x360] sm:$0xff]  ;;  %5176 = vmatprep.subr.bf16.mxu0 %v9523_v2  ;;  %v9548_v2 = vcombine.low %v3989_v53, %v4001_v41 }
 0x33f   :  { %v11173_v61 = vpop.eup %11172  ;;  %v14939_v46 = vadd.f32 %v14837_v43, %v3476_v63  ;;  %3599 = vrot.lane.b32.xlu1 %v11171_v15, %s12729_s22  ;;  %v9522_v15 = vcombine.low %v3964_v60, %v3976_v4  ;;  %v9547_v63 = vcombine.high %v3988_v55, %v4000_v7  ;;  %v3512_v60 = vld [vmem:[%s18841_s1 + $0x38] sm:$0xff]  ;;  %v4013_v4 = vld [vmem:[%s18840_s8 + $0x3c8] sm:$0xff] }
 0x340   :  { %v3532_v49 = vmul.f32 0.5, %v14936_v23  ;;  %9226 = vst.msk [vmem:[%s18839_s11 + $0x58] sm:$0xff] %vm9214_vm0, %v14936_v23  ;;  %3597 = vrot.lane.b32.xlu0 %v11173_v61, %s12729_s22  ;;  %v4012_v61 = vld [vmem:[%s18840_s8 + $0x3c0] sm:$0xff] }
 0x341   :  { %v3531_v50 = vmul.f32 0.5, %v14939_v46  ;;  %9225 = vst.msk [vmem:[%s18839_s11 + $0x50] sm:$0xff] %vm9214_vm0, %v14939_v46  ;;  %5177 = vmatpush1.bf16.msra.mxu0 %v9522_v15  ;;  %v9573_v15 = vcombine.high %v4013_v4, %v4025_v13 }
 0x342   :  { %v3559_v40 = vmul.f32 1.442695, %v3532_v49  ;;  %v4024_v49 = vld [vmem:[%s18840_s8 + $0x420] sm:$0xff]  ;;  %5178 = vmatprep.subr.bf16.mxu0 %v9547_v63 }
 0x343   :  { %v3557_v42 = vmul.f32 1.442695, %v3531_v50  ;;  %v9546_v50 = vcombine.low %v3988_v55, %v4000_v7 }
 0x344   :  { %11178 = vpow2.f32 %v3559_v40  ;;  %v9571_v40 = vcombine.high %v4012_v61, %v4024_v49 }
 0x345   :  { %11180 = vpow2.f32 %v3557_v42  ;;  %v10896_v59 = vpop.f32.mrb[204].mxu0  ;;  %5179 = vmatpush1.bf16.msra.mxu0 %v9546_v50  ;;  %v9570_v42 = vcombine.low %v4012_v61, %v4024_v49  ;;  %v9572_v49 = vcombine.low %v4013_v4, %v4025_v13 }
 0x346   :  { %v11175_v20 = vpop.eup %11174  ;;  %v14956_v5 = vadd.f32 %v10896_v59, %v14837_v43  ;;  %v3486_v9 = vpop.f32.mrb[205].mxu0  ;;  %5180 = vmatprep.subr.bf16.mxu0 %v9571_v40  ;;  %v3505_v59 = vld [vmem:[%s18841_s1] sm:$0xff]  ;;  %v3514_v40 = vld [vmem:[%s18841_s1 + $0x48] sm:$0xff] }
 0x347   :  { %v11177_v12 = vpop.eup %11176  ;;  %v14959_v35 = vadd.f32 %v14837_v43, %v3486_v9  ;;  %3603 = vrot.lane.b32.xlu1 %v11175_v20, %s12729_s22 }
 0x348   :  { %v3534_v17 = vmul.f32 0.5, %v14956_v5  ;;  %9228 = vst.msk [vmem:[%s18839_s11 + $0x68] sm:$0xff] %vm9214_vm0, %v14956_v5  ;;  %3601 = vrot.lane.b32.xlu0 %v11177_v12, %s12729_s22  ;;  %v3506_v12 = vld [vmem:[%s18841_s1 + $0x8] sm:$0xff] }
 0x349   :  { %v3533_v51 = vmul.f32 0.5, %v14959_v35  ;;  %9227 = vst.msk [vmem:[%s18839_s11 + $0x60] sm:$0xff] %vm9214_vm0, %v14959_v35  ;;  %5181 = vmatpush1.bf16.msra.mxu0 %v9570_v42  ;;  %v3513_v42 = vld [vmem:[%s18841_s1 + $0x40] sm:$0xff] }
 0x34a   :  { %v3563_v19 = vmul.f32 1.442695, %v3534_v17 }
 0x34b   :  { %v3561_v10 = vmul.f32 1.442695, %v3533_v51 }
 0x34c   :  { %11182 = vpow2.f32 %v3563_v19  ;;  %v3917_v19 = vld [vmem:[%s18840_s8 + $0xc8] sm:$0xff] }
 0x34d   :  { %11184 = vpow2.f32 %v3561_v10  ;;  %v10899_v27 = vpop.f32.mrb[206].mxu0  ;;  %v3929_v10 = vld [vmem:[%s18840_s8 + $0x128] sm:$0xff] }
 0x34e   :  { %v11179_v57 = vpop.eup %11178  ;;  %v14976_v56 = vadd.f32 %v10899_v27, %v14837_v43  ;;  %v3496_v25 = vpop.f32.mrb[207].mxu0 }
 0x34f   :  { %v11181_v58 = vpop.eup %11180  ;;  %v14979_v54 = vadd.f32 %v14837_v43, %v3496_v25  ;;  %3607 = vrot.lane.b32.xlu1 %v11179_v57, %s12729_s22  ;;  %v3507_v57 = vld [vmem:[%s18841_s1 + $0x10] sm:$0xff] }
 0x350   :  { %v3536_v8 = vmul.f32 0.5, %v14976_v56  ;;  %9230 = vst.msk [vmem:[%s18839_s11 + $0x78] sm:$0xff] %vm9214_vm0, %v14976_v56  ;;  %3605 = vrot.lane.b32.xlu0 %v11181_v58, %s12729_s22  ;;  %v9477_v58 = vcombine.high %v3917_v19, %v3929_v10 }
 0x351   :  { %v3535_v28 = vmul.f32 0.5, %v14979_v54  ;;  %9229 = vst.msk [vmem:[%s18839_s11 + $0x70] sm:$0xff] %vm9214_vm0, %v14979_v54 }
 0x352   :  { %v3567_v43 = vmul.f32 1.442695, %v3536_v8  ;;  %v3941_v8 = vld [vmem:[%s18840_s8 + $0x188] sm:$0xff] }
 0x353   :  { %v3565_v11 = vmul.f32 1.442695, %v3535_v28  ;;  %v3953_v28 = vld [vmem:[%s18840_s8 + $0x1e8] sm:$0xff] }
 0x354   :  { %11186 = vpow2.f32 %v3567_v43  ;;  %v9500_v36 = vcombine.low %v3941_v8, %v3953_v28 }
 0x355   :  { %11188 = vpow2.f32 %v3565_v11  ;;  %v3508_v11 = vld [vmem:[%s18841_s1 + $0x18] sm:$0xff] }
 0x356   :  { %v11183_v34 = vpop.eup %11182 }
 0x357   :  { %v11185_v22 = vpop.eup %11184  ;;  %3611 = vrot.lane.b32.xlu1 %v11183_v34, %s12729_s22  ;;  %v9476_v34 = vcombine.low %v3917_v19, %v3929_v10 }
 0x358   :  { %3609 = vrot.lane.b32.xlu0 %v11185_v22, %s12729_s22  ;;  %v9501_v22 = vcombine.high %v3941_v8, %v3953_v28 }
 0x35e   :  { %v11187_v37 = vpop.eup %11186 }
 0x35f   :  { %v11189_v32 = vpop.eup %11188  ;;  %3615 = vrot.lane.b32.xlu1 %v11187_v37, %s12729_s22 }
 0x360   :  { %3613 = vrot.lane.b32.xlu0 %v11189_v32, %s12729_s22  ;;  %v9549_v32 = vcombine.high %v3989_v53, %v4001_v41 }
 0x39a   :  { %v3586_v20 = vpop.permute.xlu0 %3585 }
 0x39b   :  { %v3633_v9 = vmul.f32 %v3586_v20, %v3505_v59 }
 0x39d   :  { %v3649_v17 = vadd.f32 %v3633_v9, %v14843_v16 }
 0x39e   :  { %v3588_v51 = vpop.permute.xlu0 %3587 }
 0x39f   :  { %v3634_v27 = vmul.f32 %v3588_v51, %v3506_v12  ;;  %10904 = vmatprep.mubr.msk.f32.mxu1 %vm3674_vm1, %v3649_v17  ;;  %v3516_v17 = vld [vmem:[%s18841_s1 + $0x58] sm:$0xff]  ;;  %v3515_v51 = vld [vmem:[%s18841_s1 + $0x50] sm:$0xff] }
 0x3a1   :  { %v3650_v25 = vadd.f32 %v3634_v27, %v14840_v52 }
 0x3a2   :  { %v3590_v16 = vpop.permute.xlu1 %3589 }
 0x3a3   :  { %v3635_v43 = vmul.f32 %v3590_v16, %v3507_v57  ;;  %10905 = vmatmul.mubr.msk.f32.vlgmr.msra.gmra.mrb[192].mxu1 %vm3674_vm1, %v3650_v25  ;;  %v3518_v25 = vld [vmem:[%s18841_s1 + $0x68] sm:$0xff] }
 0x3a4   :  { %5284 = vmatpush1.bf16.msra.mxu1 %v9452_v45 }
 0x3a5   :  { %v3651_v52 = vadd.f32 %v3635_v43, %v14861_v26  ;;  %5285 = vmatprep.subr.bf16.mxu1 %v9477_v58  ;;  %v3509_v26 = vld [vmem:[%s18841_s1 + $0x20] sm:$0xff] }
 0x3a6   :  { %v3592_v18 = vpop.permute.xlu1 %3591  ;;  %v3517_v58 = vld [vmem:[%s18841_s1 + $0x60] sm:$0xff] }
 0x3a7   :  { %v3636_v30 = vmul.f32 %v3592_v18, %v3508_v11  ;;  %10907 = vmatprep.mubr.msk.f32.mxu1 %vm3674_vm1, %v3651_v52  ;;  %v3520_v11 = vld [vmem:[%s18841_s1 + $0x78] sm:$0xff] }
 0x3a8   :  { %5286 = vmatpush1.bf16.msra.mxu1 %v9476_v34  ;;  %v3519_v34 = vld [vmem:[%s18841_s1 + $0x70] sm:$0xff] }
 0x3a9   :  { %v3652_v44 = vadd.f32 %v3636_v30, %v14858_v1  ;;  %5287 = vmatprep.subr.bf16.mxu1 %v9501_v22  ;;  %v4048_v30 = vld [vmem:[%s18840_s8 + $0x4e0] sm:$0xff] }
 0x3aa   :  { %v3596_v45 = vpop.permute.xlu1 %3595  ;;  %v3594_v39 = vpop.permute.xlu0 %3593 }
 0x3ab   :  { %v3638_v24 = vmul.f32 %v3596_v45, %v3510_v38  ;;  %v3637_v48 = vmul.f32 %v3594_v39, %v3509_v26  ;;  %10908 = vmatmul.mubr.msk.f32.gmra.mrb[194].mxu1 %vm3674_vm1, %v3652_v44  ;;  %v4037_v38 = vld [vmem:[%s18840_s8 + $0x488] sm:$0xff]  ;;  %v9595_v26 = vcombine.high %v4036_v14, %v4048_v30  ;;  %v4072_v45 = vld [vmem:[%s18840_s8 + $0x5a0] sm:$0xff] }
 0x3ac   :  { %5288 = vmatpush1.bf16.msra.mxu1 %v9500_v36  ;;  %v4061_v39 = vld [vmem:[%s18840_s8 + $0x548] sm:$0xff] }
 0x3ad   :  { %v3654_v37 = vadd.f32 %v3638_v24, %v14876_v62  ;;  %v3653_v1 = vadd.f32 %v3637_v48, %v14879_v33  ;;  %5289 = vmatprep.subr.bf16.mxu1 %v9525_v47  ;;  %v3511_v62 = vld [vmem:[%s18841_s1 + $0x30] sm:$0xff]  ;;  %5182 = vmatprep.subr.bf16.mxu0 %v9595_v26  ;;  %v4060_v47 = vld [vmem:[%s18840_s8 + $0x540] sm:$0xff]  ;;  %v4073_v48 = vld [vmem:[%s18840_s8 + $0x5a8] sm:$0xff] }
 0x3ae   :  { %v9619_v24 = vcombine.high %v4060_v47, %v4072_v45  ;;  %v9618_v53 = vcombine.low %v4060_v47, %v4072_v45  ;;  %v9620_v41 = vcombine.low %v4061_v39, %v4073_v48 }
 0x3af   :  { %10910 = vmatprep.mubr.msk.f32.mxu1 %vm3674_vm1, %v3653_v1  ;;  %v18845_v1 = vmov 0  }
 0x3b0   :  { %10911 = vmatmul.mubr.msk.f32.gmra.mrb[196].mxu1 %vm3674_vm1, %v3654_v37  ;;  %v9621_v37 = vcombine.high %v4061_v39, %v4073_v48  ;;  %5202 = vmatprep.mubr.bf16.mxu0 %v18845_v1 }
 0x3b1   :  { %v3600_v33 = vpop.permute.xlu1 %3599  ;;  %5290 = vmatpush1.bf16.msra.mxu1 %v9524_v31  ;;  %v3894_v31 = vld [vmem:[%s18840_s8 + $0x10] sm:$0xff] }
 0x3b2   :  { %v3640_v55 = vmul.f32 %v3600_v33, %v3512_v60  ;;  %v3598_v7 = vpop.permute.xlu0 %3597  ;;  %5291 = vmatprep.subr.bf16.mxu1 %v9549_v32  ;;  %v3906_v32 = vld [vmem:[%s18840_s8 + $0x70] sm:$0xff]  ;;  %v3895_v60 = vld [vmem:[%s18840_s8 + $0x18] sm:$0xff] }
 0x3b3   :  { %v3639_v63 = vmul.f32 %v3598_v7, %v3511_v62  ;;  %v9454_v4 = vcombine.low %v3894_v31, %v3906_v32  ;;  %v9455_v13 = vcombine.high %v3894_v31, %v3906_v32  ;;  %v3907_v62 = vld [vmem:[%s18840_s8 + $0x78] sm:$0xff] }
 0x3b4   :  { %v3656_v50 = vadd.f32 %v3640_v55, %v14896_v21  ;;  %v9456_v33 = vcombine.low %v3895_v60, %v3907_v62  ;;  %v15196_v55 = vld [vmem:[%s18842_s7] ss:$0 sm:$0xff]  ;;  %v4027_v31 = vld [vmem:[%s18840_s8 + $0x438] sm:$0xff] }
 0x3b5   :  { %v3655_v61 = vadd.f32 %v3639_v63, %v14899_v29  ;;  %5292 = vmatpush1.bf16.msra.mxu1 %v9548_v2  ;;  %v9457_v2 = vcombine.high %v3895_v60, %v3907_v62 }
 0x3b6   :  { %5293 = vmatprep.subr.bf16.mxu1 %v9573_v15 }
 0x3b7   :  { %10913 = vmatprep.mubr.msk.f32.mxu1 %vm3674_vm1, %v3655_v61 }
 0x3b8   :  { %10914 = vmatmul.mubr.msk.f32.gmra.mrb[198].mxu1 %vm3674_vm1, %v3656_v50  ;;  %v3918_v50 = vld [vmem:[%s18840_s8 + $0xd0] sm:$0xff] }
 0x3b9   :  { %v3604_v59 = vpop.permute.xlu1 %3603  ;;  %5294 = vmatpush1.bf16.msra.mxu1 %v9572_v49 }
 0x3ba   :  { %v3642_v29 = vmul.f32 %v3604_v59, %v3514_v40  ;;  %v3602_v20 = vpop.permute.xlu0 %3601  ;;  %v3919_v59 = vld [vmem:[%s18840_s8 + $0xd8] sm:$0xff] }
 0x3bb   :  { %v3641_v9 = vmul.f32 %v3602_v20, %v3513_v42  ;;  %v3930_v42 = vld [vmem:[%s18840_s8 + $0x130] sm:$0xff] }
 0x3bc   :  { %v3658_v12 = vadd.f32 %v3642_v29, %v14916_v0  ;;  %v3931_v29 = vld [vmem:[%s18840_s8 + $0x138] sm:$0xff] }
 0x3bd   :  { %v3657_v21 = vadd.f32 %v3641_v9, %v14919_v6  ;;  %v3942_v9 = vld [vmem:[%s18840_s8 + $0x190] sm:$0xff] }
 0x3bf   :  { %10916 = vmatprep.mubr.msk.f32.mxu1 %vm3674_vm1, %v3657_v21  ;;  %v9479_v21 = vcombine.high %v3918_v50, %v3930_v42 }
 0x3c0   :  { %10917 = vmatmul.mubr.msk.f32.gmra.mrb[200].mxu1 %vm3674_vm1, %v3658_v12  ;;  %v9481_v12 = vcombine.high %v3919_v59, %v3931_v29 }
 0x3c1   :  { %v3608_v19 = vpop.permute.xlu1 %3607 }
 0x3c2   :  { %v3644_v10 = vmul.f32 %v3608_v19, %v3516_v17  ;;  %v3606_v27 = vpop.permute.xlu0 %3605  ;;  %v3954_v17 = vld [vmem:[%s18840_s8 + $0x1f0] sm:$0xff]  ;;  %v3955_v19 = vld [vmem:[%s18840_s8 + $0x1f8] sm:$0xff] }
 0x3c3   :  { %v3643_v57 = vmul.f32 %v3606_v27, %v3515_v51  ;;  %v3943_v51 = vld [vmem:[%s18840_s8 + $0x198] sm:$0xff] }
 0x3c4   :  { %v3660_v0 = vadd.f32 %v3644_v10, %v14936_v23 }
 0x3c5   :  { %v3659_v6 = vadd.f32 %v3643_v57, %v14939_v46 }
 0x3c7   :  { %10919 = vmatprep.mubr.msk.f32.mxu1 %vm3674_vm1, %v3659_v6  ;;  %v9478_v6 = vcombine.low %v3918_v50, %v3930_v42  ;;  %v4051_v50 = vld [vmem:[%s18840_s8 + $0x4f8] sm:$0xff] }
 0x3c8   :  { %10920 = vmatmul.mubr.msk.f32.gmra.mrb[202].mxu1 %vm3674_vm1, %v3660_v0  ;;  %v9480_v0 = vcombine.low %v3919_v59, %v3931_v29 }
 0x3c9   :  { %v3612_v16 = vpop.permute.xlu1 %3611 }
 0x3ca   :  { %v3646_v8 = vmul.f32 %v3612_v16, %v3518_v25  ;;  %v3610_v28 = vpop.permute.xlu0 %3609  ;;  %v9505_v16 = vcombine.high %v3943_v51, %v3955_v19 }
 0x3cb   :  { %v3645_v43 = vmul.f32 %v3610_v28, %v3517_v58  ;;  %v9503_v58 = vcombine.high %v3942_v9, %v3954_v17  ;;  %v3966_v28 = vld [vmem:[%s18840_s8 + $0x250] sm:$0xff] }
 0x3cc   :  { %v3662_v23 = vadd.f32 %v3646_v8, %v14956_v5 }
 0x3cd   :  { %v3661_v46 = vadd.f32 %v3645_v43, %v14959_v35 }
 0x3cf   :  { %10922 = vmatprep.mubr.msk.f32.mxu1 %vm3674_vm1, %v3661_v46  ;;  %v3978_v46 = vld [vmem:[%s18840_s8 + $0x2b0] sm:$0xff] }
 0x3d0   :  { %10923 = vmatmul.mubr.msk.f32.gmra.mrb[204].mxu1 %vm3674_vm1, %v3662_v23  ;;  %v3967_v23 = vld [vmem:[%s18840_s8 + $0x258] sm:$0xff]  ;;  %v9526_v47 = vcombine.low %v3966_v28, %v3978_v46 }
 0x3d1   :  { %v3616_v52 = vpop.permute.xlu1 %3615 }
 0x3d2   :  { %v3648_v22 = vmul.f32 %v3616_v52, %v3520_v11  ;;  %v3614_v18 = vpop.permute.xlu0 %3613  ;;  %v3979_v11 = vld [vmem:[%s18840_s8 + $0x2b8] sm:$0xff]  ;;  %v9502_v52 = vcombine.low %v3942_v9, %v3954_v17  ;;  %v4074_v17 = vld [vmem:[%s18840_s8 + $0x5b0] sm:$0xff] }
 0x3d3   :  { %v3647_v3 = vmul.f32 %v3614_v18, %v3519_v34  ;;  %v9528_v45 = vcombine.low %v3967_v23, %v3979_v11 }
 0x3d4   :  { %v3664_v5 = vadd.f32 %v3648_v22, %v14976_v56  ;;  %v4049_v56 = vld [vmem:[%s18840_s8 + $0x4e8] sm:$0xff] }
 0x3d5   :  { %v3663_v35 = vadd.f32 %v3647_v3, %v14979_v54  ;;  %v9594_v54 = vcombine.low %v4036_v14, %v4048_v30  ;;  %v9596_v36 = vcombine.low %v4037_v38, %v4049_v56  ;;  %v9597_v44 = vcombine.high %v4037_v38, %v4049_v56  ;;  %v3990_v38 = vld [vmem:[%s18840_s8 + $0x310] sm:$0xff] }
 0x3d6   :  { %v9527_v14 = vcombine.high %v3966_v28, %v3978_v46  ;;  %v9529_v30 = vcombine.high %v3967_v23, %v3979_v11  ;;  %v4002_v56 = vld [vmem:[%s18840_s8 + $0x370] sm:$0xff]  ;;  %v15327_v46 = vld [vmem:[%s18840_s8 + $0x28] sm:$0xff] }
 0x3d7   :  { %10925 = vmatprep.mubr.msk.f32.mxu1 %vm3674_vm1, %v3663_v35  ;;  %5295 = vmatprep.subr.bf16.mxu1 %v9597_v44  ;;  %v9504_v35 = vcombine.low %v3943_v51, %v3955_v19  ;;  %v4063_v51 = vld [vmem:[%s18840_s8 + $0x558] sm:$0xff]  ;;  %v15332_v23 = vld [vmem:[%s18840_s8 + $0x88] sm:$0xff] }
 0x3d8   :  { %10926 = vmatmul.mubr.msk.f32.gmra.mrb[206].mxu1 %vm3674_vm1, %v3664_v5  ;;  %5183 = vmatpush1.bf16.msra.mxu0 %v9594_v54  ;;  %v3991_v54 = vld [vmem:[%s18840_s8 + $0x318] sm:$0xff] }
 0x3d9   :  { %5296 = vmatpush1.bf16.msra.mxu1 %v9596_v36  ;;  %5184 = vmatprep.subr.bf16.mxu0 %v9619_v24  ;;  %v4003_v36 = vld [vmem:[%s18840_s8 + $0x378] sm:$0xff]  ;;  %v9551_v24 = vcombine.high %v3990_v38, %v4002_v56 }
 0x3da   :  { %5297 = vmatprep.subr.bf16.mxu1 %v9621_v37  ;;  %5315 = vmatprep.mubr.bf16.mxu1 %v18845_v1  ;;  %v9553_v48 = vcombine.high %v3991_v54, %v4003_v36  ;;  %v4015_v37 = vld [vmem:[%s18840_s8 + $0x3d8] sm:$0xff]  ;;  %v9552_v62 = vcombine.low %v3991_v54, %v4003_v36 }
 0x3db   :  { %v9576_v59 = vcombine.low %v4015_v37, %v4027_v31  ;;  %v4075_v19 = vld [vmem:[%s18840_s8 + $0x5b8] sm:$0xff] }
 0x3dc   :  { %5185 = vmatpush1.bf16.msra.mxu0 %v9618_v53  ;;  %v4014_v53 = vld [vmem:[%s18840_s8 + $0x3d0] sm:$0xff] }
 0x3dd   :  { %5298 = vmatpush1.bf16.msra.mxu1 %v9620_v41  ;;  %5396 = vmatprep.subr.bf16.mxu0 %v9455_v13  ;;  %v4026_v41 = vld [vmem:[%s18840_s8 + $0x430] sm:$0xff]  ;;  %v9550_v13 = vcombine.low %v3990_v38, %v4002_v56 }
 0x3de   :  { %5509 = vmatprep.subr.bf16.mxu1 %v9457_v2  ;;  %v9575_v2 = vcombine.high %v4014_v53, %v4026_v41  ;;  %v9574_v42 = vcombine.low %v4014_v53, %v4026_v41 }
 0x476   :  { %v10906_v7 = vpop.f32.mrb[192].mxu1 }
 0x477   :  { %v3795_v15 = vadd.f32 %v10906_v7, %v15196_v55  ;;  %v3789_v63 = vpop.f32.mrb[193].mxu1  ;;  %v9577_v7 = vcombine.high %v4015_v37, %v4027_v31 }
 0x478   :  { %v3790_v61 = vadd.f32 %v15196_v55, %v3789_v63 }
 0x479   :  { %v3869_v49 = vmax.f32 %v3795_v15, 0.0  ;;  %v4038_v15 = vld [vmem:[%s18840_s8 + $0x490] sm:$0xff] }
 0x47a   :  { %v3868_v40 = vmax.f32 %v3790_v61, 0.0  ;;  %v4050_v61 = vld [vmem:[%s18840_s8 + $0x4f0] sm:$0xff] }
 0x47b   :  { %v9599_v9 = vcombine.high %v4038_v15, %v4050_v61 }
 0x47c   :  { %v15212_v20 = vpack.c.bf16 %v3869_v49, %v3868_v40  ;;  %v4039_v49 = vld [vmem:[%s18840_s8 + $0x498] sm:$0xff] }
 0x47e   :  { %18865 = vst [vmem:[#allocation2_spill] sm:$0xff] %v15212_v20  ;;  %v10909_v10 = vpop.f32.mrb[194].mxu1  ;;  %5203 = vmatmul.mubr.bf16.vlgmr.msra.gmra.mrb[208].mxu0 %v15212_v20  ;;  %5316 = vmatmul.mubr.bf16.vlgmr.msra.gmra.mrb[208].mxu1 %v15212_v20 }
 0x47f   :  { %v3805_v27 = vadd.f32 %v10909_v10, %v15196_v55  ;;  %v3799_v57 = vpop.f32.mrb[195].mxu1  ;;  %5397 = vmatpush1.bf16.msra.mxu0 %v9454_v4  ;;  %5510 = vmatpush1.bf16.msra.mxu1 %v9456_v33 }
 0x480   :  { %v3800_v25 = vadd.f32 %v15196_v55, %v3799_v57  ;;  %5212 = vmatprep.mubr.bf16.mxu0 %v18845_v1  ;;  %5325 = vmatprep.mubr.bf16.mxu1 %v18845_v1 }
 0x481   :  { %v3871_v8 = vmax.f32 %v3805_v27, 0.0  ;;  %5398 = vmatprep.subr.bf16.mxu0 %v9479_v21  ;;  %5511 = vmatprep.subr.bf16.mxu1 %v9481_v12  ;;  %v9601_v21 = vcombine.high %v4039_v49, %v4051_v50  ;;  %v4062_v12 = vld [vmem:[%s18840_s8 + $0x550] sm:$0xff] }
 0x482   :  { %v3870_v43 = vmax.f32 %v3800_v25, 0.0 }
 0x483   :  { %v10912_v34 = vpop.f32.mrb[196].mxu1  ;;  %5399 = vmatpush1.bf16.msra.mxu0 %v9478_v6  ;;  %5512 = vmatpush1.bf16.msra.mxu1 %v9480_v0  ;;  %v9598_v6 = vcombine.low %v4038_v15, %v4050_v61  ;;  %v9600_v0 = vcombine.low %v4039_v49, %v4051_v50  ;;  %v9460_v15 = vcombine.low %v15327_v46, %v15332_v23  ;;  %v3956_v50 = vld [vmem:[%s18840_s8 + $0x200] sm:$0xff] }
 0x484   :  { %v15244_v22 = vpack.c.bf16 %v3871_v8, %v3870_v43  ;;  %v3815_v18 = vadd.f32 %v10912_v34, %v15196_v55  ;;  %v3809_v3 = vpop.f32.mrb[197].mxu1  ;;  %5400 = vmatprep.subr.bf16.mxu0 %v9503_v58  ;;  %5513 = vmatprep.subr.bf16.mxu1 %v9505_v16  ;;  %v9623_v58 = vcombine.high %v4062_v12, %v4074_v17  ;;  %v15315_v8 = vld [vmem:[%s18840_s8 + $0x20] sm:$0xff] }
 0x485   :  { %v3810_v5 = vadd.f32 %v15196_v55, %v3809_v3  ;;  %v9625_v16 = vcombine.high %v4063_v51, %v4075_v19  ;;  %v15322_v43 = vld [vmem:[%s18840_s8 + $0x80] sm:$0xff]  ;;  %v9622_v34 = vcombine.low %v4062_v12, %v4074_v17 }
 0x486   :  { %v3873_v26 = vmax.f32 %v3815_v18, 0.0  ;;  %5213 = vmatmul.mubr.bf16.gmra.mrb[212].mxu0 %v15244_v22  ;;  %5326 = vmatmul.mubr.bf16.gmra.mrb[212].mxu1 %v15244_v22  ;;  %v9459_v3 = vcombine.high %v15315_v8, %v15322_v43  ;;  %v3968_v17 = vld [vmem:[%s18840_s8 + $0x260] sm:$0xff] }
 0x487   :  { %v3872_v44 = vmax.f32 %v3810_v5, 0.0  ;;  %5222 = vmatprep.mubr.bf16.mxu0 %v18845_v1  ;;  %5335 = vmatprep.mubr.bf16.mxu1 %v18845_v1 }
 0x488   :  { %5401 = vmatpush1.bf16.msra.mxu0 %v9502_v52  ;;  %5514 = vmatpush1.bf16.msra.mxu1 %v9504_v35  ;;  %v9624_v52 = vcombine.low %v4063_v51, %v4075_v19  ;;  %v9461_v35 = vcombine.high %v15327_v46, %v15332_v23  ;;  %v3980_v51 = vld [vmem:[%s18840_s8 + $0x2c0] sm:$0xff]  ;;  %v3969_v19 = vld [vmem:[%s18840_s8 + $0x268] sm:$0xff] }
 0x489   :  { %v15264_v39 = vpack.c.bf16 %v3873_v26, %v3872_v44  ;;  %5402 = vmatprep.subr.bf16.mxu0 %v9527_v14  ;;  %5515 = vmatprep.subr.bf16.mxu1 %v9529_v30 }
 0x48b   :  { %v10915_v32 = vpop.f32.mrb[198].mxu1 }
 0x48c   :  { %v3825_v60 = vadd.f32 %v10915_v32, %v15196_v55  ;;  %v3819_v4 = vpop.f32.mrb[199].mxu1  ;;  %5403 = vmatpush1.bf16.msra.mxu0 %v9526_v47  ;;  %5516 = vmatpush1.bf16.msra.mxu1 %v9528_v45 }
 0x48d   :  { %v3820_v33 = vadd.f32 %v15196_v55, %v3819_v4  ;;  %5404 = vmatprep.subr.bf16.mxu0 %v9551_v24  ;;  %5517 = vmatprep.subr.bf16.mxu1 %v9553_v48 }
 0x48e   :  { %v3875_v63 = vmax.f32 %v3825_v60, 0.0  ;;  %5223 = vmatmul.mubr.bf16.gmra.mrb[216].mxu0 %v15264_v39  ;;  %5336 = vmatmul.mubr.bf16.gmra.mrb[216].mxu1 %v15264_v39 }
 0x48f   :  { %v3874_v40 = vmax.f32 %v3820_v33, 0.0  ;;  %5232 = vmatprep.mubr.bf16.mxu0 %v18845_v1  ;;  %5345 = vmatprep.mubr.bf16.mxu1 %v18845_v1  ;;  %v3921_v33 = vld [vmem:[%s18840_s8 + $0xe8] sm:$0xff] }
 0x490   :  { %5405 = vmatpush1.bf16.msra.mxu0 %v9550_v13  ;;  %5518 = vmatpush1.bf16.msra.mxu1 %v9552_v62  ;;  %v3932_v62 = vld [vmem:[%s18840_s8 + $0x140] sm:$0xff] }
 0x491   :  { %v15296_v29 = vpack.c.bf16 %v3875_v63, %v3874_v40  ;;  %5406 = vmatprep.subr.bf16.mxu0 %v9575_v2  ;;  %5519 = vmatprep.subr.bf16.mxu1 %v9577_v7  ;;  %v3933_v2 = vld [vmem:[%s18840_s8 + $0x148] sm:$0xff]  ;;  %v9458_v7 = vcombine.low %v15315_v8, %v15322_v43  ;;  %v3944_v63 = vld [vmem:[%s18840_s8 + $0x1a0] sm:$0xff] }
 0x492   :  { %v9485_v49 = vcombine.high %v3921_v33, %v3933_v2  ;;  %v3945_v40 = vld [vmem:[%s18840_s8 + $0x1a8] sm:$0xff] }
 0x493   :  { %v10918_v10 = vpop.f32.mrb[200].mxu1  ;;  %v4005_v8 = vld [vmem:[%s18840_s8 + $0x388] sm:$0xff] }
 0x494   :  { %v3835_v27 = vadd.f32 %v10918_v10, %v15196_v55  ;;  %v3829_v57 = vpop.f32.mrb[201].mxu1  ;;  %5407 = vmatpush1.bf16.msra.mxu0 %v9574_v42  ;;  %5520 = vmatpush1.bf16.msra.mxu1 %v9576_v59  ;;  %v3957_v42 = vld [vmem:[%s18840_s8 + $0x208] sm:$0xff] }
 0x495   :  { %v3830_v25 = vadd.f32 %v15196_v55, %v3829_v57  ;;  %5408 = vmatprep.subr.bf16.mxu0 %v9599_v9  ;;  %5521 = vmatprep.subr.bf16.mxu1 %v9601_v21  ;;  %v9484_v9 = vcombine.low %v3921_v33, %v3933_v2  ;;  %v9507_v21 = vcombine.high %v3944_v63, %v3956_v50  ;;  %v3981_v10 = vld [vmem:[%s18840_s8 + $0x2c8] sm:$0xff]  ;;  %v3910_v33 = vld [vmem:[%s18840_s8 + $0x90] sm:$0xff]  ;;  %v3899_v2 = vld [vmem:[%s18840_s8 + $0x38] sm:$0xff] }
 0x496   :  { %v3877_v28 = vmax.f32 %v3835_v27, 0.0  ;;  %5233 = vmatmul.mubr.bf16.gmra.mrb[220].mxu0 %v15296_v29  ;;  %5346 = vmatmul.mubr.bf16.gmra.mrb[220].mxu1 %v15296_v29  ;;  %v9509_v12 = vcombine.high %v3945_v40, %v3957_v42  ;;  %v9506_v27 = vcombine.low %v3944_v63, %v3956_v50  ;;  %v9508_v57 = vcombine.low %v3945_v40, %v3957_v42  ;;  %v3922_v50 = vld [vmem:[%s18840_s8 + $0xf0] sm:$0xff]  ;;  %v3923_v42 = vld [vmem:[%s18840_s8 + $0xf8] sm:$0xff] }
 0x497   :  { %v3876_v11 = vmax.f32 %v3830_v25, 0.0  ;;  %5242 = vmatprep.mubr.bf16.mxu0 %v18845_v1  ;;  %5355 = vmatprep.mubr.bf16.mxu1 %v18845_v1  ;;  %v3992_v25 = vld [vmem:[%s18840_s8 + $0x320] sm:$0xff]  ;;  %v9532_v43 = vcombine.low %v3969_v19, %v3981_v10  ;;  %v3934_v40 = vld [vmem:[%s18840_s8 + $0x150] sm:$0xff] }
 0x498   :  { %5409 = vmatpush1.bf16.msra.mxu0 %v9598_v6  ;;  %5522 = vmatpush1.bf16.msra.mxu1 %v9600_v0  ;;  %v9531_v6 = vcombine.high %v3968_v17, %v3980_v51  ;;  %v9533_v0 = vcombine.high %v3969_v19, %v3981_v10  ;;  %v3958_v19 = vld [vmem:[%s18840_s8 + $0x210] sm:$0xff]  ;;  %v3947_v10 = vld [vmem:[%s18840_s8 + $0x1b8] sm:$0xff] }
 0x499   :  { %v15336_v18 = vpack.c.bf16 %v3877_v28, %v3876_v11  ;;  %5410 = vmatprep.subr.bf16.mxu0 %v9623_v58  ;;  %5523 = vmatprep.subr.bf16.mxu1 %v9625_v16  ;;  %v4004_v58 = vld [vmem:[%s18840_s8 + $0x380] sm:$0xff]  ;;  %v3993_v16 = vld [vmem:[%s18840_s8 + $0x328] sm:$0xff]  ;;  %v9530_v28 = vcombine.low %v3968_v17, %v3980_v51  ;;  %v9487_v17 = vcombine.high %v3922_v50, %v3934_v40 }
 0x49a   :  { %v9555_v46 = vcombine.high %v3992_v25, %v4004_v58  ;;  %v9557_v23 = vcombine.high %v3993_v16, %v4005_v8  ;;  %v4016_v11 = vld [vmem:[%s18840_s8 + $0x3e0] sm:$0xff] }
 0x49b   :  { %v10921_v5 = vpop.f32.mrb[202].mxu1 }
 0x49c   :  { %v3845_v14 = vadd.f32 %v10921_v5, %v15196_v55  ;;  %v3839_v30 = vpop.f32.mrb[203].mxu1  ;;  %5411 = vmatpush1.bf16.msra.mxu0 %v9622_v34  ;;  %5524 = vmatpush1.bf16.msra.mxu1 %v9624_v52  ;;  %v4028_v34 = vld [vmem:[%s18840_s8 + $0x440] sm:$0xff]  ;;  %v4017_v52 = vld [vmem:[%s18840_s8 + $0x3e8] sm:$0xff]  ;;  %v9556_v5 = vcombine.low %v3993_v16, %v4005_v8  ;;  %v3982_v16 = vld [vmem:[%s18840_s8 + $0x2d0] sm:$0xff] }
 0x49d   :  { %v3840_v38 = vadd.f32 %v15196_v55, %v3839_v30  ;;  %5622 = vmatprep.subr.bf16.mxu0 %v9459_v3  ;;  %5735 = vmatprep.subr.bf16.mxu1 %v9461_v35  ;;  %v4029_v3 = vld [vmem:[%s18840_s8 + $0x448] sm:$0xff]  ;;  %v9554_v35 = vcombine.low %v3992_v25, %v4004_v58  ;;  %v3970_v58 = vld [vmem:[%s18840_s8 + $0x270] sm:$0xff]  ;;  %v3971_v8 = vld [vmem:[%s18840_s8 + $0x278] sm:$0xff] }
 0x49e   :  { %v3879_v26 = vmax.f32 %v3845_v14, 0.0  ;;  %5243 = vmatmul.mubr.bf16.gmra.mrb[224].mxu0 %v15336_v18  ;;  %5356 = vmatmul.mubr.bf16.gmra.mrb[224].mxu1 %v15336_v18  ;;  %v9579_v14 = vcombine.high %v4016_v11, %v4028_v34  ;;  %v9581_v30 = vcombine.high %v4017_v52, %v4029_v3 }
 0x49f   :  { %v3878_v56 = vmax.f32 %v3840_v38, 0.0  ;;  %5252 = vmatprep.mubr.bf16.mxu0 %v18845_v1  ;;  %5365 = vmatprep.mubr.bf16.mxu1 %v18845_v1  ;;  %v4040_v38 = vld [vmem:[%s18840_s8 + $0x4a0] sm:$0xff] }
 0x4a1   :  { %v15348_v54 = vpack.c.bf16 %v3879_v26, %v3878_v56  ;;  %v4052_v26 = vld [vmem:[%s18840_s8 + $0x500] sm:$0xff]  ;;  %v4041_v56 = vld [vmem:[%s18840_s8 + $0x4a8] sm:$0xff] }
 0x4a3   :  { %v10924_v36 = vpop.f32.mrb[204].mxu1 }
 0x4a4   :  { %v3855_v44 = vadd.f32 %v10924_v36, %v15196_v55  ;;  %v3849_v47 = vpop.f32.mrb[205].mxu1  ;;  %v4053_v36 = vld [vmem:[%s18840_s8 + $0x508] sm:$0xff] }
 0x4a5   :  { %v3850_v45 = vadd.f32 %v15196_v55, %v3849_v47  ;;  %v9580_v47 = vcombine.low %v4017_v52, %v4029_v3  ;;  %v4006_v52 = vld [vmem:[%s18840_s8 + $0x390] sm:$0xff]  ;;  %v3995_v3 = vld [vmem:[%s18840_s8 + $0x338] sm:$0xff] }
 0x4a6   :  { %v3881_v24 = vmax.f32 %v3855_v44, 0.0  ;;  %5253 = vmatmul.mubr.bf16.gmra.mrb[228].mxu0 %v15348_v54  ;;  %5366 = vmatmul.mubr.bf16.gmra.mrb[228].mxu1 %v15348_v54  ;;  %v9578_v44 = vcombine.low %v4016_v11, %v4028_v34  ;;  %v3994_v34 = vld [vmem:[%s18840_s8 + $0x330] sm:$0xff] }
 0x4a7   :  { %v3880_v48 = vmax.f32 %v3850_v45, 0.0  ;;  %5262 = vmatprep.mubr.bf16.mxu0 %v18845_v1  ;;  %5375 = vmatprep.mubr.bf16.mxu1 %v18845_v1  ;;  %v9603_v45 = vcombine.high %v4040_v38, %v4052_v26 }
 0x4a9   :  { %v15356_v53 = vpack.c.bf16 %v3881_v24, %v3880_v48  ;;  %v9605_v24 = vcombine.high %v4041_v56, %v4053_v36  ;;  %v4064_v48 = vld [vmem:[%s18840_s8 + $0x560] sm:$0xff] }
 0x4ab   :  { %v10927_v41 = vpop.f32.mrb[206].mxu1 }
 0x4ac   :  { %v3865_v37 = vadd.f32 %v10927_v41, %v15196_v55  ;;  %v3859_v31 = vpop.f32.mrb[207].mxu1  ;;  %v4076_v41 = vld [vmem:[%s18840_s8 + $0x5c0] sm:$0xff] }
 0x4ad   :  { %v3860_v32 = vadd.f32 %v15196_v55, %v3859_v31  ;;  %v3920_v55 = vld [vmem:[%s18840_s8 + $0xe0] sm:$0xff]  ;;  %v4077_v31 = vld [vmem:[%s18840_s8 + $0x5c8] sm:$0xff] }
 0x4ae   :  { %v3883_v60 = vmax.f32 %v3865_v37, 0.0  ;;  %5263 = vmatmul.mubr.bf16.gmra.mrb[232].mxu0 %v15356_v53  ;;  %5376 = vmatmul.mubr.bf16.gmra.mrb[232].mxu1 %v15356_v53  ;;  %v9483_v61 = vcombine.high %v3920_v55, %v3932_v62  ;;  %v9482_v59 = vcombine.low %v3920_v55, %v3932_v62  ;;  %v4065_v37 = vld [vmem:[%s18840_s8 + $0x568] sm:$0xff]  ;;  %v3898_v62 = vld [vmem:[%s18840_s8 + $0x30] sm:$0xff] }
 0x4af   :  { %v3882_v4 = vmax.f32 %v3860_v32, 0.0  ;;  %5272 = vmatprep.mubr.bf16.mxu0 %v18845_v1  ;;  %5385 = vmatprep.mubr.bf16.mxu1 %v18845_v1  ;;  %v9602_v32 = vcombine.low %v4040_v38, %v4052_v26  ;;  %v9629_v55 = vcombine.high %v4065_v37, %v4077_v31  ;;  %v9628_v63 = vcombine.low %v4065_v37, %v4077_v31  ;;  %v4018_v26 = vld [vmem:[%s18840_s8 + $0x3f0] sm:$0xff]  ;;  %v4043_v31 = vld [vmem:[%s18840_s8 + $0x4b8] sm:$0xff] }
 0x4b0   :  { %v4054_v37 = vld [vmem:[%s18840_s8 + $0x510] sm:$0xff] }
 0x4b1   :  { %v15364_v13 = vpack.c.bf16 %v3883_v60, %v3882_v4  ;;  %v9604_v60 = vcombine.low %v4041_v56, %v4053_v36  ;;  %v9627_v4 = vcombine.high %v4064_v48, %v4076_v41  ;;  %v4030_v56 = vld [vmem:[%s18840_s8 + $0x450] sm:$0xff]  ;;  %v4019_v36 = vld [vmem:[%s18840_s8 + $0x3f8] sm:$0xff] }
 0x4b6   :  { %5273 = vmatmul.mubr.bf16.gmra.mrb[236].mxu0 %v15364_v13  ;;  %5386 = vmatmul.mubr.bf16.gmra.mrb[236].mxu1 %v15364_v13 }
 0x4b7   :  { %5428 = vmatprep.mubr.bf16.mxu0 %v18845_v1  ;;  %5541 = vmatprep.mubr.bf16.mxu1 %v18845_v1 }
 0x4be   :  { %5429 = vmatmul.mubr.bf16.vlgmr.msra.gmra.mrb[240].mxu0 %v15212_v20  ;;  %5542 = vmatmul.mubr.bf16.vlgmr.msra.gmra.mrb[240].mxu1 %v15212_v20 }
 0x4bf   :  { %5623 = vmatpush1.bf16.msra.mxu0 %v9458_v7  ;;  %5736 = vmatpush1.bf16.msra.mxu1 %v9460_v15  ;;  %v3911_v7 = vld [vmem:[%s18840_s8 + $0x98] sm:$0xff]  ;;  %v9626_v15 = vcombine.low %v4064_v48, %v4076_v41  ;;  %v4042_v41 = vld [vmem:[%s18840_s8 + $0x4b0] sm:$0xff] }
 0x4c0   :  { %5438 = vmatprep.mubr.bf16.mxu0 %v18845_v1  ;;  %5551 = vmatprep.mubr.bf16.mxu1 %v18845_v1 }
 0x4c1   :  { %5624 = vmatprep.subr.bf16.mxu0 %v9483_v61  ;;  %5737 = vmatprep.subr.bf16.mxu1 %v9485_v49  ;;  %v9463_v61 = vcombine.high %v3898_v62, %v3910_v33  ;;  %v9465_v49 = vcombine.high %v3899_v2, %v3911_v7 }
 0x4c3   :  { %5625 = vmatpush1.bf16.msra.mxu0 %v9482_v59  ;;  %5738 = vmatpush1.bf16.msra.mxu1 %v9484_v9  ;;  %v3935_v59 = vld [vmem:[%s18840_s8 + $0x158] sm:$0xff]  ;;  %v9462_v9 = vcombine.low %v3898_v62, %v3910_v33  ;;  %v4066_v33 = vld [vmem:[%s18840_s8 + $0x570] sm:$0xff] }
 0x4c4   :  { %5626 = vmatprep.subr.bf16.mxu0 %v9507_v21  ;;  %5739 = vmatprep.subr.bf16.mxu1 %v9509_v12  ;;  %v9464_v21 = vcombine.low %v3899_v2, %v3911_v7  ;;  %v3946_v12 = vld [vmem:[%s18840_s8 + $0x1b0] sm:$0xff]  ;;  %v9489_v51 = vcombine.high %v3923_v42, %v3935_v59  ;;  %v4067_v7 = vld [vmem:[%s18840_s8 + $0x578] sm:$0xff] }
 0x4c5   :  { %v4078_v2 = vld [vmem:[%s18840_s8 + $0x5d0] sm:$0xff] }
 0x4c6   :  { %5439 = vmatmul.mubr.bf16.gmra.mrb[244].mxu0 %v15244_v22  ;;  %5552 = vmatmul.mubr.bf16.gmra.mrb[244].mxu1 %v15244_v22 }
 0x4c7   :  { %5448 = vmatprep.mubr.bf16.mxu0 %v18845_v1  ;;  %5561 = vmatprep.mubr.bf16.mxu1 %v18845_v1 }
 0x4c8   :  { %5627 = vmatpush1.bf16.msra.mxu0 %v9506_v27  ;;  %5740 = vmatpush1.bf16.msra.mxu1 %v9508_v57  ;;  %v3959_v27 = vld [vmem:[%s18840_s8 + $0x218] sm:$0xff]  ;;  %v9486_v57 = vcombine.low %v3922_v50, %v3934_v40  ;;  %v3900_v40 = vld [vmem:[%s18840_s8 + $0x40] sm:$0xff] }
 0x4c9   :  { %5628 = vmatprep.subr.bf16.mxu0 %v9531_v6  ;;  %5741 = vmatprep.subr.bf16.mxu1 %v9533_v0  ;;  %v9488_v6 = vcombine.low %v3923_v42, %v3935_v59  ;;  %v9511_v0 = vcombine.high %v3946_v12, %v3958_v19  ;;  %v9513_v25 = vcombine.high %v3947_v10, %v3959_v27  ;;  %v3912_v42 = vld [vmem:[%s18840_s8 + $0xa0] sm:$0xff]  ;;  %v3901_v59 = vld [vmem:[%s18840_s8 + $0x48] sm:$0xff] }
 0x4cc   :  { %5629 = vmatpush1.bf16.msra.mxu0 %v9530_v28  ;;  %5742 = vmatpush1.bf16.msra.mxu1 %v9532_v43  ;;  %v3983_v28 = vld [vmem:[%s18840_s8 + $0x2d8] sm:$0xff]  ;;  %v9510_v43 = vcombine.low %v3946_v12, %v3958_v19  ;;  %v3924_v19 = vld [vmem:[%s18840_s8 + $0x100] sm:$0xff] }
 0x4cd   :  { %5630 = vmatprep.subr.bf16.mxu0 %v9555_v46  ;;  %5743 = vmatprep.subr.bf16.mxu1 %v9557_v23  ;;  %v9512_v46 = vcombine.low %v3947_v10, %v3959_v27  ;;  %v9535_v23 = vcombine.high %v3970_v58, %v3982_v16  ;;  %v9537_v11 = vcombine.high %v3971_v8, %v3983_v28  ;;  %v3936_v10 = vld [vmem:[%s18840_s8 + $0x160] sm:$0xff]  ;;  %v3925_v27 = vld [vmem:[%s18840_s8 + $0x108] sm:$0xff] }
 0x4ce   :  { %5449 = vmatmul.mubr.bf16.gmra.mrb[248].mxu0 %v15264_v39  ;;  %5562 = vmatmul.mubr.bf16.gmra.mrb[248].mxu1 %v15264_v39 }
 0x4cf   :  { %5458 = vmatprep.mubr.bf16.mxu0 %v18845_v1  ;;  %5571 = vmatprep.mubr.bf16.mxu1 %v18845_v1 }
 0x4d0   :  { %5631 = vmatpush1.bf16.msra.mxu0 %v9554_v35  ;;  %5744 = vmatpush1.bf16.msra.mxu1 %v9556_v5  ;;  %v4007_v35 = vld [vmem:[%s18840_s8 + $0x398] sm:$0xff]  ;;  %v9534_v5 = vcombine.low %v3970_v58, %v3982_v16  ;;  %v9491_v58 = vcombine.high %v3924_v19, %v3936_v10 }
 0x4d1   :  { %5632 = vmatprep.subr.bf16.mxu0 %v9579_v14  ;;  %5745 = vmatprep.subr.bf16.mxu1 %v9581_v30  ;;  %v9536_v14 = vcombine.low %v3971_v8, %v3983_v28  ;;  %v9559_v30 = vcombine.high %v3994_v34, %v4006_v52  ;;  %v9561_v38 = vcombine.high %v3995_v3, %v4007_v35  ;;  %v3960_v8 = vld [vmem:[%s18840_s8 + $0x220] sm:$0xff]  ;;  %v3949_v28 = vld [vmem:[%s18840_s8 + $0x1c8] sm:$0xff] }
 0x4d4   :  { %5633 = vmatpush1.bf16.msra.mxu0 %v9578_v44  ;;  %5746 = vmatpush1.bf16.msra.mxu1 %v9580_v47  ;;  %v4031_v44 = vld [vmem:[%s18840_s8 + $0x458] sm:$0xff]  ;;  %v9558_v47 = vcombine.low %v3994_v34, %v4006_v52  ;;  %v3972_v52 = vld [vmem:[%s18840_s8 + $0x280] sm:$0xff] }
 0x4d5   :  { %5634 = vmatprep.subr.bf16.mxu0 %v9603_v45  ;;  %5747 = vmatprep.subr.bf16.mxu1 %v9605_v24  ;;  %v9560_v45 = vcombine.low %v3995_v3, %v4007_v35  ;;  %v9583_v24 = vcombine.high %v4018_v26, %v4030_v56  ;;  %v9585_v48 = vcombine.high %v4019_v36, %v4031_v44  ;;  %v4090_v3 = vlaneseq  ;;  %v3984_v35 = vld [vmem:[%s18840_s8 + $0x2e0] sm:$0xff] }
 0x4d6   :  { %5459 = vmatmul.mubr.bf16.gmra.mrb[252].mxu0 %v15296_v29  ;;  %5572 = vmatmul.mubr.bf16.gmra.mrb[252].mxu1 %v15296_v29 }
 0x4d7   :  { %5468 = vmatprep.mubr.bf16.mxu0 %v18845_v1  ;;  %5581 = vmatprep.mubr.bf16.mxu1 %v18845_v1 }
 0x4d8   :  { %5635 = vmatpush1.bf16.msra.mxu0 %v9602_v32  ;;  %5748 = vmatpush1.bf16.msra.mxu1 %v9604_v60  ;;  %v4055_v32 = vld [vmem:[%s18840_s8 + $0x518] sm:$0xff]  ;;  %v9582_v60 = vcombine.low %v4018_v26, %v4030_v56  ;;  %v9539_v26 = vcombine.high %v3972_v52, %v3984_v35 }
 0x4d9   :  { %5636 = vmatprep.subr.bf16.mxu0 %v9627_v4  ;;  %5749 = vmatprep.subr.bf16.mxu1 %v9629_v55  ;;  %v9584_v4 = vcombine.low %v4019_v36, %v4031_v44  ;;  %v9607_v55 = vcombine.high %v4042_v41, %v4054_v37  ;;  %v9609_v62 = vcombine.high %v4043_v31, %v4055_v32  ;;  %v3996_v36 = vld [vmem:[%s18840_s8 + $0x340] sm:$0xff]  ;;  %v15675_v44 = vshrl.u32 %v4090_v3, 7 }
 0x4dc   :  { %5637 = vmatpush1.bf16.msra.mxu0 %v9626_v15  ;;  %5750 = vmatpush1.bf16.msra.mxu1 %v9628_v63  ;;  %v4079_v15 = vld [vmem:[%s18840_s8 + $0x5d8] sm:$0xff]  ;;  %v9606_v63 = vcombine.low %v4042_v41, %v4054_v37 }
 0x4dd   :  { %5848 = vmatprep.subr.bf16.mxu0 %v9463_v61  ;;  %5961 = vmatprep.subr.bf16.mxu1 %v9465_v49  ;;  %v9608_v61 = vcombine.low %v4043_v31, %v4055_v32  ;;  %v9631_v49 = vcombine.high %v4066_v33, %v4078_v2  ;;  %v9633_v50 = vcombine.high %v4067_v7, %v4079_v15  ;;  %v4020_v32 = vld [vmem:[%s18840_s8 + $0x400] sm:$0xff] }
 0x4de   :  { %5469 = vmatmul.mubr.bf16.gmra.mrb[0].mxu0 %v15336_v18  ;;  %5582 = vmatmul.mubr.bf16.gmra.mrb[0].mxu1 %v15336_v18  ;;  %v9632_v12 = vcombine.low %v4067_v7, %v4079_v15  ;;  %v15710_v7 = vsub.s32 1, %v15675_v44  ;;  %v15713_v15 = vsub.s32 3, %v15675_v44 }
 0x4df   :  { %5478 = vmatprep.mubr.bf16.mxu0 %v18845_v1  ;;  %5591 = vmatprep.mubr.bf16.mxu1 %v18845_v1 }
 0x4e0   :  { %18868 = vst [vmem:[#allocation5_spill] sm:$0xff] %v15710_v7  ;;  %18869 = vst [vmem:[#allocation6_spill] sm:$0xff] %v15713_v15 }
 0x4e6   :  { %5479 = vmatmul.mubr.bf16.gmra.mrb[4].mxu0 %v15348_v54  ;;  %5592 = vmatmul.mubr.bf16.gmra.mrb[4].mxu1 %v15348_v54 }
 0x4e7   :  { %5488 = vmatprep.mubr.bf16.mxu0 %v18845_v1  ;;  %5601 = vmatprep.mubr.bf16.mxu1 %v18845_v1 }
 0x4ee   :  { %5489 = vmatmul.mubr.bf16.gmra.mrb[8].mxu0 %v15356_v53  ;;  %5602 = vmatmul.mubr.bf16.gmra.mrb[8].mxu1 %v15356_v53 }
 0x4ef   :  { %5498 = vmatprep.mubr.bf16.mxu0 %v18845_v1  ;;  %5611 = vmatprep.mubr.bf16.mxu1 %v18845_v1 }
 0x4f6   :  { %5499 = vmatmul.mubr.bf16.gmra.mrb[12].mxu0 %v15364_v13  ;;  %5612 = vmatmul.mubr.bf16.gmra.mrb[12].mxu1 %v15364_v13 }
 0x4f7   :  { %5654 = vmatprep.mubr.bf16.mxu0 %v18845_v1  ;;  %5767 = vmatprep.mubr.bf16.mxu1 %v18845_v1 }
 0x4fe   :  { %5655 = vmatmul.mubr.bf16.vlgmr.msra.gmra.mrb[16].mxu0 %v15212_v20  ;;  %5768 = vmatmul.mubr.bf16.vlgmr.msra.gmra.mrb[16].mxu1 %v15212_v20 }
 0x4ff   :  { %5849 = vmatpush1.bf16.msra.mxu0 %v9462_v9  ;;  %5962 = vmatpush1.bf16.msra.mxu1 %v9464_v21  ;;  %v3913_v9 = vld [vmem:[%s18840_s8 + $0xa8] sm:$0xff]  ;;  %v9630_v21 = vcombine.low %v4066_v33, %v4078_v2  ;;  %v4084_v2 = vld [vmem:[%s18843_s9] sm:$0xff] }
 0x500   :  { %5664 = vmatprep.mubr.bf16.mxu0 %v18845_v1  ;;  %5777 = vmatprep.mubr.bf16.mxu1 %v18845_v1  ;;  %v4033_v33 = vld [vmem:[%s18840_s8 + $0x468] sm:$0xff] }
 0x501   :  { %5850 = vmatprep.subr.bf16.mxu0 %v9487_v17  ;;  %5963 = vmatprep.subr.bf16.mxu1 %v9489_v51  ;;  %v9467_v17 = vcombine.high %v3900_v40, %v3912_v42  ;;  %v9469_v51 = vcombine.high %v3901_v59, %v3913_v9 }
 0x503   :  { %5851 = vmatpush1.bf16.msra.mxu0 %v9486_v57  ;;  %5964 = vmatpush1.bf16.msra.mxu1 %v9488_v6  ;;  %v3937_v57 = vld [vmem:[%s18840_s8 + $0x168] sm:$0xff]  ;;  %v9466_v6 = vcombine.low %v3900_v40, %v3912_v42  ;;  %v15718_v40 = vld [vmem:[%s18840_s8 + $0x4c0] sm:$0xff] }
 0x504   :  { %5852 = vmatprep.subr.bf16.mxu0 %v9511_v0  ;;  %5965 = vmatprep.subr.bf16.mxu1 %v9513_v25  ;;  %v9468_v0 = vcombine.low %v3901_v59, %v3913_v9  ;;  %v3948_v25 = vld [vmem:[%s18840_s8 + $0x1c0] sm:$0xff]  ;;  %v9493_v16 = vcombine.high %v3925_v27, %v3937_v57 }
 0x505   :  { %v4056_v9 = vld [vmem:[%s18840_s8 + $0x520] sm:$0xff] }
 0x506   :  { %5665 = vmatmul.mubr.bf16.gmra.mrb[20].mxu0 %v15244_v22  ;;  %5778 = vmatmul.mubr.bf16.gmra.mrb[20].mxu1 %v15244_v22 }
 0x507   :  { %5674 = vmatprep.mubr.bf16.mxu0 %v18845_v1  ;;  %5787 = vmatprep.mubr.bf16.mxu1 %v18845_v1 }
 0x508   :  { %5853 = vmatpush1.bf16.msra.mxu0 %v9510_v43  ;;  %5966 = vmatpush1.bf16.msra.mxu1 %v9512_v46  ;;  %v3961_v43 = vld [vmem:[%s18840_s8 + $0x228] sm:$0xff]  ;;  %v9490_v46 = vcombine.low %v3924_v19, %v3936_v10  ;;  %v15748_v19 = vld [vmem:[%s18840_s8 + $0x580] sm:$0xff] }
 0x509   :  { %5854 = vmatprep.subr.bf16.mxu0 %v9535_v23  ;;  %5967 = vmatprep.subr.bf16.mxu1 %v9537_v11  ;;  %v9492_v23 = vcombine.low %v3925_v27, %v3937_v57  ;;  %v9515_v11 = vcombine.high %v3948_v25, %v3960_v8  ;;  %v9517_v34 = vcombine.high %v3949_v28, %v3961_v43  ;;  %v15753_v57 = vld [vmem:[%s18840_s8 + $0x5e0] sm:$0xff] }
 0x50c   :  { %5855 = vmatpush1.bf16.msra.mxu0 %v9534_v5  ;;  %5968 = vmatpush1.bf16.msra.mxu1 %v9536_v14  ;;  %v3973_v5 = vld [vmem:[%s18840_s8 + $0x288] sm:$0xff] }
 0x50d   :  { %5856 = vmatprep.subr.bf16.mxu0 %v9559_v30  ;;  %5969 = vmatprep.subr.bf16.mxu1 %v9561_v38  ;;  %v3985_v14 = vld [vmem:[%s18840_s8 + $0x2e8] sm:$0xff]  ;;  %v9514_v30 = vcombine.low %v3948_v25, %v3960_v8  ;;  %v9516_v38 = vcombine.low %v3949_v28, %v3961_v43 }
 0x50e   :  { %5675 = vmatmul.mubr.bf16.gmra.mrb[24].mxu0 %v15264_v39  ;;  %5788 = vmatmul.mubr.bf16.gmra.mrb[24].mxu1 %v15264_v39  ;;  %v9541_v56 = vcombine.high %v3973_v5, %v3985_v14  ;;  %v9540_v41 = vcombine.low %v3973_v5, %v3985_v14  ;;  %v9635_v14 = vcombine.high %v15748_v19, %v15753_v57 }
 0x50f   :  { %5684 = vmatprep.mubr.bf16.mxu0 %v18845_v1  ;;  %5797 = vmatprep.mubr.bf16.mxu1 %v18845_v1 }
 0x510   :  { %5857 = vmatpush1.bf16.msra.mxu0 %v9558_v47  ;;  %5970 = vmatpush1.bf16.msra.mxu1 %v9560_v45  ;;  %v4008_v47 = vld [vmem:[%s18840_s8 + $0x3a0] sm:$0xff]  ;;  %v3997_v45 = vld [vmem:[%s18840_s8 + $0x348] sm:$0xff] }
 0x511   :  { %5858 = vmatprep.subr.bf16.mxu0 %v9583_v24  ;;  %5971 = vmatprep.subr.bf16.mxu1 %v9585_v48  ;;  %v4009_v24 = vld [vmem:[%s18840_s8 + $0x3a8] sm:$0xff]  ;;  %v9538_v48 = vcombine.low %v3972_v52, %v3984_v35  ;;  %v9563_v37 = vcombine.high %v3996_v36, %v4008_v47 }
 0x512   :  { %v9565_v31 = vcombine.high %v3997_v45, %v4009_v24 }
 0x514   :  { %5859 = vmatpush1.bf16.msra.mxu0 %v9582_v60  ;;  %5972 = vmatpush1.bf16.msra.mxu1 %v9584_v4  ;;  %v15692_v60 = vsub.s32 0, %v15675_v44  ;;  %v15695_v4 = vsub.s32 2, %v15675_v44 }
 0x515   :  { %5860 = vmatprep.subr.bf16.mxu0 %v9607_v55  ;;  %5973 = vmatprep.subr.bf16.mxu1 %v9609_v62  ;;  %v4032_v55 = vld [vmem:[%s18840_s8 + $0x460] sm:$0xff]  ;;  %v4021_v62 = vld [vmem:[%s18840_s8 + $0x408] sm:$0xff] }
 0x516   :  { %5685 = vmatmul.mubr.bf16.gmra.mrb[28].mxu0 %v15296_v29  ;;  %5798 = vmatmul.mubr.bf16.gmra.mrb[28].mxu1 %v15296_v29  ;;  %18866 = vst [vmem:[#allocation3_spill] sm:$0xff] %v15692_v60  ;;  %18867 = vst [vmem:[#allocation4_spill] sm:$0xff] %v15695_v4  ;;  %v15723_v42 = vrot.slane %v4084_v2, %v15692_v60  ;;  %v15726_v59 = vrot.slane %v4084_v2, %v15695_v4 }
 0x517   :  { %5694 = vmatprep.mubr.bf16.mxu0 %v18845_v1  ;;  %5807 = vmatprep.mubr.bf16.mxu1 %v18845_v1  ;;  %v9586_v10 = vcombine.low %v4020_v32, %v4032_v55  ;;  %v9588_v27 = vcombine.low %v4021_v62, %v4033_v33 }
 0x518   :  { %5861 = vmatpush1.bf16.msra.mxu0 %v9606_v63  ;;  %5974 = vmatpush1.bf16.msra.mxu1 %v9608_v61  ;;  %v9562_v63 = vcombine.low %v3996_v36, %v4008_v47  ;;  %v9564_v61 = vcombine.low %v3997_v45, %v4009_v24 }
 0x519   :  { %5862 = vmatprep.subr.bf16.mxu0 %v9631_v49  ;;  %5975 = vmatprep.subr.bf16.mxu1 %v9633_v50  ;;  %v9587_v49 = vcombine.high %v4020_v32, %v4032_v55  ;;  %v9589_v50 = vcombine.high %v4021_v62, %v4033_v33  ;;  %v15789_v55 = vld [vmem:[%s18840_s8 + $0xb0] sm:$0xff]  ;;  %v15794_v62 = vld [vmem:[%s18840_s8 + $0x58] sm:$0xff] }
 0x51a   :  { %v15799_v33 = vld [vmem:[%s18840_s8 + $0xb8] sm:$0xff] }
 0x51c   :  { %5863 = vmatpush1.bf16.msra.mxu0 %v9630_v21  ;;  %5976 = vmatpush1.bf16.msra.mxu1 %v9632_v12  ;;  %v4045_v21 = vld [vmem:[%s18840_s8 + $0x4c8] sm:$0xff] }
 0x51d   :  { %6074 = vmatprep.subr.bf16.mxu0 %v9467_v17  ;;  %6187 = vmatprep.subr.bf16.mxu1 %v9469_v51  ;;  %v4057_v12 = vld [vmem:[%s18840_s8 + $0x528] sm:$0xff]  ;;  %v15738_v17 = vrot.slane %v4084_v2, %v15710_v7  ;;  %v15741_v51 = vrot.slane %v4084_v2, %v15713_v15 }
 0x51e   :  { %5695 = vmatmul.mubr.bf16.gmra.mrb[32].mxu0 %v15336_v18  ;;  %5808 = vmatmul.mubr.bf16.gmra.mrb[32].mxu1 %v15336_v18  ;;  %v9613_v8 = vcombine.high %v4045_v21, %v4057_v12 }
 0x51f   :  { %5704 = vmatprep.mubr.bf16.mxu0 %v18845_v1  ;;  %5817 = vmatprep.mubr.bf16.mxu1 %v18845_v1 }
 0x526   :  { %5705 = vmatmul.mubr.bf16.gmra.mrb[36].mxu0 %v15348_v54  ;;  %5818 = vmatmul.mubr.bf16.gmra.mrb[36].mxu1 %v15348_v54 }
 0x527   :  { %5714 = vmatprep.mubr.bf16.mxu0 %v18845_v1  ;;  %5827 = vmatprep.mubr.bf16.mxu1 %v18845_v1 }
 0x52e   :  { %5715 = vmatmul.mubr.bf16.gmra.mrb[40].mxu0 %v15356_v53  ;;  %5828 = vmatmul.mubr.bf16.gmra.mrb[40].mxu1 %v15356_v53 }
 0x52f   :  { %5724 = vmatprep.mubr.bf16.mxu0 %v18845_v1  ;;  %5837 = vmatprep.mubr.bf16.mxu1 %v18845_v1 }
 0x536   :  { %5725 = vmatmul.mubr.bf16.gmra.mrb[44].mxu0 %v15364_v13  ;;  %5838 = vmatmul.mubr.bf16.gmra.mrb[44].mxu1 %v15364_v13 }
 0x537   :  { %5880 = vmatprep.mubr.bf16.mxu0 %v18845_v1  ;;  %5993 = vmatprep.mubr.bf16.mxu1 %v18845_v1 }
 0x53e   :  { %5881 = vmatmul.mubr.bf16.vlgmr.msra.gmra.mrb[48].mxu0 %v15212_v20  ;;  %5994 = vmatmul.mubr.bf16.vlgmr.msra.gmra.mrb[48].mxu1 %v15212_v20 }
 0x53f   :  { %6075 = vmatpush1.bf16.msra.mxu0 %v9466_v6  ;;  %6188 = vmatpush1.bf16.msra.mxu1 %v9468_v0  ;;  %v15758_v6 = vld [vmem:[%s18840_s8 + $0x588] sm:$0xff] }
 0x540   :  { %5890 = vmatprep.mubr.bf16.mxu0 %v18845_v1  ;;  %6003 = vmatprep.mubr.bf16.mxu1 %v18845_v1  ;;  %v15763_v0 = vld [vmem:[%s18840_s8 + $0x5e8] sm:$0xff] }
 0x541   :  { %6076 = vmatprep.subr.bf16.mxu0 %v9491_v58  ;;  %6189 = vmatprep.subr.bf16.mxu1 %v9493_v16  ;;  %v9611_v16 = vcombine.high %v15718_v40, %v4056_v9 }
 0x543   :  { %6077 = vmatpush1.bf16.msra.mxu0 %v9490_v46  ;;  %6190 = vmatpush1.bf16.msra.mxu1 %v9492_v23 }
 0x544   :  { %6078 = vmatprep.subr.bf16.mxu0 %v9515_v11  ;;  %6191 = vmatprep.subr.bf16.mxu1 %v9517_v34  ;;  %v9610_v11 = vcombine.low %v15718_v40, %v4056_v9  ;;  %v9612_v34 = vcombine.low %v4045_v21, %v4057_v12  ;;  %v9473_v12 = vcombine.high %v15794_v62, %v15799_v33 }
 0x546   :  { %5891 = vmatmul.mubr.bf16.gmra.mrb[52].mxu0 %v15244_v22  ;;  %6004 = vmatmul.mubr.bf16.gmra.mrb[52].mxu1 %v15244_v22 }
 0x547   :  { %5900 = vmatprep.mubr.bf16.mxu0 %v18845_v1  ;;  %6013 = vmatprep.mubr.bf16.mxu1 %v18845_v1 }
 0x548   :  { %6079 = vmatpush1.bf16.msra.mxu0 %v9514_v30  ;;  %6192 = vmatpush1.bf16.msra.mxu1 %v9516_v38  ;;  %v9637_v30 = vcombine.high %v15758_v6, %v15763_v0 }
 0x549   :  { %6080 = vmatprep.subr.bf16.mxu0 %v9539_v26  ;;  %6193 = vmatprep.subr.bf16.mxu1 %v9541_v56 }
 0x54c   :  { %6081 = vmatpush1.bf16.msra.mxu0 %v9538_v48  ;;  %6194 = vmatpush1.bf16.msra.mxu1 %v9540_v41 }
 0x54d   :  { %6082 = vmatprep.subr.bf16.mxu0 %v9563_v37  ;;  %6195 = vmatprep.subr.bf16.mxu1 %v9565_v31  ;;  %v15782_v31 = vld [vmem:[%s18840_s8 + $0x50] sm:$0xff] }
 0x54e   :  { %5901 = vmatmul.mubr.bf16.gmra.mrb[56].mxu0 %v15264_v39  ;;  %6014 = vmatmul.mubr.bf16.gmra.mrb[56].mxu1 %v15264_v39  ;;  %v9471_v21 = vcombine.high %v15782_v31, %v15789_v55 }
 0x54f   :  { %5910 = vmatprep.mubr.bf16.mxu0 %v18845_v1  ;;  %6023 = vmatprep.mubr.bf16.mxu1 %v18845_v1 }
 0x550   :  { %6083 = vmatpush1.bf16.msra.mxu0 %v9562_v63  ;;  %6196 = vmatpush1.bf16.msra.mxu1 %v9564_v61  ;;  %v9634_v61 = vcombine.low %v15748_v19, %v15753_v57 }
 0x551   :  { %v5204_v25 = vpop.f32.mrb[208].mxu0  ;;  %v5317_v58 = vpop.f32.mrb[208].mxu1  ;;  %6084 = vmatprep.subr.bf16.mxu0 %v9587_v49  ;;  %6197 = vmatprep.subr.bf16.mxu1 %v9589_v50  ;;  %v9636_v49 = vcombine.low %v15758_v6, %v15763_v0 }
 0x552   :  { %v5205_v28 = vadd.f32 %v5204_v25, %v15723_v42  ;;  %v5318_v43 = vadd.f32 %v5317_v58, %v15726_v59  ;;  %v5206_v46 = vpop.f32.mrb[209].mxu0  ;;  %v5319_v23 = vpop.f32.mrb[209].mxu1 }
 0x553   :  { %v5207_v52 = vadd.f32 %v5206_v46, %v15738_v17  ;;  %v5320_v3 = vadd.f32 %v5319_v23, %v15741_v51  ;;  %v5208_v35 = vpop.f32.mrb[210].mxu0  ;;  %v5321_v5 = vpop.f32.mrb[210].mxu1 }
 0x554   :  { %v9642_v38 = vmul.f32 -1.442695, %v5205_v28  ;;  %v9644_v26 = vmul.f32 -1.442695, %v5318_v43  ;;  %v5209_v56 = vadd.f32 %v5208_v35, %v15723_v42  ;;  %v5322_v36 = vadd.f32 %v5321_v5, %v15726_v59  ;;  %v5210_v47 = vpop.f32.mrb[211].mxu0  ;;  %v5323_v45 = vpop.f32.mrb[211].mxu1  ;;  %6085 = vmatpush1.bf16.msra.mxu0 %v9586_v10  ;;  %6198 = vmatpush1.bf16.msra.mxu1 %v9588_v27 }
 0x555   :  { %v9643_v24 = vmul.f32 -1.442695, %v5207_v52  ;;  %v9645_v48 = vmul.f32 -1.442695, %v5320_v3  ;;  %v5211_v41 = vadd.f32 %v5210_v47, %v15738_v17  ;;  %v5324_v37 = vadd.f32 %v5323_v45, %v15741_v51  ;;  %6086 = vmatprep.subr.bf16.mxu0 %v9611_v16  ;;  %6199 = vmatprep.subr.bf16.mxu1 %v9613_v8 }
 0x556   :  { %11190 = vpow2.f32 %v9642_v38  ;;  %v9666_v32 = vmul.f32 -1.442695, %v5209_v56  ;;  %5911 = vmatmul.mubr.bf16.gmra.mrb[60].mxu0 %v15296_v29  ;;  %6024 = vmatmul.mubr.bf16.gmra.mrb[60].mxu1 %v15296_v29  ;;  %v9668_v2 = vmul.f32 -1.442695, %v5322_v36 }
 0x557   :  { %11192 = vpow2.f32 %v9644_v26  ;;  %5920 = vmatprep.mubr.bf16.mxu0 %v18845_v1  ;;  %6033 = vmatprep.mubr.bf16.mxu1 %v18845_v1  ;;  %v9667_v63 = vmul.f32 -1.442695, %v5211_v41  ;;  %v9669_v50 = vmul.f32 -1.442695, %v5324_v37 }
 0x558   :  { %11194 = vpow2.f32 %v9643_v24  ;;  %6087 = vmatpush1.bf16.msra.mxu0 %v9610_v11  ;;  %6200 = vmatpush1.bf16.msra.mxu1 %v9612_v34 }
 0x559   :  { %11196 = vpow2.f32 %v9645_v48  ;;  %v5214_v40 = vpop.f32.mrb[212].mxu0  ;;  %v5327_v9 = vpop.f32.mrb[212].mxu1  ;;  %6088 = vmatprep.subr.bf16.mxu0 %v9635_v14  ;;  %6201 = vmatprep.subr.bf16.mxu1 %v9637_v30 }
 0x55a   :  { %11198 = vpow2.f32 %v9666_v32  ;;  %v5215_v10 = vadd.f32 %v5214_v40, %v15723_v42  ;;  %v5328_v19 = vadd.f32 %v5327_v9, %v15726_v59  ;;  %v5216_v27 = vpop.f32.mrb[213].mxu0  ;;  %v5329_v57 = vpop.f32.mrb[213].mxu1 }
 0x55b   :  { %11200 = vpow2.f32 %v9668_v2  ;;  %v5217_v6 = vadd.f32 %v5216_v27, %v15738_v17  ;;  %v5330_v0 = vadd.f32 %v5329_v57, %v15741_v51  ;;  %v5218_v25 = vpop.f32.mrb[214].mxu0  ;;  %v5331_v58 = vpop.f32.mrb[214].mxu1 }
 0x55c   :  { %11202 = vpow2.f32 %v9667_v63  ;;  %v9690_v16 = vmul.f32 -1.442695, %v5215_v10  ;;  %v9692_v8 = vmul.f32 -1.442695, %v5328_v19  ;;  %v5219_v28 = vadd.f32 %v5218_v25, %v15723_v42  ;;  %v5220_v43 = vpop.f32.mrb[215].mxu0  ;;  %v5333_v46 = vpop.f32.mrb[215].mxu1  ;;  %6089 = vmatpush1.bf16.msra.mxu0 %v9634_v61  ;;  %6202 = vmatpush1.bf16.msra.mxu1 %v9636_v49 }
 0x55d   :  { %11204 = vpow2.f32 %v9669_v50  ;;  %v9691_v23 = vmul.f32 -1.442695, %v5217_v6  ;;  %v9693_v11 = vmul.f32 -1.442695, %v5330_v0  ;;  %6300 = vmatprep.subr.bf16.mxu0 %v9471_v21  ;;  %6413 = vmatprep.subr.bf16.mxu1 %v9473_v12  ;;  %v5332_v12 = vadd.f32 %v5331_v58, %v15726_v59 }
 0x55e   :  { %11206 = vpow2.f32 %v9690_v16  ;;  %v9714_v34 = vmul.f32 -1.442695, %v5219_v28  ;;  %5921 = vmatmul.mubr.bf16.gmra.mrb[64].mxu0 %v15336_v18  ;;  %6034 = vmatmul.mubr.bf16.gmra.mrb[64].mxu1 %v15336_v18  ;;  %v5221_v27 = vadd.f32 %v5220_v43, %v15738_v17  ;;  %v5334_v25 = vadd.f32 %v5333_v46, %v15741_v51 }
 0x55f   :  { %11208 = vpow2.f32 %v9692_v8  ;;  %5930 = vmatprep.mubr.bf16.mxu0 %v18845_v1  ;;  %6043 = vmatprep.mubr.bf16.mxu1 %v18845_v1 }
 0x560   :  { %v11191_v52 = vpop.eup %11190  ;;  %11210 = vpow2.f32 %v9691_v23 }
 0x561   :  { %v11193_v3 = vpop.eup %11192  ;;  %v7678_v35 = vadd.f32 1.0, %v11191_v52  ;;  %11212 = vpow2.f32 %v9693_v11  ;;  %v5224_v5 = vpop.f32.mrb[216].mxu0 }
 0x562   :  { %v5337_v14 = vpop.f32.mrb[216].mxu1  ;;  %v11195_v30 = vpop.eup %11194  ;;  %v7680_v38 = vadd.f32 1.0, %v11193_v3  ;;  %11214 = vpow2.f32 %v9714_v34  ;;  %v5225_v58 = vadd.f32 %v5224_v5, %v15723_v42  ;;  %v9716_v3 = vmul.f32 -1.442695, %v5332_v12 }
 0x563   :  { %v5226_v26 = vpop.f32.mrb[217].mxu0  ;;  %v15820_v56 = vpop.f32.mrb[217].mxu1  ;;  %11216 = vrcp.f32 %v7678_v35  ;;  %v7679_v47 = vadd.f32 1.0, %v11195_v30  ;;  %v5338_v35 = vadd.f32 %v5337_v14, %v15726_v59 }
 0x564   :  { %v11197_v36 = vpop.eup %11196  ;;  %v15822_v45 = vpop.f32.mrb[218].mxu0  ;;  %11218 = vrcp.f32 %v7680_v38  ;;  %v5227_v5 = vadd.f32 %v5226_v26, %v15738_v17  ;;  %v5340_v14 = vadd.f32 %v15820_v56, %v15741_v51  ;;  %v9738_v26 = vmul.f32 -1.442695, %v5225_v58 }
 0x565   :  { %v15824_v24 = vpop.f32.mrb[218].mxu1  ;;  %v11199_v48 = vpop.eup %11198  ;;  %v7681_v41 = vadd.f32 1.0, %v11197_v36  ;;  %11220 = vrcp.f32 %v7679_v47  ;;  %v9715_v47 = vmul.f32 -1.442695, %v5221_v27  ;;  %v9740_v56 = vmul.f32 -1.442695, %v5338_v35 }
 0x566   :  { %v15826_v37 = vpop.f32.mrb[219].mxu0  ;;  %v11201_v32 = vpop.eup %11200  ;;  %v7702_v2 = vadd.f32 1.0, %v11199_v48  ;;  %5931 = vmatmul.mubr.bf16.gmra.mrb[68].mxu0 %v15348_v54  ;;  %6044 = vmatmul.mubr.bf16.gmra.mrb[68].mxu1 %v15348_v54  ;;  %v15921_v35 = vld [vmem:[%s18840_s8 + $0x118] sm:$0xff] }
 0x567   :  { %v15828_v63 = vpop.f32.mrb[219].mxu1  ;;  %v11203_v61 = vpop.eup %11202  ;;  %11222 = vrcp.f32 %v7681_v41  ;;  %v7704_v49 = vadd.f32 1.0, %v11201_v32  ;;  %5940 = vmatprep.mubr.bf16.mxu0 %v18845_v1  ;;  %6053 = vmatprep.mubr.bf16.mxu1 %v18845_v1  ;;  %v9717_v32 = vmul.f32 -1.442695, %v5334_v25 }
 0x568   :  { %v11205_v50 = vpop.eup %11204  ;;  %11224 = vrcp.f32 %v7702_v2  ;;  %v7703_v40 = vadd.f32 1.0, %v11203_v61  ;;  %v5229_v61 = vadd.f32 %v15822_v45, %v15723_v42  ;;  %v15883_v45 = vld [vmem:[%s18840_s8 + $0x170] sm:$0xff] }
 0x569   :  { %v11207_v9 = vpop.eup %11206  ;;  %11226 = vrcp.f32 %v7704_v49  ;;  %v7705_v21 = vadd.f32 1.0, %v11205_v50  ;;  %v15836_v57 = vpop.f32.mrb[220].mxu0  ;;  %v5342_v50 = vadd.f32 %v15824_v24, %v15726_v59  ;;  %v5231_v24 = vadd.f32 %v15826_v37, %v15738_v17 }
 0x56a   :  { %v11209_v10 = vpop.eup %11208  ;;  %11228 = vrcp.f32 %v7703_v40  ;;  %v7726_v19 = vadd.f32 1.0, %v11207_v9  ;;  %v15839_v16 = vpop.f32.mrb[220].mxu1  ;;  %v15878_v40 = vld [vmem:[%s18840_s8 + $0x110] sm:$0xff]  ;;  %v9762_v58 = vmul.f32 -1.442695, %v5229_v61 }
 0x56b   :  { %v11211_v6 = vpop.eup %11210  ;;  %11230 = vrcp.f32 %v7705_v21  ;;  %v7728_v0 = vadd.f32 1.0, %v11209_v10  ;;  %v15841_v8 = vpop.f32.mrb[221].mxu0  ;;  %v9739_v21 = vmul.f32 -1.442695, %v5227_v5 }
 0x56c   :  { %v11213_v28 = vpop.eup %11212  ;;  %11232 = vrcp.f32 %v7726_v19  ;;  %v7727_v23 = vadd.f32 1.0, %v11211_v6  ;;  %v15844_v11 = vpop.f32.mrb[221].mxu1  ;;  %v9741_v6 = vmul.f32 -1.442695, %v5340_v14  ;;  %v15940_v14 = vld [vmem:[%s18840_s8 + $0x1d0] sm:$0xff]  ;;  %v5237_v61 = vadd.f32 %v15841_v8, %v15738_v17 }
 0x56d   :  { %v15846_v34 = vpop.f32.mrb[222].mxu0  ;;  %v11215_v43 = vpop.eup %11214  ;;  %11234 = vrcp.f32 %v7728_v0  ;;  %v7729_v52 = vadd.f32 1.0, %v11213_v28  ;;  %v5344_v0 = vadd.f32 %v15828_v63, %v15741_v51 }
 0x56e   :  { %v15849_v46 = vpop.f32.mrb[222].mxu1  ;;  %v15851_v30 = vpop.f32.mrb[223].mxu0  ;;  %11236 = vrcp.f32 %v7727_v23  ;;  %v7750_v36 = vadd.f32 1.0, %v11215_v43  ;;  %5941 = vmatmul.mubr.bf16.gmra.mrb[72].mxu0 %v15356_v53  ;;  %6054 = vmatmul.mubr.bf16.gmra.mrb[72].mxu1 %v15356_v53  ;;  %v5235_v43 = vadd.f32 %v15836_v57, %v15723_v42  ;;  %v9764_v57 = vmul.f32 -1.442695, %v5342_v50  ;;  %v15962_v50 = vld [vmem:[%s18840_s8 + $0x238] sm:$0xff] }
 0x56f   :  { %v11217_v38 = vpop.eup %11216  ;;  %v15854_v48 = vpop.f32.mrb[223].mxu1  ;;  %11238 = vrcp.f32 %v7729_v52  ;;  %5950 = vmatprep.mubr.bf16.mxu0 %v18845_v1  ;;  %6063 = vmatprep.mubr.bf16.mxu1 %v18845_v1  ;;  %v9765_v8 = vmul.f32 -1.442695, %v5344_v0 }
 0x570   :  { %v11219_v41 = vpop.eup %11218  ;;  %8830 = vst [vmem:[%s18844_s10] sm:$0xff] %v11217_v38  ;;  %11240 = vrcp.f32 %v7750_v36  ;;  %v15926_v38 = vld [vmem:[%s18840_s8 + $0x178] sm:$0xff] }
 0x571   :  { %v11221_v2 = vpop.eup %11220  ;;  %8832 = vst [vmem:[%s18844_s10 + $0x10] sm:$0xff] %v11219_v41  ;;  %11242 = vpow2.f32 %v9716_v3  ;;  %v15890_v12 = vpop.f32.mrb[224].mxu0  ;;  %v5352_v3 = vadd.f32 %v15849_v46, %v15726_v59  ;;  %v18876_v7 = vcombine.low %v15921_v35, %v15926_v38 }
 0x572   :  { %v11223_v49 = vpop.eup %11222  ;;  %8831 = vst [vmem:[%s18844_s10 + $0x8] sm:$0xff] %v11221_v2  ;;  %11244 = vpow2.f32 %v9715_v47  ;;  %v15892_v10 = vpop.f32.mrb[224].mxu1  ;;  %v5348_v47 = vadd.f32 %v15839_v16, %v15726_v59  ;;  %v15945_v2 = vld [vmem:[%s18840_s8 + $0x230] sm:$0xff]  ;;  %v9763_v16 = vmul.f32 -1.442695, %v5231_v24 }
 0x573   :  { %v11225_v9 = vpop.eup %11224  ;;  %8833 = vst [vmem:[%s18844_s10 + $0x18] sm:$0xff] %v11223_v49  ;;  %11246 = vpow2.f32 %v9717_v32  ;;  %v15901_v25 = vpop.f32.mrb[225].mxu0  ;;  %v5350_v49 = vadd.f32 %v15844_v11, %v15741_v51 }
 0x574   :  { %v11227_v27 = vpop.eup %11226  ;;  %8854 = vst [vmem:[%s18844_s10 + $0xc0] sm:$0xff] %v11225_v9  ;;  %v15903_v37 = vpop.f32.mrb[225].mxu1  ;;  %11248 = vpow2.f32 %v9738_v26 }
 0x575   :  { %v11229_v23 = vpop.eup %11228  ;;  %8856 = vst [vmem:[%s18844_s10 + $0xd0] sm:$0xff] %v11227_v27  ;;  %v15912_v52 = vpop.f32.mrb[226].mxu0  ;;  %11250 = vpow2.f32 %v9740_v56  ;;  %v15957_v56 = vld [vmem:[%s18840_s8 + $0x1d8] sm:$0xff]  ;;  %v9786_v27 = vmul.f32 -1.442695, %v5235_v43  ;;  %v5239_v43 = vadd.f32 %v15846_v34, %v15723_v42 }
 0x576   :  { %v15914_v63 = vpop.f32.mrb[226].mxu1  ;;  %v11231_v36 = vpop.eup %11230  ;;  %8855 = vst [vmem:[%s18844_s10 + $0xc8] sm:$0xff] %v11229_v23  ;;  %11252 = vpow2.f32 %v9739_v21  ;;  %5951 = vmatmul.mubr.bf16.gmra.mrb[76].mxu0 %v15364_v13  ;;  %6064 = vmatmul.mubr.bf16.gmra.mrb[76].mxu1 %v15364_v13 }
 0x577   :  { %v15933_v5 = vpop.f32.mrb[227].mxu0  ;;  %v5363_v41 = vpop.f32.mrb[227].mxu1  ;;  %8857 = vst [vmem:[%s18844_s10 + $0xd8] sm:$0xff] %v11231_v36  ;;  %11254 = vpow2.f32 %v9741_v6  ;;  %6106 = vmatprep.mubr.bf16.mxu0 %v18845_v1  ;;  %6219 = vmatprep.mubr.bf16.mxu1 %v18845_v1  ;;  %v9788_v36 = vmul.f32 -1.442695, %v5348_v47  ;;  %v5241_v1 = vadd.f32 %v15851_v30, %v15738_v17 }
 0x578   :  { %v11233_v26 = vpop.eup %11232  ;;  %v15968_v21 = vadd.f32 %v5363_v41, %v15741_v51  ;;  %11256 = vpow2.f32 %v9762_v58  ;;  %v16054_v19 = vmul.f32 -1.442695, %v5239_v43  ;;  %v16073_v43 = vld [vmem:[%s18840_s8 + $0x298] sm:$0xff] }
 0x579   :  { %v11235_v9 = vpop.eup %11234  ;;  %8878 = vst [vmem:[%s18844_s10 + $0x180] sm:$0xff] %v11233_v26  ;;  %11258 = vpow2.f32 %v9764_v57  ;;  %v15993_v26 = vmul.f32 -1.442695, %v5237_v61  ;;  %v5254_v0 = vpop.f32.mrb[228].mxu0  ;;  %v16013_v57 = vld [vmem:[%s18840_s8 + $0x290] sm:$0xff] }
 0x57a   :  { %v11237_v24 = vpop.eup %11236  ;;  %8880 = vst [vmem:[%s18844_s10 + $0x190] sm:$0xff] %v11235_v9  ;;  %11260 = vpow2.f32 %v9763_v16  ;;  %v15995_v9 = vmul.f32 -1.442695, %v5350_v49  ;;  %v16005_v16 = vadd.f32 %v5254_v0, %v15723_v42  ;;  %v5256_v49 = vpop.f32.mrb[229].mxu0 }
 0x57b   :  { %v11239_v23 = vpop.eup %11238  ;;  %8879 = vst [vmem:[%s18844_s10 + $0x188] sm:$0xff] %v11237_v24  ;;  %v5367_v24 = vpop.f32.mrb[228].mxu1  ;;  %11262 = vpow2.f32 %v9765_v8  ;;  %v16018_v8 = vld [vmem:[%s18840_s8 + $0x2f0] sm:$0xff]  ;;  %v16021_v0 = vadd.f32 %v5256_v49, %v15738_v17  ;;  %v5354_v49 = vadd.f32 %v15854_v48, %v15741_v51 }
 0x57c   :  { %v11241_v41 = vpop.eup %11240  ;;  %8881 = vst [vmem:[%s18844_s10 + $0x198] sm:$0xff] %v11239_v23  ;;  %v16008_v61 = vadd.f32 %v5367_v24, %v15726_v59  ;;  %v5369_v23 = vpop.f32.mrb[229].mxu1  ;;  %11264 = vpow2.f32 %v9786_v27 }
 0x57d   :  { %v11243_v47 = vpop.eup %11242  ;;  %8902 = vst [vmem:[%s18844_s10 + $0x240] sm:$0xff] %v11241_v41  ;;  %v16024_v24 = vadd.f32 %v5369_v23, %v15741_v51  ;;  %v5258_v58 = vpop.f32.mrb[230].mxu0  ;;  %11266 = vpow2.f32 %v9788_v36 }
 0x57e   :  { %v11245_v41 = vpop.eup %11244  ;;  %v7752_v34 = vadd.f32 1.0, %v11243_v47  ;;  %v5371_v11 = vpop.f32.mrb[230].mxu1  ;;  %6107 = vmatmul.mubr.bf16.vlgmr.msra.gmra.mrb[80].mxu0 %v15212_v20  ;;  %6220 = vmatmul.mubr.bf16.vlgmr.msra.gmra.mrb[80].mxu1 %v15212_v20  ;;  %v18877_v20 = vcombine.high %v15940_v14, %v15945_v2 }
 0x57f   :  { %v11247_v32 = vpop.eup %11246  ;;  %v7751_v6 = vadd.f32 1.0, %v11245_v41  ;;  %v5260_v28 = vpop.f32.mrb[231].mxu0  ;;  %v16035_v41 = vadd.f32 %v5258_v58, %v15723_v42  ;;  %v16038_v46 = vadd.f32 %v5371_v11, %v15726_v59  ;;  %v18871_v11 = vcombine.low %v15794_v62, %v15799_v33 }
 0x580   :  { %v11249_v47 = vpop.eup %11248  ;;  %11268 = vrcp.f32 %v7752_v34  ;;  %v7753_v27 = vadd.f32 1.0, %v11247_v32  ;;  %v5373_v23 = vpop.f32.mrb[231].mxu1  ;;  %v16043_v32 = vadd.f32 %v5260_v28, %v15738_v17  ;;  %v18872_v28 = vmov 0  }
 0x581   :  { %v11251_v15 = vpop.eup %11250  ;;  %11270 = vrcp.f32 %v7751_v6  ;;  %v7774_v36 = vadd.f32 1.0, %v11249_v47  ;;  %v16046_v34 = vadd.f32 %v5373_v23, %v15741_v51  ;;  %v18870_v6 = vcombine.low %v15782_v31, %v15789_v55  ;;  %6414 = vmatpush1.bf16.msra.mxu1 %v18871_v11  ;;  %6116 = vmatprep.mubr.bf16.mxu0 %v18872_v28  ;;  %v5264_v55 = vpop.f32.mrb[232].mxu0 }
 0x582   :  { %v11253_v30 = vpop.eup %11252  ;;  %11272 = vrcp.f32 %v7753_v27  ;;  %v7776_v48 = vadd.f32 1.0, %v11251_v15  ;;  %v16056_v15 = vmul.f32 -1.442695, %v5352_v3  ;;  %6229 = vmatprep.mubr.bf16.mxu1 %v18872_v28  ;;  %v16060_v31 = vmul.f32 -1.442695, %v5241_v1  ;;  %v5266_v11 = vpop.f32.mrb[233].mxu0 }
 0x583   :  { %6301 = vmatpush1.bf16.msra.mxu0 %v18870_v6  ;;  %v11255_v58 = vpop.eup %11254  ;;  %11274 = vrcp.f32 %v7774_v36  ;;  %v7775_v47 = vadd.f32 1.0, %v11253_v30  ;;  %v18873_v62 = vcombine.high %v15878_v40, %v15883_v45  ;;  %v18874_v33 = vcombine.high %v15921_v35, %v15926_v38  ;;  %v5377_v6 = vpop.f32.mrb[232].mxu1 }
 0x584   :  { %v11257_v27 = vpop.eup %11256  ;;  %11276 = vrcp.f32 %v7776_v48  ;;  %v7777_v23 = vadd.f32 1.0, %v11255_v58  ;;  %v16075_v30 = vmul.f32 -1.442695, %v5354_v49  ;;  %v16078_v48 = vadd.f32 %v5264_v55, %v15723_v42  ;;  %v16083_v58 = vld [vmem:[%s18840_s8 + $0x2f8] sm:$0xff]  ;;  %v5379_v49 = vpop.f32.mrb[233].mxu1 }
 0x585   :  { %6302 = vmatprep.subr.bf16.mxu0 %v18873_v62  ;;  %6415 = vmatprep.subr.bf16.mxu1 %v18874_v33  ;;  %v11259_v36 = vpop.eup %11258  ;;  %11278 = vrcp.f32 %v7775_v47  ;;  %v7798_v1 = vadd.f32 1.0, %v11257_v27  ;;  %v16086_v3 = vadd.f32 %v5377_v6, %v15726_v59  ;;  %v16089_v47 = vadd.f32 %v5266_v11, %v15738_v17  ;;  %v5268_v27 = vpop.f32.mrb[234].mxu0 }
 0x586   :  { %v11261_v62 = vpop.eup %11260  ;;  %11280 = vrcp.f32 %v7777_v23  ;;  %v7800_v33 = vadd.f32 1.0, %v11259_v36  ;;  %v18875_v55 = vcombine.low %v15878_v40, %v15883_v45  ;;  %6416 = vmatpush1.bf16.msra.mxu1 %v18876_v7  ;;  %v5245_v36 = vadd.f32 %v15890_v12, %v15723_v42  ;;  %v5381_v11 = vpop.f32.mrb[234].mxu1  ;;  %6117 = vmatmul.mubr.bf16.gmra.mrb[84].mxu0 %v15244_v22 }
 0x587   :  { %v11263_v4 = vpop.eup %11262  ;;  %11282 = vrcp.f32 %v7798_v1  ;;  %v7799_v23 = vadd.f32 1.0, %v11261_v62  ;;  %v16100_v6 = vadd.f32 %v5379_v49, %v15741_v51  ;;  %v5270_v60 = vpop.f32.mrb[235].mxu0  ;;  %v18878_v40 = vcombine.high %v15957_v56, %v15962_v50  ;;  %6230 = vmatmul.mubr.bf16.gmra.mrb[84].mxu1 %v15244_v22  ;;  %6126 = vmatprep.mubr.bf16.mxu0 %v18872_v28 }
 0x588   :  { %6303 = vmatpush1.bf16.msra.mxu0 %v18875_v55  ;;  %v11265_v7 = vpop.eup %11264  ;;  %11284 = vrcp.f32 %v7800_v33  ;;  %v7801_v45 = vadd.f32 1.0, %v11263_v4  ;;  %v5358_v35 = vadd.f32 %v15892_v10, %v15726_v59  ;;  %v5383_v12 = vpop.f32.mrb[235].mxu1  ;;  %v9545_v38 = vcombine.high %v16073_v43, %v16083_v58  ;;  %v16122_v4 = vld [vmem:[%s18840_s8 + $0x350] sm:$0xff]  ;;  %6239 = vmatprep.mubr.bf16.mxu1 %v18872_v28 }
 0x589   :  { %6304 = vmatprep.subr.bf16.mxu0 %v18877_v20  ;;  %6417 = vmatprep.subr.bf16.mxu1 %v18878_v40  ;;  %v11267_v1 = vpop.eup %11266  ;;  %11286 = vrcp.f32 %v7799_v23  ;;  %v7822_v62 = vadd.f32 1.0, %v11265_v7  ;;  %v16113_v49 = vadd.f32 %v5268_v27, %v15723_v42  ;;  %v9544_v20 = vcombine.low %v16073_v43, %v16083_v58  ;;  %v16127_v10 = vld [vmem:[%s18840_s8 + $0x3b0] sm:$0xff] }
 0x58a   :  { %v11269_v33 = vpop.eup %11268  ;;  %11288 = vrcp.f32 %v7801_v45  ;;  %v7824_v27 = vadd.f32 1.0, %v11267_v1  ;;  %v16130_v55 = vadd.f32 %v5381_v11, %v15726_v59  ;;  %v16133_v23 = vadd.f32 %v5270_v60, %v15738_v17  ;;  %v16158_v45 = vld [vmem:[%s18840_s8 + $0x358] sm:$0xff] }
 0x58b   :  { %v11271_v43 = vpop.eup %11270  ;;  %8904 = vst [vmem:[%s18844_s10 + $0x250] sm:$0xff] %v11269_v33  ;;  %11290 = vrcp.f32 %v7822_v62  ;;  %v5247_v58 = vadd.f32 %v15901_v25, %v15738_v17  ;;  %v16144_v11 = vadd.f32 %v15903_v37, %v15741_v51  ;;  %v16147_v60 = vadd.f32 %v5383_v12, %v15741_v51  ;;  %v16163_v25 = vld [vmem:[%s18840_s8 + $0x3b8] sm:$0xff] }
 0x58c   :  { %v18879_v40 = vcombine.low %v15940_v14, %v15945_v2  ;;  %v18880_v7 = vcombine.low %v15957_v56, %v15962_v50  ;;  %v11273_v37 = vpop.eup %11272  ;;  %8903 = vst [vmem:[%s18844_s10 + $0x248] sm:$0xff] %v11271_v43  ;;  %11292 = vrcp.f32 %v7824_v27  ;;  %v9834_v14 = vmul.f32 -1.442695, %v5245_v36  ;;  %v5274_v56 = vpop.f32.mrb[236].mxu0 }
 0x58d   :  { %v16168_v2 = vmul.f32 -1.442695, %v5358_v35  ;;  %v5387_v50 = vpop.f32.mrb[236].mxu1  ;;  %v18881_v12 = vcombine.high %v16013_v57, %v16018_v8  ;;  %v9567_v1 = vcombine.high %v16122_v4, %v16127_v10  ;;  %v11275_v62 = vpop.eup %11274  ;;  %8905 = vst [vmem:[%s18844_s10 + $0x258] sm:$0xff] %v11273_v37  ;;  %11294 = vpow2.f32 %v15993_v26 }
 0x58e   :  { %6305 = vmatpush1.bf16.msra.mxu0 %v18879_v40  ;;  %6418 = vmatpush1.bf16.msra.mxu1 %v18880_v7  ;;  %v5249_v36 = vadd.f32 %v15912_v52, %v15723_v42  ;;  %v16182_v35 = vadd.f32 %v5274_v56, %v15723_v42  ;;  %v16185_v33 = vadd.f32 %v5387_v50, %v15726_v59  ;;  %v5389_v27 = vpop.f32.mrb[237].mxu1  ;;  %v11277_v43 = vpop.eup %11276  ;;  %11296 = vpow2.f32 %v15995_v9 }
 0x58f   :  { %6306 = vmatprep.subr.bf16.mxu0 %v18881_v12  ;;  %6419 = vmatprep.subr.bf16.mxu1 %v9545_v38  ;;  %v5276_v38 = vpop.f32.mrb[237].mxu0  ;;  %8926 = vst [vmem:[%s18844_s10 + $0x300] sm:$0xff] %v11275_v62  ;;  %v16195_v52 = vadd.f32 %v5389_v27, %v15741_v51  ;;  %v5391_v7 = vpop.f32.mrb[238].mxu1  ;;  %v9569_v37 = vcombine.high %v16158_v45, %v16163_v25  ;;  %8928 = vst [vmem:[%s18844_s10 + $0x310] sm:$0xff] %v11277_v43  ;;  %11298 = vpow2.f32 %v16054_v19  ;;  %v16216_v19 = vld [vmem:[%s18840_s8 + $0x410] sm:$0xff] }
 0x590   :  { %v16192_v26 = vadd.f32 %v5276_v38, %v15738_v17  ;;  %v5278_v40 = vpop.f32.mrb[238].mxu0  ;;  %v11279_v56 = vpop.eup %11278  ;;  %v18882_v62 = vcombine.low %v16013_v57, %v16018_v8  ;;  %v9566_v38 = vcombine.low %v16122_v4, %v16127_v10  ;;  %v9568_v27 = vcombine.low %v16158_v45, %v16163_v25  ;;  %v4023_v4 = vld [vmem:[%s18840_s8 + $0x418] sm:$0xff]  ;;  %6127 = vmatmul.mubr.bf16.gmra.mrb[88].mxu0 %v15264_v39 }
 0x591   :  { %v16204_v9 = vadd.f32 %v5278_v40, %v15723_v42  ;;  %v5280_v50 = vpop.f32.mrb[239].mxu0  ;;  %v5393_v12 = vpop.f32.mrb[239].mxu1  ;;  %v4034_v42 = vld [vmem:[%s18840_s8 + $0x470] sm:$0xff]  ;;  %8927 = vst [vmem:[%s18844_s10 + $0x308] sm:$0xff] %v11279_v56  ;;  %11300 = vpow2.f32 %v16056_v15  ;;  %v9835_v57 = vmul.f32 -1.442695, %v5247_v58  ;;  %v5362_v8 = vadd.f32 %v15914_v63, %v15726_v59  ;;  %6240 = vmatmul.mubr.bf16.gmra.mrb[88].mxu1 %v15264_v39  ;;  %6136 = vmatprep.mubr.bf16.mxu0 %v18872_v28 }
 0x592   :  { %6307 = vmatpush1.bf16.msra.mxu0 %v18882_v62  ;;  %6420 = vmatpush1.bf16.msra.mxu1 %v9544_v20  ;;  %v11281_v43 = vpop.eup %11280  ;;  %v16228_v20 = vadd.f32 %v5391_v7, %v15726_v59  ;;  %v4035_v10 = vld [vmem:[%s18840_s8 + $0x478] sm:$0xff]  ;;  %11302 = vpow2.f32 %v16060_v31  ;;  %v5251_v59 = vadd.f32 %v15933_v5, %v15738_v17  ;;  %v16243_v63 = vadd.f32 %v5280_v50, %v15738_v17  ;;  %v16266_v40 = vpop.f32.mrb[240].mxu0 }
 0x593   :  { %6308 = vmatprep.subr.bf16.mxu0 %v9567_v1  ;;  %6421 = vmatprep.subr.bf16.mxu1 %v9569_v37  ;;  %v11283_v45 = vpop.eup %11282  ;;  %8929 = vst [vmem:[%s18844_s10 + $0x318] sm:$0xff] %v11281_v43  ;;  %v16246_v15 = vadd.f32 %v5393_v12, %v15741_v51  ;;  %11304 = vpow2.f32 %v16075_v30  ;;  %v9837_v31 = vmul.f32 -1.442695, %v16144_v11  ;;  %v9591_v17 = vcombine.high %v16216_v19, %v4034_v42  ;;  %v16268_v7 = vpop.f32.mrb[240].mxu1  ;;  %v4058_v12 = vld [vmem:[%s18840_s8 + $0x530] sm:$0xff] }
 0x594   :  { %v11285_v58 = vpop.eup %11284  ;;  %8950 = vst [vmem:[%s18844_s10 + $0x3c0] sm:$0xff] %v11283_v45  ;;  %6249 = vmatprep.mubr.bf16.mxu1 %v18872_v28  ;;  %11306 = vpow2.f32 %v9834_v14  ;;  %v9858_v5 = vmul.f32 -1.442695, %v5249_v36  ;;  %v9590_v25 = vcombine.low %v16216_v19, %v4034_v42  ;;  %v9592_v30 = vcombine.low %v4023_v4, %v4035_v10  ;;  %v16273_v56 = vpop.f32.mrb[241].mxu0 }
 0x595   :  { %v11287_v51 = vpop.eup %11286  ;;  %8952 = vst [vmem:[%s18844_s10 + $0x3d0] sm:$0xff] %v11285_v58  ;;  %11308 = vpow2.f32 %v16168_v2  ;;  %v9860_v11 = vmul.f32 -1.442695, %v5362_v8  ;;  %v9593_v14 = vcombine.high %v4023_v4, %v4035_v10  ;;  %v9859_v37 = vmul.f32 -1.442695, %v5251_v59  ;;  %v16275_v50 = vpop.f32.mrb[241].mxu1 }
 0x596   :  { %6309 = vmatpush1.bf16.msra.mxu0 %v9566_v38  ;;  %6422 = vmatpush1.bf16.msra.mxu1 %v9568_v27  ;;  %v11289_v1 = vpop.eup %11288  ;;  %8951 = vst [vmem:[%s18844_s10 + $0x3c8] sm:$0xff] %v11287_v51  ;;  %11310 = vpow2.f32 %v9835_v57  ;;  %v4046_v2 = vld [vmem:[%s18840_s8 + $0x4d0] sm:$0xff]  ;;  %v16286_v38 = vpop.f32.mrb[242].mxu0 }
 0x597   :  { %6310 = vmatprep.subr.bf16.mxu0 %v9591_v17  ;;  %v11291_v36 = vpop.eup %11290  ;;  %8953 = vst [vmem:[%s18844_s10 + $0x3d8] sm:$0xff] %v11289_v1  ;;  %11312 = vpow2.f32 %v9837_v31  ;;  %v16288_v27 = vpop.f32.mrb[242].mxu1  ;;  %6423 = vmatprep.subr.bf16.mxu1 %v9593_v14  ;;  %v9615_v19 = vcombine.high %v4046_v2, %v4058_v12  ;;  %v9614_v51 = vcombine.low %v4046_v2, %v4058_v12 }
 0x598   :  { %v11293_v62 = vpop.eup %11292  ;;  %8974 = vst [vmem:[%s18844_s10 + $0x480] sm:$0xff] %v11291_v36  ;;  %11314 = vpow2.f32 %v9858_v5  ;;  %v16293_v43 = vpop.f32.mrb[243].mxu0  ;;  %6137 = vmatmul.mubr.bf16.gmra.mrb[92].mxu0 %v15296_v29 }
 0x599   :  { %v11295_v42 = vpop.eup %11294  ;;  %8976 = vst [vmem:[%s18844_s10 + $0x490] sm:$0xff] %v11293_v62  ;;  %v16295_v57 = vpop.f32.mrb[243].mxu1  ;;  %11316 = vpow2.f32 %v9860_v11  ;;  %6250 = vmatmul.mubr.bf16.gmra.mrb[92].mxu1 %v15296_v29  ;;  %6146 = vmatprep.mubr.bf16.mxu0 %v18872_v28 }
 0x59a   :  { %6311 = vmatpush1.bf16.msra.mxu0 %v9590_v25  ;;  %6424 = vmatpush1.bf16.msra.mxu1 %v9592_v30  ;;  %v11297_v8 = vpop.eup %11296  ;;  %v7823_v4 = vadd.f32 1.0, %v11295_v42  ;;  %11318 = vpow2.f32 %v9859_v37  ;;  %v16301_v30 = vpop.f32.mrb[244].mxu0 }
 0x59b   :  { %6312 = vmatprep.subr.bf16.mxu0 %v9615_v19  ;;  %v11299_v10 = vpop.eup %11298  ;;  %v7825_v45 = vadd.f32 1.0, %v11297_v8  ;;  %6259 = vmatprep.mubr.bf16.mxu1 %v18872_v28  ;;  %v16303_v14 = vpop.f32.mrb[244].mxu1 }
 0x59c   :  { %v11301_v59 = vpop.eup %11300  ;;  %11320 = vrcp.f32 %v7823_v4  ;;  %v7846_v58 = vadd.f32 1.0, %v11299_v10  ;;  %v16305_v36 = vpop.f32.mrb[245].mxu0 }
 0x59d   :  { %v11303_v31 = vpop.eup %11302  ;;  %11322 = vrcp.f32 %v7825_v45  ;;  %v7848_v17 = vadd.f32 1.0, %v11301_v59  ;;  %v16307_v19 = vpop.f32.mrb[245].mxu1 }
 0x59e   :  { %v11305_v5 = vpop.eup %11304  ;;  %11324 = vrcp.f32 %v7846_v58  ;;  %v7847_v25 = vadd.f32 1.0, %v11303_v31  ;;  %6313 = vmatpush1.bf16.msra.mxu0 %v9614_v51  ;;  %v16309_v42 = vpop.f32.mrb[246].mxu0  ;;  %v4059_v51 = vld [vmem:[%s18840_s8 + $0x538] sm:$0xff] }
 0x59f   :  { %v11307_v1 = vpop.eup %11306  ;;  %11326 = vrcp.f32 %v7848_v17  ;;  %v7849_v11 = vadd.f32 1.0, %v11305_v5  ;;  %v16311_v8 = vpop.f32.mrb[246].mxu1  ;;  %v4047_v17 = vld [vmem:[%s18840_s8 + $0x4d8] sm:$0xff] }
 0x5a0   :  { %v11309_v37 = vpop.eup %11308  ;;  %11328 = vrcp.f32 %v7847_v25  ;;  %v7870_v62 = vadd.f32 1.0, %v11307_v1  ;;  %v16313_v4 = vpop.f32.mrb[247].mxu0  ;;  %6147 = vmatmul.mubr.bf16.gmra.mrb[96].mxu0 %v15336_v18 }
 0x5a1   :  { %v11311_v2 = vpop.eup %11310  ;;  %11330 = vrcp.f32 %v7849_v11  ;;  %v7872_v12 = vadd.f32 1.0, %v11309_v37  ;;  %18883 = vst [vmem:[#allocation7_spill] sm:$0xff] %v16313_v4  ;;  %v16315_v59 = vpop.f32.mrb[247].mxu1  ;;  %6260 = vmatmul.mubr.bf16.gmra.mrb[96].mxu1 %v15336_v18  ;;  %6156 = vmatprep.mubr.bf16.mxu0 %v18872_v28  ;;  %v9861_v37 = vmul.f32 -1.442695, %v15968_v21  ;;  %v9617_v21 = vcombine.high %v4047_v17, %v4059_v51 }
 0x5a2   :  { %v11313_v10 = vpop.eup %11312  ;;  %11332 = vrcp.f32 %v7870_v62  ;;  %v7871_v45 = vadd.f32 1.0, %v11311_v2  ;;  %18884 = vst [vmem:[#allocation8_spill] sm:$0xff] %v16315_v59  ;;  %6269 = vmatprep.mubr.bf16.mxu1 %v18872_v28  ;;  %v9616_v59 = vcombine.low %v4047_v17, %v4059_v51  ;;  %v4082_v17 = vld [vmem:[%s18840_s8 + $0x5f0] sm:$0xff] }
 0x5a3   :  { %v11315_v58 = vpop.eup %11314  ;;  %11334 = vrcp.f32 %v7872_v12  ;;  %v7873_v31 = vadd.f32 1.0, %v11313_v10  ;;  %v9882_v12 = vmul.f32 -1.442695, %v16005_v16  ;;  %v16329_v10 = vpop.f32.mrb[248].mxu0  ;;  %v9883_v16 = vmul.f32 -1.442695, %v16021_v0  ;;  %6425 = vmatprep.subr.bf16.mxu1 %v9617_v21 }
 0x5a4   :  { %v11317_v5 = vpop.eup %11316  ;;  %11336 = vrcp.f32 %v7871_v45  ;;  %v7894_v25 = vadd.f32 1.0, %v11315_v58  ;;  %v9884_v45 = vmul.f32 -1.442695, %v16008_v61  ;;  %v16335_v58 = vpop.f32.mrb[248].mxu1  ;;  %v4070_v61 = vld [vmem:[%s18840_s8 + $0x590] sm:$0xff]  ;;  %6426 = vmatpush1.bf16.msra.mxu1 %v9616_v59 }
 0x5a5   :  { %v11319_v1 = vpop.eup %11318  ;;  %11338 = vrcp.f32 %v7873_v31  ;;  %v7896_v11 = vadd.f32 1.0, %v11317_v5  ;;  %v16337_v31 = vpop.f32.mrb[249].mxu0  ;;  %v9885_v0 = vmul.f32 -1.442695, %v16024_v24  ;;  %v4071_v24 = vld [vmem:[%s18840_s8 + $0x598] sm:$0xff]  ;;  %v9638_v59 = vcombine.low %v4070_v61, %v4082_v17 }
 0x5a6   :  { %v11321_v62 = vpop.eup %11320  ;;  %11340 = vrcp.f32 %v7894_v25  ;;  %v7895_v2 = vadd.f32 1.0, %v11319_v1  ;;  %v16343_v25 = vpop.f32.mrb[249].mxu1 }
 0x5a7   :  { %v11323_v4 = vpop.eup %11322  ;;  %8975 = vst [vmem:[%s18844_s10 + $0x488] sm:$0xff] %v11321_v62  ;;  %11342 = vrcp.f32 %v7896_v11  ;;  %v16345_v1 = vpop.f32.mrb[250].mxu0 }
 0x5a8   :  { %v11325_v5 = vpop.eup %11324  ;;  %8977 = vst [vmem:[%s18844_s10 + $0x498] sm:$0xff] %v11323_v4  ;;  %11344 = vrcp.f32 %v7895_v2  ;;  %18885 = vst [vmem:[#allocation9_spill] sm:$0xff] %v16345_v1  ;;  %v16357_v4 = vpop.f32.mrb[250].mxu1  ;;  %v9906_v2 = vmul.f32 -1.442695, %v16035_v41  ;;  %v16378_v41 = vsub.s32 4, %v15675_v44  ;;  %6157 = vmatmul.mubr.bf16.gmra.mrb[100].mxu0 %v15348_v54 }
 0x5a9   :  { %v11327_v51 = vpop.eup %11326  ;;  %8998 = vst [vmem:[%s18844_s10 + $0x540] sm:$0xff] %v11325_v5  ;;  %11346 = vpow2.f32 %v9861_v37  ;;  %18886 = vst [vmem:[#allocation10_spill] sm:$0xff] %v16357_v4  ;;  %v16359_v11 = vpop.f32.mrb[251].mxu0  ;;  %v4083_v37 = vld [vmem:[%s18840_s8 + $0x5f8] sm:$0xff]  ;;  %6270 = vmatmul.mubr.bf16.gmra.mrb[100].mxu1 %v15348_v54  ;;  %6166 = vmatprep.mubr.bf16.mxu0 %v18872_v28 }
 0x5aa   :  { %18887 = vst [vmem:[#allocation11_spill] sm:$0xff] %v16359_v11  ;;  %v11329_v62 = vpop.eup %11328  ;;  %9000 = vst [vmem:[%s18844_s10 + $0x550] sm:$0xff] %v11327_v51  ;;  %11348 = vpow2.f32 %v9882_v12  ;;  %v16365_v1 = vpop.f32.mrb[251].mxu1  ;;  %v9908_v12 = vmul.f32 -1.442695, %v16038_v46  ;;  %6279 = vmatprep.mubr.bf16.mxu1 %v18872_v28  ;;  %v9639_v46 = vcombine.high %v4070_v61, %v4082_v17  ;;  %v9641_v11 = vcombine.high %v4071_v24, %v4083_v37 }
 0x5ab   :  { %18888 = vst [vmem:[#allocation12_spill] sm:$0xff] %v16365_v1  ;;  %v11331_v21 = vpop.eup %11330  ;;  %8999 = vst [vmem:[%s18844_s10 + $0x548] sm:$0xff] %v11329_v62  ;;  %11350 = vpow2.f32 %v9884_v45  ;;  %v9907_v51 = vmul.f32 -1.442695, %v16043_v32  ;;  %v9909_v62 = vmul.f32 -1.442695, %v16046_v34  ;;  %v9640_v1 = vcombine.low %v4071_v24, %v4083_v37 }
 0x5ac   :  { %18889 = vst [vmem:[#allocation13_spill] sm:$0xff] %v16378_v41  ;;  %v11333_v5 = vpop.eup %11332  ;;  %9001 = vst [vmem:[%s18844_s10 + $0x558] sm:$0xff] %v11331_v21  ;;  %11352 = vpow2.f32 %v9883_v16  ;;  %v9930_v32 = vmul.f32 -1.442695, %v16078_v48  ;;  %v16396_v16 = vpop.f32.mrb[252].mxu0  ;;  %6314 = vmatprep.subr.bf16.mxu0 %v9639_v46  ;;  %6427 = vmatprep.subr.bf16.mxu1 %v9641_v11 }
 0x5ad   :  { %v11335_v45 = vpop.eup %11334  ;;  %9022 = vst [vmem:[%s18844_s10 + $0x600] sm:$0xff] %v11333_v5  ;;  %11354 = vpow2.f32 %v9885_v0  ;;  %v16398_v61 = vpop.f32.mrb[252].mxu1  ;;  %v9932_v34 = vmul.f32 -1.442695, %v16086_v3  ;;  %v16407_v0 = vld [vmem:[%s18843_s9] sm:$0xff]  ;;  %6315 = vmatpush1.bf16.msra.mxu0 %v9638_v59  ;;  %6428 = vmatpush1.bf16.msra.mxu1 %v9640_v1 }
 0x5ae   :  { %v11337_v4 = vpop.eup %11336  ;;  %9024 = vst [vmem:[%s18844_s10 + $0x610] sm:$0xff] %v11335_v45  ;;  %11356 = vpow2.f32 %v9906_v2  ;;  %v16411_v48 = vrot.slane %v16407_v0, %v16378_v41  ;;  %v16413_v2 = vpop.f32.mrb[253].mxu0  ;;  %v9931_v3 = vmul.f32 -1.442695, %v16089_v47  ;;  %v9933_v11 = vmul.f32 -1.442695, %v16100_v6 }
 0x5af   :  { %v11339_v17 = vpop.eup %11338  ;;  %9023 = vst [vmem:[%s18844_s10 + $0x608] sm:$0xff] %v11337_v4  ;;  %11358 = vpow2.f32 %v9908_v12  ;;  %v16415_v24 = vpop.f32.mrb[253].mxu1 }
 0x5b0   :  { %v11341_v37 = vpop.eup %11340  ;;  %9025 = vst [vmem:[%s18844_s10 + $0x618] sm:$0xff] %v11339_v17  ;;  %11360 = vpow2.f32 %v9907_v51  ;;  %v5464_v4 = vpop.f32.mrb[254].mxu0  ;;  %6167 = vmatmul.mubr.bf16.gmra.mrb[104].mxu0 %v15356_v53 }
 0x5b1   :  { %v16421_v21 = vpop.f32.mrb[254].mxu1  ;;  %v11343_v12 = vpop.eup %11342  ;;  %9046 = vst [vmem:[%s18844_s10 + $0x6c0] sm:$0xff] %v11341_v37  ;;  %11362 = vpow2.f32 %v9909_v62  ;;  %v16428_v59 = vadd.f32 %v5464_v4, %v16411_v48  ;;  %6280 = vmatmul.mubr.bf16.gmra.mrb[104].mxu1 %v15356_v53  ;;  %6176 = vmatprep.mubr.bf16.mxu0 %v18872_v28 }
 0x5b2   :  { %v16430_v5 = vpop.f32.mrb[255].mxu0  ;;  %v16432_v51 = vpop.f32.mrb[255].mxu1  ;;  %9048 = vst [vmem:[%s18844_s10 + $0x6d0] sm:$0xff] %v11343_v12  ;;  %11364 = vpow2.f32 %v9930_v32  ;;  %6289 = vmatprep.mubr.bf16.mxu1 %v18872_v28 }
 0x5b3   :  { %18890 = vst [vmem:[#allocation14_spill] sm:$0xff] %v16428_v59  ;;  %18891 = vst [vmem:[#allocation15_spill] sm:$0xff] %v16432_v51  ;;  %v11345_v47 = vpop.eup %11344  ;;  %11366 = vpow2.f32 %v9932_v34  ;;  %v5470_v37 = vpop.f32.mrb[0].mxu0 }
 0x5b4   :  { %v11347_v1 = vpop.eup %11346  ;;  %9047 = vst [vmem:[%s18844_s10 + $0x6c8] sm:$0xff] %v11345_v47  ;;  %11368 = vpow2.f32 %v9931_v3  ;;  %v16444_v4 = vpop.f32.mrb[0].mxu1  ;;  %v16447_v47 = vadd.f32 %v5470_v37, %v16411_v48 }
 0x5b5   :  { %v11349_v6 = vpop.eup %11348  ;;  %v7897_v46 = vadd.f32 1.0, %v11347_v1  ;;  %11370 = vpow2.f32 %v9933_v11  ;;  %18892 = vst [vmem:[#allocation16_spill] sm:$0xff] %v16444_v4  ;;  %v16449_v3 = vpop.f32.mrb[1].mxu0  ;;  %v16456_v4 = vsub.s32 6, %v15675_v44 }
 0x5b6   :  { %v11351_v45 = vpop.eup %11350  ;;  %v7918_v62 = vadd.f32 1.0, %v11349_v6  ;;  %18893 = vst [vmem:[#allocation17_spill] sm:$0xff] %v16447_v47  ;;  %18894 = vst [vmem:[#allocation18_spill] sm:$0xff] %v16449_v3  ;;  %v16451_v1 = vpop.f32.mrb[1].mxu1 }
 0x5b7   :  { %v11353_v32 = vpop.eup %11352  ;;  %11372 = vrcp.f32 %v7897_v46  ;;  %v7920_v17 = vadd.f32 1.0, %v11351_v45  ;;  %18895 = vst [vmem:[#allocation19_spill] sm:$0xff] %v16451_v1  ;;  %v5474_v11 = vpop.f32.mrb[2].mxu0  ;;  %18897 = vst [vmem:[#allocation21_spill] sm:$0xff] %v16456_v4 }
 0x5b8   :  { %v11355_v34 = vpop.eup %11354  ;;  %11374 = vrcp.f32 %v7918_v62  ;;  %v7919_v12 = vadd.f32 1.0, %v11353_v32  ;;  %v16453_v59 = vpop.f32.mrb[2].mxu1  ;;  %v16459_v62 = vsub.s32 5, %v15675_v44  ;;  %6177 = vmatmul.mubr.bf16.gmra.mrb[108].mxu0 %v15364_v13 }
 0x5b9   :  { %v11357_v41 = vpop.eup %11356  ;;  %11376 = vrcp.f32 %v7920_v17  ;;  %v7921_v6 = vadd.f32 1.0, %v11355_v34  ;;  %18896 = vst [vmem:[#allocation20_spill] sm:$0xff] %v16453_v59  ;;  %v16461_v32 = vpop.f32.mrb[3].mxu0  ;;  %v16464_v17 = vsub.s32 7, %v15675_v44  ;;  %6290 = vmatmul.mubr.bf16.gmra.mrb[108].mxu1 %v15364_v13  ;;  %6332 = vmatprep.mubr.bf16.mxu0 %v18872_v28 }
 0x5ba   :  { %v11359_v46 = vpop.eup %11358  ;;  %11378 = vrcp.f32 %v7919_v12  ;;  %v7942_v45 = vadd.f32 1.0, %v11357_v41  ;;  %18898 = vst [vmem:[#allocation22_spill] sm:$0xff] %v16459_v62  ;;  %18899 = vst [vmem:[#allocation23_spill] sm:$0xff] %v16461_v32  ;;  %v16466_v34 = vpop.f32.mrb[3].mxu1  ;;  %v16469_v41 = vadd.f32 %v5474_v11, %v16411_v48  ;;  %6445 = vmatprep.mubr.bf16.mxu1 %v18872_v28  ;;  %v16481_v11 = vrot.slane %v16407_v0, %v16459_v62 }
 0x5bb   :  { %v11361_v37 = vpop.eup %11360  ;;  %11380 = vrcp.f32 %v7921_v6  ;;  %v7944_v47 = vadd.f32 1.0, %v11359_v46  ;;  %18900 = vst [vmem:[#allocation24_spill] sm:$0xff] %v16464_v17  ;;  %18901 = vst [vmem:[#allocation25_spill] sm:$0xff] %v16466_v34  ;;  %v16477_v46 = vrot.slane %v16407_v0, %v16456_v4  ;;  %v9956_v4 = vmul.f32 -1.442695, %v16130_v55  ;;  %v5593_v62 = vpop.f32.mrb[4].mxu1 }
 0x5bc   :  { %v11363_v59 = vpop.eup %11362  ;;  %11382 = vrcp.f32 %v7942_v45  ;;  %v7943_v12 = vadd.f32 1.0, %v11361_v37  ;;  %18902 = vst [vmem:[#allocation26_spill] sm:$0xff] %v16469_v41  ;;  %v5480_v41 = vpop.f32.mrb[4].mxu0  ;;  %v9955_v55 = vmul.f32 -1.442695, %v16133_v23 }
 0x5bd   :  { %v11365_v1 = vpop.eup %11364  ;;  %11384 = vrcp.f32 %v7944_v47  ;;  %v7945_v32 = vadd.f32 1.0, %v11363_v59  ;;  %v9954_v59 = vmul.f32 -1.442695, %v16113_v49  ;;  %v16486_v47 = vrot.slane %v16407_v0, %v16464_v17  ;;  %v5482_v3 = vpop.f32.mrb[5].mxu0 }
 0x5be   :  { %v11367_v44 = vpop.eup %11366  ;;  %11386 = vrcp.f32 %v7943_v12  ;;  %v7966_v6 = vadd.f32 1.0, %v11365_v1  ;;  %v16490_v34 = vadd.f32 %v5480_v41, %v16411_v48  ;;  %v16493_v49 = vadd.f32 %v5593_v62, %v16477_v46  ;;  %v5484_v17 = vpop.f32.mrb[6].mxu0 }
 0x5bf   :  { %v11369_v45 = vpop.eup %11368  ;;  %11388 = vrcp.f32 %v7945_v32  ;;  %v7968_v37 = vadd.f32 1.0, %v11367_v44  ;;  %v16496_v0 = vadd.f32 %v5482_v3, %v16481_v11  ;;  %v5595_v44 = vpop.f32.mrb[5].mxu1 }
 0x5c0   :  { %v11371_v12 = vpop.eup %11370  ;;  %11390 = vrcp.f32 %v7966_v6  ;;  %v7967_v1 = vadd.f32 1.0, %v11369_v45  ;;  %v16503_v41 = vadd.f32 %v5595_v44, %v16486_v47  ;;  %v16506_v45 = vadd.f32 %v5484_v17, %v16411_v48  ;;  %v5597_v62 = vpop.f32.mrb[6].mxu1 }
 0x5c1   :  { %v11373_v51 = vpop.eup %11372  ;;  %11392 = vrcp.f32 %v7968_v37  ;;  %v7969_v32 = vadd.f32 1.0, %v11371_v12  ;;  %v5486_v37 = vpop.f32.mrb[7].mxu0  ;;  %v9957_v12 = vmul.f32 -1.442695, %v16147_v60  ;;  %v9978_v17 = vmul.f32 -1.442695, %v16182_v35 }
 0x5c2   :  { %v11375_v6 = vpop.eup %11374  ;;  %9049 = vst [vmem:[%s18844_s10 + $0x6d8] sm:$0xff] %v11373_v51  ;;  %11394 = vrcp.f32 %v7967_v1  ;;  %18903 = vst [vmem:[#allocation27_spill] sm:$0xff] %v16506_v45  ;;  %v16513_v51 = vadd.f32 %v5597_v62, %v16477_v46  ;;  %v5599_v23 = vpop.f32.mrb[7].mxu1  ;;  %v16520_v44 = vadd.f32 %v5486_v37, %v16481_v11  ;;  %v18904_v45 = vld [vmem:[#allocation2_spill] sm:$0xff] }
 0x5c3   :  { %v11377_v3 = vpop.eup %11376  ;;  %9070 = vst [vmem:[%s18844_s10 + $0x780] sm:$0xff] %v11375_v6  ;;  %11396 = vrcp.f32 %v7969_v32  ;;  %6333 = vmatmul.mubr.bf16.vlgmr.msra.gmra.mrb[112].mxu0 %v18904_v45  ;;  %6446 = vmatmul.mubr.bf16.vlgmr.msra.gmra.mrb[112].mxu1 %v18904_v45  ;;  %v9980_v32 = vmul.f32 -1.442695, %v16185_v33  ;;  %v16529_v6 = vadd.f32 %v5599_v23, %v16486_v47  ;;  %v9981_v33 = vmul.f32 -1.442695, %v16195_v52  ;;  %v5490_v62 = vpop.f32.mrb[8].mxu0 }
 0x5c4   :  { %v11379_v1 = vpop.eup %11378  ;;  %9072 = vst [vmem:[%s18844_s10 + $0x790] sm:$0xff] %v11377_v3  ;;  %11398 = vpow2.f32 %v9954_v59  ;;  %6342 = vmatprep.mubr.bf16.mxu0 %v18872_v28  ;;  %6455 = vmatprep.mubr.bf16.mxu1 %v18872_v28  ;;  %v9979_v59 = vmul.f32 -1.442695, %v16192_v26  ;;  %v5603_v37 = vpop.f32.mrb[8].mxu1  ;;  %v5431_v26 = vadd.f32 %v16266_v40, %v16411_v48 }
 0x5c5   :  { %v11381_v60 = vpop.eup %11380  ;;  %9071 = vst [vmem:[%s18844_s10 + $0x788] sm:$0xff] %v11379_v1  ;;  %11400 = vpow2.f32 %v9956_v4  ;;  %v10002_v4 = vmul.f32 -1.442695, %v16204_v9  ;;  %v5492_v52 = vpop.f32.mrb[9].mxu0  ;;  %v10004_v1 = vmul.f32 -1.442695, %v16228_v20 }
 0x5c6   :  { %v11383_v35 = vpop.eup %11382  ;;  %9073 = vst [vmem:[%s18844_s10 + $0x798] sm:$0xff] %v11381_v60  ;;  %11402 = vpow2.f32 %v9955_v55  ;;  %v16548_v55 = vadd.f32 %v5490_v62, %v16411_v48  ;;  %v5605_v23 = vpop.f32.mrb[9].mxu1  ;;  %v10003_v62 = vmul.f32 -1.442695, %v16243_v63  ;;  %v9646_v63 = vmul.f32 -1.442695, %v5431_v26 }
 0x5c7   :  { %v11385_v45 = vpop.eup %11384  ;;  %9094 = vst [vmem:[%s18844_s10 + $0x840] sm:$0xff] %v11383_v35  ;;  %11404 = vpow2.f32 %v9957_v12  ;;  %v16551_v12 = vadd.f32 %v5603_v37, %v16477_v46  ;;  %v16561_v40 = vadd.f32 %v5605_v23, %v16486_v47  ;;  %v5494_v60 = vpop.f32.mrb[10].mxu0 }
 0x5c8   :  { %v11387_v3 = vpop.eup %11386  ;;  %9096 = vst [vmem:[%s18844_s10 + $0x850] sm:$0xff] %v11385_v45  ;;  %11406 = vpow2.f32 %v9978_v17  ;;  %v16558_v17 = vadd.f32 %v5492_v52, %v16481_v11  ;;  %v5607_v35 = vpop.f32.mrb[10].mxu1  ;;  %v10005_v52 = vmul.f32 -1.442695, %v16246_v15 }
 0x5c9   :  { %v11389_v9 = vpop.eup %11388  ;;  %9095 = vst [vmem:[%s18844_s10 + $0x848] sm:$0xff] %v11387_v3  ;;  %11408 = vpow2.f32 %v9980_v32  ;;  %v16568_v32 = vadd.f32 %v5494_v60, %v16411_v48  ;;  %v5496_v20 = vpop.f32.mrb[11].mxu0  ;;  %v16575_v23 = vadd.f32 %v5607_v35, %v16477_v46 }
 0x5ca   :  { %v11391_v45 = vpop.eup %11390  ;;  %9097 = vst [vmem:[%s18844_s10 + $0x858] sm:$0xff] %v11389_v9  ;;  %11410 = vpow2.f32 %v9979_v59  ;;  %v5609_v37 = vpop.f32.mrb[11].mxu1  ;;  %v16581_v59 = vadd.f32 %v5496_v20, %v16481_v11 }
 0x5cb   :  { %v11393_v3 = vpop.eup %11392  ;;  %9118 = vst [vmem:[%s18844_s10 + $0x900] sm:$0xff] %v11391_v45  ;;  %11412 = vpow2.f32 %v9981_v33  ;;  %18905 = vst [vmem:[#allocation2_spill] sm:$0xff] %v16575_v23  ;;  %v16584_v60 = vadd.f32 %v5609_v37, %v16486_v47  ;;  %6343 = vmatmul.mubr.bf16.gmra.mrb[116].mxu0 %v15244_v22  ;;  %6456 = vmatmul.mubr.bf16.gmra.mrb[116].mxu1 %v15244_v22  ;;  %v5500_v22 = vpop.f32.mrb[12].mxu0 }
 0x5cc   :  { %v11395_v9 = vpop.eup %11394  ;;  %9120 = vst [vmem:[%s18844_s10 + $0x910] sm:$0xff] %v11393_v3  ;;  %11414 = vpow2.f32 %v10002_v4  ;;  %18906 = vst [vmem:[#allocation28_spill] sm:$0xff] %v16581_v59  ;;  %6352 = vmatprep.mubr.bf16.mxu0 %v18872_v28  ;;  %6465 = vmatprep.mubr.bf16.mxu1 %v18872_v28  ;;  %v5613_v35 = vpop.f32.mrb[12].mxu1 }
 0x5cd   :  { %18907 = vst [vmem:[#allocation29_spill] sm:$0xff] %v16584_v60  ;;  %v11397_v15 = vpop.eup %11396  ;;  %9119 = vst [vmem:[%s18844_s10 + $0x908] sm:$0xff] %v11395_v9  ;;  %11416 = vpow2.f32 %v10004_v1  ;;  %v16597_v1 = vadd.f32 %v5500_v22, %v16411_v48  ;;  %v16600_v37 = vadd.f32 %v5613_v35, %v16477_v46  ;;  %v5502_v3 = vpop.f32.mrb[13].mxu0 }
 0x5ce   :  { %v11399_v33 = vpop.eup %11398  ;;  %9121 = vst [vmem:[%s18844_s10 + $0x918] sm:$0xff] %v11397_v15  ;;  %11418 = vpow2.f32 %v10003_v62  ;;  %v5615_v9 = vpop.f32.mrb[13].mxu1  ;;  %v16603_v62 = vadd.f32 %v5502_v3, %v16481_v11 }
 0x5cf   :  { %v11401_v4 = vpop.eup %11400  ;;  %v7990_v26 = vadd.f32 1.0, %v11399_v33  ;;  %11420 = vpow2.f32 %v10005_v52  ;;  %18908 = vst [vmem:[#allocation30_spill] sm:$0xff] %v16597_v1  ;;  %18909 = vst [vmem:[#allocation31_spill] sm:$0xff] %v16600_v37  ;;  %v16606_v52 = vadd.f32 %v5615_v9, %v16486_v47  ;;  %v5504_v33 = vpop.f32.mrb[14].mxu0 }
 0x5d0   :  { %v11403_v45 = vpop.eup %11402  ;;  %v7992_v20 = vadd.f32 1.0, %v11401_v4  ;;  %11422 = vpow2.f32 %v9646_v63  ;;  %v5617_v4 = vpop.f32.mrb[14].mxu1 }
 0x5d1   :  { %v11405_v60 = vpop.eup %11404  ;;  %11424 = vrcp.f32 %v7990_v26  ;;  %v7991_v15 = vadd.f32 1.0, %v11403_v45  ;;  %v5506_v1 = vpop.f32.mrb[15].mxu0  ;;  %v16609_v45 = vadd.f32 %v5504_v33, %v16411_v48  ;;  %v16612_v3 = vadd.f32 %v5617_v4, %v16477_v46 }
 0x5d2   :  { %v11407_v63 = vpop.eup %11406  ;;  %11426 = vrcp.f32 %v7992_v20  ;;  %v7993_v22 = vadd.f32 1.0, %v11405_v60  ;;  %v5619_v37 = vpop.f32.mrb[15].mxu1  ;;  %v16617_v9 = vadd.f32 %v5506_v1, %v16481_v11  ;;  %v5544_v4 = vadd.f32 %v16268_v7, %v16477_v46 }
 0x5d3   :  { %v11409_v59 = vpop.eup %11408  ;;  %11428 = vrcp.f32 %v7991_v15  ;;  %v8014_v35 = vadd.f32 1.0, %v11407_v63  ;;  %18910 = vst [vmem:[#allocation32_spill] sm:$0xff] %v16612_v3  ;;  %6353 = vmatmul.mubr.bf16.gmra.mrb[120].mxu0 %v15264_v39  ;;  %6466 = vmatmul.mubr.bf16.gmra.mrb[120].mxu1 %v15264_v39  ;;  %v16620_v15 = vadd.f32 %v5619_v37, %v16486_v47  ;;  %v16628_v1 = vpop.f32.mrb[16].mxu0 }
 0x5d4   :  { %v11411_v23 = vpop.eup %11410  ;;  %11430 = vrcp.f32 %v7993_v22  ;;  %v8016_v26 = vadd.f32 1.0, %v11409_v59  ;;  %18911 = vst [vmem:[#allocation33_spill] sm:$0xff] %v16617_v9  ;;  %6362 = vmatprep.mubr.bf16.mxu0 %v18872_v28  ;;  %6475 = vmatprep.mubr.bf16.mxu1 %v18872_v28  ;;  %v9648_v9 = vmul.f32 -1.442695, %v5544_v4  ;;  %v5550_v4 = vadd.f32 %v16295_v57, %v16486_v47 }
 0x5d5   :  { %v11413_v20 = vpop.eup %11412  ;;  %11432 = vrcp.f32 %v8014_v35  ;;  %v8015_v60 = vadd.f32 1.0, %v11411_v23  ;;  %18912 = vst [vmem:[#allocation34_spill] sm:$0xff] %v16620_v15  ;;  %v5433_v23 = vadd.f32 %v16273_v56, %v16481_v11  ;;  %v5546_v35 = vadd.f32 %v16275_v50, %v16486_v47  ;;  %v16632_v15 = vpop.f32.mrb[16].mxu1 }
 0x5d6   :  { %v11415_v59 = vpop.eup %11414  ;;  %11434 = vrcp.f32 %v8016_v26  ;;  %v8017_v33 = vadd.f32 1.0, %v11413_v20  ;;  %18913 = vst [vmem:[#allocation35_spill] sm:$0xff] %v16632_v15  ;;  %v16634_v26 = vpop.f32.mrb[17].mxu0 }
 0x5d7   :  { %v11417_v39 = vpop.eup %11416  ;;  %11436 = vrcp.f32 %v8015_v60  ;;  %v8038_v63 = vadd.f32 1.0, %v11415_v59  ;;  %18914 = vst [vmem:[#allocation36_spill] sm:$0xff] %v16634_v26  ;;  %v5435_v60 = vadd.f32 %v16286_v38, %v16411_v48  ;;  %v9647_v3 = vmul.f32 -1.442695, %v5433_v23  ;;  %v16642_v15 = vpop.f32.mrb[17].mxu1 }
 0x5d8   :  { %v11419_v37 = vpop.eup %11418  ;;  %11438 = vrcp.f32 %v8017_v33  ;;  %v8040_v22 = vadd.f32 1.0, %v11417_v39  ;;  %v5548_v33 = vadd.f32 %v16288_v27, %v16477_v46  ;;  %v5437_v26 = vadd.f32 %v16293_v43, %v16481_v11 }
 0x5d9   :  { %v11421_v20 = vpop.eup %11420  ;;  %11440 = vrcp.f32 %v8038_v63  ;;  %v8039_v7 = vadd.f32 1.0, %v11419_v37  ;;  %v9649_v38 = vmul.f32 -1.442695, %v5546_v35  ;;  %v9670_v43 = vmul.f32 -1.442695, %v5435_v60  ;;  %v16656_v37 = vpop.f32.mrb[18].mxu0 }
 0x5da   :  { %v11423_v59 = vpop.eup %11422  ;;  %11442 = vrcp.f32 %v8040_v22  ;;  %v8041_v56 = vadd.f32 1.0, %v11421_v20  ;;  %v5441_v23 = vadd.f32 %v16301_v30, %v16411_v48  ;;  %v16658_v22 = vpop.f32.mrb[18].mxu1  ;;  %v5554_v35 = vadd.f32 %v16303_v14, %v16477_v46 }
 0x5db   :  { %v11425_v39 = vpop.eup %11424  ;;  %11444 = vrcp.f32 %v8039_v7  ;;  %v7682_v50 = vadd.f32 1.0, %v11423_v59  ;;  %6363 = vmatmul.mubr.bf16.gmra.mrb[124].mxu0 %v15296_v29  ;;  %6476 = vmatmul.mubr.bf16.gmra.mrb[124].mxu1 %v15296_v29  ;;  %v9672_v29 = vmul.f32 -1.442695, %v5548_v33  ;;  %v9671_v30 = vmul.f32 -1.442695, %v5437_v26  ;;  %v16672_v60 = vpop.f32.mrb[19].mxu0 }
 0x5dc   :  { %v11427_v63 = vpop.eup %11426  ;;  %9142 = vst [vmem:[%s18844_s10 + $0x9c0] sm:$0xff] %v11425_v39  ;;  %11446 = vrcp.f32 %v8041_v56  ;;  %6372 = vmatprep.mubr.bf16.mxu0 %v18872_v28  ;;  %6485 = vmatprep.mubr.bf16.mxu1 %v18872_v28  ;;  %v5443_v7 = vadd.f32 %v16305_v36, %v16481_v11  ;;  %v16674_v59 = vpop.f32.mrb[19].mxu1  ;;  %v9673_v14 = vmul.f32 -1.442695, %v5550_v4  ;;  %v9694_v36 = vmul.f32 -1.442695, %v5441_v23 }
 0x5dd   :  { %v11429_v27 = vpop.eup %11428  ;;  %9144 = vst [vmem:[%s18844_s10 + $0x9d0] sm:$0xff] %v11427_v63  ;;  %11448 = vrcp.f32 %v7682_v50  ;;  %v9696_v39 = vmul.f32 -1.442695, %v5554_v35 }
 0x5de   :  { %v11431_v57 = vpop.eup %11430  ;;  %9143 = vst [vmem:[%s18844_s10 + $0x9c8] sm:$0xff] %v11429_v27  ;;  %11450 = vpow2.f32 %v9648_v9  ;;  %v5556_v9 = vadd.f32 %v16307_v19, %v16486_v47  ;;  %v5558_v19 = vadd.f32 %v16311_v8, %v16477_v46  ;;  %v9695_v63 = vmul.f32 -1.442695, %v5443_v7  ;;  %v16702_v27 = vpop.f32.mrb[20].mxu0 }
 0x5df   :  { %v11433_v20 = vpop.eup %11432  ;;  %9145 = vst [vmem:[%s18844_s10 + $0x9d8] sm:$0xff] %v11431_v57  ;;  %11452 = vpow2.f32 %v9647_v3  ;;  %v5445_v3 = vadd.f32 %v16309_v42, %v16411_v48  ;;  %v16711_v57 = vpop.f32.mrb[21].mxu0 }
 0x5e0   :  { %v11435_v56 = vpop.eup %11434  ;;  %9166 = vst [vmem:[%s18844_s10 + $0xa80] sm:$0xff] %v11433_v20  ;;  %11454 = vpow2.f32 %v9649_v38  ;;  %v9697_v42 = vmul.f32 -1.442695, %v5556_v9  ;;  %v16718_v20 = vpop.f32.mrb[22].mxu0 }
 0x5e1   :  { %v11437_v33 = vpop.eup %11436  ;;  %9168 = vst [vmem:[%s18844_s10 + $0xa90] sm:$0xff] %v11435_v56  ;;  %11456 = vpow2.f32 %v9670_v43  ;;  %v9718_v8 = vmul.f32 -1.442695, %v5445_v3  ;;  %v16704_v43 = vpop.f32.mrb[20].mxu1 }
 0x5e2   :  { %v11439_v26 = vpop.eup %11438  ;;  %9167 = vst [vmem:[%s18844_s10 + $0xa88] sm:$0xff] %v11437_v33  ;;  %11458 = vpow2.f32 %v9672_v29  ;;  %v16713_v29 = vpop.f32.mrb[21].mxu1 }
 0x5e3   :  { %v11441_v50 = vpop.eup %11440  ;;  %9169 = vst [vmem:[%s18844_s10 + $0xa98] sm:$0xff] %v11439_v26  ;;  %11460 = vpow2.f32 %v9671_v30  ;;  %6373 = vmatmul.mubr.bf16.gmra.mrb[128].mxu0 %v15336_v18  ;;  %6486 = vmatmul.mubr.bf16.gmra.mrb[128].mxu1 %v15336_v18  ;;  %v9720_v18 = vmul.f32 -1.442695, %v5558_v19  ;;  %v16720_v30 = vpop.f32.mrb[22].mxu1 }
 0x5e4   :  { %v11443_v38 = vpop.eup %11442  ;;  %9190 = vst [vmem:[%s18844_s10 + $0xb40] sm:$0xff] %v11441_v50  ;;  %11462 = vpow2.f32 %v9673_v14  ;;  %6382 = vmatprep.mubr.bf16.mxu0 %v18872_v28  ;;  %6495 = vmatprep.mubr.bf16.mxu1 %v18872_v28  ;;  %v16725_v56 = vpop.f32.mrb[23].mxu0 }
 0x5e5   :  { %v11445_v4 = vpop.eup %11444  ;;  %9192 = vst [vmem:[%s18844_s10 + $0xb50] sm:$0xff] %v11443_v38  ;;  %11464 = vpow2.f32 %v9694_v36  ;;  %v16727_v14 = vpop.f32.mrb[23].mxu1 }
 0x5e6   :  { %v11447_v23 = vpop.eup %11446  ;;  %9191 = vst [vmem:[%s18844_s10 + $0xb48] sm:$0xff] %v11445_v4  ;;  %11466 = vpow2.f32 %v9696_v39 }
 0x5e7   :  { %v11449_v35 = vpop.eup %11448  ;;  %9193 = vst [vmem:[%s18844_s10 + $0xb58] sm:$0xff] %v11447_v23  ;;  %11468 = vpow2.f32 %v9695_v63 }
 0x5e8   :  { %v11451_v7 = vpop.eup %11450  ;;  %8834 = vst [vmem:[%s18844_s10 + $0x20] sm:$0xff] %v11449_v35  ;;  %11470 = vpow2.f32 %v9697_v42 }
 0x5e9   :  { %v11453_v9 = vpop.eup %11452  ;;  %v7684_v33 = vadd.f32 1.0, %v11451_v7  ;;  %11472 = vpow2.f32 %v9718_v8  ;;  %v18915_v7 = vld [vmem:[#allocation7_spill] sm:$0xff] }
 0x5ea   :  { %v11455_v36 = vpop.eup %11454  ;;  %v7683_v3 = vadd.f32 1.0, %v11453_v9  ;;  %11474 = vpow2.f32 %v9720_v18  ;;  %v5447_v9 = vadd.f32 %v18915_v7, %v16481_v11  ;;  %v5566_v7 = vadd.f32 %v16343_v25, %v16486_v47 }
 0x5eb   :  { %v11457_v26 = vpop.eup %11456  ;;  %11476 = vrcp.f32 %v7684_v33  ;;  %v7685_v39 = vadd.f32 1.0, %v11455_v36  ;;  %6383 = vmatmul.mubr.bf16.gmra.mrb[132].mxu0 %v15348_v54  ;;  %6496 = vmatmul.mubr.bf16.gmra.mrb[132].mxu1 %v15348_v54  ;;  %v18916_v36 = vld [vmem:[#allocation8_spill] sm:$0xff] }
 0x5ec   :  { %v11459_v19 = vpop.eup %11458  ;;  %11478 = vrcp.f32 %v7683_v3  ;;  %v7706_v50 = vadd.f32 1.0, %v11457_v26  ;;  %6392 = vmatprep.mubr.bf16.mxu0 %v18872_v28  ;;  %6505 = vmatprep.mubr.bf16.mxu1 %v18872_v28  ;;  %v5560_v3 = vadd.f32 %v18916_v36, %v16486_v47 }
 0x5ed   :  { %v11461_v63 = vpop.eup %11460  ;;  %11480 = vrcp.f32 %v7685_v39  ;;  %v7708_v38 = vadd.f32 1.0, %v11459_v19  ;;  %v5451_v19 = vadd.f32 %v16329_v10, %v16411_v48 }
 0x5ee   :  { %v11463_v42 = vpop.eup %11462  ;;  %11482 = vrcp.f32 %v7706_v50  ;;  %v7707_v4 = vadd.f32 1.0, %v11461_v63 }
 0x5ef   :  { %v11465_v8 = vpop.eup %11464  ;;  %11484 = vrcp.f32 %v7708_v38  ;;  %v7709_v23 = vadd.f32 1.0, %v11463_v42  ;;  %v5564_v38 = vadd.f32 %v16335_v58, %v16477_v46 }
 0x5f0   :  { %v11467_v18 = vpop.eup %11466  ;;  %11486 = vrcp.f32 %v7707_v4  ;;  %v7730_v35 = vadd.f32 1.0, %v11465_v8  ;;  %v9719_v8 = vmul.f32 -1.442695, %v5447_v9 }
 0x5f1   :  { %v11469_v54 = vpop.eup %11468  ;;  %11488 = vrcp.f32 %v7709_v23  ;;  %v7732_v33 = vadd.f32 1.0, %v11467_v18  ;;  %v5453_v23 = vadd.f32 %v16337_v31, %v16481_v11  ;;  %v9742_v31 = vmul.f32 -1.442695, %v5451_v19 }
 0x5f2   :  { %v11471_v26 = vpop.eup %11470  ;;  %11490 = vrcp.f32 %v7730_v35  ;;  %v7731_v39 = vadd.f32 1.0, %v11469_v54  ;;  %v9721_v35 = vmul.f32 -1.442695, %v5560_v3  ;;  %v9744_v25 = vmul.f32 -1.442695, %v5564_v38 }
 0x5f3   :  { %v11473_v50 = vpop.eup %11472  ;;  %11492 = vrcp.f32 %v7732_v33  ;;  %v7733_v63 = vadd.f32 1.0, %v11471_v26  ;;  %6393 = vmatmul.mubr.bf16.gmra.mrb[136].mxu0 %v15356_v53  ;;  %6506 = vmatmul.mubr.bf16.gmra.mrb[136].mxu1 %v15356_v53  ;;  %v18917_v53 = vld [vmem:[#allocation9_spill] sm:$0xff]  ;;  %v18918_v33 = vld [vmem:[#allocation10_spill] sm:$0xff]  ;;  %v9743_v3 = vmul.f32 -1.442695, %v5453_v23  ;;  %v18919_v26 = vld [vmem:[#allocation11_spill] sm:$0xff] }
 0x5f4   :  { %v11475_v42 = vpop.eup %11474  ;;  %11494 = vrcp.f32 %v7731_v39  ;;  %v7754_v4 = vadd.f32 1.0, %v11473_v50  ;;  %6402 = vmatprep.mubr.bf16.mxu0 %v18872_v28  ;;  %6515 = vmatprep.mubr.bf16.mxu1 %v18872_v28  ;;  %v5455_v9 = vadd.f32 %v18917_v53, %v16411_v48  ;;  %v5568_v28 = vadd.f32 %v18918_v33, %v16477_v46  ;;  %v16774_v23 = vpop.f32.mrb[24].mxu0 }
 0x5f5   :  { %v11477_v18 = vpop.eup %11476  ;;  %11496 = vrcp.f32 %v7733_v63  ;;  %v7756_v10 = vadd.f32 1.0, %v11475_v42  ;;  %v5457_v39 = vadd.f32 %v18919_v26, %v16481_v11  ;;  %v9745_v50 = vmul.f32 -1.442695, %v5566_v7  ;;  %v18920_v63 = vld [vmem:[#allocation12_spill] sm:$0xff] }
 0x5f6   :  { %v11479_v58 = vpop.eup %11478  ;;  %8836 = vst [vmem:[%s18844_s10 + $0x30] sm:$0xff] %v11477_v18  ;;  %11498 = vrcp.f32 %v7754_v4  ;;  %v5570_v38 = vadd.f32 %v18920_v63, %v16486_v47  ;;  %v9766_v4 = vmul.f32 -1.442695, %v5455_v9  ;;  %v16776_v18 = vpop.f32.mrb[24].mxu1  ;;  %v5574_v7 = vadd.f32 %v16398_v61, %v16477_v46 }
 0x5f7   :  { %v11481_v54 = vpop.eup %11480  ;;  %8835 = vst [vmem:[%s18844_s10 + $0x28] sm:$0xff] %v11479_v58  ;;  %11500 = vrcp.f32 %v7756_v10  ;;  %v16783_v58 = vpop.f32.mrb[25].mxu0 }
 0x5f8   :  { %v11483_v36 = vpop.eup %11482  ;;  %8837 = vst [vmem:[%s18844_s10 + $0x38] sm:$0xff] %v11481_v54  ;;  %11502 = vpow2.f32 %v9719_v8  ;;  %v5461_v8 = vadd.f32 %v16396_v16, %v16411_v48  ;;  %v9767_v16 = vmul.f32 -1.442695, %v5457_v39  ;;  %v5463_v48 = vadd.f32 %v16413_v2, %v16481_v11  ;;  %v16792_v9 = vpop.f32.mrb[26].mxu0 }
 0x5f9   :  { %v11485_v19 = vpop.eup %11484  ;;  %8858 = vst [vmem:[%s18844_s10 + $0xe0] sm:$0xff] %v11483_v36  ;;  %11504 = vpow2.f32 %v9721_v35  ;;  %v9768_v35 = vmul.f32 -1.442695, %v5568_v28  ;;  %v16801_v33 = vpop.f32.mrb[27].mxu0 }
 0x5fa   :  { %v11487_v42 = vpop.eup %11486  ;;  %8860 = vst [vmem:[%s18844_s10 + $0xf0] sm:$0xff] %v11485_v19  ;;  %11506 = vpow2.f32 %v9742_v31  ;;  %v16785_v31 = vpop.f32.mrb[25].mxu1  ;;  %v9790_v36 = vmul.f32 -1.442695, %v5461_v8  ;;  %v9791_v39 = vmul.f32 -1.442695, %v5463_v48 }
 0x5fb   :  { %v11489_v10 = vpop.eup %11488  ;;  %8859 = vst [vmem:[%s18844_s10 + $0xe8] sm:$0xff] %v11487_v42  ;;  %11508 = vpow2.f32 %v9744_v25  ;;  %v16794_v54 = vpop.f32.mrb[26].mxu1  ;;  %6403 = vmatmul.mubr.bf16.gmra.mrb[140].mxu0 %v15364_v13  ;;  %6516 = vmatmul.mubr.bf16.gmra.mrb[140].mxu1 %v15364_v13  ;;  %v9769_v25 = vmul.f32 -1.442695, %v5570_v38  ;;  %v9792_v13 = vmul.f32 -1.442695, %v5574_v7 }
 0x5fc   :  { %v11491_v53 = vpop.eup %11490  ;;  %8861 = vst [vmem:[%s18844_s10 + $0xf8] sm:$0xff] %v11489_v10  ;;  %11510 = vpow2.f32 %v9743_v3  ;;  %v16803_v28 = vpop.f32.mrb[27].mxu1 }
 0x5fd   :  { %v11493_v61 = vpop.eup %11492  ;;  %8882 = vst [vmem:[%s18844_s10 + $0x1a0] sm:$0xff] %v11491_v53  ;;  %11512 = vpow2.f32 %v9745_v50  ;;  %v16820_v63 = vpop.f32.mrb[28].mxu0 }
 0x5fe   :  { %v11495_v2 = vpop.eup %11494  ;;  %8884 = vst [vmem:[%s18844_s10 + $0x1b0] sm:$0xff] %v11493_v61  ;;  %11514 = vpow2.f32 %v9766_v4  ;;  %v16822_v38 = vpop.f32.mrb[28].mxu1 }
 0x5ff   :  { %v11497_v3 = vpop.eup %11496  ;;  %8883 = vst [vmem:[%s18844_s10 + $0x1a8] sm:$0xff] %v11495_v2  ;;  %11516 = vpow2.f32 %v9768_v35  ;;  %v16824_v8 = vpop.f32.mrb[29].mxu0 }
 0x600   :  { %v11499_v26 = vpop.eup %11498  ;;  %8885 = vst [vmem:[%s18844_s10 + $0x1b8] sm:$0xff] %v11497_v3  ;;  %11518 = vpow2.f32 %v9767_v16  ;;  %v16826_v10 = vpop.f32.mrb[29].mxu1 }
 0x601   :  { %v11501_v19 = vpop.eup %11500  ;;  %8906 = vst [vmem:[%s18844_s10 + $0x260] sm:$0xff] %v11499_v26  ;;  %11520 = vpow2.f32 %v9769_v25  ;;  %v16828_v53 = vpop.f32.mrb[30].mxu0 }
 0x602   :  { %v11503_v50 = vpop.eup %11502  ;;  %8908 = vst [vmem:[%s18844_s10 + $0x270] sm:$0xff] %v11501_v19  ;;  %11522 = vpow2.f32 %v9790_v36  ;;  %18921 = vst [vmem:[#allocation7_spill] sm:$0xff] %v16828_v53  ;;  %v16839_v53 = vpop.f32.mrb[30].mxu1 }
 0x603   :  { %v11505_v42 = vpop.eup %11504  ;;  %v7755_v4 = vadd.f32 1.0, %v11503_v50  ;;  %11524 = vpow2.f32 %v9792_v13 }
 0x604   :  { %v11507_v35 = vpop.eup %11506  ;;  %v7757_v7 = vadd.f32 1.0, %v11505_v42  ;;  %11526 = vpow2.f32 %v9791_v39  ;;  %v5576_v42 = vadd.f32 %v16415_v24, %v16486_v47  ;;  %v18922_v24 = vld [vmem:[#allocation15_spill] sm:$0xff] }
 0x605   :  { %v11509_v16 = vpop.eup %11508  ;;  %11528 = vrcp.f32 %v7755_v4  ;;  %v7778_v48 = vadd.f32 1.0, %v11507_v35 }
 0x606   :  { %v11511_v61 = vpop.eup %11510  ;;  %11530 = vrcp.f32 %v7757_v7  ;;  %v7780_v25 = vadd.f32 1.0, %v11509_v16 }
 0x607   :  { %v11513_v2 = vpop.eup %11512  ;;  %11532 = vrcp.f32 %v7778_v48  ;;  %v7779_v36 = vadd.f32 1.0, %v11511_v61  ;;  %v5578_v48 = vadd.f32 %v16421_v21, %v16477_v46 }
 0x608   :  { %v11515_v3 = vpop.eup %11514  ;;  %11534 = vrcp.f32 %v7780_v25  ;;  %v7781_v13 = vadd.f32 1.0, %v11513_v2  ;;  %v5467_v2 = vadd.f32 %v16430_v5, %v16481_v11 }
 0x609   :  { %v11517_v26 = vpop.eup %11516  ;;  %11536 = vrcp.f32 %v7779_v36  ;;  %v7802_v19 = vadd.f32 1.0, %v11515_v3  ;;  %v9816_v5 = vmul.f32 -1.442695, %v5578_v48 }
 0x60a   :  { %v11519_v50 = vpop.eup %11518  ;;  %11538 = vrcp.f32 %v7781_v13  ;;  %v7804_v39 = vadd.f32 1.0, %v11517_v26  ;;  %v9793_v13 = vmul.f32 -1.442695, %v5576_v42  ;;  %v5580_v26 = vadd.f32 %v18922_v24, %v16486_v47  ;;  %v16853_v24 = vpop.f32.mrb[31].mxu1 }
 0x60b   :  { %v11521_v4 = vpop.eup %11520  ;;  %11540 = vrcp.f32 %v7802_v19  ;;  %v7803_v35 = vadd.f32 1.0, %v11519_v50 }
 0x60c   :  { %v11523_v7 = vpop.eup %11522  ;;  %11542 = vrcp.f32 %v7804_v39  ;;  %v7805_v16 = vadd.f32 1.0, %v11521_v4  ;;  %v18923_v39 = vld [vmem:[#allocation14_spill] sm:$0xff]  ;;  %v9817_v48 = vmul.f32 -1.442695, %v5580_v26 }
 0x60d   :  { %v11525_v61 = vpop.eup %11524  ;;  %11544 = vrcp.f32 %v7803_v35  ;;  %v7826_v25 = vadd.f32 1.0, %v11523_v7  ;;  %v9814_v4 = vmul.f32 -1.442695, %v18923_v39  ;;  %v18924_v35 = vld [vmem:[#allocation16_spill] sm:$0xff] }
 0x60e   :  { %v11527_v36 = vpop.eup %11526  ;;  %11546 = vrcp.f32 %v7805_v16  ;;  %v7828_v3 = vadd.f32 1.0, %v11525_v61  ;;  %v5584_v42 = vadd.f32 %v18924_v35, %v16477_v46  ;;  %v9815_v16 = vmul.f32 -1.442695, %v5467_v2  ;;  %v18925_v61 = vld [vmem:[#allocation18_spill] sm:$0xff]  ;;  %v18927_v2 = vld [vmem:[#allocation17_spill] sm:$0xff] }
 0x60f   :  { %v11529_v19 = vpop.eup %11528  ;;  %11548 = vrcp.f32 %v7826_v25  ;;  %v7827_v50 = vadd.f32 1.0, %v11527_v36  ;;  %v5473_v25 = vadd.f32 %v18925_v61, %v16481_v11  ;;  %v16851_v36 = vpop.f32.mrb[31].mxu0 }
 0x610   :  { %v11531_v21 = vpop.eup %11530  ;;  %8907 = vst [vmem:[%s18844_s10 + $0x268] sm:$0xff] %v11529_v19  ;;  %11550 = vrcp.f32 %v7828_v3  ;;  %v18926_v3 = vld [vmem:[#allocation19_spill] sm:$0xff] }
 0x611   :  { %v11533_v7 = vpop.eup %11532  ;;  %8909 = vst [vmem:[%s18844_s10 + $0x278] sm:$0xff] %v11531_v21  ;;  %11552 = vrcp.f32 %v7827_v50  ;;  %v5586_v39 = vadd.f32 %v18926_v3, %v16486_v47  ;;  %v9838_v50 = vmul.f32 -1.442695, %v18927_v2 }
 0x612   :  { %v11535_v19 = vpop.eup %11534  ;;  %8930 = vst [vmem:[%s18844_s10 + $0x320] sm:$0xff] %v11533_v7  ;;  %11554 = vpow2.f32 %v9793_v13  ;;  %v9840_v7 = vmul.f32 -1.442695, %v5584_v42  ;;  %v18928_v13 = vld [vmem:[#allocation20_spill] sm:$0xff]  ;;  %v18930_v42 = vld [vmem:[#allocation25_spill] sm:$0xff] }
 0x613   :  { %v11537_v21 = vpop.eup %11536  ;;  %8932 = vst [vmem:[%s18844_s10 + $0x330] sm:$0xff] %v11535_v19  ;;  %11556 = vpow2.f32 %v9814_v4  ;;  %v5588_v26 = vadd.f32 %v18928_v13, %v16477_v46  ;;  %v9839_v19 = vmul.f32 -1.442695, %v5473_v25  ;;  %v18929_v4 = vld [vmem:[#allocation23_spill] sm:$0xff]  ;;  %v5590_v46 = vadd.f32 %v18930_v42, %v16486_v47 }
 0x614   :  { %v11539_v35 = vpop.eup %11538  ;;  %8931 = vst [vmem:[%s18844_s10 + $0x328] sm:$0xff] %v11537_v21  ;;  %11558 = vpow2.f32 %v9816_v5  ;;  %v5477_v3 = vadd.f32 %v18929_v4, %v16481_v11  ;;  %v9841_v5 = vmul.f32 -1.442695, %v5586_v39  ;;  %v16885_v11 = vpop.f32.mrb[32].mxu1 }
 0x615   :  { %v11541_v61 = vpop.eup %11540  ;;  %8933 = vst [vmem:[%s18844_s10 + $0x338] sm:$0xff] %v11539_v35  ;;  %11560 = vpow2.f32 %v9815_v16  ;;  %v18931_v16 = vld [vmem:[#allocation26_spill] sm:$0xff]  ;;  %v16883_v35 = vpop.f32.mrb[32].mxu0 }
 0x616   :  { %v11543_v2 = vpop.eup %11542  ;;  %8954 = vst [vmem:[%s18844_s10 + $0x3e0] sm:$0xff] %v11541_v61  ;;  %11562 = vpow2.f32 %v9817_v48  ;;  %v9862_v25 = vmul.f32 -1.442695, %v18931_v16  ;;  %v9864_v48 = vmul.f32 -1.442695, %v5588_v26  ;;  %v16890_v47 = vpop.f32.mrb[33].mxu0 }
 0x617   :  { %v11545_v21 = vpop.eup %11544  ;;  %8956 = vst [vmem:[%s18844_s10 + $0x3f0] sm:$0xff] %v11543_v2  ;;  %11564 = vpow2.f32 %v9838_v50  ;;  %v16892_v39 = vpop.f32.mrb[33].mxu1  ;;  %v9863_v50 = vmul.f32 -1.442695, %v5477_v3 }
 0x618   :  { %v11547_v13 = vpop.eup %11546  ;;  %8955 = vst [vmem:[%s18844_s10 + $0x3e8] sm:$0xff] %v11545_v21  ;;  %11566 = vpow2.f32 %v9840_v7  ;;  %18932 = vst [vmem:[#allocation8_spill] sm:$0xff] %v16892_v39  ;;  %v16897_v4 = vpop.f32.mrb[34].mxu0  ;;  %v9865_v7 = vmul.f32 -1.442695, %v5590_v46 }
 0x619   :  { %v11549_v61 = vpop.eup %11548  ;;  %8957 = vst [vmem:[%s18844_s10 + $0x3f8] sm:$0xff] %v11547_v13  ;;  %11568 = vpow2.f32 %v9839_v19  ;;  %18933 = vst [vmem:[#allocation9_spill] sm:$0xff] %v16897_v4  ;;  %v16899_v2 = vpop.f32.mrb[34].mxu1 }
 0x61a   :  { %18934 = vst [vmem:[#allocation10_spill] sm:$0xff] %v16899_v2  ;;  %v11551_v42 = vpop.eup %11550  ;;  %8978 = vst [vmem:[%s18844_s10 + $0x4a0] sm:$0xff] %v11549_v61  ;;  %11570 = vpow2.f32 %v9841_v5  ;;  %v16904_v26 = vpop.f32.mrb[35].mxu0 }
 0x61b   :  { %18935 = vst [vmem:[#allocation11_spill] sm:$0xff] %v16904_v26  ;;  %v16906_v21 = vpop.f32.mrb[35].mxu1  ;;  %v11553_v16 = vpop.eup %11552  ;;  %8980 = vst [vmem:[%s18844_s10 + $0x4b0] sm:$0xff] %v11551_v42  ;;  %11572 = vpow2.f32 %v9862_v25 }
 0x61c   :  { %18936 = vst [vmem:[#allocation12_spill] sm:$0xff] %v16906_v21  ;;  %v11555_v19 = vpop.eup %11554  ;;  %8979 = vst [vmem:[%s18844_s10 + $0x4a8] sm:$0xff] %v11553_v16  ;;  %11574 = vpow2.f32 %v9864_v48  ;;  %v16914_v26 = vpop.f32.mrb[36].mxu0 }
 0x61d   :  { %v11557_v3 = vpop.eup %11556  ;;  %v7829_v13 = vadd.f32 1.0, %v11555_v19  ;;  %11576 = vpow2.f32 %v9863_v50  ;;  %18937 = vst [vmem:[#allocation15_spill] sm:$0xff] %v16914_v26  ;;  %v16916_v2 = vpop.f32.mrb[36].mxu1 }
 0x61e   :  { %v11559_v5 = vpop.eup %11558  ;;  %v7850_v46 = vadd.f32 1.0, %v11557_v3  ;;  %11578 = vpow2.f32 %v9865_v7  ;;  %18938 = vst [vmem:[#allocation14_spill] sm:$0xff] %v16916_v2 }
 0x61f   :  { %v11561_v61 = vpop.eup %11560  ;;  %11580 = vrcp.f32 %v7829_v13  ;;  %v7852_v21 = vadd.f32 1.0, %v11559_v5 }
 0x620   :  { %v11563_v25 = vpop.eup %11562  ;;  %11582 = vrcp.f32 %v7850_v46  ;;  %v7851_v42 = vadd.f32 1.0, %v11561_v61 }
 0x621   :  { %v11565_v4 = vpop.eup %11564  ;;  %11584 = vrcp.f32 %v7852_v21  ;;  %v7853_v16 = vadd.f32 1.0, %v11563_v25 }
 0x622   :  { %v11567_v48 = vpop.eup %11566  ;;  %11586 = vrcp.f32 %v7851_v42  ;;  %v7874_v19 = vadd.f32 1.0, %v11565_v4  ;;  %v9886_v4 = vmul.f32 -1.442695, %v16490_v34  ;;  %v9889_v34 = vmul.f32 -1.442695, %v16503_v41 }
 0x623   :  { %v11569_v50 = vpop.eup %11568  ;;  %11588 = vrcp.f32 %v7853_v16  ;;  %v7876_v3 = vadd.f32 1.0, %v11567_v48  ;;  %v9888_v48 = vmul.f32 -1.442695, %v16493_v49  ;;  %v9912_v41 = vmul.f32 -1.442695, %v16513_v51 }
 0x624   :  { %v11571_v7 = vpop.eup %11570  ;;  %11590 = vrcp.f32 %v7874_v19  ;;  %v7875_v13 = vadd.f32 1.0, %v11569_v50  ;;  %v9887_v50 = vmul.f32 -1.442695, %v16496_v0  ;;  %v9913_v51 = vmul.f32 -1.442695, %v16529_v6 }
 0x625   :  { %v11573_v5 = vpop.eup %11572  ;;  %11592 = vrcp.f32 %v7876_v3  ;;  %v7877_v26 = vadd.f32 1.0, %v11571_v7  ;;  %v18939_v3 = vld [vmem:[#allocation27_spill] sm:$0xff]  ;;  %v9935_v6 = vmul.f32 -1.442695, %v16558_v17 }
 0x626   :  { %v11575_v39 = vpop.eup %11574  ;;  %11594 = vrcp.f32 %v7875_v13  ;;  %v7898_v2 = vadd.f32 1.0, %v11573_v5  ;;  %v9910_v0 = vmul.f32 -1.442695, %v18939_v3 }
 0x627   :  { %v11577_v46 = vpop.eup %11576  ;;  %11596 = vrcp.f32 %v7877_v26  ;;  %v7900_v61 = vadd.f32 1.0, %v11575_v39  ;;  %v16924_v26 = vpop.f32.mrb[37].mxu0 }
 0x628   :  { %v11579_v21 = vpop.eup %11578  ;;  %11598 = vrcp.f32 %v7898_v2  ;;  %v7899_v25 = vadd.f32 1.0, %v11577_v46  ;;  %v16926_v39 = vpop.f32.mrb[37].mxu1 }
 0x629   :  { %v11581_v42 = vpop.eup %11580  ;;  %11600 = vrcp.f32 %v7900_v61  ;;  %v7901_v16 = vadd.f32 1.0, %v11579_v21  ;;  %v16936_v7 = vpop.f32.mrb[38].mxu0  ;;  %v9911_v61 = vmul.f32 -1.442695, %v16520_v44  ;;  %v9934_v44 = vmul.f32 -1.442695, %v16548_v55 }
 0x62a   :  { %v11583_v19 = vpop.eup %11582  ;;  %8981 = vst [vmem:[%s18844_s10 + $0x4b8] sm:$0xff] %v11581_v42  ;;  %11602 = vrcp.f32 %v7899_v25  ;;  %v16938_v13 = vpop.f32.mrb[38].mxu1  ;;  %v9937_v55 = vmul.f32 -1.442695, %v16561_v40 }
 0x62b   :  { %v11585_v2 = vpop.eup %11584  ;;  %9002 = vst [vmem:[%s18844_s10 + $0x560] sm:$0xff] %v11583_v19  ;;  %11604 = vrcp.f32 %v7901_v16  ;;  %v16948_v21 = vpop.f32.mrb[39].mxu0 }
 0x62c   :  { %v11587_v49 = vpop.eup %11586  ;;  %9004 = vst [vmem:[%s18844_s10 + $0x570] sm:$0xff] %v11585_v2  ;;  %11606 = vpow2.f32 %v9886_v4  ;;  %v16950_v25 = vpop.f32.mrb[39].mxu1 }
 0x62d   :  { %v11589_v5 = vpop.eup %11588  ;;  %9003 = vst [vmem:[%s18844_s10 + $0x568] sm:$0xff] %v11587_v49  ;;  %11608 = vpow2.f32 %v9888_v48  ;;  %v9936_v48 = vmul.f32 -1.442695, %v16551_v12  ;;  %v9958_v12 = vmul.f32 -1.442695, %v16568_v32  ;;  %v16978_v49 = vpop.f32.mrb[40].mxu1 }
 0x62e   :  { %v11591_v46 = vpop.eup %11590  ;;  %9005 = vst [vmem:[%s18844_s10 + $0x578] sm:$0xff] %v11589_v5  ;;  %11610 = vpow2.f32 %v9887_v50  ;;  %v16985_v40 = vpop.f32.mrb[41].mxu1 }
 0x62f   :  { %v11593_v4 = vpop.eup %11592  ;;  %9026 = vst [vmem:[%s18844_s10 + $0x620] sm:$0xff] %v11591_v46  ;;  %11612 = vpow2.f32 %v9889_v34  ;;  %v16976_v34 = vpop.f32.mrb[40].mxu0 }
 0x630   :  { %v11595_v42 = vpop.eup %11594  ;;  %9028 = vst [vmem:[%s18844_s10 + $0x630] sm:$0xff] %v11593_v4  ;;  %11614 = vpow2.f32 %v9910_v0  ;;  %v16983_v3 = vpop.f32.mrb[41].mxu0 }
 0x631   :  { %v11597_v16 = vpop.eup %11596  ;;  %9027 = vst [vmem:[%s18844_s10 + $0x628] sm:$0xff] %v11595_v42  ;;  %11616 = vpow2.f32 %v9912_v41  ;;  %v16990_v32 = vpop.f32.mrb[42].mxu0 }
 0x632   :  { %v11599_v19 = vpop.eup %11598  ;;  %9029 = vst [vmem:[%s18844_s10 + $0x638] sm:$0xff] %v11597_v16  ;;  %11618 = vpow2.f32 %v9911_v61  ;;  %v16992_v5 = vpop.f32.mrb[42].mxu1 }
 0x633   :  { %v11601_v50 = vpop.eup %11600  ;;  %9050 = vst [vmem:[%s18844_s10 + $0x6e0] sm:$0xff] %v11599_v19  ;;  %11620 = vpow2.f32 %v9913_v51  ;;  %v16994_v61 = vpop.f32.mrb[43].mxu0 }
 0x634   :  { %v11603_v2 = vpop.eup %11602  ;;  %9052 = vst [vmem:[%s18844_s10 + $0x6f0] sm:$0xff] %v11601_v50  ;;  %11622 = vpow2.f32 %v9934_v44  ;;  %18940 = vst [vmem:[#allocation16_spill] sm:$0xff] %v16994_v61 }
 0x635   :  { %v11605_v17 = vpop.eup %11604  ;;  %9051 = vst [vmem:[%s18844_s10 + $0x6e8] sm:$0xff] %v11603_v2  ;;  %11624 = vpow2.f32 %v9936_v48 }
 0x636   :  { %v11607_v0 = vpop.eup %11606  ;;  %9053 = vst [vmem:[%s18844_s10 + $0x6f8] sm:$0xff] %v11605_v17  ;;  %11626 = vpow2.f32 %v9935_v6 }
 0x637   :  { %v11609_v41 = vpop.eup %11608  ;;  %v7922_v46 = vadd.f32 1.0, %v11607_v0  ;;  %11628 = vpow2.f32 %v9937_v55 }
 0x638   :  { %v11611_v4 = vpop.eup %11610  ;;  %v7924_v51 = vadd.f32 1.0, %v11609_v41  ;;  %11630 = vpow2.f32 %v9958_v12 }
 0x639   :  { %v11613_v42 = vpop.eup %11612  ;;  %11632 = vrcp.f32 %v7922_v46  ;;  %v7923_v44 = vadd.f32 1.0, %v11611_v4 }
 0x63a   :  { %v11615_v16 = vpop.eup %11614  ;;  %11634 = vrcp.f32 %v7924_v51  ;;  %v7925_v48 = vadd.f32 1.0, %v11613_v42 }
 0x63b   :  { %v11617_v19 = vpop.eup %11616  ;;  %11636 = vrcp.f32 %v7923_v44  ;;  %v7946_v6 = vadd.f32 1.0, %v11615_v16 }
 0x63c   :  { %v11619_v50 = vpop.eup %11618  ;;  %11638 = vrcp.f32 %v7925_v48  ;;  %v7948_v2 = vadd.f32 1.0, %v11617_v19  ;;  %v18941_v48 = vld [vmem:[#allocation2_spill] sm:$0xff] }
 0x63d   :  { %v11621_v17 = vpop.eup %11620  ;;  %11640 = vrcp.f32 %v7946_v6  ;;  %v7947_v55 = vadd.f32 1.0, %v11619_v50  ;;  %v9960_v19 = vmul.f32 -1.442695, %v18941_v48  ;;  %v17000_v6 = vld [vmem:[%s18843_s9 + $0x8] sm:$0xff] }
 0x63e   :  { %v11623_v0 = vpop.eup %11622  ;;  %11642 = vrcp.f32 %v7948_v2  ;;  %v7949_v61 = vadd.f32 1.0, %v11621_v17  ;;  %v18942_v17 = vld [vmem:[#allocation28_spill] sm:$0xff] }
 0x63f   :  { %v11625_v41 = vpop.eup %11624  ;;  %11644 = vrcp.f32 %v7947_v55  ;;  %v7970_v12 = vadd.f32 1.0, %v11623_v0  ;;  %v9959_v55 = vmul.f32 -1.442695, %v18942_v17  ;;  %v18947_v17 = vld [vmem:[#allocation4_spill] sm:$0xff] }
 0x640   :  { %v11627_v46 = vpop.eup %11626  ;;  %11646 = vrcp.f32 %v7949_v61  ;;  %v7972_v4 = vadd.f32 1.0, %v11625_v41  ;;  %v17003_v61 = vpop.f32.mrb[43].mxu1  ;;  %v18943_v41 = vld [vmem:[#allocation29_spill] sm:$0xff] }
 0x641   :  { %v11629_v51 = vpop.eup %11628  ;;  %11648 = vrcp.f32 %v7970_v12  ;;  %v7971_v42 = vadd.f32 1.0, %v11627_v46  ;;  %v9961_v12 = vmul.f32 -1.442695, %v18943_v41  ;;  %v17023_v41 = vrot.slane %v17000_v6, %v18947_v17 }
 0x642   :  { %v11631_v44 = vpop.eup %11630  ;;  %11650 = vrcp.f32 %v7972_v4  ;;  %v7973_v16 = vadd.f32 1.0, %v11629_v51  ;;  %v18944_v4 = vld [vmem:[#allocation30_spill] sm:$0xff] }
 0x643   :  { %v11633_v50 = vpop.eup %11632  ;;  %11652 = vrcp.f32 %v7971_v42  ;;  %v7994_v2 = vadd.f32 1.0, %v11631_v44  ;;  %v9982_v51 = vmul.f32 -1.442695, %v18944_v4  ;;  %v18945_v42 = vld [vmem:[#allocation3_spill] sm:$0xff] }
 0x644   :  { %v11635_v0 = vpop.eup %11634  ;;  %9074 = vst [vmem:[%s18844_s10 + $0x7a0] sm:$0xff] %v11633_v50  ;;  %11654 = vrcp.f32 %v7973_v16  ;;  %v17015_v44 = vrot.slane %v17000_v6, %v18945_v42  ;;  %v18946_v16 = vld [vmem:[#allocation31_spill] sm:$0xff]  ;;  %v18954_v42 = vld [vmem:[#allocation33_spill] sm:$0xff] }
 0x645   :  { %v11637_v46 = vpop.eup %11636  ;;  %9076 = vst [vmem:[%s18844_s10 + $0x7b0] sm:$0xff] %v11635_v0  ;;  %11656 = vrcp.f32 %v7994_v2  ;;  %v9984_v50 = vmul.f32 -1.442695, %v18946_v16  ;;  %v9983_v2 = vmul.f32 -1.442695, %v16603_v62  ;;  %v17039_v62 = vpop.f32.mrb[44].mxu0 }
 0x646   :  { %v11639_v48 = vpop.eup %11638  ;;  %9075 = vst [vmem:[%s18844_s10 + $0x7a8] sm:$0xff] %v11637_v46  ;;  %11658 = vpow2.f32 %v9960_v19  ;;  %v9985_v19 = vmul.f32 -1.442695, %v16606_v52  ;;  %v10006_v16 = vmul.f32 -1.442695, %v16609_v45  ;;  %18948 = vst [vmem:[#allocation18_spill] sm:$0xff] %v17039_v62 }
 0x647   :  { %v11641_v0 = vpop.eup %11640  ;;  %9077 = vst [vmem:[%s18844_s10 + $0x7b8] sm:$0xff] %v11639_v48  ;;  %11660 = vpow2.f32 %v9959_v55  ;;  %v5657_v55 = vadd.f32 %v16628_v1, %v17015_v44  ;;  %v17041_v48 = vpop.f32.mrb[44].mxu1  ;;  %v18950_v52 = vld [vmem:[#allocation32_spill] sm:$0xff] }
 0x648   :  { %v11643_v4 = vpop.eup %11642  ;;  %9098 = vst [vmem:[%s18844_s10 + $0x860] sm:$0xff] %v11641_v0  ;;  %11662 = vpow2.f32 %v9961_v12  ;;  %18949 = vst [vmem:[#allocation19_spill] sm:$0xff] %v17041_v48  ;;  %v10008_v12 = vmul.f32 -1.442695, %v18950_v52  ;;  %v18951_v0 = vld [vmem:[#allocation35_spill] sm:$0xff]  ;;  %v17051_v45 = vpop.f32.mrb[45].mxu1 }
 0x649   :  { %v11645_v46 = vpop.eup %11644  ;;  %9100 = vst [vmem:[%s18844_s10 + $0x870] sm:$0xff] %v11643_v4  ;;  %11664 = vpow2.f32 %v9982_v51  ;;  %v5770_v51 = vadd.f32 %v18951_v0, %v17023_v41  ;;  %v17049_v4 = vpop.f32.mrb[45].mxu0  ;;  %18953 = vst [vmem:[#allocation20_spill] sm:$0xff] %v17051_v45  ;;  %v10007_v48 = vmul.f32 -1.442695, %v18954_v42  ;;  %v18957_v52 = vld [vmem:[#allocation34_spill] sm:$0xff] }
 0x64a   :  { %v11647_v17 = vpop.eup %11646  ;;  %9099 = vst [vmem:[%s18844_s10 + $0x868] sm:$0xff] %v11645_v46  ;;  %11666 = vpow2.f32 %v9984_v50  ;;  %18952 = vst [vmem:[#allocation17_spill] sm:$0xff] %v17049_v4  ;;  %v17057_v62 = vpop.f32.mrb[46].mxu0  ;;  %v10009_v0 = vmul.f32 -1.442695, %v18957_v52 }
 0x64b   :  { %v11649_v1 = vpop.eup %11648  ;;  %9101 = vst [vmem:[%s18844_s10 + $0x878] sm:$0xff] %v11647_v17  ;;  %11668 = vpow2.f32 %v9983_v2  ;;  %18955 = vst [vmem:[#allocation23_spill] sm:$0xff] %v17057_v62  ;;  %v17059_v50 = vpop.f32.mrb[46].mxu1  ;;  %v9650_v42 = vmul.f32 -1.442695, %v5657_v55 }
 0x64c   :  { %18956 = vst [vmem:[#allocation25_spill] sm:$0xff] %v17059_v50  ;;  %v11651_v46 = vpop.eup %11650  ;;  %9122 = vst [vmem:[%s18844_s10 + $0x920] sm:$0xff] %v11649_v1  ;;  %11670 = vpow2.f32 %v9985_v19  ;;  %v17065_v45 = vpop.f32.mrb[47].mxu0  ;;  %v9652_v19 = vmul.f32 -1.442695, %v5770_v51 }
 0x64d   :  { %18958 = vst [vmem:[#allocation26_spill] sm:$0xff] %v17065_v45  ;;  %v17067_v4 = vpop.f32.mrb[47].mxu1  ;;  %v11653_v17 = vpop.eup %11652  ;;  %9124 = vst [vmem:[%s18844_s10 + $0x930] sm:$0xff] %v11651_v46  ;;  %11672 = vpow2.f32 %v10006_v16 }
 0x64e   :  { %18959 = vst [vmem:[#allocation27_spill] sm:$0xff] %v17067_v4  ;;  %v11655_v2 = vpop.eup %11654  ;;  %9123 = vst [vmem:[%s18844_s10 + $0x928] sm:$0xff] %v11653_v17  ;;  %11674 = vpow2.f32 %v10008_v12  ;;  %v17081_v46 = vpop.f32.mrb[48].mxu0 }
 0x64f   :  { %v11657_v1 = vpop.eup %11656  ;;  %9125 = vst [vmem:[%s18844_s10 + $0x938] sm:$0xff] %v11655_v2  ;;  %11676 = vpow2.f32 %v10007_v48  ;;  %18960 = vst [vmem:[#allocation2_spill] sm:$0xff] %v17081_v46  ;;  %v17083_v17 = vpop.f32.mrb[48].mxu1  ;;  %v18965_v46 = vld [vmem:[#allocation6_spill] sm:$0xff] }
 0x650   :  { %v11659_v52 = vpop.eup %11658  ;;  %9146 = vst [vmem:[%s18844_s10 + $0x9e0] sm:$0xff] %v11657_v1  ;;  %11678 = vpow2.f32 %v10009_v0  ;;  %18961 = vst [vmem:[#allocation28_spill] sm:$0xff] %v17083_v17  ;;  %v17085_v4 = vpop.f32.mrb[49].mxu0  ;;  %v18964_v1 = vld [vmem:[#allocation5_spill] sm:$0xff] }
 0x651   :  { %v11661_v16 = vpop.eup %11660  ;;  %v7996_v55 = vadd.f32 1.0, %v11659_v52  ;;  %11680 = vpow2.f32 %v9650_v42  ;;  %18962 = vst [vmem:[#allocation29_spill] sm:$0xff] %v17085_v4  ;;  %v17087_v2 = vpop.f32.mrb[49].mxu1  ;;  %v17091_v42 = vrot.slane %v17000_v6, %v18964_v1 }
 0x652   :  { %v11663_v12 = vpop.eup %11662  ;;  %v7995_v51 = vadd.f32 1.0, %v11661_v16  ;;  %11682 = vpow2.f32 %v9652_v19  ;;  %18963 = vst [vmem:[#allocation30_spill] sm:$0xff] %v17087_v2  ;;  %v17095_v19 = vrot.slane %v17000_v6, %v18965_v46 }
 0x653   :  { %v11665_v48 = vpop.eup %11664  ;;  %11684 = vrcp.f32 %v7996_v55  ;;  %v7997_v45 = vadd.f32 1.0, %v11663_v12 }
 0x654   :  { %v11667_v50 = vpop.eup %11666  ;;  %11686 = vrcp.f32 %v7995_v51  ;;  %v8018_v0 = vadd.f32 1.0, %v11665_v48  ;;  %v18966_v48 = vld [vmem:[#allocation36_spill] sm:$0xff] }
 0x655   :  { %v11669_v52 = vpop.eup %11668  ;;  %11688 = vrcp.f32 %v7997_v45  ;;  %v8020_v17 = vadd.f32 1.0, %v11667_v50  ;;  %v5659_v1 = vadd.f32 %v18966_v48, %v17091_v42  ;;  %v5772_v50 = vadd.f32 %v16642_v15, %v17095_v19 }
 0x656   :  { %v11671_v16 = vpop.eup %11670  ;;  %11690 = vrcp.f32 %v8018_v0  ;;  %v8019_v2 = vadd.f32 1.0, %v11669_v52  ;;  %v5661_v0 = vadd.f32 %v16656_v37, %v17015_v44  ;;  %v5776_v37 = vadd.f32 %v16674_v59, %v17095_v19 }
 0x657   :  { %v11673_v4 = vpop.eup %11672  ;;  %11692 = vrcp.f32 %v8020_v17  ;;  %v8021_v55 = vadd.f32 1.0, %v11671_v16 }
 0x658   :  { %v11675_v12 = vpop.eup %11674  ;;  %11694 = vrcp.f32 %v8019_v2  ;;  %v8042_v51 = vadd.f32 1.0, %v11673_v4  ;;  %v5774_v4 = vadd.f32 %v16658_v22, %v17023_v41  ;;  %v9674_v22 = vmul.f32 -1.442695, %v5661_v0 }
 0x659   :  { %v11677_v62 = vpop.eup %11676  ;;  %11696 = vrcp.f32 %v8021_v55  ;;  %v8044_v45 = vadd.f32 1.0, %v11675_v12  ;;  %v9651_v55 = vmul.f32 -1.442695, %v5659_v1  ;;  %v5663_v12 = vadd.f32 %v16672_v60, %v17091_v42  ;;  %v17114_v1 = vpop.f32.mrb[50].mxu0 }
 0x65a   :  { %v11679_v6 = vpop.eup %11678  ;;  %11698 = vrcp.f32 %v8042_v51  ;;  %v8043_v46 = vadd.f32 1.0, %v11677_v62  ;;  %v9653_v62 = vmul.f32 -1.442695, %v5772_v50  ;;  %v17116_v60 = vpop.f32.mrb[50].mxu1  ;;  %v9676_v59 = vmul.f32 -1.442695, %v5774_v4 }
 0x65b   :  { %v11681_v17 = vpop.eup %11680  ;;  %11700 = vrcp.f32 %v8044_v45  ;;  %v8045_v52 = vadd.f32 1.0, %v11679_v6  ;;  %v5780_v50 = vadd.f32 %v16704_v43, %v17023_v41  ;;  %v5669_v0 = vadd.f32 %v16711_v57, %v17091_v42 }
 0x65c   :  { %v11683_v2 = vpop.eup %11682  ;;  %11702 = vrcp.f32 %v8043_v46  ;;  %v7686_v16 = vadd.f32 1.0, %v11681_v17  ;;  %v5667_v46 = vadd.f32 %v16702_v27, %v17015_v44  ;;  %v9675_v27 = vmul.f32 -1.442695, %v5663_v12  ;;  %v17128_v17 = vpop.f32.mrb[51].mxu0 }
 0x65d   :  { %v11685_v15 = vpop.eup %11684  ;;  %11704 = vrcp.f32 %v8045_v52  ;;  %v7688_v51 = vadd.f32 1.0, %v11683_v2  ;;  %v17130_v52 = vpop.f32.mrb[51].mxu1  ;;  %v9677_v43 = vmul.f32 -1.442695, %v5776_v37  ;;  %v5782_v4 = vadd.f32 %v16713_v29, %v17095_v19 }
 0x65e   :  { %v11687_v48 = vpop.eup %11686  ;;  %9148 = vst [vmem:[%s18844_s10 + $0x9f0] sm:$0xff] %v11685_v15  ;;  %11706 = vrcp.f32 %v7686_v16  ;;  %v9698_v57 = vmul.f32 -1.442695, %v5667_v46  ;;  %v9700_v15 = vmul.f32 -1.442695, %v5780_v50  ;;  %v5784_v29 = vadd.f32 %v16720_v30, %v17023_v41  ;;  %v17158_v46 = vpop.f32.mrb[52].mxu0 }
 0x65f   :  { %v11689_v45 = vpop.eup %11688  ;;  %9147 = vst [vmem:[%s18844_s10 + $0x9e8] sm:$0xff] %v11687_v48  ;;  %11708 = vrcp.f32 %v7688_v51  ;;  %v9701_v48 = vmul.f32 -1.442695, %v5782_v4  ;;  %v17165_v50 = vpop.f32.mrb[53].mxu0 }
 0x660   :  { %v11691_v6 = vpop.eup %11690  ;;  %9149 = vst [vmem:[%s18844_s10 + $0x9f8] sm:$0xff] %v11689_v45  ;;  %11710 = vpow2.f32 %v9651_v55  ;;  %v5671_v55 = vadd.f32 %v16718_v20, %v17015_v44  ;;  %v5673_v20 = vadd.f32 %v16725_v56, %v17091_v42  ;;  %v17160_v45 = vpop.f32.mrb[52].mxu1  ;;  %v9724_v56 = vmul.f32 -1.442695, %v5784_v29 }
 0x661   :  { %v11693_v2 = vpop.eup %11692  ;;  %9170 = vst [vmem:[%s18844_s10 + $0xaa0] sm:$0xff] %v11691_v6  ;;  %11712 = vpow2.f32 %v9653_v62  ;;  %v9699_v62 = vmul.f32 -1.442695, %v5669_v0  ;;  %v17167_v6 = vpop.f32.mrb[53].mxu1 }
 0x662   :  { %v11695_v16 = vpop.eup %11694  ;;  %9172 = vst [vmem:[%s18844_s10 + $0xab0] sm:$0xff] %v11693_v2  ;;  %11714 = vpow2.f32 %v9674_v22  ;;  %v9722_v30 = vmul.f32 -1.442695, %v5671_v55  ;;  %v9723_v0 = vmul.f32 -1.442695, %v5673_v20  ;;  %v17172_v2 = vpop.f32.mrb[54].mxu0 }
 0x663   :  { %v11697_v12 = vpop.eup %11696  ;;  %9171 = vst [vmem:[%s18844_s10 + $0xaa8] sm:$0xff] %v11695_v16  ;;  %11716 = vpow2.f32 %v9676_v59  ;;  %v17179_v16 = vpop.f32.mrb[55].mxu0 }
 0x664   :  { %v11699_v51 = vpop.eup %11698  ;;  %9173 = vst [vmem:[%s18844_s10 + $0xab8] sm:$0xff] %v11697_v12  ;;  %11718 = vpow2.f32 %v9675_v27 }
 0x665   :  { %v11701_v37 = vpop.eup %11700  ;;  %9194 = vst [vmem:[%s18844_s10 + $0xb60] sm:$0xff] %v11699_v51  ;;  %11720 = vpow2.f32 %v9677_v43  ;;  %v17174_v43 = vpop.f32.mrb[54].mxu1 }
 0x666   :  { %v11703_v22 = vpop.eup %11702  ;;  %9196 = vst [vmem:[%s18844_s10 + $0xb70] sm:$0xff] %v11701_v37  ;;  %11722 = vpow2.f32 %v9698_v57  ;;  %v17181_v57 = vpop.f32.mrb[55].mxu1 }
 0x667   :  { %v11705_v59 = vpop.eup %11704  ;;  %9195 = vst [vmem:[%s18844_s10 + $0xb68] sm:$0xff] %v11703_v22  ;;  %11724 = vpow2.f32 %v9700_v15  ;;  %18967 = vst [vmem:[#allocation31_spill] sm:$0xff] %v17181_v57  ;;  %v17186_v22 = vpop.f32.mrb[56].mxu0 }
 0x668   :  { %v11707_v27 = vpop.eup %11706  ;;  %9197 = vst [vmem:[%s18844_s10 + $0xb78] sm:$0xff] %v11705_v59  ;;  %11726 = vpow2.f32 %v9699_v62 }
 0x669   :  { %v11709_v4 = vpop.eup %11708  ;;  %8838 = vst [vmem:[%s18844_s10 + $0x40] sm:$0xff] %v11707_v27  ;;  %11728 = vpow2.f32 %v9701_v48 }
 0x66a   :  { %v11711_v55 = vpop.eup %11710  ;;  %8840 = vst [vmem:[%s18844_s10 + $0x50] sm:$0xff] %v11709_v4  ;;  %11730 = vpow2.f32 %v9722_v30 }
 0x66b   :  { %v11713_v12 = vpop.eup %11712  ;;  %v7687_v15 = vadd.f32 1.0, %v11711_v55  ;;  %11732 = vpow2.f32 %v9724_v56 }
 0x66c   :  { %v11715_v29 = vpop.eup %11714  ;;  %v7689_v51 = vadd.f32 1.0, %v11713_v12  ;;  %11734 = vpow2.f32 %v9723_v0  ;;  %v5786_v12 = vadd.f32 %v16727_v14, %v17095_v19 }
 0x66d   :  { %v11717_v62 = vpop.eup %11716  ;;  %11736 = vrcp.f32 %v7687_v15  ;;  %v7710_v20 = vadd.f32 1.0, %v11715_v29 }
 0x66e   :  { %v11719_v37 = vpop.eup %11718  ;;  %11738 = vrcp.f32 %v7689_v51  ;;  %v7712_v48 = vadd.f32 1.0, %v11717_v62  ;;  %v5677_v51 = vadd.f32 %v16774_v23, %v17015_v44 }
 0x66f   :  { %v11721_v59 = vpop.eup %11720  ;;  %11740 = vrcp.f32 %v7710_v20  ;;  %v7711_v27 = vadd.f32 1.0, %v11719_v37  ;;  %v5790_v37 = vadd.f32 %v16776_v18, %v17023_v41  ;;  %v5681_v18 = vadd.f32 %v16792_v9, %v17015_v44 }
 0x670   :  { %v11723_v57 = vpop.eup %11722  ;;  %11742 = vrcp.f32 %v7712_v48  ;;  %v7713_v30 = vadd.f32 1.0, %v11721_v59  ;;  %v5679_v59 = vadd.f32 %v16783_v58, %v17091_v42  ;;  %v5683_v9 = vadd.f32 %v16801_v33, %v17091_v42 }
 0x671   :  { %v11725_v4 = vpop.eup %11724  ;;  %11744 = vrcp.f32 %v7711_v27  ;;  %v7734_v56 = vadd.f32 1.0, %v11723_v57  ;;  %v9748_v58 = vmul.f32 -1.442695, %v5790_v37  ;;  %v5796_v37 = vadd.f32 %v16803_v28, %v17095_v19 }
 0x672   :  { %v11727_v55 = vpop.eup %11726  ;;  %11746 = vrcp.f32 %v7713_v30  ;;  %v7736_v0 = vadd.f32 1.0, %v11725_v4  ;;  %v9725_v30 = vmul.f32 -1.442695, %v5786_v12  ;;  %v5792_v4 = vadd.f32 %v16785_v31, %v17095_v19 }
 0x673   :  { %v11729_v15 = vpop.eup %11728  ;;  %11748 = vrcp.f32 %v7734_v56  ;;  %v7735_v29 = vadd.f32 1.0, %v11727_v55  ;;  %v9746_v55 = vmul.f32 -1.442695, %v5677_v51  ;;  %v5794_v12 = vadd.f32 %v16794_v54, %v17023_v41  ;;  %v17212_v51 = vpop.f32.mrb[57].mxu0 }
 0x674   :  { %v11731_v62 = vpop.eup %11730  ;;  %11750 = vrcp.f32 %v7736_v0  ;;  %v7737_v20 = vadd.f32 1.0, %v11729_v15  ;;  %v17200_v0 = vpop.f32.mrb[56].mxu1  ;;  %v9749_v54 = vmul.f32 -1.442695, %v5792_v4  ;;  %v9770_v33 = vmul.f32 -1.442695, %v5681_v18 }
 0x675   :  { %v11733_v48 = vpop.eup %11732  ;;  %11752 = vrcp.f32 %v7735_v29  ;;  %v7758_v57 = vadd.f32 1.0, %v11731_v62  ;;  %v9747_v29 = vmul.f32 -1.442695, %v5679_v59  ;;  %v17214_v62 = vpop.f32.mrb[57].mxu1  ;;  %v9772_v28 = vmul.f32 -1.442695, %v5794_v12 }
 0x676   :  { %v11735_v27 = vpop.eup %11734  ;;  %11754 = vrcp.f32 %v7737_v20  ;;  %v7760_v14 = vadd.f32 1.0, %v11733_v48  ;;  %v17226_v59 = vpop.f32.mrb[58].mxu0 }
 0x677   :  { %v11737_v23 = vpop.eup %11736  ;;  %11756 = vrcp.f32 %v7758_v57  ;;  %v7759_v56 = vadd.f32 1.0, %v11735_v27  ;;  %v5687_v57 = vadd.f32 %v16820_v63, %v17015_v44  ;;  %v17228_v27 = vpop.f32.mrb[58].mxu1  ;;  %v9771_v63 = vmul.f32 -1.442695, %v5683_v9 }
 0x678   :  { %v11739_v15 = vpop.eup %11738  ;;  %8839 = vst [vmem:[%s18844_s10 + $0x48] sm:$0xff] %v11737_v23  ;;  %11758 = vrcp.f32 %v7760_v14  ;;  %v5689_v23 = vadd.f32 %v16824_v8, %v17091_v42 }
 0x679   :  { %v11741_v31 = vpop.eup %11740  ;;  %8841 = vst [vmem:[%s18844_s10 + $0x58] sm:$0xff] %v11739_v15  ;;  %11760 = vrcp.f32 %v7759_v56  ;;  %v17240_v56 = vpop.f32.mrb[59].mxu0  ;;  %v5802_v15 = vadd.f32 %v16826_v10, %v17095_v19  ;;  %v9794_v8 = vmul.f32 -1.442695, %v5687_v57 }
 0x67a   :  { %v11743_v20 = vpop.eup %11742  ;;  %8862 = vst [vmem:[%s18844_s10 + $0x100] sm:$0xff] %v11741_v31  ;;  %11762 = vpow2.f32 %v9725_v30  ;;  %v5800_v30 = vadd.f32 %v16822_v38, %v17023_v41  ;;  %v9773_v38 = vmul.f32 -1.442695, %v5796_v37  ;;  %v9795_v10 = vmul.f32 -1.442695, %v5689_v23  ;;  %v17264_v37 = vpop.f32.mrb[60].mxu0 }
 0x67b   :  { %v11745_v48 = vpop.eup %11744  ;;  %8864 = vst [vmem:[%s18844_s10 + $0x110] sm:$0xff] %v11743_v20  ;;  %11764 = vpow2.f32 %v9746_v55  ;;  %v17242_v55 = vpop.f32.mrb[59].mxu1  ;;  %v9797_v20 = vmul.f32 -1.442695, %v5802_v15 }
 0x67c   :  { %v11747_v14 = vpop.eup %11746  ;;  %8863 = vst [vmem:[%s18844_s10 + $0x108] sm:$0xff] %v11745_v48  ;;  %11766 = vpow2.f32 %v9748_v58  ;;  %v9796_v31 = vmul.f32 -1.442695, %v5800_v30  ;;  %v17266_v48 = vpop.f32.mrb[60].mxu1 }
 0x67d   :  { %v11749_v4 = vpop.eup %11748  ;;  %8865 = vst [vmem:[%s18844_s10 + $0x118] sm:$0xff] %v11747_v14  ;;  %11768 = vpow2.f32 %v9747_v29  ;;  %v17271_v57 = vpop.f32.mrb[61].mxu0 }
 0x67e   :  { %v11751_v18 = vpop.eup %11750  ;;  %8886 = vst [vmem:[%s18844_s10 + $0x1c0] sm:$0xff] %v11749_v4  ;;  %11770 = vpow2.f32 %v9749_v54  ;;  %v17273_v14 = vpop.f32.mrb[61].mxu1 }
 0x67f   :  { %v11753_v58 = vpop.eup %11752  ;;  %8888 = vst [vmem:[%s18844_s10 + $0x1d0] sm:$0xff] %v11751_v18  ;;  %11772 = vpow2.f32 %v9770_v33  ;;  %v17275_v4 = vpop.f32.mrb[62].mxu0 }
 0x680   :  { %v11755_v12 = vpop.eup %11754  ;;  %8887 = vst [vmem:[%s18844_s10 + $0x1c8] sm:$0xff] %v11753_v58  ;;  %11774 = vpow2.f32 %v9772_v28 }
 0x681   :  { %v11757_v29 = vpop.eup %11756  ;;  %8889 = vst [vmem:[%s18844_s10 + $0x1d8] sm:$0xff] %v11755_v12  ;;  %11776 = vpow2.f32 %v9771_v63  ;;  %v17277_v63 = vpop.f32.mrb[62].mxu1 }
 0x682   :  { %v11759_v9 = vpop.eup %11758  ;;  %8910 = vst [vmem:[%s18844_s10 + $0x280] sm:$0xff] %v11757_v29  ;;  %11778 = vpow2.f32 %v9773_v38  ;;  %18968 = vst [vmem:[#allocation32_spill] sm:$0xff] %v17277_v63 }
 0x683   :  { %v11761_v54 = vpop.eup %11760  ;;  %8912 = vst [vmem:[%s18844_s10 + $0x290] sm:$0xff] %v11759_v9  ;;  %11780 = vpow2.f32 %v9794_v8 }
 0x684   :  { %v11763_v33 = vpop.eup %11762  ;;  %8911 = vst [vmem:[%s18844_s10 + $0x288] sm:$0xff] %v11761_v54  ;;  %11782 = vpow2.f32 %v9796_v31 }
 0x685   :  { %v11765_v28 = vpop.eup %11764  ;;  %v7761_v30 = vadd.f32 1.0, %v11763_v33  ;;  %11784 = vpow2.f32 %v9795_v10 }
 0x686   :  { %v11767_v23 = vpop.eup %11766  ;;  %v7782_v18 = vadd.f32 1.0, %v11765_v28  ;;  %11786 = vpow2.f32 %v9797_v20  ;;  %v18969_v20 = vld [vmem:[#allocation7_spill] sm:$0xff] }
 0x687   :  { %v11769_v38 = vpop.eup %11768  ;;  %11788 = vrcp.f32 %v7761_v30  ;;  %v7784_v15 = vadd.f32 1.0, %v11767_v23  ;;  %v5691_v28 = vadd.f32 %v18969_v20, %v17015_v44 }
 0x688   :  { %v11771_v58 = vpop.eup %11770  ;;  %11790 = vrcp.f32 %v7782_v18  ;;  %v7783_v8 = vadd.f32 1.0, %v11769_v38  ;;  %v5804_v18 = vadd.f32 %v16839_v53, %v17023_v41 }
 0x689   :  { %v11773_v12 = vpop.eup %11772  ;;  %11792 = vrcp.f32 %v7784_v15  ;;  %v7785_v31 = vadd.f32 1.0, %v11771_v58  ;;  %v5693_v58 = vadd.f32 %v16851_v36, %v17091_v42  ;;  %v5810_v36 = vadd.f32 %v16885_v11, %v17023_v41 }
 0x68a   :  { %v11775_v29 = vpop.eup %11774  ;;  %11794 = vrcp.f32 %v7783_v8  ;;  %v7806_v9 = vadd.f32 1.0, %v11773_v12 }
 0x68b   :  { %v11777_v10 = vpop.eup %11776  ;;  %11796 = vrcp.f32 %v7785_v31  ;;  %v7808_v54 = vadd.f32 1.0, %v11775_v29  ;;  %v5806_v31 = vadd.f32 %v16853_v24, %v17095_v19  ;;  %v9819_v24 = vmul.f32 -1.442695, %v5693_v58  ;;  %v18971_v58 = vld [vmem:[#allocation9_spill] sm:$0xff] }
 0x68c   :  { %v11779_v33 = vpop.eup %11778  ;;  %11798 = vrcp.f32 %v7806_v9  ;;  %v7807_v63 = vadd.f32 1.0, %v11777_v10  ;;  %v9818_v10 = vmul.f32 -1.442695, %v5691_v28  ;;  %v5699_v28 = vadd.f32 %v16890_v47, %v17091_v42 }
 0x68d   :  { %v11781_v30 = vpop.eup %11780  ;;  %11800 = vrcp.f32 %v7808_v54  ;;  %v7809_v23 = vadd.f32 1.0, %v11779_v33  ;;  %v5697_v54 = vadd.f32 %v16883_v35, %v17015_v44  ;;  %v9820_v33 = vmul.f32 -1.442695, %v5804_v18  ;;  %v17298_v35 = vpop.f32.mrb[63].mxu1  ;;  %v18970_v18 = vld [vmem:[#allocation8_spill] sm:$0xff] }
 0x68e   :  { %v11783_v38 = vpop.eup %11782  ;;  %11802 = vrcp.f32 %v7807_v63  ;;  %v7830_v15 = vadd.f32 1.0, %v11781_v30  ;;  %v17296_v30 = vpop.f32.mrb[63].mxu0  ;;  %v9821_v11 = vmul.f32 -1.442695, %v5806_v31  ;;  %v9844_v31 = vmul.f32 -1.442695, %v5810_v36 }
 0x68f   :  { %v11785_v8 = vpop.eup %11784  ;;  %11804 = vrcp.f32 %v7809_v23  ;;  %v7832_v12 = vadd.f32 1.0, %v11783_v38  ;;  %v5812_v38 = vadd.f32 %v18970_v18, %v17095_v19  ;;  %v9842_v47 = vmul.f32 -1.442695, %v5697_v54  ;;  %v18973_v54 = vld [vmem:[#allocation11_spill] sm:$0xff]  ;;  %v18974_v36 = vld [vmem:[#allocation12_spill] sm:$0xff] }
 0x690   :  { %v11787_v29 = vpop.eup %11786  ;;  %11806 = vrcp.f32 %v7830_v15  ;;  %v7831_v9 = vadd.f32 1.0, %v11785_v8  ;;  %v5701_v8 = vadd.f32 %v18971_v58, %v17015_v44  ;;  %v17330_v58 = vpop.f32.mrb[64].mxu0 }
 0x691   :  { %v11789_v53 = vpop.eup %11788  ;;  %11808 = vrcp.f32 %v7832_v12  ;;  %v7833_v63 = vadd.f32 1.0, %v11787_v29  ;;  %v18972_v29 = vld [vmem:[#allocation10_spill] sm:$0xff] }
 0x692   :  { %v11791_v20 = vpop.eup %11790  ;;  %8913 = vst [vmem:[%s18844_s10 + $0x298] sm:$0xff] %v11789_v53  ;;  %11810 = vrcp.f32 %v7831_v9  ;;  %v5814_v9 = vadd.f32 %v18972_v29, %v17023_v41 }
 0x693   :  { %v11793_v23 = vpop.eup %11792  ;;  %8934 = vst [vmem:[%s18844_s10 + $0x340] sm:$0xff] %v11791_v20  ;;  %11812 = vrcp.f32 %v7833_v63  ;;  %v5703_v63 = vadd.f32 %v18973_v54, %v17091_v42 }
 0x694   :  { %v11795_v15 = vpop.eup %11794  ;;  %8936 = vst [vmem:[%s18844_s10 + $0x350] sm:$0xff] %v11793_v23  ;;  %11814 = vpow2.f32 %v9818_v10  ;;  %v9843_v10 = vmul.f32 -1.442695, %v5699_v28  ;;  %v5816_v23 = vadd.f32 %v18974_v36, %v17095_v19  ;;  %v18975_v28 = vld [vmem:[#allocation15_spill] sm:$0xff] }
 0x695   :  { %v11797_v12 = vpop.eup %11796  ;;  %8935 = vst [vmem:[%s18844_s10 + $0x348] sm:$0xff] %v11795_v15  ;;  %11816 = vpow2.f32 %v9820_v33  ;;  %v9845_v33 = vmul.f32 -1.442695, %v5812_v38  ;;  %v5707_v15 = vadd.f32 %v18975_v28, %v17015_v44  ;;  %v17337_v38 = vpop.f32.mrb[65].mxu0 }
 0x696   :  { %v11799_v53 = vpop.eup %11798  ;;  %8937 = vst [vmem:[%s18844_s10 + $0x358] sm:$0xff] %v11797_v12  ;;  %11818 = vpow2.f32 %v9819_v24  ;;  %v9866_v24 = vmul.f32 -1.442695, %v5701_v8  ;;  %v17332_v12 = vpop.f32.mrb[64].mxu1  ;;  %v9867_v8 = vmul.f32 -1.442695, %v5703_v63 }
 0x697   :  { %v11801_v20 = vpop.eup %11800  ;;  %8958 = vst [vmem:[%s18844_s10 + $0x400] sm:$0xff] %v11799_v53  ;;  %11820 = vpow2.f32 %v9821_v11  ;;  %v9868_v11 = vmul.f32 -1.442695, %v5814_v9  ;;  %v17339_v53 = vpop.f32.mrb[65].mxu1 }
 0x698   :  { %v11803_v18 = vpop.eup %11802  ;;  %8960 = vst [vmem:[%s18844_s10 + $0x410] sm:$0xff] %v11801_v20  ;;  %11822 = vpow2.f32 %v9842_v47  ;;  %v17344_v54 = vpop.f32.mrb[66].mxu0 }
 0x699   :  { %v11805_v29 = vpop.eup %11804  ;;  %8959 = vst [vmem:[%s18844_s10 + $0x408] sm:$0xff] %v11803_v18  ;;  %11824 = vpow2.f32 %v9844_v31  ;;  %18976 = vst [vmem:[#allocation35_spill] sm:$0xff] %v17344_v54  ;;  %v17346_v20 = vpop.f32.mrb[66].mxu1  ;;  %v9869_v31 = vmul.f32 -1.442695, %v5816_v23 }
 0x69a   :  { %v11807_v47 = vpop.eup %11806  ;;  %8961 = vst [vmem:[%s18844_s10 + $0x418] sm:$0xff] %v11805_v29  ;;  %11826 = vpow2.f32 %v9843_v10  ;;  %18977 = vst [vmem:[#allocation33_spill] sm:$0xff] %v17346_v20  ;;  %v17351_v9 = vpop.f32.mrb[67].mxu0  ;;  %v9890_v10 = vmul.f32 -1.442695, %v5707_v15 }
 0x69b   :  { %v11809_v36 = vpop.eup %11808  ;;  %8982 = vst [vmem:[%s18844_s10 + $0x4c0] sm:$0xff] %v11807_v47  ;;  %11828 = vpow2.f32 %v9845_v33  ;;  %18978 = vst [vmem:[#allocation34_spill] sm:$0xff] %v17351_v9  ;;  %v17353_v18 = vpop.f32.mrb[67].mxu1 }
 0x69c   :  { %18979 = vst [vmem:[#allocation36_spill] sm:$0xff] %v17353_v18  ;;  %v11811_v28 = vpop.eup %11810  ;;  %8984 = vst [vmem:[%s18844_s10 + $0x4d0] sm:$0xff] %v11809_v36  ;;  %11830 = vpow2.f32 %v9866_v24  ;;  %v17364_v24 = vpop.f32.mrb[68].mxu0 }
 0x69d   :  { %v11813_v63 = vpop.eup %11812  ;;  %8983 = vst [vmem:[%s18844_s10 + $0x4c8] sm:$0xff] %v11811_v28  ;;  %11832 = vpow2.f32 %v9868_v11  ;;  %18980 = vst [vmem:[#allocation7_spill] sm:$0xff] %v17364_v24  ;;  %v17366_v15 = vpop.f32.mrb[68].mxu1 }
 0x69e   :  { %v11815_v29 = vpop.eup %11814  ;;  %8985 = vst [vmem:[%s18844_s10 + $0x4d8] sm:$0xff] %v11813_v63  ;;  %11834 = vpow2.f32 %v9867_v8  ;;  %18981 = vst [vmem:[#allocation8_spill] sm:$0xff] %v17366_v15  ;;  %v17368_v11 = vpop.f32.mrb[69].mxu0 }
 0x69f   :  { %v11817_v33 = vpop.eup %11816  ;;  %v7854_v23 = vadd.f32 1.0, %v11815_v29  ;;  %11836 = vpow2.f32 %v9869_v31  ;;  %18982 = vst [vmem:[#allocation9_spill] sm:$0xff] %v17368_v11 }
 0x6a0   :  { %v11819_v47 = vpop.eup %11818  ;;  %v7856_v18 = vadd.f32 1.0, %v11817_v33  ;;  %11838 = vpow2.f32 %v9890_v10 }
 0x6a1   :  { %v11821_v36 = vpop.eup %11820  ;;  %11840 = vrcp.f32 %v7854_v23  ;;  %v7855_v28 = vadd.f32 1.0, %v11819_v47  ;;  %v18983_v23 = vld [vmem:[#allocation14_spill] sm:$0xff] }
 0x6a2   :  { %v11823_v9 = vpop.eup %11822  ;;  %11842 = vrcp.f32 %v7856_v18  ;;  %v7857_v20 = vadd.f32 1.0, %v11821_v36  ;;  %v5820_v47 = vadd.f32 %v18983_v23, %v17023_v41  ;;  %v5709_v18 = vadd.f32 %v16924_v26, %v17091_v42 }
 0x6a3   :  { %v11825_v63 = vpop.eup %11824  ;;  %11844 = vrcp.f32 %v7855_v28  ;;  %v7878_v8 = vadd.f32 1.0, %v11823_v9  ;;  %v5826_v23 = vadd.f32 %v16950_v25, %v17095_v19 }
 0x6a4   :  { %v11827_v29 = vpop.eup %11826  ;;  %11846 = vrcp.f32 %v7857_v20  ;;  %v7880_v31 = vadd.f32 1.0, %v11825_v63  ;;  %v5822_v20 = vadd.f32 %v16926_v39, %v17095_v19  ;;  %v5713_v39 = vadd.f32 %v16948_v21, %v17091_v42 }
 0x6a5   :  { %v11829_v33 = vpop.eup %11828  ;;  %11848 = vrcp.f32 %v7878_v8  ;;  %v7879_v10 = vadd.f32 1.0, %v11827_v29  ;;  %v5711_v8 = vadd.f32 %v16936_v7, %v17015_v44  ;;  %v5717_v21 = vadd.f32 %v16976_v34, %v17015_v44 }
 0x6a6   :  { %v11831_v24 = vpop.eup %11830  ;;  %11850 = vrcp.f32 %v7880_v31  ;;  %v7881_v15 = vadd.f32 1.0, %v11829_v33  ;;  %v9892_v33 = vmul.f32 -1.442695, %v5820_v47  ;;  %v9893_v7 = vmul.f32 -1.442695, %v5822_v20 }
 0x6a7   :  { %v11833_v54 = vpop.eup %11832  ;;  %11852 = vrcp.f32 %v7879_v10  ;;  %v7902_v11 = vadd.f32 1.0, %v11831_v24  ;;  %v5824_v24 = vadd.f32 %v16938_v13, %v17023_v41  ;;  %v17382_v10 = vpop.f32.mrb[69].mxu1  ;;  %v9914_v47 = vmul.f32 -1.442695, %v5711_v8 }
 0x6a8   :  { %v11835_v36 = vpop.eup %11834  ;;  %11854 = vrcp.f32 %v7881_v15  ;;  %v7904_v9 = vadd.f32 1.0, %v11833_v54  ;;  %v9891_v54 = vmul.f32 -1.442695, %v5709_v18  ;;  %v17394_v18 = vpop.f32.mrb[70].mxu0  ;;  %v5830_v20 = vadd.f32 %v16978_v49, %v17023_v41 }
 0x6a9   :  { %v11837_v28 = vpop.eup %11836  ;;  %11856 = vrcp.f32 %v7902_v11  ;;  %v7903_v63 = vadd.f32 1.0, %v11835_v36  ;;  %v17396_v36 = vpop.f32.mrb[70].mxu1  ;;  %v9916_v25 = vmul.f32 -1.442695, %v5824_v24  ;;  %v9915_v34 = vmul.f32 -1.442695, %v5713_v39 }
 0x6aa   :  { %v11839_v29 = vpop.eup %11838  ;;  %11858 = vrcp.f32 %v7904_v9  ;;  %v7905_v31 = vadd.f32 1.0, %v11837_v28  ;;  %v17408_v8 = vpop.f32.mrb[71].mxu0  ;;  %v9917_v49 = vmul.f32 -1.442695, %v5826_v23 }
 0x6ab   :  { %v11841_v26 = vpop.eup %11840  ;;  %11860 = vrcp.f32 %v7903_v63  ;;  %v7926_v15 = vadd.f32 1.0, %v11839_v29  ;;  %v5719_v63 = vadd.f32 %v16983_v3, %v17091_v42  ;;  %v17410_v29 = vpop.f32.mrb[71].mxu1  ;;  %v9938_v3 = vmul.f32 -1.442695, %v5717_v21 }
 0x6ac   :  { %v11843_v11 = vpop.eup %11842  ;;  %9006 = vst [vmem:[%s18844_s10 + $0x580] sm:$0xff] %v11841_v26  ;;  %11862 = vrcp.f32 %v7905_v31  ;;  %v5721_v26 = vadd.f32 %v16990_v32, %v17015_v44 }
 0x6ad   :  { %v11845_v13 = vpop.eup %11844  ;;  %9008 = vst [vmem:[%s18844_s10 + $0x590] sm:$0xff] %v11843_v11  ;;  %11864 = vrcp.f32 %v7926_v15  ;;  %v9939_v11 = vmul.f32 -1.442695, %v5719_v63 }
 0x6ae   :  { %v11847_v9 = vpop.eup %11846  ;;  %9007 = vst [vmem:[%s18844_s10 + $0x588] sm:$0xff] %v11845_v13  ;;  %11866 = vpow2.f32 %v9892_v33  ;;  %v5832_v33 = vadd.f32 %v16985_v40, %v17095_v19  ;;  %v5834_v40 = vadd.f32 %v16992_v5, %v17023_v41  ;;  %v9962_v5 = vmul.f32 -1.442695, %v5721_v26  ;;  %v17436_v13 = vpop.f32.mrb[72].mxu0 }
 0x6af   :  { %v11849_v28 = vpop.eup %11848  ;;  %9009 = vst [vmem:[%s18844_s10 + $0x598] sm:$0xff] %v11847_v9  ;;  %11868 = vpow2.f32 %v9891_v54  ;;  %v9940_v54 = vmul.f32 -1.442695, %v5830_v20 }
 0x6b0   :  { %v11851_v31 = vpop.eup %11850  ;;  %9030 = vst [vmem:[%s18844_s10 + $0x640] sm:$0xff] %v11849_v28  ;;  %11870 = vpow2.f32 %v9893_v7  ;;  %v9941_v32 = vmul.f32 -1.442695, %v5832_v33  ;;  %v9964_v9 = vmul.f32 -1.442695, %v5834_v40 }
 0x6b1   :  { %v11853_v24 = vpop.eup %11852  ;;  %9032 = vst [vmem:[%s18844_s10 + $0x650] sm:$0xff] %v11851_v31  ;;  %11872 = vpow2.f32 %v9914_v47  ;;  %v17438_v47 = vpop.f32.mrb[72].mxu1 }
 0x6b2   :  { %v11855_v15 = vpop.eup %11854  ;;  %9031 = vst [vmem:[%s18844_s10 + $0x648] sm:$0xff] %v11853_v24  ;;  %11874 = vpow2.f32 %v9916_v25  ;;  %v17443_v25 = vpop.f32.mrb[73].mxu0 }
 0x6b3   :  { %v11857_v39 = vpop.eup %11856  ;;  %9033 = vst [vmem:[%s18844_s10 + $0x658] sm:$0xff] %v11855_v15  ;;  %11876 = vpow2.f32 %v9915_v34  ;;  %v17445_v20 = vpop.f32.mrb[73].mxu1 }
 0x6b4   :  { %v11859_v7 = vpop.eup %11858  ;;  %9054 = vst [vmem:[%s18844_s10 + $0x700] sm:$0xff] %v11857_v39  ;;  %11878 = vpow2.f32 %v9917_v49  ;;  %v17450_v34 = vpop.f32.mrb[74].mxu0 }
 0x6b5   :  { %v11861_v23 = vpop.eup %11860  ;;  %9056 = vst [vmem:[%s18844_s10 + $0x710] sm:$0xff] %v11859_v7  ;;  %11880 = vpow2.f32 %v9938_v3  ;;  %18984 = vst [vmem:[#allocation10_spill] sm:$0xff] %v17450_v34  ;;  %v17452_v63 = vpop.f32.mrb[74].mxu1 }
 0x6b6   :  { %v11863_v21 = vpop.eup %11862  ;;  %9055 = vst [vmem:[%s18844_s10 + $0x708] sm:$0xff] %v11861_v23  ;;  %11882 = vpow2.f32 %v9940_v54  ;;  %18985 = vst [vmem:[#allocation11_spill] sm:$0xff] %v17452_v63  ;;  %v17457_v49 = vpop.f32.mrb[75].mxu0  ;;  %v18992_v63 = vld [vmem:[#allocation20_spill] sm:$0xff] }
 0x6b7   :  { %v11865_v28 = vpop.eup %11864  ;;  %9057 = vst [vmem:[%s18844_s10 + $0x718] sm:$0xff] %v11863_v21  ;;  %11884 = vpow2.f32 %v9939_v11  ;;  %18986 = vst [vmem:[#allocation12_spill] sm:$0xff] %v17457_v49  ;;  %v17459_v33 = vpop.f32.mrb[75].mxu1 }
 0x6b8   :  { %v11867_v31 = vpop.eup %11866  ;;  %9078 = vst [vmem:[%s18844_s10 + $0x7c0] sm:$0xff] %v11865_v28  ;;  %11886 = vpow2.f32 %v9941_v32  ;;  %18987 = vst [vmem:[#allocation15_spill] sm:$0xff] %v17459_v33 }
 0x6b9   :  { %v11869_v24 = vpop.eup %11868  ;;  %v7928_v3 = vadd.f32 1.0, %v11867_v31  ;;  %11888 = vpow2.f32 %v9962_v5 }
 0x6ba   :  { %v11871_v26 = vpop.eup %11870  ;;  %v7927_v15 = vadd.f32 1.0, %v11869_v24  ;;  %11890 = vpow2.f32 %v9964_v9  ;;  %v18988_v9 = vld [vmem:[#allocation16_spill] sm:$0xff] }
 0x6bb   :  { %v11873_v54 = vpop.eup %11872  ;;  %11892 = vrcp.f32 %v7928_v3  ;;  %v7929_v40 = vadd.f32 1.0, %v11871_v26  ;;  %v5723_v24 = vadd.f32 %v18988_v9, %v17091_v42 }
 0x6bc   :  { %v11875_v39 = vpop.eup %11874  ;;  %11894 = vrcp.f32 %v7927_v15  ;;  %v7950_v11 = vadd.f32 1.0, %v11873_v54  ;;  %v5836_v15 = vadd.f32 %v17003_v61, %v17095_v19 }
 0x6bd   :  { %v11877_v7 = vpop.eup %11876  ;;  %11896 = vrcp.f32 %v7929_v40  ;;  %v7952_v23 = vadd.f32 1.0, %v11875_v39  ;;  %v18989_v39 = vld [vmem:[#allocation18_spill] sm:$0xff] }
 0x6be   :  { %v11879_v32 = vpop.eup %11878  ;;  %11898 = vrcp.f32 %v7950_v11  ;;  %v7951_v21 = vadd.f32 1.0, %v11877_v7  ;;  %v5727_v11 = vadd.f32 %v18989_v39, %v17015_v44  ;;  %v5842_v39 = vadd.f32 %v18992_v63, %v17095_v19 }
 0x6bf   :  { %v11881_v28 = vpop.eup %11880  ;;  %11900 = vrcp.f32 %v7952_v23  ;;  %v7953_v33 = vadd.f32 1.0, %v11879_v32  ;;  %v18990_v32 = vld [vmem:[#allocation19_spill] sm:$0xff] }
 0x6c0   :  { %v11883_v31 = vpop.eup %11882  ;;  %11902 = vrcp.f32 %v7951_v21  ;;  %v7974_v5 = vadd.f32 1.0, %v11881_v28  ;;  %v5840_v21 = vadd.f32 %v18990_v32, %v17023_v41 }
 0x6c1   :  { %v11885_v3 = vpop.eup %11884  ;;  %11904 = vrcp.f32 %v7953_v33  ;;  %v7976_v26 = vadd.f32 1.0, %v11883_v31  ;;  %v9963_v33 = vmul.f32 -1.442695, %v5723_v24  ;;  %v18991_v31 = vld [vmem:[#allocation17_spill] sm:$0xff] }
 0x6c2   :  { %v11887_v54 = vpop.eup %11886  ;;  %11906 = vrcp.f32 %v7974_v5  ;;  %v7975_v40 = vadd.f32 1.0, %v11885_v3  ;;  %v5729_v49 = vadd.f32 %v18991_v31, %v17091_v42  ;;  %v9965_v3 = vmul.f32 -1.442695, %v5836_v15 }
 0x6c3   :  { %v11889_v7 = vpop.eup %11888  ;;  %11908 = vrcp.f32 %v7976_v26  ;;  %v7977_v23 = vadd.f32 1.0, %v11887_v54  ;;  %v9986_v26 = vmul.f32 -1.442695, %v5727_v11  ;;  %v18993_v54 = vld [vmem:[#allocation23_spill] sm:$0xff]  ;;  %v18995_v11 = vld [vmem:[#allocation25_spill] sm:$0xff] }
 0x6c4   :  { %v11891_v28 = vpop.eup %11890  ;;  %11910 = vrcp.f32 %v7975_v40  ;;  %v7998_v9 = vadd.f32 1.0, %v11889_v7  ;;  %v5731_v24 = vadd.f32 %v18993_v54, %v17015_v44  ;;  %v17481_v40 = vld [vmem:[%s18843_s9 + $0x8] sm:$0xff]  ;;  %v18994_v7 = vld [vmem:[#allocation13_spill] sm:$0xff]  ;;  %v5844_v32 = vadd.f32 %v18995_v11, %v17023_v41 }
 0x6c5   :  { %v11893_v61 = vpop.eup %11892  ;;  %11912 = vrcp.f32 %v7977_v23  ;;  %v8000_v5 = vadd.f32 1.0, %v11891_v28  ;;  %v17485_v15 = vrot.slane %v17481_v40, %v18994_v7  ;;  %v9988_v23 = vmul.f32 -1.442695, %v5840_v21  ;;  %v18996_v44 = vld [vmem:[#allocation21_spill] sm:$0xff]  ;;  %v18999_v11 = vld [vmem:[#allocation27_spill] sm:$0xff] }
 0x6c6   :  { %v11895_v34 = vpop.eup %11894  ;;  %9080 = vst [vmem:[%s18844_s10 + $0x7d0] sm:$0xff] %v11893_v61  ;;  %11914 = vrcp.f32 %v7998_v9  ;;  %v17494_v28 = vrot.slane %v17481_v40, %v18996_v44  ;;  %v9987_v31 = vmul.f32 -1.442695, %v5729_v49  ;;  %v18997_v61 = vld [vmem:[#allocation26_spill] sm:$0xff]  ;;  %v9989_v41 = vmul.f32 -1.442695, %v5842_v39 }
 0x6c7   :  { %v11897_v63 = vpop.eup %11896  ;;  %9079 = vst [vmem:[%s18844_s10 + $0x7c8] sm:$0xff] %v11895_v34  ;;  %11916 = vrcp.f32 %v8000_v5  ;;  %v5733_v54 = vadd.f32 %v18997_v61, %v17091_v42  ;;  %v18998_v34 = vld [vmem:[#allocation22_spill] sm:$0xff]  ;;  %v5846_v44 = vadd.f32 %v18999_v11, %v17095_v19  ;;  %v10010_v42 = vmul.f32 -1.442695, %v5731_v24  ;;  %v17515_v61 = vpop.f32.mrb[76].mxu0 }
 0x6c8   :  { %v11899_v9 = vpop.eup %11898  ;;  %9081 = vst [vmem:[%s18844_s10 + $0x7d8] sm:$0xff] %v11897_v63  ;;  %11918 = vpow2.f32 %v9963_v33  ;;  %v17503_v21 = vrot.slane %v17481_v40, %v18998_v34  ;;  %v19000_v49 = vld [vmem:[#allocation2_spill] sm:$0xff]  ;;  %v17517_v34 = vpop.f32.mrb[76].mxu1  ;;  %v10012_v19 = vmul.f32 -1.442695, %v5844_v32 }
 0x6c9   :  { %v11901_v5 = vpop.eup %11900  ;;  %9102 = vst [vmem:[%s18844_s10 + $0x880] sm:$0xff] %v11899_v9  ;;  %11920 = vpow2.f32 %v9965_v3  ;;  %v5883_v33 = vadd.f32 %v19000_v49, %v17485_v15  ;;  %v19001_v3 = vld [vmem:[#allocation28_spill] sm:$0xff]  ;;  %v10011_v11 = vmul.f32 -1.442695, %v5733_v54  ;;  %v19004_v49 = vld [vmem:[#allocation29_spill] sm:$0xff] }
 0x6ca   :  { %v11903_v63 = vpop.eup %11902  ;;  %9104 = vst [vmem:[%s18844_s10 + $0x890] sm:$0xff] %v11901_v5  ;;  %11922 = vpow2.f32 %v9986_v26  ;;  %v5996_v39 = vadd.f32 %v19001_v3, %v17494_v28  ;;  %v17524_v5 = vpop.f32.mrb[77].mxu0  ;;  %v5885_v7 = vadd.f32 %v19004_v49, %v17503_v21  ;;  %v10013_v3 = vmul.f32 -1.442695, %v5846_v44 }
 0x6cb   :  { %v11905_v9 = vpop.eup %11904  ;;  %9103 = vst [vmem:[%s18844_s10 + $0x888] sm:$0xff] %v11903_v63  ;;  %11924 = vpow2.f32 %v9988_v23  ;;  %19002 = vst [vmem:[#allocation14_spill] sm:$0xff] %v17524_v5  ;;  %v17526_v26 = vpop.f32.mrb[77].mxu1  ;;  %v9654_v54 = vmul.f32 -1.442695, %v5883_v33 }
 0x6cc   :  { %19003 = vst [vmem:[#allocation16_spill] sm:$0xff] %v17526_v26  ;;  %v11907_v24 = vpop.eup %11906  ;;  %9105 = vst [vmem:[%s18844_s10 + $0x898] sm:$0xff] %v11905_v9  ;;  %11926 = vpow2.f32 %v9987_v31  ;;  %v17533_v63 = vpop.f32.mrb[78].mxu0  ;;  %v9655_v44 = vmul.f32 -1.442695, %v5885_v7 }
 0x6cd   :  { %v17535_v23 = vpop.f32.mrb[78].mxu1  ;;  %v11909_v32 = vpop.eup %11908  ;;  %9126 = vst [vmem:[%s18844_s10 + $0x940] sm:$0xff] %v11907_v24  ;;  %11928 = vpow2.f32 %v9989_v41  ;;  %v9656_v24 = vmul.f32 -1.442695, %v5996_v39 }
 0x6ce   :  { %v17540_v26 = vpop.f32.mrb[79].mxu0  ;;  %v17542_v5 = vpop.f32.mrb[79].mxu1  ;;  %9128 = vst [vmem:[%s18844_s10 + $0x950] sm:$0xff] %v11909_v32  ;;  %11930 = vpow2.f32 %v10010_v42 }
 0x6cf   :  { %19005 = vst [vmem:[#allocation18_spill] sm:$0xff] %v17540_v26  ;;  %19006 = vst [vmem:[#allocation19_spill] sm:$0xff] %v17542_v5  ;;  %v11911_v31 = vpop.eup %11910  ;;  %11932 = vpow2.f32 %v10012_v19  ;;  %v17559_v33 = vpop.f32.mrb[80].mxu0  ;;  %v19012_v5 = vld [vmem:[#allocation24_spill] sm:$0xff] }
 0x6d0   :  { %v11913_v9 = vpop.eup %11912  ;;  %9127 = vst [vmem:[%s18844_s10 + $0x948] sm:$0xff] %v11911_v31  ;;  %11934 = vpow2.f32 %v10011_v11  ;;  %19007 = vst [vmem:[#allocation17_spill] sm:$0xff] %v17559_v33  ;;  %v17561_v19 = vpop.f32.mrb[80].mxu1 }
 0x6d1   :  { %v11915_v41 = vpop.eup %11914  ;;  %9129 = vst [vmem:[%s18844_s10 + $0x958] sm:$0xff] %v11913_v9  ;;  %11936 = vpow2.f32 %v10013_v3  ;;  %19008 = vst [vmem:[#allocation20_spill] sm:$0xff] %v17561_v19  ;;  %v17563_v7 = vpop.f32.mrb[81].mxu0  ;;  %v17571_v19 = vrot.slane %v17481_v40, %v19012_v5  ;;  %v5887_v40 = vadd.f32 %v17114_v1, %v17485_v15 }
 0x6d2   :  { %v11917_v49 = vpop.eup %11916  ;;  %9150 = vst [vmem:[%s18844_s10 + $0xa00] sm:$0xff] %v11915_v41  ;;  %11938 = vpow2.f32 %v9654_v54  ;;  %19009 = vst [vmem:[#allocation23_spill] sm:$0xff] %v17563_v7  ;;  %v17565_v11 = vpop.f32.mrb[81].mxu1 }
 0x6d3   :  { %v11919_v42 = vpop.eup %11918  ;;  %9152 = vst [vmem:[%s18844_s10 + $0xa10] sm:$0xff] %v11917_v49  ;;  %11940 = vpow2.f32 %v9656_v24  ;;  %19010 = vst [vmem:[#allocation25_spill] sm:$0xff] %v17565_v11  ;;  %v17567_v3 = vpop.f32.mrb[82].mxu0 }
 0x6d4   :  { %v11921_v39 = vpop.eup %11920  ;;  %v7999_v32 = vadd.f32 1.0, %v11919_v42  ;;  %11942 = vpow2.f32 %v9655_v44  ;;  %19011 = vst [vmem:[#allocation26_spill] sm:$0xff] %v17567_v3 }
 0x6d5   :  { %v11923_v31 = vpop.eup %11922  ;;  %v8001_v9 = vadd.f32 1.0, %v11921_v39 }
 0x6d6   :  { %v11925_v41 = vpop.eup %11924  ;;  %11944 = vrcp.f32 %v7999_v32  ;;  %v8022_v49 = vadd.f32 1.0, %v11923_v31  ;;  %v19013_v31 = vld [vmem:[#allocation30_spill] sm:$0xff] }
 0x6d7   :  { %v11927_v54 = vpop.eup %11926  ;;  %11946 = vrcp.f32 %v8001_v9  ;;  %v8024_v33 = vadd.f32 1.0, %v11925_v41  ;;  %v5998_v9 = vadd.f32 %v19013_v31, %v17571_v19  ;;  %v9678_v31 = vmul.f32 -1.442695, %v5887_v40 }
 0x6d8   :  { %v11929_v24 = vpop.eup %11928  ;;  %11948 = vrcp.f32 %v8022_v49  ;;  %v8023_v42 = vadd.f32 1.0, %v11927_v54 }
 0x6d9   :  { %v11931_v7 = vpop.eup %11930  ;;  %11950 = vrcp.f32 %v8024_v33  ;;  %v8025_v11 = vadd.f32 1.0, %v11929_v24  ;;  %v6000_v33 = vadd.f32 %v17116_v60, %v17494_v28  ;;  %v5893_v60 = vadd.f32 %v17158_v46, %v17485_v15 }
 0x6da   :  { %v11933_v39 = vpop.eup %11932  ;;  %11952 = vrcp.f32 %v8023_v42  ;;  %v8046_v44 = vadd.f32 1.0, %v11931_v7  ;;  %v5895_v46 = vadd.f32 %v17165_v50, %v17503_v21 }
 0x6db   :  { %v11935_v3 = vpop.eup %11934  ;;  %11954 = vrcp.f32 %v8025_v11  ;;  %v8048_v32 = vadd.f32 1.0, %v11933_v39  ;;  %v5889_v11 = vadd.f32 %v17128_v17, %v17503_v21  ;;  %v9680_v17 = vmul.f32 -1.442695, %v6000_v33 }
 0x6dc   :  { %v11937_v41 = vpop.eup %11936  ;;  %11956 = vrcp.f32 %v8046_v44  ;;  %v8047_v26 = vadd.f32 1.0, %v11935_v3  ;;  %v9657_v44 = vmul.f32 -1.442695, %v5998_v9  ;;  %v6002_v3 = vadd.f32 %v17130_v52, %v17571_v19 }
 0x6dd   :  { %v11939_v49 = vpop.eup %11938  ;;  %11958 = vrcp.f32 %v8048_v32  ;;  %v8049_v54 = vadd.f32 1.0, %v11937_v41  ;;  %v17585_v41 = vpop.f32.mrb[82].mxu1  ;;  %v6006_v9 = vadd.f32 %v17160_v45, %v17494_v28  ;;  %v9679_v40 = vmul.f32 -1.442695, %v5889_v11 }
 0x6de   :  { %v11941_v24 = vpop.eup %11940  ;;  %11960 = vrcp.f32 %v8047_v26  ;;  %v7690_v7 = vadd.f32 1.0, %v11939_v49  ;;  %v17597_v49 = vpop.f32.mrb[83].mxu0  ;;  %v9681_v45 = vmul.f32 -1.442695, %v6002_v3  ;;  %v6008_v33 = vadd.f32 %v17167_v6, %v17571_v19 }
 0x6df   :  { %v11943_v42 = vpop.eup %11942  ;;  %11962 = vrcp.f32 %v8049_v54  ;;  %v7692_v39 = vadd.f32 1.0, %v11941_v24  ;;  %v17599_v54 = vpop.f32.mrb[83].mxu1  ;;  %v9702_v50 = vmul.f32 -1.442695, %v5893_v60  ;;  %v5897_v11 = vadd.f32 %v17172_v2, %v17485_v15 }
 0x6e0   :  { %v11945_v1 = vpop.eup %11944  ;;  %11964 = vrcp.f32 %v7690_v7  ;;  %v7691_v32 = vadd.f32 1.0, %v11943_v42  ;;  %v6010_v6 = vadd.f32 %v17174_v43, %v17494_v28  ;;  %v9703_v3 = vmul.f32 -1.442695, %v5895_v46 }
 0x6e1   :  { %v11947_v26 = vpop.eup %11946  ;;  %9151 = vst [vmem:[%s18844_s10 + $0xa08] sm:$0xff] %v11945_v1  ;;  %11966 = vrcp.f32 %v7692_v39  ;;  %v9704_v39 = vmul.f32 -1.442695, %v6006_v9  ;;  %v5899_v2 = vadd.f32 %v17179_v16, %v17503_v21  ;;  %v17631_v16 = vpop.f32.mrb[84].mxu1 }
 0x6e2   :  { %v11949_v52 = vpop.eup %11948  ;;  %9153 = vst [vmem:[%s18844_s10 + $0xa18] sm:$0xff] %v11947_v26  ;;  %11968 = vrcp.f32 %v7691_v32  ;;  %v9705_v32 = vmul.f32 -1.442695, %v6008_v33  ;;  %v9726_v26 = vmul.f32 -1.442695, %v5897_v11  ;;  %v17638_v46 = vpop.f32.mrb[85].mxu1 }
 0x6e3   :  { %v11951_v24 = vpop.eup %11950  ;;  %9174 = vst [vmem:[%s18844_s10 + $0xac0] sm:$0xff] %v11949_v52  ;;  %11970 = vpow2.f32 %v9657_v44  ;;  %v9728_v52 = vmul.f32 -1.442695, %v6010_v6 }
 0x6e4   :  { %v11953_v7 = vpop.eup %11952  ;;  %9176 = vst [vmem:[%s18844_s10 + $0xad0] sm:$0xff] %v11951_v24  ;;  %11972 = vpow2.f32 %v9678_v31  ;;  %v19014_v31 = vld [vmem:[#allocation31_spill] sm:$0xff] }
 0x6e5   :  { %v11955_v42 = vpop.eup %11954  ;;  %9175 = vst [vmem:[%s18844_s10 + $0xac8] sm:$0xff] %v11953_v7  ;;  %11974 = vpow2.f32 %v9680_v17  ;;  %v6012_v43 = vadd.f32 %v19014_v31, %v17571_v19  ;;  %v17629_v17 = vpop.f32.mrb[84].mxu0 }
 0x6e6   :  { %v11957_v44 = vpop.eup %11956  ;;  %9177 = vst [vmem:[%s18844_s10 + $0xad8] sm:$0xff] %v11955_v42  ;;  %11976 = vpow2.f32 %v9679_v40  ;;  %v17636_v40 = vpop.f32.mrb[85].mxu0 }
 0x6e7   :  { %v11959_v1 = vpop.eup %11958  ;;  %9198 = vst [vmem:[%s18844_s10 + $0xb80] sm:$0xff] %v11957_v44  ;;  %11978 = vpow2.f32 %v9681_v45  ;;  %v9727_v45 = vmul.f32 -1.442695, %v5899_v2  ;;  %v17643_v33 = vpop.f32.mrb[86].mxu0  ;;  %v9729_v11 = vmul.f32 -1.442695, %v6012_v43 }
 0x6e8   :  { %v11961_v60 = vpop.eup %11960  ;;  %9200 = vst [vmem:[%s18844_s10 + $0xb90] sm:$0xff] %v11959_v1  ;;  %11980 = vpow2.f32 %v9702_v50  ;;  %v17645_v7 = vpop.f32.mrb[86].mxu1 }
 0x6e9   :  { %v11963_v9 = vpop.eup %11962  ;;  %9199 = vst [vmem:[%s18844_s10 + $0xb88] sm:$0xff] %v11961_v60  ;;  %11982 = vpow2.f32 %v9704_v39  ;;  %v17650_v42 = vpop.f32.mrb[87].mxu0 }
 0x6ea   :  { %v11965_v24 = vpop.eup %11964  ;;  %9201 = vst [vmem:[%s18844_s10 + $0xb98] sm:$0xff] %v11963_v9  ;;  %11984 = vpow2.f32 %v9703_v3  ;;  %v17652_v39 = vpop.f32.mrb[87].mxu1 }
 0x6eb   :  { %v11967_v50 = vpop.eup %11966  ;;  %8842 = vst [vmem:[%s18844_s10 + $0x60] sm:$0xff] %v11965_v24  ;;  %11986 = vpow2.f32 %v9705_v32  ;;  %v17660_v60 = vpop.f32.mrb[88].mxu0 }
 0x6ec   :  { %v11969_v6 = vpop.eup %11968  ;;  %8844 = vst [vmem:[%s18844_s10 + $0x70] sm:$0xff] %v11967_v50  ;;  %11988 = vpow2.f32 %v9726_v26  ;;  %v17662_v9 = vpop.f32.mrb[88].mxu1 }
 0x6ed   :  { %v11971_v44 = vpop.eup %11970  ;;  %8843 = vst [vmem:[%s18844_s10 + $0x68] sm:$0xff] %v11969_v6  ;;  %11990 = vpow2.f32 %v9728_v52  ;;  %19015 = vst [vmem:[#allocation27_spill] sm:$0xff] %v17662_v9 }
 0x6ee   :  { %v11973_v3 = vpop.eup %11972  ;;  %v7693_v2 = vadd.f32 1.0, %v11971_v44  ;;  %11992 = vpow2.f32 %v9727_v45 }
 0x6ef   :  { %v11975_v1 = vpop.eup %11974  ;;  %v7714_v32 = vadd.f32 1.0, %v11973_v3  ;;  %11994 = vpow2.f32 %v9729_v11 }
 0x6f0   :  { %v11977_v31 = vpop.eup %11976  ;;  %11996 = vrcp.f32 %v7693_v2  ;;  %v7716_v43 = vadd.f32 1.0, %v11975_v1  ;;  %v5903_v1 = vadd.f32 %v17186_v22, %v17485_v15 }
 0x6f1   :  { %v11979_v26 = vpop.eup %11978  ;;  %11998 = vrcp.f32 %v7714_v32  ;;  %v7715_v24 = vadd.f32 1.0, %v11977_v31  ;;  %v6016_v32 = vadd.f32 %v17200_v0, %v17494_v28 }
 0x6f2   :  { %v11981_v50 = vpop.eup %11980  ;;  %12000 = vrcp.f32 %v7716_v43  ;;  %v7717_v6 = vadd.f32 1.0, %v11979_v26  ;;  %v5905_v26 = vadd.f32 %v17212_v51, %v17503_v21  ;;  %v6020_v51 = vadd.f32 %v17228_v27, %v17494_v28 }
 0x6f3   :  { %v11983_v52 = vpop.eup %11982  ;;  %12002 = vrcp.f32 %v7715_v24  ;;  %v7738_v44 = vadd.f32 1.0, %v11981_v50 }
 0x6f4   :  { %v11985_v45 = vpop.eup %11984  ;;  %12004 = vrcp.f32 %v7717_v6  ;;  %v7740_v3 = vadd.f32 1.0, %v11983_v52  ;;  %v6018_v6 = vadd.f32 %v17214_v62, %v17571_v19  ;;  %v9751_v62 = vmul.f32 -1.442695, %v5905_v26 }
 0x6f5   :  { %v11987_v11 = vpop.eup %11986  ;;  %12006 = vrcp.f32 %v7738_v44  ;;  %v7739_v2 = vadd.f32 1.0, %v11985_v45  ;;  %v9750_v44 = vmul.f32 -1.442695, %v5903_v1  ;;  %v5907_v45 = vadd.f32 %v17226_v59, %v17485_v15  ;;  %v17683_v59 = vpop.f32.mrb[89].mxu1 }
 0x6f6   :  { %v11989_v5 = vpop.eup %11988  ;;  %12008 = vrcp.f32 %v7740_v3  ;;  %v7741_v9 = vadd.f32 1.0, %v11987_v11  ;;  %v9753_v27 = vmul.f32 -1.442695, %v6018_v6  ;;  %v6026_v6 = vadd.f32 %v17266_v48, %v17494_v28 }
 0x6f7   :  { %v11991_v31 = vpop.eup %11990  ;;  %12010 = vrcp.f32 %v7739_v2  ;;  %v7762_v43 = vadd.f32 1.0, %v11989_v5  ;;  %v9752_v5 = vmul.f32 -1.442695, %v6016_v32  ;;  %v17681_v2 = vpop.f32.mrb[89].mxu0  ;;  %v6022_v32 = vadd.f32 %v17242_v55, %v17571_v19 }
 0x6f8   :  { %v11993_v24 = vpop.eup %11992  ;;  %12012 = vrcp.f32 %v7741_v9  ;;  %v7764_v50 = vadd.f32 1.0, %v11991_v31  ;;  %v5909_v9 = vadd.f32 %v17240_v56, %v17503_v21  ;;  %v9774_v56 = vmul.f32 -1.442695, %v5907_v45  ;;  %v17695_v26 = vpop.f32.mrb[90].mxu0 }
 0x6f9   :  { %v11995_v52 = vpop.eup %11994  ;;  %12014 = vrcp.f32 %v7762_v43  ;;  %v7763_v22 = vadd.f32 1.0, %v11993_v24  ;;  %v5913_v43 = vadd.f32 %v17264_v37, %v17485_v15  ;;  %v17697_v24 = vpop.f32.mrb[90].mxu1  ;;  %v9776_v55 = vmul.f32 -1.442695, %v6020_v51 }
 0x6fa   :  { %v11997_v0 = vpop.eup %11996  ;;  %12016 = vrcp.f32 %v7764_v50  ;;  %v7765_v3 = vadd.f32 1.0, %v11995_v52  ;;  %v9775_v37 = vmul.f32 -1.442695, %v5909_v9  ;;  %v17711_v45 = vpop.f32.mrb[91].mxu1  ;;  %v9777_v48 = vmul.f32 -1.442695, %v6022_v32 }
 0x6fb   :  { %v11999_v11 = vpop.eup %11998  ;;  %8845 = vst [vmem:[%s18844_s10 + $0x78] sm:$0xff] %v11997_v0  ;;  %12018 = vrcp.f32 %v7763_v22  ;;  %v5915_v22 = vadd.f32 %v17271_v57, %v17503_v21  ;;  %v9798_v57 = vmul.f32 -1.442695, %v5913_v43  ;;  %v5917_v51 = vadd.f32 %v17275_v4, %v17485_v15 }
 0x6fc   :  { %v12001_v1 = vpop.eup %12000  ;;  %8866 = vst [vmem:[%s18844_s10 + $0x120] sm:$0xff] %v11999_v11  ;;  %12020 = vrcp.f32 %v7765_v3  ;;  %v6028_v3 = vadd.f32 %v17273_v14, %v17571_v19 }
 0x6fd   :  { %v12003_v31 = vpop.eup %12002  ;;  %8868 = vst [vmem:[%s18844_s10 + $0x130] sm:$0xff] %v12001_v1  ;;  %12022 = vpow2.f32 %v9750_v44  ;;  %v17709_v44 = vpop.f32.mrb[91].mxu0  ;;  %v9799_v14 = vmul.f32 -1.442695, %v5915_v22  ;;  %v9822_v32 = vmul.f32 -1.442695, %v5917_v51 }
 0x6fe   :  { %v12005_v50 = vpop.eup %12004  ;;  %8867 = vst [vmem:[%s18844_s10 + $0x128] sm:$0xff] %v12003_v31  ;;  %12024 = vpow2.f32 %v9752_v5  ;;  %v9801_v4 = vmul.f32 -1.442695, %v6028_v3  ;;  %v17735_v31 = vpop.f32.mrb[92].mxu0 }
 0x6ff   :  { %v12007_v52 = vpop.eup %12006  ;;  %8869 = vst [vmem:[%s18844_s10 + $0x138] sm:$0xff] %v12005_v50  ;;  %12026 = vpow2.f32 %v9751_v62  ;;  %v9800_v62 = vmul.f32 -1.442695, %v6026_v6  ;;  %v17742_v50 = vpop.f32.mrb[93].mxu0 }
 0x700   :  { %v12009_v0 = vpop.eup %12008  ;;  %8890 = vst [vmem:[%s18844_s10 + $0x1e0] sm:$0xff] %v12007_v52  ;;  %12028 = vpow2.f32 %v9753_v27  ;;  %v17749_v52 = vpop.f32.mrb[94].mxu0 }
 0x701   :  { %v12011_v5 = vpop.eup %12010  ;;  %8892 = vst [vmem:[%s18844_s10 + $0x1f0] sm:$0xff] %v12009_v0  ;;  %12030 = vpow2.f32 %v9774_v56  ;;  %v17737_v56 = vpop.f32.mrb[92].mxu1 }
 0x702   :  { %v12013_v11 = vpop.eup %12012  ;;  %8891 = vst [vmem:[%s18844_s10 + $0x1e8] sm:$0xff] %v12011_v5  ;;  %12032 = vpow2.f32 %v9776_v55  ;;  %v17744_v55 = vpop.f32.mrb[93].mxu1 }
 0x703   :  { %v12015_v9 = vpop.eup %12014  ;;  %8893 = vst [vmem:[%s18844_s10 + $0x1f8] sm:$0xff] %v12013_v11  ;;  %12034 = vpow2.f32 %v9775_v37  ;;  %v17751_v37 = vpop.f32.mrb[94].mxu1 }
 0x704   :  { %v12017_v1 = vpop.eup %12016  ;;  %8914 = vst [vmem:[%s18844_s10 + $0x2a0] sm:$0xff] %v12015_v9  ;;  %12036 = vpow2.f32 %v9777_v48  ;;  %v17753_v48 = vpop.f32.mrb[95].mxu0 }
 0x705   :  { %v12019_v27 = vpop.eup %12018  ;;  %8916 = vst [vmem:[%s18844_s10 + $0x2b0] sm:$0xff] %v12017_v1  ;;  %12038 = vpow2.f32 %v9798_v57  ;;  %19016 = vst [vmem:[#allocation2_spill] sm:$0xff] %v17753_v48 }
 0x706   :  { %v12021_v43 = vpop.eup %12020  ;;  %8915 = vst [vmem:[%s18844_s10 + $0x2a8] sm:$0xff] %v12019_v27  ;;  %12040 = vpow2.f32 %v9800_v62 }
 0x707   :  { %v12023_v6 = vpop.eup %12022  ;;  %8917 = vst [vmem:[%s18844_s10 + $0x2b8] sm:$0xff] %v12021_v43  ;;  %12042 = vpow2.f32 %v9799_v14 }
 0x708   :  { %v12025_v22 = vpop.eup %12024  ;;  %v7786_v0 = vadd.f32 1.0, %v12023_v6  ;;  %12044 = vpow2.f32 %v9801_v4 }
 0x709   :  { %v12027_v3 = vpop.eup %12026  ;;  %v7788_v5 = vadd.f32 1.0, %v12025_v22  ;;  %12046 = vpow2.f32 %v9822_v32  ;;  %v19017_v32 = vld [vmem:[#allocation32_spill] sm:$0xff] }
 0x70a   :  { %v12029_v57 = vpop.eup %12028  ;;  %12048 = vrcp.f32 %v7786_v0  ;;  %v7787_v51 = vadd.f32 1.0, %v12027_v3  ;;  %v6030_v22 = vadd.f32 %v19017_v32, %v17494_v28  ;;  %v17767_v32 = vpop.f32.mrb[95].mxu1 }
 0x70b   :  { %v12031_v11 = vpop.eup %12030  ;;  %12050 = vrcp.f32 %v7788_v5  ;;  %v7789_v62 = vadd.f32 1.0, %v12029_v57  ;;  %v5919_v5 = vadd.f32 %v17296_v30, %v17503_v21 }
 0x70c   :  { %v12033_v9 = vpop.eup %12032  ;;  %12052 = vrcp.f32 %v7787_v51  ;;  %v7810_v14 = vadd.f32 1.0, %v12031_v11  ;;  %v6032_v11 = vadd.f32 %v17298_v35, %v17571_v19  ;;  %v5925_v35 = vadd.f32 %v17337_v38, %v17503_v21  ;;  %v19018_v38 = vld [vmem:[#allocation35_spill] sm:$0xff] }
 0x70d   :  { %v12035_v1 = vpop.eup %12034  ;;  %12054 = vrcp.f32 %v7789_v62  ;;  %v7812_v27 = vadd.f32 1.0, %v12033_v9 }
 0x70e   :  { %v12037_v43 = vpop.eup %12036  ;;  %12056 = vrcp.f32 %v7810_v14  ;;  %v7811_v4 = vadd.f32 1.0, %v12035_v1  ;;  %v5923_v14 = vadd.f32 %v17330_v58, %v17485_v15  ;;  %v9825_v58 = vmul.f32 -1.442695, %v6032_v11  ;;  %v19019_v11 = vld [vmem:[#allocation33_spill] sm:$0xff] }
 0x70f   :  { %v12039_v6 = vpop.eup %12038  ;;  %12058 = vrcp.f32 %v7812_v27  ;;  %v7813_v48 = vadd.f32 1.0, %v12037_v43  ;;  %v9824_v43 = vmul.f32 -1.442695, %v6030_v22  ;;  %v6038_v22 = vadd.f32 %v17339_v53, %v17571_v19 }
 0x710   :  { %v12041_v0 = vpop.eup %12040  ;;  %12060 = vrcp.f32 %v7811_v4  ;;  %v7834_v3 = vadd.f32 1.0, %v12039_v6  ;;  %v6036_v4 = vadd.f32 %v17332_v12, %v17494_v28  ;;  %v9823_v6 = vmul.f32 -1.442695, %v5919_v5 }
 0x711   :  { %v12043_v57 = vpop.eup %12042  ;;  %12062 = vrcp.f32 %v7813_v48  ;;  %v7836_v51 = vadd.f32 1.0, %v12041_v0  ;;  %v5927_v5 = vadd.f32 %v19018_v38, %v17485_v15  ;;  %v6040_v53 = vadd.f32 %v19019_v11, %v17494_v28  ;;  %v17801_v38 = vpop.f32.mrb[96].mxu1 }
 0x712   :  { %v12045_v62 = vpop.eup %12044  ;;  %12064 = vrcp.f32 %v7834_v3  ;;  %v7835_v9 = vadd.f32 1.0, %v12043_v57  ;;  %v9846_v3 = vmul.f32 -1.442695, %v5923_v14  ;;  %v19020_v14 = vld [vmem:[#allocation34_spill] sm:$0xff] }
 0x713   :  { %v12047_v1 = vpop.eup %12046  ;;  %12066 = vrcp.f32 %v7836_v51  ;;  %v7837_v27 = vadd.f32 1.0, %v12045_v62  ;;  %v9848_v51 = vmul.f32 -1.442695, %v6036_v4  ;;  %v19021_v4 = vld [vmem:[#allocation36_spill] sm:$0xff] }
 0x714   :  { %v12049_v30 = vpop.eup %12048  ;;  %12068 = vrcp.f32 %v7835_v9  ;;  %v7858_v48 = vadd.f32 1.0, %v12047_v1  ;;  %v9847_v9 = vmul.f32 -1.442695, %v5925_v35  ;;  %v5929_v1 = vadd.f32 %v19020_v14, %v17503_v21  ;;  %v19022_v35 = vld [vmem:[#allocation7_spill] sm:$0xff] }
 0x715   :  { %v12051_v0 = vpop.eup %12050  ;;  %8938 = vst [vmem:[%s18844_s10 + $0x360] sm:$0xff] %v12049_v30  ;;  %12070 = vrcp.f32 %v7837_v27  ;;  %v6042_v30 = vadd.f32 %v19021_v4, %v17571_v19 }
 0x716   :  { %v12053_v12 = vpop.eup %12052  ;;  %8940 = vst [vmem:[%s18844_s10 + $0x370] sm:$0xff] %v12051_v0  ;;  %12072 = vrcp.f32 %v7858_v48  ;;  %v5933_v0 = vadd.f32 %v19022_v35, %v17485_v15  ;;  %v9871_v14 = vmul.f32 -1.442695, %v5929_v1 }
 0x717   :  { %v12055_v57 = vpop.eup %12054  ;;  %8939 = vst [vmem:[%s18844_s10 + $0x368] sm:$0xff] %v12053_v12  ;;  %12074 = vpow2.f32 %v9824_v43  ;;  %v9849_v43 = vmul.f32 -1.442695, %v6038_v22  ;;  %v17799_v12 = vpop.f32.mrb[96].mxu0  ;;  %v19023_v22 = vld [vmem:[#allocation8_spill] sm:$0xff] }
 0x718   :  { %v12057_v62 = vpop.eup %12056  ;;  %8941 = vst [vmem:[%s18844_s10 + $0x378] sm:$0xff] %v12055_v57  ;;  %12076 = vpow2.f32 %v9823_v6  ;;  %v9870_v6 = vmul.f32 -1.442695, %v5927_v5  ;;  %v6046_v11 = vadd.f32 %v19023_v22, %v17494_v28 }
 0x719   :  { %v12059_v27 = vpop.eup %12058  ;;  %8962 = vst [vmem:[%s18844_s10 + $0x420] sm:$0xff] %v12057_v62  ;;  %12078 = vpow2.f32 %v9825_v58  ;;  %v9872_v58 = vmul.f32 -1.442695, %v6040_v53  ;;  %v17808_v62 = vpop.f32.mrb[97].mxu0  ;;  %v9873_v53 = vmul.f32 -1.442695, %v6042_v30 }
 0x71a   :  { %v12061_v48 = vpop.eup %12060  ;;  %8964 = vst [vmem:[%s18844_s10 + $0x430] sm:$0xff] %v12059_v27  ;;  %12080 = vpow2.f32 %v9846_v3  ;;  %v17810_v3 = vpop.f32.mrb[97].mxu1 }
 0x71b   :  { %v12063_v57 = vpop.eup %12062  ;;  %8963 = vst [vmem:[%s18844_s10 + $0x428] sm:$0xff] %v12061_v48  ;;  %12082 = vpow2.f32 %v9848_v51  ;;  %v17815_v27 = vpop.f32.mrb[98].mxu0 }
 0x71c   :  { %v12065_v5 = vpop.eup %12064  ;;  %8965 = vst [vmem:[%s18844_s10 + $0x438] sm:$0xff] %v12063_v57  ;;  %12084 = vpow2.f32 %v9847_v9  ;;  %v17817_v4 = vpop.f32.mrb[98].mxu1  ;;  %v9894_v9 = vmul.f32 -1.442695, %v5933_v0  ;;  %v9896_v57 = vmul.f32 -1.442695, %v6046_v11 }
 0x71d   :  { %19024 = vst [vmem:[#allocation28_spill] sm:$0xff] %v17817_v4  ;;  %v12067_v51 = vpop.eup %12066  ;;  %8986 = vst [vmem:[%s18844_s10 + $0x4e0] sm:$0xff] %v12065_v5  ;;  %12086 = vpow2.f32 %v9849_v43  ;;  %v17822_v48 = vpop.f32.mrb[99].mxu0 }
 0x71e   :  { %19025 = vst [vmem:[#allocation29_spill] sm:$0xff] %v17822_v48  ;;  %v17824_v35 = vpop.f32.mrb[99].mxu1  ;;  %v12069_v22 = vpop.eup %12068  ;;  %8988 = vst [vmem:[%s18844_s10 + $0x4f0] sm:$0xff] %v12067_v51  ;;  %12088 = vpow2.f32 %v9870_v6 }
 0x71f   :  { %19026 = vst [vmem:[#allocation30_spill] sm:$0xff] %v17824_v35  ;;  %v12071_v1 = vpop.eup %12070  ;;  %8987 = vst [vmem:[%s18844_s10 + $0x4e8] sm:$0xff] %v12069_v22  ;;  %12090 = vpow2.f32 %v9872_v58  ;;  %v17838_v5 = vpop.f32.mrb[100].mxu0 }
 0x720   :  { %v12073_v43 = vpop.eup %12072  ;;  %8989 = vst [vmem:[%s18844_s10 + $0x4f8] sm:$0xff] %v12071_v1  ;;  %12092 = vpow2.f32 %v9871_v14  ;;  %19027 = vst [vmem:[#allocation31_spill] sm:$0xff] %v17838_v5  ;;  %v17840_v51 = vpop.f32.mrb[100].mxu1 }
 0x721   :  { %v12075_v30 = vpop.eup %12074  ;;  %9010 = vst [vmem:[%s18844_s10 + $0x5a0] sm:$0xff] %v12073_v43  ;;  %12094 = vpow2.f32 %v9873_v53  ;;  %19028 = vst [vmem:[#allocation32_spill] sm:$0xff] %v17840_v51  ;;  %v17842_v22 = vpop.f32.mrb[101].mxu0 }
 0x722   :  { %v12077_v6 = vpop.eup %12076  ;;  %v7860_v0 = vadd.f32 1.0, %v12075_v30  ;;  %12096 = vpow2.f32 %v9894_v9  ;;  %19029 = vst [vmem:[#allocation35_spill] sm:$0xff] %v17842_v22  ;;  %v17844_v1 = vpop.f32.mrb[101].mxu1 }
 0x723   :  { %v12079_v58 = vpop.eup %12078  ;;  %v7859_v11 = vadd.f32 1.0, %v12077_v6  ;;  %12098 = vpow2.f32 %v9896_v57  ;;  %19030 = vst [vmem:[#allocation33_spill] sm:$0xff] %v17844_v1  ;;  %v19031_v1 = vld [vmem:[#allocation9_spill] sm:$0xff] }
 0x724   :  { %v12081_v14 = vpop.eup %12080  ;;  %12100 = vrcp.f32 %v7860_v0  ;;  %v7861_v35 = vadd.f32 1.0, %v12079_v58  ;;  %v5935_v4 = vadd.f32 %v19031_v1, %v17503_v21 }
 0x725   :  { %v12083_v48 = vpop.eup %12082  ;;  %12102 = vrcp.f32 %v7859_v11  ;;  %v7882_v53 = vadd.f32 1.0, %v12081_v14  ;;  %v6048_v11 = vadd.f32 %v17382_v10, %v17571_v19  ;;  %v5937_v14 = vadd.f32 %v17394_v18, %v17485_v15 }
 0x726   :  { %v12085_v43 = vpop.eup %12084  ;;  %12104 = vrcp.f32 %v7861_v35  ;;  %v7884_v9 = vadd.f32 1.0, %v12083_v48  ;;  %v6052_v18 = vadd.f32 %v17410_v29, %v17571_v19 }
 0x727   :  { %v12087_v30 = vpop.eup %12086  ;;  %12106 = vrcp.f32 %v7882_v53  ;;  %v7883_v5 = vadd.f32 1.0, %v12085_v43 }
 0x728   :  { %v12089_v51 = vpop.eup %12088  ;;  %12108 = vrcp.f32 %v7884_v9  ;;  %v7885_v6 = vadd.f32 1.0, %v12087_v30  ;;  %v9895_v9 = vmul.f32 -1.442695, %v5935_v4  ;;  %v5939_v30 = vadd.f32 %v17408_v8, %v17503_v21  ;;  %v17865_v8 = vpop.f32.mrb[102].mxu1 }
 0x729   :  { %v12091_v57 = vpop.eup %12090  ;;  %12110 = vrcp.f32 %v7883_v5  ;;  %v7906_v22 = vadd.f32 1.0, %v12089_v51  ;;  %v6050_v5 = vadd.f32 %v17396_v36, %v17494_v28  ;;  %v9918_v36 = vmul.f32 -1.442695, %v5937_v14 }
 0x72a   :  { %v12093_v0 = vpop.eup %12092  ;;  %12112 = vrcp.f32 %v7885_v6  ;;  %v7908_v58 = vadd.f32 1.0, %v12091_v57  ;;  %v9897_v6 = vmul.f32 -1.442695, %v6048_v11  ;;  %v5943_v4 = vadd.f32 %v17436_v13, %v17485_v15 }
 0x72b   :  { %v12095_v35 = vpop.eup %12094  ;;  %12114 = vrcp.f32 %v7906_v22  ;;  %v7907_v48 = vadd.f32 1.0, %v12093_v0  ;;  %v17863_v0 = vpop.f32.mrb[102].mxu0  ;;  %v9920_v29 = vmul.f32 -1.442695, %v6050_v5  ;;  %v6056_v11 = vadd.f32 %v17438_v47, %v17494_v28 }
 0x72c   :  { %v12097_v53 = vpop.eup %12096  ;;  %12116 = vrcp.f32 %v7908_v58  ;;  %v7909_v43 = vadd.f32 1.0, %v12095_v35  ;;  %v9919_v13 = vmul.f32 -1.442695, %v5939_v30  ;;  %v17877_v14 = vpop.f32.mrb[103].mxu0  ;;  %v9921_v47 = vmul.f32 -1.442695, %v6052_v18 }
 0x72d   :  { %v12099_v51 = vpop.eup %12098  ;;  %12118 = vrcp.f32 %v7907_v48  ;;  %v7930_v1 = vadd.f32 1.0, %v12097_v53  ;;  %v5945_v48 = vadd.f32 %v17443_v25, %v17503_v21  ;;  %v17879_v53 = vpop.f32.mrb[103].mxu1  ;;  %v6058_v5 = vadd.f32 %v17445_v20, %v17571_v19 }
 0x72e   :  { %v12101_v10 = vpop.eup %12100  ;;  %12120 = vrcp.f32 %v7909_v43  ;;  %v7932_v22 = vadd.f32 1.0, %v12099_v51  ;;  %v9942_v25 = vmul.f32 -1.442695, %v5943_v4 }
 0x72f   :  { %v12103_v57 = vpop.eup %12102  ;;  %9012 = vst [vmem:[%s18844_s10 + $0x5b0] sm:$0xff] %v12101_v10  ;;  %12122 = vrcp.f32 %v7930_v1  ;;  %v19032_v1 = vld [vmem:[#allocation10_spill] sm:$0xff]  ;;  %v9944_v10 = vmul.f32 -1.442695, %v6056_v11  ;;  %v9943_v18 = vmul.f32 -1.442695, %v5945_v48 }
 0x730   :  { %v12105_v58 = vpop.eup %12104  ;;  %9011 = vst [vmem:[%s18844_s10 + $0x5a8] sm:$0xff] %v12103_v57  ;;  %12124 = vrcp.f32 %v7932_v22  ;;  %v19033_v22 = vld [vmem:[#allocation11_spill] sm:$0xff]  ;;  %v19034_v57 = vld [vmem:[#allocation12_spill] sm:$0xff] }
 0x731   :  { %v12107_v35 = vpop.eup %12106  ;;  %9013 = vst [vmem:[%s18844_s10 + $0x5b8] sm:$0xff] %v12105_v58  ;;  %12126 = vpow2.f32 %v9895_v9  ;;  %v5947_v9 = vadd.f32 %v19032_v1, %v17485_v15  ;;  %v6060_v20 = vadd.f32 %v19033_v22, %v17494_v28  ;;  %v9945_v58 = vmul.f32 -1.442695, %v6058_v5 }
 0x732   :  { %v12109_v43 = vpop.eup %12108  ;;  %9034 = vst [vmem:[%s18844_s10 + $0x660] sm:$0xff] %v12107_v35  ;;  %12128 = vpow2.f32 %v9897_v6  ;;  %v17907_v35 = vpop.f32.mrb[104].mxu0 }
 0x733   :  { %v12111_v51 = vpop.eup %12110  ;;  %9036 = vst [vmem:[%s18844_s10 + $0x670] sm:$0xff] %v12109_v43  ;;  %12130 = vpow2.f32 %v9918_v36  ;;  %v5949_v36 = vadd.f32 %v19034_v57, %v17503_v21  ;;  %v9966_v11 = vmul.f32 -1.442695, %v5947_v9  ;;  %v9968_v43 = vmul.f32 -1.442695, %v6060_v20 }
 0x734   :  { %v12113_v30 = vpop.eup %12112  ;;  %9035 = vst [vmem:[%s18844_s10 + $0x668] sm:$0xff] %v12111_v51  ;;  %12132 = vpow2.f32 %v9920_v29 }
 0x735   :  { %v12115_v6 = vpop.eup %12114  ;;  %9037 = vst [vmem:[%s18844_s10 + $0x678] sm:$0xff] %v12113_v30  ;;  %12134 = vpow2.f32 %v9919_v13  ;;  %v17909_v13 = vpop.f32.mrb[104].mxu1 }
 0x736   :  { %v12117_v4 = vpop.eup %12116  ;;  %9058 = vst [vmem:[%s18844_s10 + $0x720] sm:$0xff] %v12115_v6  ;;  %12136 = vpow2.f32 %v9921_v47  ;;  %v17914_v47 = vpop.f32.mrb[105].mxu0 }
 0x737   :  { %v12119_v29 = vpop.eup %12118  ;;  %9060 = vst [vmem:[%s18844_s10 + $0x730] sm:$0xff] %v12117_v4  ;;  %12138 = vpow2.f32 %v9942_v25  ;;  %v17916_v5 = vpop.f32.mrb[105].mxu1  ;;  %v9967_v25 = vmul.f32 -1.442695, %v5949_v36 }
 0x738   :  { %v12121_v48 = vpop.eup %12120  ;;  %9059 = vst [vmem:[%s18844_s10 + $0x728] sm:$0xff] %v12119_v29  ;;  %12140 = vpow2.f32 %v9944_v10  ;;  %19035 = vst [vmem:[#allocation34_spill] sm:$0xff] %v17916_v5  ;;  %v17921_v1 = vpop.f32.mrb[106].mxu0  ;;  %v19044_v5 = vld [vmem:[#allocation3_spill] sm:$0xff] }
 0x739   :  { %v12123_v51 = vpop.eup %12122  ;;  %9061 = vst [vmem:[%s18844_s10 + $0x738] sm:$0xff] %v12121_v48  ;;  %12142 = vpow2.f32 %v9943_v18  ;;  %19036 = vst [vmem:[#allocation36_spill] sm:$0xff] %v17921_v1  ;;  %v17923_v9 = vpop.f32.mrb[106].mxu1  ;;  %v5957_v1 = vadd.f32 %v17533_v63, %v17485_v15  ;;  %v19046_v63 = vld [vmem:[#allocation18_spill] sm:$0xff] }
 0x73a   :  { %19037 = vst [vmem:[#allocation7_spill] sm:$0xff] %v17923_v9  ;;  %v12125_v30 = vpop.eup %12124  ;;  %9082 = vst [vmem:[%s18844_s10 + $0x7e0] sm:$0xff] %v12123_v51  ;;  %12144 = vpow2.f32 %v9945_v58  ;;  %v17928_v10 = vpop.f32.mrb[107].mxu0 }
 0x73b   :  { %19038 = vst [vmem:[#allocation8_spill] sm:$0xff] %v17928_v10  ;;  %v17930_v22 = vpop.f32.mrb[107].mxu1  ;;  %v12127_v20 = vpop.eup %12126  ;;  %9084 = vst [vmem:[%s18844_s10 + $0x7f0] sm:$0xff] %v12125_v30  ;;  %12146 = vpow2.f32 %v9966_v11 }
 0x73c   :  { %19039 = vst [vmem:[#allocation9_spill] sm:$0xff] %v17930_v22  ;;  %v12129_v6 = vpop.eup %12128  ;;  %v7931_v18 = vadd.f32 1.0, %v12127_v20  ;;  %12148 = vpow2.f32 %v9968_v43  ;;  %v17935_v51 = vpop.f32.mrb[108].mxu0  ;;  %v19041_v20 = vld [vmem:[#allocation15_spill] sm:$0xff] }
 0x73d   :  { %v12131_v57 = vpop.eup %12130  ;;  %v7933_v36 = vadd.f32 1.0, %v12129_v6  ;;  %12150 = vpow2.f32 %v9967_v25  ;;  %19040 = vst [vmem:[#allocation10_spill] sm:$0xff] %v17935_v51  ;;  %v6062_v25 = vadd.f32 %v19041_v20, %v17571_v19 }
 0x73e   :  { %v12133_v4 = vpop.eup %12132  ;;  %12152 = vrcp.f32 %v7931_v18  ;;  %v7954_v29 = vadd.f32 1.0, %v12131_v57  ;;  %v5953_v57 = vadd.f32 %v17515_v61, %v17485_v15 }
 0x73f   :  { %v12135_v58 = vpop.eup %12134  ;;  %12154 = vrcp.f32 %v7933_v36  ;;  %v7956_v48 = vadd.f32 1.0, %v12133_v4 }
 0x740   :  { %v12137_v22 = vpop.eup %12136  ;;  %12156 = vrcp.f32 %v7954_v29  ;;  %v7955_v10 = vadd.f32 1.0, %v12135_v58 }
 0x741   :  { %v12139_v9 = vpop.eup %12138  ;;  %12158 = vrcp.f32 %v7956_v48  ;;  %v7957_v11 = vadd.f32 1.0, %v12137_v22  ;;  %v6066_v22 = vadd.f32 %v17517_v34, %v17494_v28 }
 0x742   :  { %v12141_v30 = vpop.eup %12140  ;;  %12160 = vrcp.f32 %v7955_v10  ;;  %v7978_v43 = vadd.f32 1.0, %v12139_v9  ;;  %v4086_v9 = vld [vmem:[%s18843_s9 + $0x10] sm:$0xff] }
 0x743   :  { %v12143_v6 = vpop.eup %12142  ;;  %12162 = vrcp.f32 %v7957_v11  ;;  %v7980_v18 = vadd.f32 1.0, %v12141_v30  ;;  %v9969_v11 = vmul.f32 -1.442695, %v6062_v25  ;;  %v19042_v30 = vld [vmem:[#allocation14_spill] sm:$0xff]  ;;  %v17955_v25 = vpop.f32.mrb[108].mxu1 }
 0x744   :  { %v12145_v36 = vpop.eup %12144  ;;  %12164 = vrcp.f32 %v7978_v43  ;;  %v7979_v4 = vadd.f32 1.0, %v12143_v6  ;;  %v5955_v61 = vadd.f32 %v19042_v30, %v17503_v21  ;;  %v9990_v6 = vmul.f32 -1.442695, %v5953_v57 }
 0x745   :  { %v12147_v29 = vpop.eup %12146  ;;  %12166 = vrcp.f32 %v7980_v18  ;;  %v7981_v58 = vadd.f32 1.0, %v12145_v36  ;;  %v19043_v18 = vld [vmem:[#allocation16_spill] sm:$0xff]  ;;  %v9992_v57 = vmul.f32 -1.442695, %v6066_v22  ;;  %v17973_v22 = vpop.f32.mrb[109].mxu0 }
 0x746   :  { %v12149_v10 = vpop.eup %12148  ;;  %12168 = vrcp.f32 %v7979_v4  ;;  %v8002_v48 = vadd.f32 1.0, %v12147_v29  ;;  %v6068_v36 = vadd.f32 %v19043_v18, %v17571_v19  ;;  %v17953_v4 = vrot.slane %v4086_v9, %v19044_v5  ;;  %v19049_v18 = vld [vmem:[#allocation19_spill] sm:$0xff] }
 0x747   :  { %v12151_v20 = vpop.eup %12150  ;;  %12170 = vrcp.f32 %v7981_v58  ;;  %v8004_v43 = vadd.f32 1.0, %v12149_v10  ;;  %v6070_v58 = vadd.f32 %v17535_v23, %v17494_v28  ;;  %v19045_v10 = vld [vmem:[#allocation4_spill] sm:$0xff]  ;;  %v9991_v15 = vmul.f32 -1.442695, %v5955_v61 }
 0x748   :  { %v12153_v51 = vpop.eup %12152  ;;  %12172 = vrcp.f32 %v8002_v48  ;;  %v8003_v34 = vadd.f32 1.0, %v12151_v20  ;;  %v17963_v48 = vrot.slane %v4086_v9, %v19045_v10  ;;  %v5959_v5 = vadd.f32 %v19046_v63, %v17503_v21  ;;  %v19047_v20 = vld [vmem:[#allocation5_spill] sm:$0xff] }
 0x749   :  { %v12155_v29 = vpop.eup %12154  ;;  %9083 = vst [vmem:[%s18844_s10 + $0x7e8] sm:$0xff] %v12153_v51  ;;  %12174 = vrcp.f32 %v8004_v43  ;;  %v17971_v51 = vrot.slane %v4086_v9, %v19047_v20  ;;  %v17975_v43 = vpop.f32.mrb[109].mxu1  ;;  %v9993_v23 = vmul.f32 -1.442695, %v6068_v36  ;;  %v6072_v61 = vadd.f32 %v19049_v18, %v17571_v19  ;;  %v19051_v63 = vld [vmem:[#allocation17_spill] sm:$0xff] }
 0x74a   :  { %v12157_v30 = vpop.eup %12156  ;;  %9085 = vst [vmem:[%s18844_s10 + $0x7f8] sm:$0xff] %v12155_v29  ;;  %12176 = vrcp.f32 %v8003_v34  ;;  %19048 = vst [vmem:[#allocation11_spill] sm:$0xff] %v17975_v43  ;;  %v19050_v34 = vld [vmem:[#allocation6_spill] sm:$0xff]  ;;  %v10014_v10 = vmul.f32 -1.442695, %v5957_v1  ;;  %v6109_v20 = vadd.f32 %v19051_v63, %v17953_v4  ;;  %v17990_v43 = vpop.f32.mrb[110].mxu0 }
 0x74b   :  { %v12159_v28 = vpop.eup %12158  ;;  %9106 = vst [vmem:[%s18844_s10 + $0x8a0] sm:$0xff] %v12157_v30  ;;  %12178 = vpow2.f32 %v9969_v11  ;;  %v17983_v29 = vrot.slane %v4086_v9, %v19050_v34  ;;  %v17992_v11 = vpop.f32.mrb[110].mxu1  ;;  %v10016_v19 = vmul.f32 -1.442695, %v6070_v58  ;;  %v19052_v9 = vld [vmem:[#allocation20_spill] sm:$0xff]  ;;  %v19054_v58 = vld [vmem:[#allocation25_spill] sm:$0xff] }
 0x74c   :  { %v12161_v21 = vpop.eup %12160  ;;  %9108 = vst [vmem:[%s18844_s10 + $0x8b0] sm:$0xff] %v12159_v28  ;;  %12180 = vpow2.f32 %v9990_v6  ;;  %v6222_v30 = vadd.f32 %v19052_v9, %v17963_v48  ;;  %v10015_v1 = vmul.f32 -1.442695, %v5959_v5  ;;  %v19053_v6 = vld [vmem:[#allocation23_spill] sm:$0xff]  ;;  %v18004_v34 = vpop.f32.mrb[111].mxu0 }
 0x74d   :  { %v12163_v36 = vpop.eup %12162  ;;  %9107 = vst [vmem:[%s18844_s10 + $0x8a8] sm:$0xff] %v12161_v21  ;;  %12182 = vpow2.f32 %v9992_v57  ;;  %v6111_v18 = vadd.f32 %v19053_v6, %v17971_v51  ;;  %v18006_v63 = vpop.f32.mrb[111].mxu1  ;;  %v10017_v57 = vmul.f32 -1.442695, %v6072_v61  ;;  %v6224_v9 = vadd.f32 %v19054_v58, %v17983_v29 }
 0x74e   :  { %v12165_v28 = vpop.eup %12164  ;;  %9109 = vst [vmem:[%s18844_s10 + $0x8b8] sm:$0xff] %v12163_v36  ;;  %12184 = vpow2.f32 %v9991_v15  ;;  %v9658_v15 = vmul.f32 -1.442695, %v6109_v20  ;;  %v9660_v6 = vmul.f32 -1.442695, %v6222_v30  ;;  %v18030_v30 = vpop.f32.mrb[112].mxu1 }
 0x74f   :  { %v12167_v21 = vpop.eup %12166  ;;  %9130 = vst [vmem:[%s18844_s10 + $0x960] sm:$0xff] %v12165_v28  ;;  %12186 = vpow2.f32 %v9993_v23  ;;  %v9659_v23 = vmul.f32 -1.442695, %v6111_v18  ;;  %19056 = vst [vmem:[#allocation15_spill] sm:$0xff] %v18030_v30  ;;  %v18037_v18 = vpop.f32.mrb[113].mxu1 }
 0x750   :  { %v12169_v36 = vpop.eup %12168  ;;  %9132 = vst [vmem:[%s18844_s10 + $0x970] sm:$0xff] %v12167_v21  ;;  %12188 = vpow2.f32 %v10014_v10  ;;  %v9661_v10 = vmul.f32 -1.442695, %v6224_v9  ;;  %19058 = vst [vmem:[#allocation16_spill] sm:$0xff] %v18037_v18 }
 0x751   :  { %v12171_v5 = vpop.eup %12170  ;;  %9131 = vst [vmem:[%s18844_s10 + $0x968] sm:$0xff] %v12169_v36  ;;  %12190 = vpow2.f32 %v10016_v19  ;;  %v18028_v19 = vpop.f32.mrb[112].mxu0 }
 0x752   :  { %v12173_v28 = vpop.eup %12172  ;;  %9133 = vst [vmem:[%s18844_s10 + $0x978] sm:$0xff] %v12171_v5  ;;  %12192 = vpow2.f32 %v10015_v1  ;;  %19055 = vst [vmem:[#allocation12_spill] sm:$0xff] %v18028_v19  ;;  %v18035_v1 = vpop.f32.mrb[113].mxu0 }
 0x753   :  { %v12175_v61 = vpop.eup %12174  ;;  %9154 = vst [vmem:[%s18844_s10 + $0xa20] sm:$0xff] %v12173_v28  ;;  %12194 = vpow2.f32 %v10017_v57  ;;  %19057 = vst [vmem:[#allocation14_spill] sm:$0xff] %v18035_v1  ;;  %v18039_v9 = vpop.f32.mrb[114].mxu0 }
 0x754   :  { %v12177_v20 = vpop.eup %12176  ;;  %9156 = vst [vmem:[%s18844_s10 + $0xa30] sm:$0xff] %v12175_v61  ;;  %12196 = vpow2.f32 %v9658_v15  ;;  %19059 = vst [vmem:[#allocation3_spill] sm:$0xff] %v18039_v9  ;;  %v18041_v36 = vpop.f32.mrb[114].mxu1 }
 0x755   :  { %v12179_v21 = vpop.eup %12178  ;;  %9155 = vst [vmem:[%s18844_s10 + $0xa28] sm:$0xff] %v12177_v20  ;;  %12198 = vpow2.f32 %v9660_v6  ;;  %19060 = vst [vmem:[#allocation4_spill] sm:$0xff] %v18041_v36 }
 0x756   :  { %v12181_v57 = vpop.eup %12180  ;;  %v8005_v58 = vadd.f32 1.0, %v12179_v21  ;;  %12200 = vpow2.f32 %v9659_v23 }
 0x757   :  { %v12183_v15 = vpop.eup %12182  ;;  %v8026_v5 = vadd.f32 1.0, %v12181_v57  ;;  %12202 = vpow2.f32 %v9661_v10  ;;  %v19061_v10 = vld [vmem:[#allocation26_spill] sm:$0xff] }
 0x758   :  { %v12185_v28 = vpop.eup %12184  ;;  %12204 = vrcp.f32 %v8005_v58  ;;  %v8028_v61 = vadd.f32 1.0, %v12183_v15  ;;  %v6113_v57 = vadd.f32 %v19061_v10, %v17953_v4 }
 0x759   :  { %v12187_v30 = vpop.eup %12186  ;;  %12206 = vrcp.f32 %v8026_v5  ;;  %v8027_v6 = vadd.f32 1.0, %v12185_v28  ;;  %v6226_v5 = vadd.f32 %v17585_v41, %v17963_v48 }
 0x75a   :  { %v12189_v20 = vpop.eup %12188  ;;  %12208 = vrcp.f32 %v8028_v61  ;;  %v8029_v1 = vadd.f32 1.0, %v12187_v30  ;;  %v6115_v61 = vadd.f32 %v17597_v49, %v17971_v51  ;;  %v6232_v49 = vadd.f32 %v17631_v16, %v17963_v48 }
 0x75b   :  { %v12191_v18 = vpop.eup %12190  ;;  %12210 = vrcp.f32 %v8027_v6  ;;  %v8050_v21 = vadd.f32 1.0, %v12189_v20  ;;  %v6228_v6 = vadd.f32 %v17599_v54, %v17983_v29 }
 0x75c   :  { %v12193_v23 = vpop.eup %12192  ;;  %12212 = vrcp.f32 %v8029_v1  ;;  %v8052_v9 = vadd.f32 1.0, %v12191_v18  ;;  %v9683_v54 = vmul.f32 -1.442695, %v6115_v61 }
 0x75d   :  { %v12195_v19 = vpop.eup %12194  ;;  %12214 = vrcp.f32 %v8050_v21  ;;  %v8051_v36 = vadd.f32 1.0, %v12193_v23  ;;  %v9684_v23 = vmul.f32 -1.442695, %v6226_v5  ;;  %v9685_v16 = vmul.f32 -1.442695, %v6228_v6 }
 0x75e   :  { %v12197_v58 = vpop.eup %12196  ;;  %12216 = vrcp.f32 %v8052_v9  ;;  %v8053_v15 = vadd.f32 1.0, %v12195_v19  ;;  %v9682_v9 = vmul.f32 -1.442695, %v6113_v57  ;;  %v6119_v19 = vadd.f32 %v17629_v17, %v17953_v4  ;;  %v18062_v17 = vpop.f32.mrb[115].mxu1 }
 0x75f   :  { %v12199_v28 = vpop.eup %12198  ;;  %12218 = vrcp.f32 %v8051_v36  ;;  %v7694_v30 = vadd.f32 1.0, %v12197_v58  ;;  %v6121_v57 = vadd.f32 %v17636_v40, %v17971_v51  ;;  %v18060_v58 = vpop.f32.mrb[115].mxu0  ;;  %v6234_v5 = vadd.f32 %v17638_v46, %v17983_v29 }
 0x760   :  { %v12201_v1 = vpop.eup %12200  ;;  %12220 = vrcp.f32 %v8053_v15  ;;  %v7696_v18 = vadd.f32 1.0, %v12199_v28  ;;  %v9706_v40 = vmul.f32 -1.442695, %v6119_v19  ;;  %v6236_v46 = vadd.f32 %v17645_v7, %v17963_v48 }
 0x761   :  { %v12203_v20 = vpop.eup %12202  ;;  %12222 = vrcp.f32 %v7694_v30  ;;  %v7695_v21 = vadd.f32 1.0, %v12201_v1  ;;  %v6123_v30 = vadd.f32 %v17643_v33, %v17953_v4  ;;  %v9708_v1 = vmul.f32 -1.442695, %v6232_v49 }
 0x762   :  { %v12205_v41 = vpop.eup %12204  ;;  %12224 = vrcp.f32 %v7696_v18  ;;  %v7697_v36 = vadd.f32 1.0, %v12203_v20  ;;  %v9707_v6 = vmul.f32 -1.442695, %v6121_v57  ;;  %v6125_v33 = vadd.f32 %v17650_v42, %v17971_v51 }
 0x763   :  { %v12207_v10 = vpop.eup %12206  ;;  %9157 = vst [vmem:[%s18844_s10 + $0xa38] sm:$0xff] %v12205_v41  ;;  %12226 = vrcp.f32 %v7695_v21  ;;  %v9709_v21 = vmul.f32 -1.442695, %v6234_v5  ;;  %v6238_v7 = vadd.f32 %v17652_v39, %v17983_v29  ;;  %v9730_v19 = vmul.f32 -1.442695, %v6123_v30  ;;  %v18094_v41 = vpop.f32.mrb[116].mxu0 }
 0x764   :  { %v12209_v15 = vpop.eup %12208  ;;  %9178 = vst [vmem:[%s18844_s10 + $0xae0] sm:$0xff] %v12207_v10  ;;  %12228 = vrcp.f32 %v7697_v36  ;;  %v6129_v42 = vadd.f32 %v17660_v60, %v17953_v4  ;;  %v18096_v36 = vpop.f32.mrb[116].mxu1  ;;  %v9732_v39 = vmul.f32 -1.442695, %v6236_v46  ;;  %v9731_v60 = vmul.f32 -1.442695, %v6125_v33 }
 0x765   :  { %v12211_v28 = vpop.eup %12210  ;;  %9180 = vst [vmem:[%s18844_s10 + $0xaf0] sm:$0xff] %v12209_v15  ;;  %12230 = vpow2.f32 %v9682_v9  ;;  %v18101_v49 = vpop.f32.mrb[117].mxu0  ;;  %v9733_v5 = vmul.f32 -1.442695, %v6238_v7 }
 0x766   :  { %v12213_v61 = vpop.eup %12212  ;;  %9179 = vst [vmem:[%s18844_s10 + $0xae8] sm:$0xff] %v12211_v28  ;;  %12232 = vpow2.f32 %v9684_v23  ;;  %v18103_v10 = vpop.f32.mrb[117].mxu1 }
 0x767   :  { %v12215_v18 = vpop.eup %12214  ;;  %9181 = vst [vmem:[%s18844_s10 + $0xaf8] sm:$0xff] %v12213_v61  ;;  %12234 = vpow2.f32 %v9683_v54  ;;  %v18108_v57 = vpop.f32.mrb[118].mxu0  ;;  %v9754_v61 = vmul.f32 -1.442695, %v6129_v42 }
 0x768   :  { %v12217_v20 = vpop.eup %12216  ;;  %9202 = vst [vmem:[%s18844_s10 + $0xba0] sm:$0xff] %v12215_v18  ;;  %12236 = vpow2.f32 %v9685_v16  ;;  %v18110_v15 = vpop.f32.mrb[118].mxu1 }
 0x769   :  { %v12219_v9 = vpop.eup %12218  ;;  %9204 = vst [vmem:[%s18844_s10 + $0xbb0] sm:$0xff] %v12217_v20  ;;  %12238 = vpow2.f32 %v9706_v40  ;;  %v18115_v28 = vpop.f32.mrb[119].mxu0 }
 0x76a   :  { %v12221_v23 = vpop.eup %12220  ;;  %9203 = vst [vmem:[%s18844_s10 + $0xba8] sm:$0xff] %v12219_v9  ;;  %12240 = vpow2.f32 %v9708_v1  ;;  %v18117_v40 = vpop.f32.mrb[119].mxu1 }
 0x76b   :  { %v12223_v54 = vpop.eup %12222  ;;  %9205 = vst [vmem:[%s18844_s10 + $0xbb8] sm:$0xff] %v12221_v23  ;;  %12242 = vpow2.f32 %v9707_v6  ;;  %v18130_v7 = vpop.f32.mrb[120].mxu1 }
 0x76c   :  { %v12225_v16 = vpop.eup %12224  ;;  %8846 = vst [vmem:[%s18844_s10 + $0x80] sm:$0xff] %v12223_v54  ;;  %12244 = vpow2.f32 %v9709_v21  ;;  %v18128_v21 = vpop.f32.mrb[120].mxu0 }
 0x76d   :  { %v12227_v30 = vpop.eup %12226  ;;  %8848 = vst [vmem:[%s18844_s10 + $0x90] sm:$0xff] %v12225_v16  ;;  %12246 = vpow2.f32 %v9730_v19  ;;  %v18132_v42 = vpop.f32.mrb[121].mxu0 }
 0x76e   :  { %v12229_v1 = vpop.eup %12228  ;;  %8847 = vst [vmem:[%s18844_s10 + $0x88] sm:$0xff] %v12227_v30  ;;  %12248 = vpow2.f32 %v9732_v39  ;;  %19062 = vst [vmem:[#allocation18_spill] sm:$0xff] %v18132_v42 }
 0x76f   :  { %v12231_v46 = vpop.eup %12230  ;;  %8849 = vst [vmem:[%s18844_s10 + $0x98] sm:$0xff] %v12229_v1  ;;  %12250 = vpow2.f32 %v9731_v60 }
 0x770   :  { %v12233_v18 = vpop.eup %12232  ;;  %v7718_v6 = vadd.f32 1.0, %v12231_v46  ;;  %12252 = vpow2.f32 %v9733_v5 }
 0x771   :  { %v12235_v33 = vpop.eup %12234  ;;  %v7720_v20 = vadd.f32 1.0, %v12233_v18  ;;  %12254 = vpow2.f32 %v9754_v61  ;;  %v19063_v18 = vld [vmem:[#allocation27_spill] sm:$0xff] }
 0x772   :  { %v12237_v9 = vpop.eup %12236  ;;  %12256 = vrcp.f32 %v7718_v6  ;;  %v7719_v19 = vadd.f32 1.0, %v12235_v33  ;;  %v6242_v6 = vadd.f32 %v19063_v18, %v17963_v48  ;;  %v18146_v18 = vpop.f32.mrb[121].mxu1 }
 0x773   :  { %v12239_v23 = vpop.eup %12238  ;;  %12258 = vrcp.f32 %v7720_v20  ;;  %v7721_v39 = vadd.f32 1.0, %v12237_v9  ;;  %v6131_v20 = vadd.f32 %v17681_v2, %v17971_v51 }
 0x774   :  { %v12241_v54 = vpop.eup %12240  ;;  %12260 = vrcp.f32 %v7719_v19  ;;  %v7742_v60 = vadd.f32 1.0, %v12239_v23  ;;  %v6244_v23 = vadd.f32 %v17683_v59, %v17983_v29  ;;  %v6135_v59 = vadd.f32 %v17709_v44, %v17971_v51 }
 0x775   :  { %v12243_v16 = vpop.eup %12242  ;;  %12262 = vrcp.f32 %v7721_v39  ;;  %v7744_v5 = vadd.f32 1.0, %v12241_v54  ;;  %v6139_v44 = vadd.f32 %v17735_v31, %v17953_v4 }
 0x776   :  { %v12245_v30 = vpop.eup %12244  ;;  %12264 = vrcp.f32 %v7742_v60  ;;  %v7743_v61 = vadd.f32 1.0, %v12243_v16  ;;  %v6133_v60 = vadd.f32 %v17695_v26, %v17953_v4  ;;  %v9757_v26 = vmul.f32 -1.442695, %v6244_v23 }
 0x777   :  { %v12247_v1 = vpop.eup %12246  ;;  %12266 = vrcp.f32 %v7744_v5  ;;  %v7745_v46 = vadd.f32 1.0, %v12245_v30  ;;  %v9756_v30 = vmul.f32 -1.442695, %v6242_v6  ;;  %v6248_v6 = vadd.f32 %v17711_v45, %v17983_v29 }
 0x778   :  { %v12249_v33 = vpop.eup %12248  ;;  %12268 = vrcp.f32 %v7743_v61  ;;  %v7766_v42 = vadd.f32 1.0, %v12247_v1  ;;  %v6246_v61 = vadd.f32 %v17697_v24, %v17963_v48  ;;  %v6252_v23 = vadd.f32 %v17737_v56, %v17963_v48 }
 0x779   :  { %v12251_v9 = vpop.eup %12250  ;;  %12270 = vrcp.f32 %v7745_v46  ;;  %v7768_v19 = vadd.f32 1.0, %v12249_v33  ;;  %v9755_v46 = vmul.f32 -1.442695, %v6131_v20  ;;  %v9778_v33 = vmul.f32 -1.442695, %v6133_v60  ;;  %v18158_v20 = vpop.f32.mrb[122].mxu0 }
 0x77a   :  { %v12253_v39 = vpop.eup %12252  ;;  %12272 = vrcp.f32 %v7766_v42  ;;  %v7767_v54 = vadd.f32 1.0, %v12251_v9  ;;  %v18160_v9 = vpop.f32.mrb[122].mxu1  ;;  %v9780_v45 = vmul.f32 -1.442695, %v6246_v61  ;;  %v9779_v31 = vmul.f32 -1.442695, %v6135_v59 }
 0x77b   :  { %v12255_v16 = vpop.eup %12254  ;;  %12274 = vrcp.f32 %v7768_v19  ;;  %v7769_v5 = vadd.f32 1.0, %v12253_v39  ;;  %v18172_v60 = vpop.f32.mrb[123].mxu0  ;;  %v9781_v56 = vmul.f32 -1.442695, %v6248_v6 }
 0x77c   :  { %v12257_v2 = vpop.eup %12256  ;;  %12276 = vrcp.f32 %v7767_v54  ;;  %v7790_v1 = vadd.f32 1.0, %v12255_v16  ;;  %v6141_v54 = vadd.f32 %v17742_v50, %v17971_v51  ;;  %v18174_v16 = vpop.f32.mrb[123].mxu1  ;;  %v9802_v50 = vmul.f32 -1.442695, %v6139_v44 }
 0x77d   :  { %v12259_v42 = vpop.eup %12258  ;;  %8870 = vst [vmem:[%s18844_s10 + $0x140] sm:$0xff] %v12257_v2  ;;  %12278 = vrcp.f32 %v7769_v5  ;;  %v6143_v2 = vadd.f32 %v17749_v52, %v17953_v4 }
 0x77e   :  { %v12261_v24 = vpop.eup %12260  ;;  %8872 = vst [vmem:[%s18844_s10 + $0x150] sm:$0xff] %v12259_v42  ;;  %12280 = vrcp.f32 %v7790_v1  ;;  %v9803_v42 = vmul.f32 -1.442695, %v6141_v54 }
 0x77f   :  { %v12263_v19 = vpop.eup %12262  ;;  %8871 = vst [vmem:[%s18844_s10 + $0x148] sm:$0xff] %v12261_v24  ;;  %12282 = vpow2.f32 %v9756_v30  ;;  %v6254_v30 = vadd.f32 %v17744_v55, %v17983_v29  ;;  %v6256_v55 = vadd.f32 %v17751_v37, %v17963_v48  ;;  %v9826_v37 = vmul.f32 -1.442695, %v6143_v2  ;;  %v18200_v24 = vpop.f32.mrb[124].mxu0 }
 0x780   :  { %v12265_v39 = vpop.eup %12264  ;;  %8873 = vst [vmem:[%s18844_s10 + $0x158] sm:$0xff] %v12263_v19  ;;  %12284 = vpow2.f32 %v9755_v46  ;;  %v9804_v46 = vmul.f32 -1.442695, %v6252_v23 }
 0x781   :  { %v12267_v5 = vpop.eup %12266  ;;  %8894 = vst [vmem:[%s18844_s10 + $0x200] sm:$0xff] %v12265_v39  ;;  %12286 = vpow2.f32 %v9757_v26  ;;  %v9805_v52 = vmul.f32 -1.442695, %v6254_v30  ;;  %v9828_v19 = vmul.f32 -1.442695, %v6256_v55 }
 0x782   :  { %v12269_v61 = vpop.eup %12268  ;;  %8896 = vst [vmem:[%s18844_s10 + $0x210] sm:$0xff] %v12267_v5  ;;  %12288 = vpow2.f32 %v9778_v33  ;;  %v18202_v33 = vpop.f32.mrb[124].mxu1 }
 0x783   :  { %v12271_v1 = vpop.eup %12270  ;;  %8895 = vst [vmem:[%s18844_s10 + $0x208] sm:$0xff] %v12269_v61  ;;  %12290 = vpow2.f32 %v9780_v45  ;;  %v18207_v45 = vpop.f32.mrb[125].mxu0 }
 0x784   :  { %v12273_v59 = vpop.eup %12272  ;;  %8897 = vst [vmem:[%s18844_s10 + $0x218] sm:$0xff] %v12271_v1  ;;  %12292 = vpow2.f32 %v9779_v31  ;;  %v18209_v23 = vpop.f32.mrb[125].mxu1 }
 0x785   :  { %v12275_v26 = vpop.eup %12274  ;;  %8918 = vst [vmem:[%s18844_s10 + $0x2c0] sm:$0xff] %v12273_v59  ;;  %12294 = vpow2.f32 %v9781_v56  ;;  %v18214_v31 = vpop.f32.mrb[126].mxu0 }
 0x786   :  { %v12277_v6 = vpop.eup %12276  ;;  %8920 = vst [vmem:[%s18844_s10 + $0x2d0] sm:$0xff] %v12275_v26  ;;  %12296 = vpow2.f32 %v9802_v50  ;;  %v18216_v54 = vpop.f32.mrb[126].mxu1 }
 0x787   :  { %v12279_v44 = vpop.eup %12278  ;;  %8919 = vst [vmem:[%s18844_s10 + $0x2c8] sm:$0xff] %v12277_v6  ;;  %12298 = vpow2.f32 %v9804_v46  ;;  %v18221_v56 = vpop.f32.mrb[127].mxu0 }
 0x788   :  { %v12281_v39 = vpop.eup %12280  ;;  %8921 = vst [vmem:[%s18844_s10 + $0x2d8] sm:$0xff] %v12279_v44  ;;  %12300 = vpow2.f32 %v9803_v42  ;;  %v18223_v30 = vpop.f32.mrb[127].mxu1 }
 0x789   :  { %v12283_v5 = vpop.eup %12282  ;;  %8942 = vst [vmem:[%s18844_s10 + $0x380] sm:$0xff] %v12281_v39  ;;  %12302 = vpow2.f32 %v9805_v52  ;;  %19064 = vst [vmem:[#allocation5_spill] sm:$0xff] %v18223_v30 }
 0x78a   :  { %v12285_v61 = vpop.eup %12284  ;;  %v7792_v50 = vadd.f32 1.0, %v12283_v5  ;;  %12304 = vpow2.f32 %v9826_v37 }
 0x78b   :  { %v12287_v2 = vpop.eup %12286  ;;  %v7791_v1 = vadd.f32 1.0, %v12285_v61  ;;  %12306 = vpow2.f32 %v9828_v19  ;;  %v19065_v19 = vld [vmem:[#allocation2_spill] sm:$0xff] }
 0x78c   :  { %v12289_v46 = vpop.eup %12288  ;;  %12308 = vrcp.f32 %v7792_v50  ;;  %v7793_v55 = vadd.f32 1.0, %v12287_v2  ;;  %v6145_v61 = vadd.f32 %v19065_v19, %v17971_v51 }
 0x78d   :  { %v12291_v59 = vpop.eup %12290  ;;  %12310 = vrcp.f32 %v7791_v1  ;;  %v7814_v42 = vadd.f32 1.0, %v12289_v46  ;;  %v6258_v1 = vadd.f32 %v17767_v32, %v17983_v29 }
 0x78e   :  { %v12293_v26 = vpop.eup %12292  ;;  %12312 = vrcp.f32 %v7793_v55  ;;  %v7816_v6 = vadd.f32 1.0, %v12291_v59  ;;  %v6149_v59 = vadd.f32 %v17799_v12, %v17953_v4  ;;  %v6264_v12 = vadd.f32 %v17810_v3, %v17983_v29 }
 0x78f   :  { %v12295_v52 = vpop.eup %12294  ;;  %12314 = vrcp.f32 %v7814_v42  ;;  %v7815_v44 = vadd.f32 1.0, %v12293_v26 }
 0x790   :  { %v12297_v39 = vpop.eup %12296  ;;  %12316 = vrcp.f32 %v7816_v6  ;;  %v7817_v30 = vadd.f32 1.0, %v12295_v52  ;;  %v6262_v6 = vadd.f32 %v17801_v38, %v17963_v48  ;;  %v9850_v38 = vmul.f32 -1.442695, %v6149_v59 }
 0x791   :  { %v12299_v5 = vpop.eup %12298  ;;  %12318 = vrcp.f32 %v7815_v44  ;;  %v7838_v37 = vadd.f32 1.0, %v12297_v39  ;;  %v6151_v39 = vadd.f32 %v17808_v62, %v17971_v51 }
 0x792   :  { %v12301_v50 = vpop.eup %12300  ;;  %12320 = vrcp.f32 %v7817_v30  ;;  %v7840_v2 = vadd.f32 1.0, %v12299_v5  ;;  %v9827_v30 = vmul.f32 -1.442695, %v6145_v61  ;;  %v6153_v61 = vadd.f32 %v17815_v27, %v17953_v4 }
 0x793   :  { %v12303_v46 = vpop.eup %12302  ;;  %12322 = vrcp.f32 %v7838_v37  ;;  %v7839_v55 = vadd.f32 1.0, %v12301_v50  ;;  %v9829_v37 = vmul.f32 -1.442695, %v6258_v1  ;;  %v9852_v62 = vmul.f32 -1.442695, %v6262_v6 }
 0x794   :  { %v12305_v42 = vpop.eup %12304  ;;  %12324 = vrcp.f32 %v7840_v2  ;;  %v7841_v26 = vadd.f32 1.0, %v12303_v46  ;;  %v19066_v2 = vld [vmem:[#allocation28_spill] sm:$0xff]  ;;  %v9851_v46 = vmul.f32 -1.442695, %v6151_v39 }
 0x795   :  { %v12307_v52 = vpop.eup %12306  ;;  %12326 = vrcp.f32 %v7839_v55  ;;  %v7862_v44 = vadd.f32 1.0, %v12305_v42  ;;  %v6266_v3 = vadd.f32 %v19066_v2, %v17963_v48  ;;  %v19067_v55 = vld [vmem:[#allocation29_spill] sm:$0xff]  ;;  %v9853_v42 = vmul.f32 -1.442695, %v6264_v12  ;;  %v19070_v12 = vld [vmem:[#allocation32_spill] sm:$0xff] }
 0x796   :  { %v12309_v32 = vpop.eup %12308  ;;  %12328 = vrcp.f32 %v7841_v26  ;;  %v7864_v5 = vadd.f32 1.0, %v12307_v52  ;;  %v6155_v27 = vadd.f32 %v19067_v55, %v17971_v51  ;;  %v19068_v26 = vld [vmem:[#allocation30_spill] sm:$0xff]  ;;  %v19071_v55 = vld [vmem:[#allocation35_spill] sm:$0xff] }
 0x797   :  { %v12311_v19 = vpop.eup %12310  ;;  %8944 = vst [vmem:[%s18844_s10 + $0x390] sm:$0xff] %v12309_v32  ;;  %12330 = vrcp.f32 %v7862_v44  ;;  %v6268_v6 = vadd.f32 %v19068_v26, %v17983_v29  ;;  %v9874_v44 = vmul.f32 -1.442695, %v6153_v61  ;;  %v18262_v32 = vpop.f32.mrb[128].mxu0 }
 0x798   :  { %v12313_v50 = vpop.eup %12312  ;;  %8943 = vst [vmem:[%s18844_s10 + $0x388] sm:$0xff] %v12311_v19  ;;  %12332 = vrcp.f32 %v7864_v5  ;;  %v18264_v5 = vpop.f32.mrb[128].mxu1 }
 0x799   :  { %v12315_v1 = vpop.eup %12314  ;;  %8945 = vst [vmem:[%s18844_s10 + $0x398] sm:$0xff] %v12313_v50  ;;  %12334 = vpow2.f32 %v9827_v30  ;;  %v19069_v30 = vld [vmem:[#allocation31_spill] sm:$0xff]  ;;  %v6272_v50 = vadd.f32 %v19070_v12, %v17963_v48  ;;  %v18271_v2 = vpop.f32.mrb[129].mxu0 }
 0x79a   :  { %v12317_v59 = vpop.eup %12316  ;;  %8966 = vst [vmem:[%s18844_s10 + $0x440] sm:$0xff] %v12315_v1  ;;  %12336 = vpow2.f32 %v9829_v37  ;;  %v6159_v39 = vadd.f32 %v19069_v30, %v17953_v4  ;;  %v9876_v37 = vmul.f32 -1.442695, %v6266_v3  ;;  %v9875_v1 = vmul.f32 -1.442695, %v6155_v27  ;;  %v18280_v26 = vpop.f32.mrb[130].mxu0 }
 0x79b   :  { %v12319_v52 = vpop.eup %12318  ;;  %8968 = vst [vmem:[%s18844_s10 + $0x450] sm:$0xff] %v12317_v59  ;;  %12338 = vpow2.f32 %v9850_v38  ;;  %v18273_v38 = vpop.f32.mrb[129].mxu1  ;;  %v6161_v59 = vadd.f32 %v19071_v55, %v17971_v51 }
 0x79c   :  { %v12321_v19 = vpop.eup %12320  ;;  %8967 = vst [vmem:[%s18844_s10 + $0x448] sm:$0xff] %v12319_v52  ;;  %12340 = vpow2.f32 %v9852_v62  ;;  %v18282_v62 = vpop.f32.mrb[130].mxu1  ;;  %v9877_v52 = vmul.f32 -1.442695, %v6268_v6  ;;  %v9898_v27 = vmul.f32 -1.442695, %v6159_v39 }
 0x79d   :  { %v12323_v61 = vpop.eup %12322  ;;  %8969 = vst [vmem:[%s18844_s10 + $0x458] sm:$0xff] %v12321_v19  ;;  %12342 = vpow2.f32 %v9851_v46  ;;  %v18287_v30 = vpop.f32.mrb[131].mxu0  ;;  %v9899_v6 = vmul.f32 -1.442695, %v6161_v59 }
 0x79e   :  { %v12325_v3 = vpop.eup %12324  ;;  %8990 = vst [vmem:[%s18844_s10 + $0x500] sm:$0xff] %v12323_v61  ;;  %12344 = vpow2.f32 %v9853_v42  ;;  %19072 = vst [vmem:[#allocation19_spill] sm:$0xff] %v18287_v30  ;;  %v18289_v12 = vpop.f32.mrb[131].mxu1  ;;  %v9900_v61 = vmul.f32 -1.442695, %v6272_v50 }
 0x79f   :  { %19073 = vst [vmem:[#allocation6_spill] sm:$0xff] %v18289_v12  ;;  %v12327_v46 = vpop.eup %12326  ;;  %8992 = vst [vmem:[%s18844_s10 + $0x510] sm:$0xff] %v12325_v3  ;;  %12346 = vpow2.f32 %v9874_v44  ;;  %v18306_v39 = vpop.f32.mrb[132].mxu0 }
 0x7a0   :  { %v12329_v19 = vpop.eup %12328  ;;  %8991 = vst [vmem:[%s18844_s10 + $0x508] sm:$0xff] %v12327_v46  ;;  %12348 = vpow2.f32 %v9876_v37  ;;  %19074 = vst [vmem:[#allocation17_spill] sm:$0xff] %v18306_v39  ;;  %v18308_v37 = vpop.f32.mrb[132].mxu1 }
 0x7a1   :  { %v12331_v42 = vpop.eup %12330  ;;  %8993 = vst [vmem:[%s18844_s10 + $0x518] sm:$0xff] %v12329_v19  ;;  %12350 = vpow2.f32 %v9875_v1  ;;  %19075 = vst [vmem:[#allocation20_spill] sm:$0xff] %v18308_v37  ;;  %v18310_v1 = vpop.f32.mrb[133].mxu0 }
 0x7a2   :  { %v12333_v55 = vpop.eup %12332  ;;  %9014 = vst [vmem:[%s18844_s10 + $0x5c0] sm:$0xff] %v12331_v42  ;;  %12352 = vpow2.f32 %v9877_v52  ;;  %19076 = vst [vmem:[#allocation23_spill] sm:$0xff] %v18310_v1  ;;  %v18312_v59 = vpop.f32.mrb[133].mxu1 }
 0x7a3   :  { %v12335_v44 = vpop.eup %12334  ;;  %9016 = vst [vmem:[%s18844_s10 + $0x5d0] sm:$0xff] %v12333_v55  ;;  %12354 = vpow2.f32 %v9898_v27  ;;  %19077 = vst [vmem:[#allocation25_spill] sm:$0xff] %v18312_v59  ;;  %v18314_v52 = vpop.f32.mrb[134].mxu0 }
 0x7a4   :  { %v12337_v50 = vpop.eup %12336  ;;  %v7863_v3 = vadd.f32 1.0, %v12335_v44  ;;  %12356 = vpow2.f32 %v9900_v61  ;;  %19078 = vst [vmem:[#allocation26_spill] sm:$0xff] %v18314_v52 }
 0x7a5   :  { %v12339_v46 = vpop.eup %12338  ;;  %v7865_v19 = vadd.f32 1.0, %v12337_v50  ;;  %12358 = vpow2.f32 %v9899_v6  ;;  %v19079_v50 = vld [vmem:[#allocation33_spill] sm:$0xff] }
 0x7a6   :  { %v12341_v42 = vpop.eup %12340  ;;  %12360 = vrcp.f32 %v7863_v3  ;;  %v7886_v55 = vadd.f32 1.0, %v12339_v46  ;;  %v6274_v52 = vadd.f32 %v19079_v50, %v17983_v29  ;;  %v18328_v50 = vpop.f32.mrb[134].mxu1 }
 0x7a7   :  { %v12343_v27 = vpop.eup %12342  ;;  %12362 = vrcp.f32 %v7865_v19  ;;  %v7888_v39 = vadd.f32 1.0, %v12341_v42  ;;  %v6163_v19 = vadd.f32 %v17863_v0, %v17953_v4 }
 0x7a8   :  { %v12345_v12 = vpop.eup %12344  ;;  %12364 = vrcp.f32 %v7886_v55  ;;  %v7887_v37 = vadd.f32 1.0, %v12343_v27 }
 0x7a9   :  { %v12347_v44 = vpop.eup %12346  ;;  %12366 = vrcp.f32 %v7888_v39  ;;  %v7889_v61 = vadd.f32 1.0, %v12345_v12  ;;  %v6276_v12 = vadd.f32 %v17865_v8, %v17963_v48  ;;  %v6169_v8 = vadd.f32 %v17907_v35, %v17953_v4 }
 0x7aa   :  { %v12349_v1 = vpop.eup %12348  ;;  %12368 = vrcp.f32 %v7887_v37  ;;  %v7910_v59 = vadd.f32 1.0, %v12347_v44  ;;  %v6171_v35 = vadd.f32 %v17914_v47, %v17971_v51 }
 0x7ab   :  { %v12351_v30 = vpop.eup %12350  ;;  %12370 = vrcp.f32 %v7889_v61  ;;  %v7912_v6 = vadd.f32 1.0, %v12349_v1  ;;  %v6165_v1 = vadd.f32 %v17877_v14, %v17971_v51  ;;  %v9924_v14 = vmul.f32 -1.442695, %v6276_v12  ;;  %v19080_v12 = vld [vmem:[#allocation34_spill] sm:$0xff] }
 0x7ac   :  { %v12353_v3 = vpop.eup %12352  ;;  %12372 = vrcp.f32 %v7910_v59  ;;  %v7911_v46 = vadd.f32 1.0, %v12351_v30  ;;  %v9901_v59 = vmul.f32 -1.442695, %v6274_v52  ;;  %v6278_v30 = vadd.f32 %v17879_v53, %v17983_v29 }
 0x7ad   :  { %v12355_v42 = vpop.eup %12354  ;;  %12374 = vrcp.f32 %v7912_v6  ;;  %v7913_v55 = vadd.f32 1.0, %v12353_v3  ;;  %v9922_v6 = vmul.f32 -1.442695, %v6163_v19  ;;  %v6282_v52 = vadd.f32 %v17909_v13, %v17963_v48  ;;  %v18340_v19 = vpop.f32.mrb[135].mxu0 }
 0x7ae   :  { %v12357_v39 = vpop.eup %12356  ;;  %12376 = vrcp.f32 %v7911_v46  ;;  %v7934_v37 = vadd.f32 1.0, %v12355_v42  ;;  %v9923_v46 = vmul.f32 -1.442695, %v6165_v1  ;;  %v18342_v42 = vpop.f32.mrb[135].mxu1  ;;  %v9925_v13 = vmul.f32 -1.442695, %v6278_v30 }
 0x7af   :  { %v12359_v27 = vpop.eup %12358  ;;  %12378 = vrcp.f32 %v7913_v55  ;;  %v7936_v44 = vadd.f32 1.0, %v12357_v39  ;;  %v6284_v39 = vadd.f32 %v19080_v12, %v17983_v29  ;;  %v9946_v47 = vmul.f32 -1.442695, %v6169_v8  ;;  %v19081_v1 = vld [vmem:[#allocation36_spill] sm:$0xff]  ;;  %v19082_v30 = vld [vmem:[#allocation7_spill] sm:$0xff] }
 0x7b0   :  { %v12361_v0 = vpop.eup %12360  ;;  %12380 = vrcp.f32 %v7934_v37  ;;  %v7935_v61 = vadd.f32 1.0, %v12359_v27  ;;  %v6173_v27 = vadd.f32 %v19081_v1, %v17953_v4  ;;  %v19083_v8 = vld [vmem:[#allocation8_spill] sm:$0xff] }
 0x7b1   :  { %v12363_v3 = vpop.eup %12362  ;;  %9015 = vst [vmem:[%s18844_s10 + $0x5c8] sm:$0xff] %v12361_v0  ;;  %12382 = vrcp.f32 %v7936_v44  ;;  %v6286_v0 = vadd.f32 %v19082_v30, %v17963_v48 }
 0x7b2   :  { %v12365_v53 = vpop.eup %12364  ;;  %9017 = vst [vmem:[%s18844_s10 + $0x5d8] sm:$0xff] %v12363_v3  ;;  %12384 = vrcp.f32 %v7935_v61  ;;  %v6175_v3 = vadd.f32 %v19083_v8, %v17971_v51 }
 0x7b3   :  { %v12367_v55 = vpop.eup %12366  ;;  %9038 = vst [vmem:[%s18844_s10 + $0x680] sm:$0xff] %v12365_v53  ;;  %12386 = vpow2.f32 %v9901_v59  ;;  %v9948_v59 = vmul.f32 -1.442695, %v6282_v52  ;;  %v19084_v52 = vld [vmem:[#allocation9_spill] sm:$0xff] }
 0x7b4   :  { %v12369_v37 = vpop.eup %12368  ;;  %9040 = vst [vmem:[%s18844_s10 + $0x690] sm:$0xff] %v12367_v55  ;;  %12388 = vpow2.f32 %v9922_v6  ;;  %v9947_v6 = vmul.f32 -1.442695, %v6171_v35  ;;  %v6288_v55 = vadd.f32 %v19084_v52, %v17983_v29  ;;  %v18372_v35 = vpop.f32.mrb[136].mxu0 }
 0x7b5   :  { %v12371_v44 = vpop.eup %12370  ;;  %9039 = vst [vmem:[%s18844_s10 + $0x688] sm:$0xff] %v12369_v37  ;;  %12390 = vpow2.f32 %v9924_v14  ;;  %v9949_v14 = vmul.f32 -1.442695, %v6284_v39  ;;  %v18374_v37 = vpop.f32.mrb[136].mxu1 }
 0x7b6   :  { %v12373_v61 = vpop.eup %12372  ;;  %9041 = vst [vmem:[%s18844_s10 + $0x698] sm:$0xff] %v12371_v44  ;;  %12392 = vpow2.f32 %v9923_v46  ;;  %v9970_v46 = vmul.f32 -1.442695, %v6173_v27  ;;  %v18379_v39 = vpop.f32.mrb[137].mxu0 }
 0x7b7   :  { %v12375_v53 = vpop.eup %12374  ;;  %9062 = vst [vmem:[%s18844_s10 + $0x740] sm:$0xff] %v12373_v61  ;;  %12394 = vpow2.f32 %v9925_v13  ;;  %v9972_v13 = vmul.f32 -1.442695, %v6286_v0  ;;  %v18381_v44 = vpop.f32.mrb[137].mxu1 }
 0x7b8   :  { %v12377_v12 = vpop.eup %12376  ;;  %9064 = vst [vmem:[%s18844_s10 + $0x750] sm:$0xff] %v12375_v53  ;;  %12396 = vpow2.f32 %v9946_v47  ;;  %19085 = vst [vmem:[#allocation27_spill] sm:$0xff] %v18381_v44  ;;  %v9971_v47 = vmul.f32 -1.442695, %v6175_v3  ;;  %v18386_v27 = vpop.f32.mrb[138].mxu0 }
 0x7b9   :  { %v12379_v1 = vpop.eup %12378  ;;  %9063 = vst [vmem:[%s18844_s10 + $0x748] sm:$0xff] %v12377_v12  ;;  %12398 = vpow2.f32 %v9948_v59  ;;  %19086 = vst [vmem:[#allocation2_spill] sm:$0xff] %v18386_v27  ;;  %v18388_v61 = vpop.f32.mrb[138].mxu1  ;;  %v9973_v59 = vmul.f32 -1.442695, %v6288_v55  ;;  %v19093_v27 = vld [vmem:[#allocation11_spill] sm:$0xff] }
 0x7ba   :  { %v12381_v30 = vpop.eup %12380  ;;  %9065 = vst [vmem:[%s18844_s10 + $0x758] sm:$0xff] %v12379_v1  ;;  %12400 = vpow2.f32 %v9947_v6  ;;  %19087 = vst [vmem:[#allocation28_spill] sm:$0xff] %v18388_v61  ;;  %v18393_v0 = vpop.f32.mrb[139].mxu0 }
 0x7bb   :  { %v12383_v8 = vpop.eup %12382  ;;  %9086 = vst [vmem:[%s18844_s10 + $0x800] sm:$0xff] %v12381_v30  ;;  %12402 = vpow2.f32 %v9949_v14  ;;  %19088 = vst [vmem:[#allocation29_spill] sm:$0xff] %v18393_v0  ;;  %v18395_v53 = vpop.f32.mrb[139].mxu1 }
 0x7bc   :  { %19089 = vst [vmem:[#allocation30_spill] sm:$0xff] %v18395_v53  ;;  %v12385_v52 = vpop.eup %12384  ;;  %9088 = vst [vmem:[%s18844_s10 + $0x810] sm:$0xff] %v12383_v8  ;;  %12404 = vpow2.f32 %v9970_v46  ;;  %v18403_v53 = vpop.f32.mrb[140].mxu0 }
 0x7bd   :  { %v12387_v6 = vpop.eup %12386  ;;  %9087 = vst [vmem:[%s18844_s10 + $0x808] sm:$0xff] %v12385_v52  ;;  %12406 = vpow2.f32 %v9972_v13  ;;  %19090 = vst [vmem:[#allocation31_spill] sm:$0xff] %v18403_v53  ;;  %v18405_v0 = vpop.f32.mrb[140].mxu1 }
 0x7be   :  { %v12389_v3 = vpop.eup %12388  ;;  %v7937_v12 = vadd.f32 1.0, %v12387_v6  ;;  %12408 = vpow2.f32 %v9971_v47  ;;  %19091 = vst [vmem:[#allocation32_spill] sm:$0xff] %v18405_v0  ;;  %v19092_v47 = vld [vmem:[#allocation10_spill] sm:$0xff] }
 0x7bf   :  { %v12391_v14 = vpop.eup %12390  ;;  %v7958_v55 = vadd.f32 1.0, %v12389_v3  ;;  %12410 = vpow2.f32 %v9973_v59  ;;  %v6179_v3 = vadd.f32 %v19092_v47, %v17953_v4 }
 0x7c0   :  { %v12393_v1 = vpop.eup %12392  ;;  %12412 = vrcp.f32 %v7937_v12  ;;  %v7960_v30 = vadd.f32 1.0, %v12391_v14  ;;  %v6292_v14 = vadd.f32 %v17955_v25, %v17963_v48  ;;  %v6294_v25 = vadd.f32 %v19093_v27, %v17983_v29  ;;  %v19095_v27 = vld [vmem:[#allocation21_spill] sm:$0xff] }
 0x7c1   :  { %v12395_v46 = vpop.eup %12394  ;;  %12414 = vrcp.f32 %v7958_v55  ;;  %v7959_v8 = vadd.f32 1.0, %v12393_v1 }
 0x7c2   :  { %v12397_v61 = vpop.eup %12396  ;;  %12416 = vrcp.f32 %v7960_v30  ;;  %v7961_v52 = vadd.f32 1.0, %v12395_v46 }
 0x7c3   :  { %v12399_v13 = vpop.eup %12398  ;;  %12418 = vrcp.f32 %v7959_v8  ;;  %v7982_v6 = vadd.f32 1.0, %v12397_v61  ;;  %v9994_v8 = vmul.f32 -1.442695, %v6179_v3  ;;  %v6181_v61 = vadd.f32 %v17973_v22, %v17971_v51  ;;  %v19094_v3 = vld [vmem:[#allocation13_spill] sm:$0xff] }
 0x7c4   :  { %v12401_v59 = vpop.eup %12400  ;;  %12420 = vrcp.f32 %v7961_v52  ;;  %v7984_v12 = vadd.f32 1.0, %v12399_v13  ;;  %v9996_v13 = vmul.f32 -1.442695, %v6292_v14  ;;  %v6296_v14 = vadd.f32 %v17992_v11, %v17963_v48 }
 0x7c5   :  { %v12403_v53 = vpop.eup %12402  ;;  %12422 = vrcp.f32 %v7982_v6  ;;  %v7983_v0 = vadd.f32 1.0, %v12401_v59  ;;  %v9997_v11 = vmul.f32 -1.442695, %v6294_v25 }
 0x7c6   :  { %v12405_v55 = vpop.eup %12404  ;;  %12424 = vrcp.f32 %v7984_v12  ;;  %v7985_v1 = vadd.f32 1.0, %v12403_v53  ;;  %v6183_v53 = vadd.f32 %v17990_v43, %v17953_v4  ;;  %v9995_v4 = vmul.f32 -1.442695, %v6181_v61 }
 0x7c7   :  { %v12407_v30 = vpop.eup %12406  ;;  %12426 = vrcp.f32 %v7983_v0  ;;  %v8006_v46 = vadd.f32 1.0, %v12405_v55  ;;  %v12728_v0 = vld [vmem:[%s18843_s9 + $0x10] sm:$0xff]  ;;  %v6185_v43 = vadd.f32 %v18004_v34, %v17971_v51  ;;  %v6298_v61 = vadd.f32 %v18006_v63, %v17983_v29  ;;  %v19099_v63 = vld [vmem:[#allocation15_spill] sm:$0xff] }
 0x7c8   :  { %v12409_v47 = vpop.eup %12408  ;;  %12428 = vrcp.f32 %v7985_v1  ;;  %v8008_v52 = vadd.f32 1.0, %v12407_v30  ;;  %v18421_v59 = vrot.slane %v12728_v0, %v19094_v3  ;;  %v18426_v55 = vrot.slane %v12728_v0, %v19095_v27  ;;  %v19096_v30 = vld [vmem:[#allocation22_spill] sm:$0xff]  ;;  %v19098_v3 = vld [vmem:[#allocation12_spill] sm:$0xff] }
 0x7c9   :  { %v12411_v44 = vpop.eup %12410  ;;  %12430 = vrcp.f32 %v8006_v46  ;;  %v8007_v6 = vadd.f32 1.0, %v12409_v47  ;;  %v18434_v46 = vrot.slane %v12728_v0, %v19096_v30  ;;  %v18438_v47 = vpop.f32.mrb[141].mxu1  ;;  %v10018_v34 = vmul.f32 -1.442695, %v6183_v53  ;;  %v19100_v53 = vld [vmem:[#allocation14_spill] sm:$0xff] }
 0x7ca   :  { %v12413_v22 = vpop.eup %12412  ;;  %12432 = vrcp.f32 %v8008_v52  ;;  %v8009_v12 = vadd.f32 1.0, %v12411_v44  ;;  %v18436_v44 = vpop.f32.mrb[141].mxu0  ;;  %v19097_v52 = vld [vmem:[#allocation24_spill] sm:$0xff]  ;;  %v10020_v29 = vmul.f32 -1.442695, %v6296_v14 }
 0x7cb   :  { %v12415_v1 = vpop.eup %12414  ;;  %9089 = vst [vmem:[%s18844_s10 + $0x818] sm:$0xff] %v12413_v22  ;;  %12434 = vrcp.f32 %v8007_v6  ;;  %v18446_v6 = vrot.slane %v12728_v0, %v19097_v52  ;;  %v6335_v22 = vadd.f32 %v19098_v3, %v18421_v59  ;;  %v18453_v27 = vpop.f32.mrb[142].mxu0  ;;  %v6448_v0 = vadd.f32 %v19099_v63, %v18426_v55  ;;  %v19101_v14 = vld [vmem:[#allocation16_spill] sm:$0xff] }
 0x7cc   :  { %v12417_v48 = vpop.eup %12416  ;;  %9110 = vst [vmem:[%s18844_s10 + $0x8c0] sm:$0xff] %v12415_v1  ;;  %12436 = vrcp.f32 %v8009_v12  ;;  %v18455_v12 = vpop.f32.mrb[142].mxu1  ;;  %v6337_v30 = vadd.f32 %v19100_v53, %v18434_v46 }
 0x7cd   :  { %v12419_v51 = vpop.eup %12418  ;;  %9112 = vst [vmem:[%s18844_s10 + $0x8d0] sm:$0xff] %v12417_v48  ;;  %12438 = vpow2.f32 %v9994_v8  ;;  %v10019_v8 = vmul.f32 -1.442695, %v6185_v43  ;;  %v18467_v48 = vpop.f32.mrb[143].mxu0  ;;  %v6450_v3 = vadd.f32 %v19101_v14, %v18446_v6  ;;  %v19102_v43 = vld [vmem:[#allocation3_spill] sm:$0xff] }
 0x7ce   :  { %v12421_v25 = vpop.eup %12420  ;;  %9111 = vst [vmem:[%s18844_s10 + $0x8c8] sm:$0xff] %v12419_v51  ;;  %12440 = vpow2.f32 %v9996_v13  ;;  %v18469_v52 = vpop.f32.mrb[143].mxu1  ;;  %v10021_v13 = vmul.f32 -1.442695, %v6298_v61  ;;  %v6339_v63 = vadd.f32 %v19102_v43, %v18421_v59 }
 0x7cf   :  { %v12423_v1 = vpop.eup %12422  ;;  %9113 = vst [vmem:[%s18844_s10 + $0x8d8] sm:$0xff] %v12421_v25  ;;  %12442 = vpow2.f32 %v9995_v4  ;;  %v9662_v4 = vmul.f32 -1.442695, %v6335_v22 }
 0x7d0   :  { %v12425_v51 = vpop.eup %12424  ;;  %9134 = vst [vmem:[%s18844_s10 + $0x980] sm:$0xff] %v12423_v1  ;;  %12444 = vpow2.f32 %v9997_v11  ;;  %v9664_v11 = vmul.f32 -1.442695, %v6448_v0  ;;  %v9663_v1 = vmul.f32 -1.442695, %v6337_v30 }
 0x7d1   :  { %v12427_v25 = vpop.eup %12426  ;;  %9136 = vst [vmem:[%s18844_s10 + $0x990] sm:$0xff] %v12425_v51  ;;  %12446 = vpow2.f32 %v10018_v34  ;;  %v9665_v34 = vmul.f32 -1.442695, %v6450_v3 }
 0x7d2   :  { %v12429_v53 = vpop.eup %12428  ;;  %9135 = vst [vmem:[%s18844_s10 + $0x988] sm:$0xff] %v12427_v25  ;;  %12448 = vpow2.f32 %v10020_v29  ;;  %v9686_v29 = vmul.f32 -1.442695, %v6339_v63 }
 0x7d3   :  { %v12431_v61 = vpop.eup %12430  ;;  %9137 = vst [vmem:[%s18844_s10 + $0x998] sm:$0xff] %v12429_v53  ;;  %12450 = vpow2.f32 %v10019_v8 }
 0x7d4   :  { %v12433_v51 = vpop.eup %12432  ;;  %9158 = vst [vmem:[%s18844_s10 + $0xa40] sm:$0xff] %v12431_v61  ;;  %12452 = vpow2.f32 %v10021_v13 }
 0x7d5   :  { %v12435_v22 = vpop.eup %12434  ;;  %9160 = vst [vmem:[%s18844_s10 + $0xa50] sm:$0xff] %v12433_v51  ;;  %12454 = vpow2.f32 %v9662_v4 }
 0x7d6   :  { %v12437_v0 = vpop.eup %12436  ;;  %9159 = vst [vmem:[%s18844_s10 + $0xa48] sm:$0xff] %v12435_v22  ;;  %12456 = vpow2.f32 %v9664_v11 }
 0x7d7   :  { %v12439_v8 = vpop.eup %12438  ;;  %9161 = vst [vmem:[%s18844_s10 + $0xa58] sm:$0xff] %v12437_v0  ;;  %12458 = vpow2.f32 %v9663_v1 }
 0x7d8   :  { %v12441_v30 = vpop.eup %12440  ;;  %v8030_v13 = vadd.f32 1.0, %v12439_v8  ;;  %12460 = vpow2.f32 %v9665_v34 }
 0x7d9   :  { %v12443_v14 = vpop.eup %12442  ;;  %v8032_v3 = vadd.f32 1.0, %v12441_v30  ;;  %12462 = vpow2.f32 %v9686_v29  ;;  %v19103_v29 = vld [vmem:[#allocation4_spill] sm:$0xff] }
 0x7da   :  { %v12445_v25 = vpop.eup %12444  ;;  %12464 = vrcp.f32 %v8030_v13  ;;  %v8031_v4 = vadd.f32 1.0, %v12443_v14  ;;  %v6452_v8 = vadd.f32 %v19103_v29, %v18426_v55  ;;  %v6341_v14 = vadd.f32 %v18060_v58, %v18434_v46 }
 0x7db   :  { %v12447_v43 = vpop.eup %12446  ;;  %12466 = vrcp.f32 %v8032_v3  ;;  %v8033_v63 = vadd.f32 1.0, %v12445_v25  ;;  %v6460_v29 = vadd.f32 %v18103_v10, %v18446_v6  ;;  %v6462_v10 = vadd.f32 %v18110_v15, %v18426_v55 }
 0x7dc   :  { %v12449_v53 = vpop.eup %12448  ;;  %12468 = vrcp.f32 %v8031_v4  ;;  %v8054_v11 = vadd.f32 1.0, %v12447_v43  ;;  %v6454_v4 = vadd.f32 %v18062_v17, %v18446_v6  ;;  %v6347_v17 = vadd.f32 %v18101_v49, %v18434_v46 }
 0x7dd   :  { %v12451_v61 = vpop.eup %12450  ;;  %12470 = vrcp.f32 %v8033_v63  ;;  %v8056_v51 = vadd.f32 1.0, %v12449_v53  ;;  %v6345_v53 = vadd.f32 %v18094_v41, %v18421_v59  ;;  %v6349_v49 = vadd.f32 %v18108_v57, %v18421_v59 }
 0x7de   :  { %v12453_v22 = vpop.eup %12452  ;;  %12472 = vrcp.f32 %v8054_v11  ;;  %v8055_v1 = vadd.f32 1.0, %v12451_v61  ;;  %v9689_v41 = vmul.f32 -1.442695, %v6454_v4  ;;  %v6351_v57 = vadd.f32 %v18115_v28, %v18434_v46 }
 0x7df   :  { %v12455_v0 = vpop.eup %12454  ;;  %12474 = vrcp.f32 %v8056_v51  ;;  %v8057_v34 = vadd.f32 1.0, %v12453_v22  ;;  %v9688_v51 = vmul.f32 -1.442695, %v6452_v8  ;;  %v6458_v22 = vadd.f32 %v18096_v36, %v18426_v55 }
 0x7e0   :  { %v12457_v30 = vpop.eup %12456  ;;  %12476 = vrcp.f32 %v8055_v1  ;;  %v7698_v13 = vadd.f32 1.0, %v12455_v0  ;;  %v9687_v0 = vmul.f32 -1.442695, %v6341_v14  ;;  %v9710_v36 = vmul.f32 -1.442695, %v6345_v53 }
 0x7e1   :  { %v12459_v3 = vpop.eup %12458  ;;  %12478 = vrcp.f32 %v8057_v34  ;;  %v7700_v25 = vadd.f32 1.0, %v12457_v30  ;;  %v9713_v4 = vmul.f32 -1.442695, %v6460_v29  ;;  %v6464_v15 = vadd.f32 %v18117_v40, %v18446_v6 }
 0x7e2   :  { %v12461_v43 = vpop.eup %12460  ;;  %12480 = vrcp.f32 %v7698_v13  ;;  %v7699_v63 = vadd.f32 1.0, %v12459_v3  ;;  %v9712_v13 = vmul.f32 -1.442695, %v6458_v22  ;;  %v9711_v3 = vmul.f32 -1.442695, %v6347_v17 }
 0x7e3   :  { %v12463_v11 = vpop.eup %12462  ;;  %12482 = vrcp.f32 %v7700_v25  ;;  %v7701_v61 = vadd.f32 1.0, %v12461_v43  ;;  %v6355_v28 = vadd.f32 %v18128_v21, %v18421_v59  ;;  %v6468_v40 = vadd.f32 %v18130_v7, %v18426_v55 }
 0x7e4   :  { %v12465_v58 = vpop.eup %12464  ;;  %12484 = vrcp.f32 %v7699_v63  ;;  %v7722_v1 = vadd.f32 1.0, %v12463_v11  ;;  %v9734_v63 = vmul.f32 -1.442695, %v6349_v49  ;;  %v9736_v11 = vmul.f32 -1.442695, %v6462_v10 }
 0x7e5   :  { %v12467_v34 = vpop.eup %12466  ;;  %9182 = vst [vmem:[%s18844_s10 + $0xb00] sm:$0xff] %v12465_v58  ;;  %12486 = vrcp.f32 %v7701_v61  ;;  %v9737_v21 = vmul.f32 -1.442695, %v6464_v15  ;;  %v9758_v7 = vmul.f32 -1.442695, %v6355_v28  ;;  %v19104_v28 = vld [vmem:[#allocation18_spill] sm:$0xff] }
 0x7e6   :  { %v12469_v8 = vpop.eup %12468  ;;  %9184 = vst [vmem:[%s18844_s10 + $0xb10] sm:$0xff] %v12467_v34  ;;  %12488 = vrcp.f32 %v7722_v1 }
 0x7e7   :  { %v12471_v30 = vpop.eup %12470  ;;  %9183 = vst [vmem:[%s18844_s10 + $0xb08] sm:$0xff] %v12469_v8  ;;  %12490 = vpow2.f32 %v9688_v51  ;;  %v9735_v51 = vmul.f32 -1.442695, %v6351_v57 }
 0x7e8   :  { %v12473_v14 = vpop.eup %12472  ;;  %9185 = vst [vmem:[%s18844_s10 + $0xb18] sm:$0xff] %v12471_v30  ;;  %12492 = vpow2.f32 %v9687_v0  ;;  %v9760_v0 = vmul.f32 -1.442695, %v6468_v40 }
 0x7e9   :  { %v12475_v25 = vpop.eup %12474  ;;  %9206 = vst [vmem:[%s18844_s10 + $0xbc0] sm:$0xff] %v12473_v14  ;;  %12494 = vpow2.f32 %v9689_v41 }
 0x7ea   :  { %v12477_v43 = vpop.eup %12476  ;;  %9208 = vst [vmem:[%s18844_s10 + $0xbd0] sm:$0xff] %v12475_v25  ;;  %12496 = vpow2.f32 %v9710_v36 }
 0x7eb   :  { %v12479_v53 = vpop.eup %12478  ;;  %9207 = vst [vmem:[%s18844_s10 + $0xbc8] sm:$0xff] %v12477_v43  ;;  %12498 = vpow2.f32 %v9712_v13 }
 0x7ec   :  { %v12481_v61 = vpop.eup %12480  ;;  %9209 = vst [vmem:[%s18844_s10 + $0xbd8] sm:$0xff] %v12479_v53  ;;  %12500 = vpow2.f32 %v9711_v3  ;;  %v6357_v53 = vadd.f32 %v19104_v28, %v18434_v46 }
 0x7ed   :  { %v12483_v22 = vpop.eup %12482  ;;  %8850 = vst [vmem:[%s18844_s10 + $0xa0] sm:$0xff] %v12481_v61  ;;  %12502 = vpow2.f32 %v9713_v4  ;;  %v6470_v61 = vadd.f32 %v18146_v18, %v18446_v6 }
 0x7ee   :  { %v12485_v58 = vpop.eup %12484  ;;  %8852 = vst [vmem:[%s18844_s10 + $0xb0] sm:$0xff] %v12483_v22  ;;  %12504 = vpow2.f32 %v9734_v63 }
 0x7ef   :  { %v12487_v1 = vpop.eup %12486  ;;  %8851 = vst [vmem:[%s18844_s10 + $0xa8] sm:$0xff] %v12485_v58  ;;  %12506 = vpow2.f32 %v9736_v11 }
 0x7f0   :  { %v12489_v17 = vpop.eup %12488  ;;  %8853 = vst [vmem:[%s18844_s10 + $0xb8] sm:$0xff] %v12487_v1  ;;  %12508 = vpow2.f32 %v9735_v51  ;;  %v6472_v1 = vadd.f32 %v18160_v9, %v18426_v55 }
 0x7f1   :  { %v12491_v34 = vpop.eup %12490  ;;  %8874 = vst [vmem:[%s18844_s10 + $0x160] sm:$0xff] %v12489_v17  ;;  %12510 = vpow2.f32 %v9737_v21  ;;  %v6359_v21 = vadd.f32 %v18158_v20, %v18421_v59  ;;  %v6474_v20 = vadd.f32 %v18174_v16, %v18446_v6  ;;  %v6478_v16 = vadd.f32 %v18202_v33, %v18426_v55 }
 0x7f2   :  { %v12493_v41 = vpop.eup %12492  ;;  %v7724_v29 = vadd.f32 1.0, %v12491_v34  ;;  %12512 = vpow2.f32 %v9758_v7  ;;  %v9759_v34 = vmul.f32 -1.442695, %v6357_v53  ;;  %v6480_v33 = vadd.f32 %v18209_v23, %v18446_v6 }
 0x7f3   :  { %v12495_v8 = vpop.eup %12494  ;;  %v7723_v36 = vadd.f32 1.0, %v12493_v41  ;;  %12514 = vpow2.f32 %v9760_v0  ;;  %v6361_v41 = vadd.f32 %v18172_v60, %v18434_v46  ;;  %v9782_v9 = vmul.f32 -1.442695, %v6359_v21 }
 0x7f4   :  { %v12497_v49 = vpop.eup %12496  ;;  %12516 = vrcp.f32 %v7724_v29  ;;  %v7725_v30 = vadd.f32 1.0, %v12495_v8  ;;  %v9761_v8 = vmul.f32 -1.442695, %v6470_v61  ;;  %v9784_v60 = vmul.f32 -1.442695, %v6472_v1 }
 0x7f5   :  { %v12499_v13 = vpop.eup %12498  ;;  %12518 = vrcp.f32 %v7723_v36  ;;  %v7746_v10 = vadd.f32 1.0, %v12497_v49  ;;  %v6365_v49 = vadd.f32 %v18200_v24, %v18421_v59  ;;  %v6367_v24 = vadd.f32 %v18207_v45, %v18434_v46 }
 0x7f6   :  { %v12501_v14 = vpop.eup %12500  ;;  %12520 = vrcp.f32 %v7725_v30  ;;  %v7748_v3 = vadd.f32 1.0, %v12499_v13  ;;  %v6369_v45 = vadd.f32 %v18214_v31, %v18421_v59  ;;  %v6482_v23 = vadd.f32 %v18216_v54, %v18426_v55 }
 0x7f7   :  { %v12503_v57 = vpop.eup %12502  ;;  %12522 = vrcp.f32 %v7746_v10  ;;  %v7747_v25 = vadd.f32 1.0, %v12501_v14  ;;  %v9783_v10 = vmul.f32 -1.442695, %v6361_v41  ;;  %v6371_v31 = vadd.f32 %v18221_v56, %v18434_v46 }
 0x7f8   :  { %v12505_v4 = vpop.eup %12504  ;;  %12524 = vrcp.f32 %v7748_v3  ;;  %v7749_v15 = vadd.f32 1.0, %v12503_v57  ;;  %v9785_v3 = vmul.f32 -1.442695, %v6474_v20  ;;  %v9809_v53 = vmul.f32 -1.442695, %v6480_v33 }
 0x7f9   :  { %v12507_v43 = vpop.eup %12506  ;;  %12526 = vrcp.f32 %v7747_v25  ;;  %v7770_v63 = vadd.f32 1.0, %v12505_v4  ;;  %v9806_v25 = vmul.f32 -1.442695, %v6365_v49  ;;  %v9830_v54 = vmul.f32 -1.442695, %v6369_v45 }
 0x7fa   :  { %v12509_v11 = vpop.eup %12508  ;;  %12528 = vrcp.f32 %v7749_v15  ;;  %v7772_v40 = vadd.f32 1.0, %v12507_v43  ;;  %v9808_v15 = vmul.f32 -1.442695, %v6478_v16  ;;  %v9832_v56 = vmul.f32 -1.442695, %v6482_v23  ;;  %v19105_v16 = vld [vmem:[#allocation5_spill] sm:$0xff] }
 0x7fb   :  { %v12511_v51 = vpop.eup %12510  ;;  %12530 = vrcp.f32 %v7770_v63  ;;  %v7771_v22 = vadd.f32 1.0, %v12509_v11  ;;  %v9807_v63 = vmul.f32 -1.442695, %v6367_v24 }
 0x7fc   :  { %v12513_v58 = vpop.eup %12512  ;;  %12532 = vrcp.f32 %v7772_v40  ;;  %v7773_v7 = vadd.f32 1.0, %v12511_v51  ;;  %v9831_v51 = vmul.f32 -1.442695, %v6371_v31 }
 0x7fd   :  { %v12515_v0 = vpop.eup %12514  ;;  %12534 = vrcp.f32 %v7771_v22  ;;  %v7794_v17 = vadd.f32 1.0, %v12513_v58 }
 0x7fe   :  { %v12517_v18 = vpop.eup %12516  ;;  %12536 = vrcp.f32 %v7773_v7  ;;  %v7796_v29 = vadd.f32 1.0, %v12515_v0 }
 0x7ff   :  { %v12519_v36 = vpop.eup %12518  ;;  %8876 = vst [vmem:[%s18844_s10 + $0x170] sm:$0xff] %v12517_v18  ;;  %12538 = vrcp.f32 %v7794_v17 }
 0x800   :  { %v12521_v30 = vpop.eup %12520  ;;  %8875 = vst [vmem:[%s18844_s10 + $0x168] sm:$0xff] %v12519_v36  ;;  %12540 = vrcp.f32 %v7796_v29 }
 0x801   :  { %v12523_v13 = vpop.eup %12522  ;;  %8877 = vst [vmem:[%s18844_s10 + $0x178] sm:$0xff] %v12521_v30  ;;  %12542 = vpow2.f32 %v9759_v34 }
 0x802   :  { %v12525_v14 = vpop.eup %12524  ;;  %8898 = vst [vmem:[%s18844_s10 + $0x220] sm:$0xff] %v12523_v13  ;;  %12544 = vpow2.f32 %v9761_v8  ;;  %v6484_v13 = vadd.f32 %v19105_v16, %v18446_v6 }
 0x803   :  { %v12527_v57 = vpop.eup %12526  ;;  %8900 = vst [vmem:[%s18844_s10 + $0x230] sm:$0xff] %v12525_v14  ;;  %12546 = vpow2.f32 %v9782_v9  ;;  %v6375_v14 = vadd.f32 %v18262_v32, %v18421_v59 }
 0x804   :  { %v12529_v4 = vpop.eup %12528  ;;  %8899 = vst [vmem:[%s18844_s10 + $0x228] sm:$0xff] %v12527_v57  ;;  %12548 = vpow2.f32 %v9784_v60  ;;  %v6488_v57 = vadd.f32 %v18264_v5, %v18426_v55  ;;  %v6379_v5 = vadd.f32 %v18280_v26, %v18421_v59 }
 0x805   :  { %v12531_v43 = vpop.eup %12530  ;;  %8901 = vst [vmem:[%s18844_s10 + $0x238] sm:$0xff] %v12529_v4  ;;  %12550 = vpow2.f32 %v9783_v10  ;;  %v6377_v4 = vadd.f32 %v18271_v2, %v18434_v46 }
 0x806   :  { %v12533_v28 = vpop.eup %12532  ;;  %8922 = vst [vmem:[%s18844_s10 + $0x2e0] sm:$0xff] %v12531_v43  ;;  %12552 = vpow2.f32 %v9785_v3  ;;  %v9833_v43 = vmul.f32 -1.442695, %v6484_v13  ;;  %v9856_v2 = vmul.f32 -1.442695, %v6488_v57 }
 0x807   :  { %v12535_v11 = vpop.eup %12534  ;;  %8924 = vst [vmem:[%s18844_s10 + $0x2f0] sm:$0xff] %v12533_v28  ;;  %12554 = vpow2.f32 %v9806_v25  ;;  %v9854_v28 = vmul.f32 -1.442695, %v6375_v14 }
 0x808   :  { %v12537_v40 = vpop.eup %12536  ;;  %8923 = vst [vmem:[%s18844_s10 + $0x2e8] sm:$0xff] %v12535_v11  ;;  %12556 = vpow2.f32 %v9808_v15  ;;  %v6492_v11 = vadd.f32 %v18282_v62, %v18426_v55 }
 0x809   :  { %v12539_v61 = vpop.eup %12538  ;;  %8925 = vst [vmem:[%s18844_s10 + $0x2f8] sm:$0xff] %v12537_v40  ;;  %12558 = vpow2.f32 %v9807_v63  ;;  %v6490_v63 = vadd.f32 %v18273_v38, %v18446_v6  ;;  %v9855_v38 = vmul.f32 -1.442695, %v6377_v4  ;;  %v19106_v40 = vld [vmem:[#allocation19_spill] sm:$0xff] }
 0x80a   :  { %v12541_v22 = vpop.eup %12540  ;;  %8946 = vst [vmem:[%s18844_s10 + $0x3a0] sm:$0xff] %v12539_v61  ;;  %12560 = vpow2.f32 %v9809_v53  ;;  %v6381_v26 = vadd.f32 %v19106_v40, %v18434_v46  ;;  %v19112_v40 = vld [vmem:[#allocation26_spill] sm:$0xff] }
 0x80b   :  { %v12543_v21 = vpop.eup %12542  ;;  %8948 = vst [vmem:[%s18844_s10 + $0x3b0] sm:$0xff] %v12541_v22  ;;  %12562 = vpow2.f32 %v9830_v54  ;;  %v9857_v61 = vmul.f32 -1.442695, %v6490_v63 }
 0x80c   :  { %v12545_v58 = vpop.eup %12544  ;;  %v7795_v7 = vadd.f32 1.0, %v12543_v21  ;;  %12564 = vpow2.f32 %v9832_v56  ;;  %v9878_v21 = vmul.f32 -1.442695, %v6379_v5 }
 0x80d   :  { %v12547_v1 = vpop.eup %12546  ;;  %v7797_v0 = vadd.f32 1.0, %v12545_v58  ;;  %12566 = vpow2.f32 %v9831_v51  ;;  %v19107_v51 = vld [vmem:[#allocation6_spill] sm:$0xff]  ;;  %v19108_v58 = vld [vmem:[#allocation17_spill] sm:$0xff] }
 0x80e   :  { %v12549_v17 = vpop.eup %12548  ;;  %12568 = vrcp.f32 %v7795_v7  ;;  %v7818_v34 = vadd.f32 1.0, %v12547_v1  ;;  %v6494_v62 = vadd.f32 %v19107_v51, %v18446_v6  ;;  %v6385_v7 = vadd.f32 %v19108_v58, %v18421_v59 }
 0x80f   :  { %v12551_v41 = vpop.eup %12550  ;;  %12570 = vrcp.f32 %v7797_v0  ;;  %v7820_v18 = vadd.f32 1.0, %v12549_v17  ;;  %v9880_v0 = vmul.f32 -1.442695, %v6492_v11  ;;  %v19109_v17 = vld [vmem:[#allocation20_spill] sm:$0xff]  ;;  %v6502_v51 = vadd.f32 %v18328_v50, %v18426_v55 }
 0x810   :  { %v12553_v29 = vpop.eup %12552  ;;  %12572 = vrcp.f32 %v7818_v34  ;;  %v7819_v8 = vadd.f32 1.0, %v12551_v41  ;;  %v6498_v34 = vadd.f32 %v19109_v17, %v18426_v55 }
 0x811   :  { %v12555_v20 = vpop.eup %12554  ;;  %12574 = vrcp.f32 %v7820_v18  ;;  %v7821_v36 = vadd.f32 1.0, %v12553_v29  ;;  %v9879_v18 = vmul.f32 -1.442695, %v6381_v26  ;;  %v19110_v29 = vld [vmem:[#allocation23_spill] sm:$0xff]  ;;  %v6389_v26 = vadd.f32 %v19112_v40, %v18421_v59 }
 0x812   :  { %v12557_v9 = vpop.eup %12556  ;;  %12576 = vrcp.f32 %v7819_v8  ;;  %v7842_v49 = vadd.f32 1.0, %v12555_v20  ;;  %v6387_v8 = vadd.f32 %v19110_v29, %v18434_v46  ;;  %v9904_v13 = vmul.f32 -1.442695, %v6498_v34 }
 0x813   :  { %v12559_v30 = vpop.eup %12558  ;;  %12578 = vrcp.f32 %v7821_v36  ;;  %v7844_v60 = vadd.f32 1.0, %v12557_v9  ;;  %v9881_v36 = vmul.f32 -1.442695, %v6494_v62  ;;  %v19111_v9 = vld [vmem:[#allocation25_spill] sm:$0xff]  ;;  %v9926_v34 = vmul.f32 -1.442695, %v6389_v26 }
 0x814   :  { %v12561_v10 = vpop.eup %12560  ;;  %12580 = vrcp.f32 %v7842_v49  ;;  %v7843_v24 = vadd.f32 1.0, %v12559_v30  ;;  %v6500_v49 = vadd.f32 %v19111_v9, %v18446_v6  ;;  %v9928_v29 = vmul.f32 -1.442695, %v6502_v51  ;;  %v19113_v9 = vld [vmem:[#allocation27_spill] sm:$0xff] }
 0x815   :  { %v12563_v3 = vpop.eup %12562  ;;  %12582 = vrcp.f32 %v7844_v60  ;;  %v7845_v33 = vadd.f32 1.0, %v12561_v10  ;;  %v9902_v60 = vmul.f32 -1.442695, %v6385_v7 }
 0x816   :  { %v12565_v25 = vpop.eup %12564  ;;  %12584 = vrcp.f32 %v7843_v24  ;;  %v7866_v45 = vadd.f32 1.0, %v12563_v3  ;;  %v9903_v24 = vmul.f32 -1.442695, %v6387_v8  ;;  %v9905_v3 = vmul.f32 -1.442695, %v6500_v49 }
 0x817   :  { %v12567_v15 = vpop.eup %12566  ;;  %12586 = vrcp.f32 %v7845_v33  ;;  %v7868_v23 = vadd.f32 1.0, %v12565_v25 }
 0x818   :  { %v12569_v32 = vpop.eup %12568  ;;  %12588 = vrcp.f32 %v7866_v45  ;;  %v7867_v31 = vadd.f32 1.0, %v12567_v15 }
 0x819   :  { %v12571_v53 = vpop.eup %12570  ;;  %8947 = vst [vmem:[%s18844_s10 + $0x3a8] sm:$0xff] %v12569_v32  ;;  %12590 = vrcp.f32 %v7868_v23 }
 0x81a   :  { %v12573_v54 = vpop.eup %12572  ;;  %8949 = vst [vmem:[%s18844_s10 + $0x3b8] sm:$0xff] %v12571_v53  ;;  %12592 = vrcp.f32 %v7867_v31 }
 0x81b   :  { %v12575_v56 = vpop.eup %12574  ;;  %8970 = vst [vmem:[%s18844_s10 + $0x460] sm:$0xff] %v12573_v54  ;;  %12594 = vpow2.f32 %v9833_v43 }
 0x81c   :  { %v12577_v22 = vpop.eup %12576  ;;  %8972 = vst [vmem:[%s18844_s10 + $0x470] sm:$0xff] %v12575_v56  ;;  %12596 = vpow2.f32 %v9854_v28 }
 0x81d   :  { %v12579_v1 = vpop.eup %12578  ;;  %8971 = vst [vmem:[%s18844_s10 + $0x468] sm:$0xff] %v12577_v22  ;;  %12598 = vpow2.f32 %v9856_v2 }
 0x81e   :  { %v12581_v41 = vpop.eup %12580  ;;  %8973 = vst [vmem:[%s18844_s10 + $0x478] sm:$0xff] %v12579_v1  ;;  %12600 = vpow2.f32 %v9855_v38  ;;  %v6504_v1 = vadd.f32 %v18342_v42, %v18446_v6 }
 0x81f   :  { %v12583_v20 = vpop.eup %12582  ;;  %8994 = vst [vmem:[%s18844_s10 + $0x520] sm:$0xff] %v12581_v41  ;;  %12602 = vpow2.f32 %v9857_v61  ;;  %v6395_v41 = vadd.f32 %v18372_v35, %v18421_v59 }
 0x820   :  { %v12585_v30 = vpop.eup %12584  ;;  %8996 = vst [vmem:[%s18844_s10 + $0x530] sm:$0xff] %v12583_v20  ;;  %12604 = vpow2.f32 %v9878_v21  ;;  %v6391_v21 = vadd.f32 %v18340_v19, %v18434_v46  ;;  %v6508_v19 = vadd.f32 %v18374_v37, %v18426_v55  ;;  %v6397_v20 = vadd.f32 %v18379_v39, %v18434_v46 }
 0x821   :  { %v12587_v16 = vpop.eup %12586  ;;  %8995 = vst [vmem:[%s18844_s10 + $0x528] sm:$0xff] %v12585_v30  ;;  %12606 = vpow2.f32 %v9880_v0  ;;  %v9929_v35 = vmul.f32 -1.442695, %v6504_v1  ;;  %v6510_v37 = vadd.f32 %v19113_v9, %v18446_v6  ;;  %v9950_v30 = vmul.f32 -1.442695, %v6395_v41 }
 0x822   :  { %v12589_v10 = vpop.eup %12588  ;;  %8997 = vst [vmem:[%s18844_s10 + $0x538] sm:$0xff] %v12587_v16  ;;  %12608 = vpow2.f32 %v9879_v18  ;;  %v9927_v42 = vmul.f32 -1.442695, %v6391_v21 }
 0x823   :  { %v12591_v14 = vpop.eup %12590  ;;  %9018 = vst [vmem:[%s18844_s10 + $0x5e0] sm:$0xff] %v12589_v10  ;;  %12610 = vpow2.f32 %v9881_v36  ;;  %v19115_v10 = vld [vmem:[#allocation28_spill] sm:$0xff] }
 0x824   :  { %v12593_v33 = vpop.eup %12592  ;;  %9020 = vst [vmem:[%s18844_s10 + $0x5f0] sm:$0xff] %v12591_v14  ;;  %12612 = vpow2.f32 %v9902_v60  ;;  %v19114_v60 = vld [vmem:[#allocation2_spill] sm:$0xff] }
 0x825   :  { %v12595_v57 = vpop.eup %12594  ;;  %9019 = vst [vmem:[%s18844_s10 + $0x5e8] sm:$0xff] %v12593_v33  ;;  %12614 = vpow2.f32 %v9904_v13  ;;  %v6399_v39 = vadd.f32 %v19114_v60, %v18421_v59  ;;  %v9952_v13 = vmul.f32 -1.442695, %v6508_v19  ;;  %v19116_v33 = vld [vmem:[#allocation29_spill] sm:$0xff]  ;;  %v19119_v19 = vld [vmem:[#allocation32_spill] sm:$0xff]  ;;  %v6409_v60 = vadd.f32 %v18453_v27, %v18421_v59 }
 0x826   :  { %v12597_v25 = vpop.eup %12596  ;;  %v7869_v45 = vadd.f32 1.0, %v12595_v57  ;;  %12616 = vpow2.f32 %v9903_v24  ;;  %v6512_v24 = vadd.f32 %v19115_v10, %v18426_v55  ;;  %v6401_v57 = vadd.f32 %v19116_v33, %v18434_v46 }
 0x827   :  { %v12599_v4 = vpop.eup %12598  ;;  %v7890_v15 = vadd.f32 1.0, %v12597_v25  ;;  %12618 = vpow2.f32 %v9905_v3  ;;  %v9951_v3 = vmul.f32 -1.442695, %v6397_v20  ;;  %v6522_v10 = vadd.f32 %v18455_v12, %v18426_v55 }
 0x828   :  { %v12601_v23 = vpop.eup %12600  ;;  %12620 = vrcp.f32 %v7869_v45  ;;  %v7892_v43 = vadd.f32 1.0, %v12599_v4  ;;  %v9953_v45 = vmul.f32 -1.442695, %v6510_v37  ;;  %v19117_v4 = vld [vmem:[#allocation30_spill] sm:$0xff]  ;;  %v6520_v37 = vadd.f32 %v18438_v47, %v18446_v6 }
 0x829   :  { %v12603_v63 = vpop.eup %12602  ;;  %12622 = vrcp.f32 %v7890_v15  ;;  %v7891_v32 = vadd.f32 1.0, %v12601_v23  ;;  %v6514_v15 = vadd.f32 %v19117_v4, %v18446_v6  ;;  %v6411_v47 = vadd.f32 %v18467_v48, %v18434_v46 }
 0x82a   :  { %v12605_v31 = vpop.eup %12604  ;;  %12624 = vrcp.f32 %v7892_v43  ;;  %v7893_v28 = vadd.f32 1.0, %v12603_v63  ;;  %v9974_v43 = vmul.f32 -1.442695, %v6399_v39  ;;  %v19118_v63 = vld [vmem:[#allocation31_spill] sm:$0xff]  ;;  %v6524_v27 = vadd.f32 %v18469_v52, %v18446_v6 }
 0x82b   :  { %v12607_v5 = vpop.eup %12606  ;;  %12626 = vrcp.f32 %v7891_v32  ;;  %v7914_v53 = vadd.f32 1.0, %v12605_v31  ;;  %v6405_v32 = vadd.f32 %v19118_v63, %v18421_v59  ;;  %v10001_v59 = vmul.f32 -1.442695, %v6520_v37 }
 0x82c   :  { %v12609_v2 = vpop.eup %12608  ;;  %12628 = vrcp.f32 %v7893_v28  ;;  %v7916_v11 = vadd.f32 1.0, %v12607_v5  ;;  %v9976_v28 = vmul.f32 -1.442695, %v6512_v24  ;;  %v10023_v6 = vmul.f32 -1.442695, %v6411_v47 }
 0x82d   :  { %v12611_v54 = vpop.eup %12610  ;;  %12630 = vrcp.f32 %v7914_v53  ;;  %v7915_v38 = vadd.f32 1.0, %v12609_v2  ;;  %v9975_v53 = vmul.f32 -1.442695, %v6401_v57  ;;  %v10025_v57 = vmul.f32 -1.442695, %v6524_v27 }
 0x82e   :  { %v12613_v56 = vpop.eup %12612  ;;  %12632 = vrcp.f32 %v7916_v11  ;;  %v7917_v61 = vadd.f32 1.0, %v12611_v54  ;;  %v9977_v11 = vmul.f32 -1.442695, %v6514_v15 }
 0x82f   :  { %v12615_v62 = vpop.eup %12614  ;;  %12634 = vrcp.f32 %v7915_v38  ;;  %v7938_v22 = vadd.f32 1.0, %v12613_v56  ;;  %v9998_v38 = vmul.f32 -1.442695, %v6405_v32 }
 0x830   :  { %v12617_v58 = vpop.eup %12616  ;;  %12636 = vrcp.f32 %v7917_v61  ;;  %v7940_v7 = vadd.f32 1.0, %v12615_v62 }
 0x831   :  { %v12619_v0 = vpop.eup %12618  ;;  %12638 = vrcp.f32 %v7938_v22  ;;  %v7939_v17 = vadd.f32 1.0, %v12617_v58 }
 0x832   :  { %v12621_v50 = vpop.eup %12620  ;;  %12640 = vrcp.f32 %v7940_v7  ;;  %v7941_v18 = vadd.f32 1.0, %v12619_v0 }
 0x833   :  { %v12623_v8 = vpop.eup %12622  ;;  %9021 = vst [vmem:[%s18844_s10 + $0x5f8] sm:$0xff] %v12621_v50  ;;  %12642 = vrcp.f32 %v7939_v17 }
 0x834   :  { %v12625_v36 = vpop.eup %12624  ;;  %9042 = vst [vmem:[%s18844_s10 + $0x6a0] sm:$0xff] %v12623_v8  ;;  %12644 = vrcp.f32 %v7941_v18  ;;  %v6518_v8 = vadd.f32 %v19119_v19, %v18426_v55  ;;  %v10022_v55 = vmul.f32 -1.442695, %v6409_v60 }
 0x835   :  { %v12627_v49 = vpop.eup %12626  ;;  %9044 = vst [vmem:[%s18844_s10 + $0x6b0] sm:$0xff] %v12625_v36  ;;  %12646 = vpow2.f32 %v9926_v34  ;;  %v6407_v36 = vadd.f32 %v18436_v44, %v18434_v46  ;;  %v10024_v46 = vmul.f32 -1.442695, %v6522_v10 }
 0x836   :  { %v12629_v16 = vpop.eup %12628  ;;  %9043 = vst [vmem:[%s18844_s10 + $0x6a8] sm:$0xff] %v12627_v49  ;;  %12648 = vpow2.f32 %v9928_v29 }
 0x837   :  { %v12631_v14 = vpop.eup %12630  ;;  %9045 = vst [vmem:[%s18844_s10 + $0x6b8] sm:$0xff] %v12629_v16  ;;  %12650 = vpow2.f32 %v9927_v42 }
 0x838   :  { %v12633_v25 = vpop.eup %12632  ;;  %9066 = vst [vmem:[%s18844_s10 + $0x760] sm:$0xff] %v12631_v14  ;;  %12652 = vpow2.f32 %v9929_v35  ;;  %v9999_v14 = vmul.f32 -1.442695, %v6407_v36 }
 0x839   :  { %v12635_v23 = vpop.eup %12634  ;;  %9068 = vst [vmem:[%s18844_s10 + $0x770] sm:$0xff] %v12633_v25  ;;  %12654 = vpow2.f32 %v9950_v30 }
 0x83a   :  { %v12637_v31 = vpop.eup %12636  ;;  %9067 = vst [vmem:[%s18844_s10 + $0x768] sm:$0xff] %v12635_v23  ;;  %12656 = vpow2.f32 %v9952_v13  ;;  %v10000_v13 = vmul.f32 -1.442695, %v6518_v8 }
 0x83b   :  { %v12639_v5 = vpop.eup %12638  ;;  %9069 = vst [vmem:[%s18844_s10 + $0x778] sm:$0xff] %v12637_v31  ;;  %12658 = vpow2.f32 %v9951_v3 }
 0x83c   :  { %v12641_v2 = vpop.eup %12640  ;;  %9090 = vst [vmem:[%s18844_s10 + $0x820] sm:$0xff] %v12639_v5  ;;  %12660 = vpow2.f32 %v9953_v45 }
 0x83d   :  { %v12643_v54 = vpop.eup %12642  ;;  %9092 = vst [vmem:[%s18844_s10 + $0x830] sm:$0xff] %v12641_v2  ;;  %12662 = vpow2.f32 %v9974_v43 }
 0x83e   :  { %v12645_v40 = vpop.eup %12644  ;;  %9091 = vst [vmem:[%s18844_s10 + $0x828] sm:$0xff] %v12643_v54  ;;  %12664 = vpow2.f32 %v9976_v28 }
 0x83f   :  { %v12647_v26 = vpop.eup %12646  ;;  %9093 = vst [vmem:[%s18844_s10 + $0x838] sm:$0xff] %v12645_v40  ;;  %12666 = vpow2.f32 %v9975_v53 }
 0x840   :  { %v12649_v56 = vpop.eup %12648  ;;  %v7962_v61 = vadd.f32 1.0, %v12647_v26  ;;  %12668 = vpow2.f32 %v9977_v11 }
 0x841   :  { %v12651_v51 = vpop.eup %12650  ;;  %v7964_v62 = vadd.f32 1.0, %v12649_v56  ;;  %12670 = vpow2.f32 %v9998_v38 }
 0x842   :  { %v12653_v22 = vpop.eup %12652  ;;  %12672 = vrcp.f32 %v7962_v61  ;;  %v7963_v21 = vadd.f32 1.0, %v12651_v51 }
 0x843   :  { %v12655_v58 = vpop.eup %12654  ;;  %12674 = vrcp.f32 %v7964_v62  ;;  %v7965_v7 = vadd.f32 1.0, %v12653_v22 }
 0x844   :  { %v12657_v1 = vpop.eup %12656  ;;  %12676 = vrcp.f32 %v7963_v21  ;;  %v7986_v0 = vadd.f32 1.0, %v12655_v58 }
 0x845   :  { %v12659_v17 = vpop.eup %12658  ;;  %12678 = vrcp.f32 %v7965_v7  ;;  %v7988_v34 = vadd.f32 1.0, %v12657_v1 }
 0x846   :  { %v12661_v41 = vpop.eup %12660  ;;  %12680 = vrcp.f32 %v7986_v0  ;;  %v7987_v50 = vadd.f32 1.0, %v12659_v17 }
 0x847   :  { %v12663_v18 = vpop.eup %12662  ;;  %12682 = vrcp.f32 %v7988_v34  ;;  %v7989_v29 = vadd.f32 1.0, %v12661_v41 }
 0x848   :  { %v12665_v42 = vpop.eup %12664  ;;  %12684 = vrcp.f32 %v7987_v50  ;;  %v8010_v20 = vadd.f32 1.0, %v12663_v18 }
 0x849   :  { %v12667_v35 = vpop.eup %12666  ;;  %12686 = vrcp.f32 %v7989_v29  ;;  %v8012_v9 = vadd.f32 1.0, %v12665_v42 }
 0x84a   :  { %v12669_v49 = vpop.eup %12668  ;;  %12688 = vrcp.f32 %v8010_v20  ;;  %v8011_v30 = vadd.f32 1.0, %v12667_v35 }
 0x84b   :  { %v12671_v39 = vpop.eup %12670  ;;  %12690 = vrcp.f32 %v8012_v9  ;;  %v8013_v16 = vadd.f32 1.0, %v12669_v49 }
 0x84c   :  { %v12673_v44 = vpop.eup %12672  ;;  %12692 = vrcp.f32 %v8011_v30  ;;  %v8034_v24 = vadd.f32 1.0, %v12671_v39 }
 0x84d   :  { %v12675_v3 = vpop.eup %12674  ;;  %9114 = vst [vmem:[%s18844_s10 + $0x8e0] sm:$0xff] %v12673_v44  ;;  %12694 = vrcp.f32 %v8013_v16 }
 0x84e   :  { %v12677_v33 = vpop.eup %12676  ;;  %9116 = vst [vmem:[%s18844_s10 + $0x8f0] sm:$0xff] %v12675_v3  ;;  %12696 = vrcp.f32 %v8034_v24 }
 0x84f   :  { %v12679_v12 = vpop.eup %12678  ;;  %9115 = vst [vmem:[%s18844_s10 + $0x8e8] sm:$0xff] %v12677_v33  ;;  %12698 = vpow2.f32 %v10000_v13 }
 0x850   :  { %v12681_v48 = vpop.eup %12680  ;;  %9117 = vst [vmem:[%s18844_s10 + $0x8f8] sm:$0xff] %v12679_v12  ;;  %12700 = vpow2.f32 %v9999_v14 }
 0x851   :  { %v12683_v52 = vpop.eup %12682  ;;  %9138 = vst [vmem:[%s18844_s10 + $0x9a0] sm:$0xff] %v12681_v48  ;;  %12702 = vpow2.f32 %v10001_v59 }
 0x852   :  { %v12685_v25 = vpop.eup %12684  ;;  %9140 = vst [vmem:[%s18844_s10 + $0x9b0] sm:$0xff] %v12683_v52  ;;  %12704 = vpow2.f32 %v10022_v55 }
 0x853   :  { %v12687_v45 = vpop.eup %12686  ;;  %9139 = vst [vmem:[%s18844_s10 + $0x9a8] sm:$0xff] %v12685_v25  ;;  %12706 = vpow2.f32 %v10024_v46 }
 0x854   :  { %v12689_v4 = vpop.eup %12688  ;;  %9141 = vst [vmem:[%s18844_s10 + $0x9b8] sm:$0xff] %v12687_v45  ;;  %12708 = vpow2.f32 %v10023_v6 }
 0x855   :  { %v12691_v15 = vpop.eup %12690  ;;  %9162 = vst [vmem:[%s18844_s10 + $0xa60] sm:$0xff] %v12689_v4  ;;  %12710 = vpow2.f32 %v10025_v57 }
 0x856   :  { %v12693_v23 = vpop.eup %12692  ;;  %9164 = vst [vmem:[%s18844_s10 + $0xa70] sm:$0xff] %v12691_v15 }
 0x857   :  { %v12695_v43 = vpop.eup %12694  ;;  %9163 = vst [vmem:[%s18844_s10 + $0xa68] sm:$0xff] %v12693_v23 }
 0x858   :  { %v12697_v63 = vpop.eup %12696  ;;  %9165 = vst [vmem:[%s18844_s10 + $0xa78] sm:$0xff] %v12695_v43 }
 0x859   :  { %v12699_v32 = vpop.eup %12698  ;;  %9186 = vst [vmem:[%s18844_s10 + $0xb20] sm:$0xff] %v12697_v63 }
 0x85a   :  { %v12701_v31 = vpop.eup %12700  ;;  %v8036_v28 = vadd.f32 1.0, %v12699_v32 }
 0x85b   :  { %v12703_v5 = vpop.eup %12702  ;;  %v8035_v53 = vadd.f32 1.0, %v12701_v31 }
 0x85c   :  { %v12705_v2 = vpop.eup %12704  ;;  %12712 = vrcp.f32 %v8036_v28  ;;  %v8037_v11 = vadd.f32 1.0, %v12703_v5 }
 0x85d   :  { %v12707_v54 = vpop.eup %12706  ;;  %12714 = vrcp.f32 %v8035_v53  ;;  %v8058_v38 = vadd.f32 1.0, %v12705_v2 }
 0x85e   :  { %v12709_v40 = vpop.eup %12708  ;;  %12716 = vrcp.f32 %v8037_v11  ;;  %v8060_v26 = vadd.f32 1.0, %v12707_v54 }
 0x85f   :  { %v12711_v56 = vpop.eup %12710  ;;  %12718 = vrcp.f32 %v8058_v38  ;;  %v8059_v61 = vadd.f32 1.0, %v12709_v40 }
 0x860   :  { %12720 = vrcp.f32 %v8060_v26  ;;  %v8061_v51 = vadd.f32 1.0, %v12711_v56 }
 0x861   :  { %12722 = vrcp.f32 %v8059_v61 }
 0x862   :  { %12724 = vrcp.f32 %v8061_v51 }
 0x866   :  { %v12713_v62 = vpop.eup %12712 }
 0x867   :  { %v12715_v22 = vpop.eup %12714  ;;  %9188 = vst [vmem:[%s18844_s10 + $0xb30] sm:$0xff] %v12713_v62 }
 0x868   :  { %v12717_v21 = vpop.eup %12716  ;;  %9187 = vst [vmem:[%s18844_s10 + $0xb28] sm:$0xff] %v12715_v22 }
 0x869   :  { %v12719_v58 = vpop.eup %12718  ;;  %9189 = vst [vmem:[%s18844_s10 + $0xb38] sm:$0xff] %v12717_v21 }
 0x86a   :  { %v12721_v7 = vpop.eup %12720  ;;  %9210 = vst [vmem:[%s18844_s10 + $0xbe0] sm:$0xff] %v12719_v58 }
 0x86b   :  { %v12723_v1 = vpop.eup %12722  ;;  %9212 = vst [vmem:[%s18844_s10 + $0xbf0] sm:$0xff] %v12721_v7 }
 0x86c   :  { %v12725_v0 = vpop.eup %12724  ;;  %9211 = vst [vmem:[%s18844_s10 + $0xbe8] sm:$0xff] %v12723_v1 }
 0x86d   :  { %9213 = vst [vmem:[%s18844_s10 + $0xbf8] sm:$0xff] %v12725_v0 }

</bundles_post_ra>
